<compile_context>
chip_gen: v7x
topology: tpu7x:2x2x1
jax: 0.10.0
libtpu: 0.0.40
codegen_flags: <defaults>
</compile_context>

<pallas_src>
import math
import functools

import jax
import jax.numpy as jnp
from jax.experimental import pallas as pl
from jax.experimental.pallas import tpu as pltpu

VMEM = pl.BlockSpec(memory_space=pltpu.MemorySpace.VMEM)


# ------------------------- Pallas kernels -------------------------

def _front_kernel(img_ref, txt_ref, attn_ref,
                  w_img_ref, w_txt_ref, b_cat_ref,
                  w11_ref, b11_ref, w77_ref, b77_ref,
                  wqkv_ref, bqkv_ref, jw_ref,
                  gate_ref, qkv_ref, *, B, HW, C):
    """conv2d_cat + channel/spatial gates + fused (block-diagonal) q/k/v projections."""
    # text_features * attn, projected through the text columns of conv2d_cat (bias folded in).
    t = txt_ref[...] * attn_ref[...]                                        # (B, E)
    t_proj = jnp.dot(t, w_txt_ref[...],
                     preferred_element_type=jnp.float32) + b_cat_ref[...]   # (B, C)

    # image columns of conv2d_cat, lane-dense (B*HW, C) @ (C, C).
    vl_flat = jnp.dot(img_ref[...], w_img_ref[...],
                      preferred_element_type=jnp.float32)                   # (B*HW, C)
    vl = vl_flat.reshape(B, HW, C) + t_proj[:, None, :]                     # (B, HW, C)

    # channel gate: mean over spatial -> conv2d_11 ; spatial gate: mean over C -> conv2d_77.
    gate_ch = jnp.mean(vl, axis=1)                                          # (B, C)
    att_ch = jnp.dot(gate_ch, w11_ref[...],
                     preferred_element_type=jnp.float32) + b11_ref[...]     # (B, C)
    gate_sp = jnp.mean(vl, axis=2)                                          # (B, HW)
    att_sp = jnp.sum(gate_sp * w77_ref[...], axis=1,
                     keepdims=True) + b77_ref[...]                          # (B, 1)

    # joint gate with joint_w folded in: jw * sigmoid(att_ch) * sigmoid(att_sp).
    gate_ref[...] = jw_ref[...] * jax.nn.sigmoid(att_ch) * jax.nn.sigmoid(att_sp)

    # fused q/k/v 1x1 convs for all heads at once: (B*HW, C) @ (C, 3C) + bias.
    qkv_ref[...] = (jnp.dot(vl.reshape(B * HW, C), wqkv_ref[...],
                            preferred_element_type=jnp.float32) + bqkv_ref[...])


def _attention_kernel(k_ref, v_ref, q_ref, o_ref, *, B, nh, scale):
    """All B*nh head attentions, attention matrices kept entirely in VMEM.

    k_ref/q_ref: (B*nh, HW, hidden) torch-.view layout; v_ref: (B*nh, hidden, HW).
    Legacy nn.Softmax() on each per-head (B, HW, HW) tensor == softmax over the batch dim,
    so groups g = b*nh + n with the same head n are normalised jointly across b.
    """
    HWd = k_ref.shape[1]
    # per-group raw scores (unrolled; B*nh is small and the grid is a sequential loop anyway).
    s = [jnp.dot(k_ref[g], v_ref[g], preferred_element_type=jnp.float32) * scale
         for g in range(B * nh)]                                            # each (HW, HW)

    for n in range(nh):
        grp = [s[b * nh + n] for b in range(B)]
        m = grp[0]
        for t in grp[1:]:
            m = jnp.maximum(m, t)
        es = [jnp.exp(t - m) for t in grp]
        denom = es[0]
        for t in es[1:]:
            denom = denom + t
        # TODO(synk): nn.Dropout(0.1) on the attention matrix is identity at inference;
        # training-mode RNG dropout is not implemented.
        for b in range(B):
            att = es[b] / denom                                             # (HW, HW)
            o_ref[b * nh + n] = jnp.dot(att, q_ref[b * nh + n],
                                        preferred_element_type=jnp.float32)


def _tail_kernel(sa_ref, img_ref, gate_ref, wfin_ref, bfin_ref,
                 wfc_ref, bfc_ref, sw_ref, o_ref, *, B, HW, C, eps):
    """conv2d_11_finl + gated composite + GeM(p=3) + Linear + L2-normalisation."""
    sa = (jnp.dot(sa_ref[...], wfin_ref[...],
                  preferred_element_type=jnp.float32) + bfin_ref[...]).reshape(B, HW, C)
    comp = (gate_ref[...][:, None, :] * img_ref[...].reshape(B, HW, C)
            + sw_ref[...] * sa)                                             # (B, HW, C)

    # GeneralizedMeanPooling(norm=3): clamp(min=eps)**3 (as x*x*x), spatial mean, **(1/3).
    x = jnp.maximum(comp, eps)
    pooled = jnp.mean(x * x * x, axis=1)                                    # (B, C)
    root = jnp.exp(jnp.log(pooled) * (1.0 / 3.0))                           # (B, C), pooled > 0

    y = jnp.dot(root, wfc_ref[...],
                preferred_element_type=jnp.float32) + bfc_ref[...]          # (B, E)
    o_ref[...] = y * jax.lax.rsqrt(jnp.sum(y * y, axis=-1, keepdims=True))


# ------------------------- parameter packing (done once) -------------------------

def init_params(key, C, E, nh):
    hidden = C // nh
    ks = jax.random.split(key, 16)

    def w(k, shape, scale=0.05):
        return (scale * jax.random.normal(k, shape)).astype(jnp.float32)

    return {
        "w_cat": w(ks[0], (C, C + E)), "b_cat": w(ks[1], (C,)),        # conv2d_cat
        "w_11":  w(ks[2], (C, C)),     "b_11":  w(ks[3], (C,)),        # conv2d_11
        "w_77":  w(ks[4], (1, 1, 7, 7)), "b_77": w(ks[5], (1,)),       # conv2d_77
        "w_q":   w(ks[6], (hidden, hidden)), "b_q": w(ks[7], (hidden,)),
        "w_k":   w(ks[8], (hidden, hidden)), "b_k": w(ks[9], (hidden,)),
        "w_v":   w(ks[10], (hidden, hidden)), "b_v": w(ks[11], (hidden,)),
        "w_fin": w(ks[12], (C, C)),    "b_fin": w(ks[13], (C,)),       # conv2d_11_finl
        "w_fc":  w(ks[14], (E, C)),    "b_fc":  w(ks[15], (E,)),       # final Linear
        "joint_w": 1.0,   # nn.Parameter([1.0])
        "self_w": 0.0,    # nn.Parameter([0.0])
    }


def prepare_params(params, num_heads):
    """Pre-transpose / pre-pack all weights once (no per-forward .T / .astype / reshape)."""
    C = params["w_11"].shape[0]
    E = params["w_fc"].shape[0]
    nh = num_heads

    eye = jnp.eye(nh, dtype=jnp.float32)
    # block-diagonal per-head weights (q/k/v convs are shared across heads), packed K|V|Q.
    wk = jnp.kron(eye, params["w_k"].T)                      # (C, C)
    wv = jnp.kron(eye, params["w_v"].T)
    wq = jnp.kron(eye, params["w_q"].T)
    w_qkv = jnp.concatenate([wk, wv, wq], axis=1)            # (C, 3C)
    b_qkv = jnp.concatenate([jnp.tile(params["b_k"], nh),
                             jnp.tile(params["b_v"], nh),
                             jnp.tile(params["b_q"], nh)]).reshape(1, 3 * C)

    return {
        "w_cat_img_T": jnp.asarray(params["w_cat"][:, :C].T, jnp.float32),   # (C, C)
        "w_cat_txt_T": jnp.asarray(params["w_cat"][:, C:].T, jnp.float32),   # (E, C)
        "b_cat": params["b_cat"].reshape(1, C),
        "w11_T": jnp.asarray(params["w_11"].T, jnp.float32),
        "b11": params["b_11"].reshape(1, C),
        "w77": params["w_77"].reshape(1, -1),                                # (1, 49)
        "b77": params["b_77"].reshape(1, 1),
        "w_qkv": w_qkv, "b_qkv": b_qkv,
        "w_fin_T": jnp.asarray(params["w_fin"].T, jnp.float32),
        "b_fin": params["b_fin"].reshape(1, C),
        "w_fc_T": jnp.asarray(params["w_fc"].T, jnp.float32),                # (C, E)
        "b_fc": params["b_fc"].reshape(1, E),
        "jw": jnp.asarray(params["joint_w"], jnp.float32).reshape(1, 1),
        "sw": jnp.asarray(params["self_w"], jnp.float32).reshape(1, 1),
    }


# ------------------------- forward -------------------------

def val_attention_forward(prep, image_features, attn, text_features, id_=None,
                          num_heads=4):
    B, C, H, W = image_features.shape
    E = text_features.shape[-1]
    nh = num_heads
    hidden = C // nh
    HW = H * W

    # NCHW -> lane-dense NHWC-flat (lanes = C = 128); reused by the front and tail kernels.
    img_nhwc = jnp.transpose(image_features, (0, 2, 3, 1)).reshape(B * HW, C)

    joint_gate, qkv = pl.pallas_call(
        functools.partial(_front_kernel, B=B, HW=HW, C=C),
        out_shape=(jax.ShapeDtypeStruct((B, C), jnp.float32),
                   jax.ShapeDtypeStruct((B * HW, 3 * C), jnp.float32)),
        in_specs=[VMEM] * 13,
        out_specs=(VMEM, VMEM),
    )(img_nhwc, text_features, attn,
      prep["w_cat_img_T"], prep["w_cat_txt_T"], prep["b_cat"],
      prep["w11_T"], prep["b11"], prep["w77"], prep["b77"],
      prep["w_qkv"], prep["b_qkv"], prep["jw"])

    # Reproduce the torch raw-.view layouts: NHWC -> per-head NCHW buffer, then raw reshapes.
    # (Done as one tiny XLA transpose so the Pallas kernels never need non-tileable reshapes.)
    qkv_nchw = jnp.transpose(qkv.reshape(B, HW, 3, nh, hidden), (2, 0, 3, 4, 1))
    k_viewed = qkv_nchw[0].reshape(B * nh, HW, hidden)   # keys.view(B, HW, hidden)
    v_nchw = qkv_nchw[1].reshape(B * nh, hidden, HW)     # values.view(-1, hidden, HW)
    q_viewed = qkv_nchw[2].reshape(B * nh, HW, hidden)   # queries.view(B, HW, hidden)

    att_out = pl.pallas_call(
        functools.partial(_attention_kernel, B=B, nh=nh,
                          scale=1.0 / math.sqrt(hidden)),
        out_shape=jax.ShapeDtypeStruct((B * nh, HW, hidden), jnp.float32),
        in_specs=[VMEM] * 3,
        out_specs=VMEM,
    )(k_viewed, v_nchw, q_viewed)

    # torch att_out.view(B, hidden, h, w) per head + cat(dim=1) == raw reshape to NCHW;
    # transpose to NHWC-flat for the lane-dense tail kernel.
    self_att_nhwc = jnp.transpose(att_out.reshape(B, nh, hidden, HW),
                                  (0, 3, 1, 2)).reshape(B * HW, C)

    return pl.pallas_call(
        functools.partial(_tail_kernel, B=B, HW=HW, C=C, eps=1e-6),
        out_shape=jax.ShapeDtypeStruct((B, E), jnp.float32),
        in_specs=[VMEM] * 8,
        out_specs=VMEM,
    )(self_att_nhwc, img_nhwc, joint_gate,
      prep["w_fin_T"], prep["b_fin"], prep["w_fc_T"], prep["b_fc"], prep["sw"])


if __name__ == "__main__":
    # Small synthetic config: image_channel=128, embed_dim=32, num_heads=4, 7x7 feature map
    # (the module's conv2d_77 'valid' conv requires the 7x7 spatial size).
    B, C, E, NH, H, W = 2, 128, 32, 4, 7, 7
    key = jax.random.PRNGKey(0)
    k_img, k_txt, k_attn, k_par = jax.random.split(key, 4)

    image_features = jax.random.normal(k_img, (B, C, H, W), jnp.float32)
    text_features = jax.random.normal(k_txt, (B, E), jnp.float32)
    attn = jax.random.normal(k_attn, (B, E), jnp.float32)

    params = init_params(k_par, C, E, NH)
    prep = prepare_params(params, NH)   # one-time weight packing, hoisted out of the forward

    fwd = jax.jit(functools.partial(val_attention_forward, num_heads=NH))
    out = fwd(prep, image_features, attn, text_features)
    out = jax.block_until_ready(out)

    assert out.shape == (B, E)
    assert bool(jnp.all(jnp.isfinite(out)))
    print("KERNEL_OK")
</pallas_src>

<mosaic_0001>
module attributes {stable_mosaic.version = 11 : i64} {
  func.func @_front_kernel(%arg0: memref<98x128xf32, #tpu.memory_space<vmem>>, %arg1: memref<2x32xf32, #tpu.memory_space<vmem>>, %arg2: memref<2x32xf32, #tpu.memory_space<vmem>>, %arg3: memref<128x128xf32, #tpu.memory_space<vmem>>, %arg4: memref<32x128xf32, #tpu.memory_space<vmem>>, %arg5: memref<1x128xf32, #tpu.memory_space<vmem>>, %arg6: memref<128x128xf32, #tpu.memory_space<vmem>>, %arg7: memref<1x128xf32, #tpu.memory_space<vmem>>, %arg8: memref<1x49xf32, #tpu.memory_space<vmem>>, %arg9: memref<1x1xf32, #tpu.memory_space<vmem>>, %arg10: memref<128x384xf32, #tpu.memory_space<vmem>>, %arg11: memref<1x384xf32, #tpu.memory_space<vmem>>, %arg12: memref<1x1xf32, #tpu.memory_space<vmem>>, %arg13: memref<2x128xf32, #tpu.memory_space<vmem>>, %arg14: memref<98x384xf32, #tpu.memory_space<vmem>>) attributes {dimension_semantics = [], scalar_prefetch = 0 : i64, scratch_operands = 0 : i64, tpu.core_type = #tpu.core_type<tc>} {
    %c0 = arith.constant 0 : index
    %c0_0 = arith.constant 0 : index
    %0 = vector.load %arg1[%c0, %c0_0] : memref<2x32xf32, #tpu.memory_space<vmem>>, vector<2x32xf32>
    %c0_1 = arith.constant 0 : index
    %c0_2 = arith.constant 0 : index
    %1 = vector.load %arg2[%c0_1, %c0_2] : memref<2x32xf32, #tpu.memory_space<vmem>>, vector<2x32xf32>
    %2 = arith.mulf %0, %1 : vector<2x32xf32>
    %c0_3 = arith.constant 0 : index
    %c0_4 = arith.constant 0 : index
    %3 = vector.load %arg4[%c0_3, %c0_4] : memref<32x128xf32, #tpu.memory_space<vmem>>, vector<32x128xf32>
    %cst = arith.constant dense<0.000000e+00> : vector<2x128xf32>
    %4 = tpu.matmul %2, %3, %cst {dimension_numbers = #tpu.dot_dimension_numbers<[1], [0], [0], [1], [0, 0, 1, 1], [], []>} : vector<2x32xf32>, vector<32x128xf32>, vector<2x128xf32> -> vector<2x128xf32>
    %c0_5 = arith.constant 0 : index
    %c0_6 = arith.constant 0 : index
    %5 = vector.load %arg5[%c0_5, %c0_6] : memref<1x128xf32, #tpu.memory_space<vmem>>, vector<1x128xf32>
    %6 = vector.broadcast %5 : vector<1x128xf32> to vector<2x128xf32>
    %7 = arith.addf %4, %6 : vector<2x128xf32>
    %c0_7 = arith.constant 0 : index
    %c0_8 = arith.constant 0 : index
    %8 = vector.load %arg0[%c0_7, %c0_8] : memref<98x128xf32, #tpu.memory_space<vmem>>, vector<98x128xf32>
    %c0_9 = arith.constant 0 : index
    %c0_10 = arith.constant 0 : index
    %9 = vector.load %arg3[%c0_9, %c0_10] : memref<128x128xf32, #tpu.memory_space<vmem>>, vector<128x128xf32>
    %cst_11 = arith.constant dense<0.000000e+00> : vector<98x128xf32>
    %10 = tpu.matmul %8, %9, %cst_11 {dimension_numbers = #tpu.dot_dimension_numbers<[1], [0], [0], [1], [0, 0, 1, 1], [], []>} : vector<98x128xf32>, vector<128x128xf32>, vector<98x128xf32> -> vector<98x128xf32>
    %11 = vector.shape_cast %10 : vector<98x128xf32> to vector<2x49x128xf32>
    %12 = vector.shape_cast %7 : vector<2x128xf32> to vector<2x1x128xf32>
    %13 = vector.broadcast %12 : vector<2x1x128xf32> to vector<2x49x128xf32>
    %14 = arith.addf %11, %13 : vector<2x49x128xf32>
    %cst_12 = arith.constant dense<0.000000e+00> : vector<2x128xf32>
    %15 = vector.multi_reduction <add>, %14, %cst_12 [1] : vector<2x49x128xf32> to vector<2x128xf32>
    %cst_13 = arith.constant 4.900000e+01 : f32
    %16 = vector.broadcast %cst_13 : f32 to vector<2x128xf32>
    %17 = arith.divf %15, %16 : vector<2x128xf32>
    %c0_14 = arith.constant 0 : index
    %c0_15 = arith.constant 0 : index
    %18 = vector.load %arg6[%c0_14, %c0_15] : memref<128x128xf32, #tpu.memory_space<vmem>>, vector<128x128xf32>
    %cst_16 = arith.constant dense<0.000000e+00> : vector<2x128xf32>
    %19 = tpu.matmul %17, %18, %cst_16 {dimension_numbers = #tpu.dot_dimension_numbers<[1], [0], [0], [1], [0, 0, 1, 1], [], []>} : vector<2x128xf32>, vector<128x128xf32>, vector<2x128xf32> -> vector<2x128xf32>
    %c0_17 = arith.constant 0 : index
    %c0_18 = arith.constant 0 : index
    %20 = vector.load %arg7[%c0_17, %c0_18] : memref<1x128xf32, #tpu.memory_space<vmem>>, vector<1x128xf32>
    %21 = vector.broadcast %20 : vector<1x128xf32> to vector<2x128xf32>
    %22 = arith.addf %19, %21 : vector<2x128xf32>
    %cst_19 = arith.constant dense<0.000000e+00> : vector<2x49xf32>
    %23 = vector.multi_reduction <add>, %14, %cst_19 [2] : vector<2x49x128xf32> to vector<2x49xf32>
    %cst_20 = arith.constant 1.280000e+02 : f32
    %24 = vector.broadcast %cst_20 : f32 to vector<2x49xf32>
    %25 = arith.divf %23, %24 : vector<2x49xf32>
    %c0_21 = arith.constant 0 : index
    %c0_22 = arith.constant 0 : index
    %26 = vector.load %arg8[%c0_21, %c0_22] : memref<1x49xf32, #tpu.memory_space<vmem>>, vector<1x49xf32>
    %27 = vector.broadcast %26 : vector<1x49xf32> to vector<2x49xf32>
    %28 = arith.mulf %25, %27 : vector<2x49xf32>
    %cst_23 = arith.constant dense<0.000000e+00> : vector<2xf32>
    %29 = vector.multi_reduction <add>, %28, %cst_23 [1] : vector<2x49xf32> to vector<2xf32>
    %30 = vector.shape_cast %29 : vector<2xf32> to vector<2x1xf32>
    %c0_24 = arith.constant 0 : index
    %c0_25 = arith.constant 0 : index
    %31 = vector.load %arg9[%c0_24, %c0_25] : memref<1x1xf32, #tpu.memory_space<vmem>>, vector<1x1xf32>
    %32 = vector.broadcast %31 : vector<1x1xf32> to vector<2x1xf32>
    %33 = arith.addf %30, %32 : vector<2x1xf32>
    %c0_26 = arith.constant 0 : index
    %c0_27 = arith.constant 0 : index
    %34 = vector.load %arg12[%c0_26, %c0_27] : memref<1x1xf32, #tpu.memory_space<vmem>>, vector<1x1xf32>
    %35 = arith.negf %22 : vector<2x128xf32>
    %36 = math.exp %35 : vector<2x128xf32>
    %cst_28 = arith.constant 1.000000e+00 : f32
    %37 = vector.broadcast %cst_28 : f32 to vector<2x128xf32>
    %38 = arith.addf %37, %36 : vector<2x128xf32>
    %39 = arith.divf %37, %38 : vector<2x128xf32>
    %40 = vector.broadcast %34 : vector<1x1xf32> to vector<2x128xf32>
    %41 = arith.mulf %40, %39 : vector<2x128xf32>
    %42 = arith.negf %33 : vector<2x1xf32>
    %43 = math.exp %42 : vector<2x1xf32>
    %cst_29 = arith.constant 1.000000e+00 : f32
    %44 = vector.broadcast %cst_29 : f32 to vector<2x1xf32>
    %45 = arith.addf %44, %43 : vector<2x1xf32>
    %46 = arith.divf %44, %45 : vector<2x1xf32>
    %47 = vector.broadcast %46 : vector<2x1xf32> to vector<2x128xf32>
    %48 = arith.mulf %41, %47 : vector<2x128xf32>
    %c0_30 = arith.constant 0 : index
    %c0_31 = arith.constant 0 : index
    %49 = vector.load %arg13[%c0_30, %c0_31] : memref<2x128xf32, #tpu.memory_space<vmem>>, vector<2x128xf32>
    tpu.vector_store %arg13[%c0_30, %c0_31], %48 {strides = array<i32>} : memref<2x128xf32, #tpu.memory_space<vmem>>, vector<2x128xf32>,
    %50 = vector.shape_cast %14 : vector<2x49x128xf32> to vector<98x128xf32>
    %c0_32 = arith.constant 0 : index
    %c0_33 = arith.constant 0 : index
    %51 = vector.load %arg10[%c0_32, %c0_33] : memref<128x384xf32, #tpu.memory_space<vmem>>, vector<128x384xf32>
    %cst_34 = arith.constant dense<0.000000e+00> : vector<98x384xf32>
    %52 = tpu.matmul %50, %51, %cst_34 {dimension_numbers = #tpu.dot_dimension_numbers<[1], [0], [0], [1], [0, 0, 1, 1], [], []>} : vector<98x128xf32>, vector<128x384xf32>, vector<98x384xf32> -> vector<98x384xf32>
    %c0_35 = arith.constant 0 : index
    %c0_36 = arith.constant 0 : index
    %53 = vector.load %arg11[%c0_35, %c0_36] : memref<1x384xf32, #tpu.memory_space<vmem>>, vector<1x384xf32>
    %54 = vector.broadcast %53 : vector<1x384xf32> to vector<98x384xf32>
    %55 = arith.addf %52, %54 : vector<98x384xf32>
    %c0_37 = arith.constant 0 : index
    %c0_38 = arith.constant 0 : index
    %56 = vector.load %arg14[%c0_37, %c0_38] : memref<98x384xf32, #tpu.memory_space<vmem>>, vector<98x384xf32>
    tpu.vector_store %arg14[%c0_37, %c0_38], %55 {strides = array<i32>} : memref<98x384xf32, #tpu.memory_space<vmem>>, vector<98x384xf32>,
    return
  }
}

module attributes {stable_mosaic.version = 11 : i64} {
  func.func @_attention_kernel(%arg0: memref<8x49x32xf32, #tpu.memory_space<vmem>>, %arg1: memref<8x32x49xf32, #tpu.memory_space<vmem>>, %arg2: memref<8x49x32xf32, #tpu.memory_space<vmem>>, %arg3: memref<8x49x32xf32, #tpu.memory_space<vmem>>) attributes {dimension_semantics = [], scalar_prefetch = 0 : i64, scratch_operands = 0 : i64, tpu.core_type = #tpu.core_type<tc>} {
    %c0 = arith.constant 0 : index
    %c0_0 = arith.constant 0 : index
    %c0_1 = arith.constant 0 : index
    %0 = vector.load %arg0[%c0, %c0_0, %c0_1] : memref<8x49x32xf32, #tpu.memory_space<vmem>>, vector<1x49x32xf32>
    %1 = vector.shape_cast %0 : vector<1x49x32xf32> to vector<49x32xf32>
    %c0_2 = arith.constant 0 : index
    %c0_3 = arith.constant 0 : index
    %c0_4 = arith.constant 0 : index
    %2 = vector.load %arg1[%c0_2, %c0_3, %c0_4] : memref<8x32x49xf32, #tpu.memory_space<vmem>>, vector<1x32x49xf32>
    %3 = vector.shape_cast %2 : vector<1x32x49xf32> to vector<32x49xf32>
    %cst = arith.constant dense<0.000000e+00> : vector<49x49xf32>
    %4 = tpu.matmul %1, %3, %cst {dimension_numbers = #tpu.dot_dimension_numbers<[1], [0], [0], [1], [0, 0, 1, 1], [], []>} : vector<49x32xf32>, vector<32x49xf32>, vector<49x49xf32> -> vector<49x49xf32>
    %cst_5 = arith.constant 0.176776692 : f32
    %5 = vector.broadcast %cst_5 : f32 to vector<49x49xf32>
    %6 = arith.mulf %4, %5 : vector<49x49xf32>
    %c1 = arith.constant 1 : index
    %c0_6 = arith.constant 0 : index
    %c0_7 = arith.constant 0 : index
    %7 = vector.load %arg0[%c1, %c0_6, %c0_7] : memref<8x49x32xf32, #tpu.memory_space<vmem>>, vector<1x49x32xf32>
    %8 = vector.shape_cast %7 : vector<1x49x32xf32> to vector<49x32xf32>
    %c1_8 = arith.constant 1 : index
    %c0_9 = arith.constant 0 : index
    %c0_10 = arith.constant 0 : index
    %9 = vector.load %arg1[%c1_8, %c0_9, %c0_10] : memref<8x32x49xf32, #tpu.memory_space<vmem>>, vector<1x32x49xf32>
    %10 = vector.shape_cast %9 : vector<1x32x49xf32> to vector<32x49xf32>
    %cst_11 = arith.constant dense<0.000000e+00> : vector<49x49xf32>
    %11 = tpu.matmul %8, %10, %cst_11 {dimension_numbers = #tpu.dot_dimension_numbers<[1], [0], [0], [1], [0, 0, 1, 1], [], []>} : vector<49x32xf32>, vector<32x49xf32>, vector<49x49xf32> -> vector<49x49xf32>
    %cst_12 = arith.constant 0.176776692 : f32
    %12 = vector.broadcast %cst_12 : f32 to vector<49x49xf32>
    %13 = arith.mulf %11, %12 : vector<49x49xf32>
    %c2 = arith.constant 2 : index
    %c0_13 = arith.constant 0 : index
    %c0_14 = arith.constant 0 : index
    %14 = vector.load %arg0[%c2, %c0_13, %c0_14] : memref<8x49x32xf32, #tpu.memory_space<vmem>>, vector<1x49x32xf32>
    %15 = vector.shape_cast %14 : vector<1x49x32xf32> to vector<49x32xf32>
    %c2_15 = arith.constant 2 : index
    %c0_16 = arith.constant 0 : index
    %c0_17 = arith.constant 0 : index
    %16 = vector.load %arg1[%c2_15, %c0_16, %c0_17] : memref<8x32x49xf32, #tpu.memory_space<vmem>>, vector<1x32x49xf32>
    %17 = vector.shape_cast %16 : vector<1x32x49xf32> to vector<32x49xf32>
    %cst_18 = arith.constant dense<0.000000e+00> : vector<49x49xf32>
    %18 = tpu.matmul %15, %17, %cst_18 {dimension_numbers = #tpu.dot_dimension_numbers<[1], [0], [0], [1], [0, 0, 1, 1], [], []>} : vector<49x32xf32>, vector<32x49xf32>, vector<49x49xf32> -> vector<49x49xf32>
    %cst_19 = arith.constant 0.176776692 : f32
    %19 = vector.broadcast %cst_19 : f32 to vector<49x49xf32>
    %20 = arith.mulf %18, %19 : vector<49x49xf32>
    %c3 = arith.constant 3 : index
    %c0_20 = arith.constant 0 : index
    %c0_21 = arith.constant 0 : index
    %21 = vector.load %arg0[%c3, %c0_20, %c0_21] : memref<8x49x32xf32, #tpu.memory_space<vmem>>, vector<1x49x32xf32>
    %22 = vector.shape_cast %21 : vector<1x49x32xf32> to vector<49x32xf32>
    %c3_22 = arith.constant 3 : index
    %c0_23 = arith.constant 0 : index
    %c0_24 = arith.constant 0 : index
    %23 = vector.load %arg1[%c3_22, %c0_23, %c0_24] : memref<8x32x49xf32, #tpu.memory_space<vmem>>, vector<1x32x49xf32>
    %24 = vector.shape_cast %23 : vector<1x32x49xf32> to vector<32x49xf32>
    %cst_25 = arith.constant dense<0.000000e+00> : vector<49x49xf32>
    %25 = tpu.matmul %22, %24, %cst_25 {dimension_numbers = #tpu.dot_dimension_numbers<[1], [0], [0], [1], [0, 0, 1, 1], [], []>} : vector<49x32xf32>, vector<32x49xf32>, vector<49x49xf32> -> vector<49x49xf32>
    %cst_26 = arith.constant 0.176776692 : f32
    %26 = vector.broadcast %cst_26 : f32 to vector<49x49xf32>
    %27 = arith.mulf %25, %26 : vector<49x49xf32>
    %c4 = arith.constant 4 : index
    %c0_27 = arith.constant 0 : index
    %c0_28 = arith.constant 0 : index
    %28 = vector.load %arg0[%c4, %c0_27, %c0_28] : memref<8x49x32xf32, #tpu.memory_space<vmem>>, vector<1x49x32xf32>
    %29 = vector.shape_cast %28 : vector<1x49x32xf32> to vector<49x32xf32>
    %c4_29 = arith.constant 4 : index
    %c0_30 = arith.constant 0 : index
    %c0_31 = arith.constant 0 : index
    %30 = vector.load %arg1[%c4_29, %c0_30, %c0_31] : memref<8x32x49xf32, #tpu.memory_space<vmem>>, vector<1x32x49xf32>
    %31 = vector.shape_cast %30 : vector<1x32x49xf32> to vector<32x49xf32>
    %cst_32 = arith.constant dense<0.000000e+00> : vector<49x49xf32>
    %32 = tpu.matmul %29, %31, %cst_32 {dimension_numbers = #tpu.dot_dimension_numbers<[1], [0], [0], [1], [0, 0, 1, 1], [], []>} : vector<49x32xf32>, vector<32x49xf32>, vector<49x49xf32> -> vector<49x49xf32>
    %cst_33 = arith.constant 0.176776692 : f32
    %33 = vector.broadcast %cst_33 : f32 to vector<49x49xf32>
    %34 = arith.mulf %32, %33 : vector<49x49xf32>
    %c5 = arith.constant 5 : index
    %c0_34 = arith.constant 0 : index
    %c0_35 = arith.constant 0 : index
    %35 = vector.load %arg0[%c5, %c0_34, %c0_35] : memref<8x49x32xf32, #tpu.memory_space<vmem>>, vector<1x49x32xf32>
    %36 = vector.shape_cast %35 : vector<1x49x32xf32> to vector<49x32xf32>
    %c5_36 = arith.constant 5 : index
    %c0_37 = arith.constant 0 : index
    %c0_38 = arith.constant 0 : index
    %37 = vector.load %arg1[%c5_36, %c0_37, %c0_38] : memref<8x32x49xf32, #tpu.memory_space<vmem>>, vector<1x32x49xf32>
    %38 = vector.shape_cast %37 : vector<1x32x49xf32> to vector<32x49xf32>
    %cst_39 = arith.constant dense<0.000000e+00> : vector<49x49xf32>
    %39 = tpu.matmul %36, %38, %cst_39 {dimension_numbers = #tpu.dot_dimension_numbers<[1], [0], [0], [1], [0, 0, 1, 1], [], []>} : vector<49x32xf32>, vector<32x49xf32>, vector<49x49xf32> -> vector<49x49xf32>
    %cst_40 = arith.constant 0.176776692 : f32
    %40 = vector.broadcast %cst_40 : f32 to vector<49x49xf32>
    %41 = arith.mulf %39, %40 : vector<49x49xf32>
    %c6 = arith.constant 6 : index
    %c0_41 = arith.constant 0 : index
    %c0_42 = arith.constant 0 : index
    %42 = vector.load %arg0[%c6, %c0_41, %c0_42] : memref<8x49x32xf32, #tpu.memory_space<vmem>>, vector<1x49x32xf32>
    %43 = vector.shape_cast %42 : vector<1x49x32xf32> to vector<49x32xf32>
    %c6_43 = arith.constant 6 : index
    %c0_44 = arith.constant 0 : index
    %c0_45 = arith.constant 0 : index
    %44 = vector.load %arg1[%c6_43, %c0_44, %c0_45] : memref<8x32x49xf32, #tpu.memory_space<vmem>>, vector<1x32x49xf32>
    %45 = vector.shape_cast %44 : vector<1x32x49xf32> to vector<32x49xf32>
    %cst_46 = arith.constant dense<0.000000e+00> : vector<49x49xf32>
    %46 = tpu.matmul %43, %45, %cst_46 {dimension_numbers = #tpu.dot_dimension_numbers<[1], [0], [0], [1], [0, 0, 1, 1], [], []>} : vector<49x32xf32>, vector<32x49xf32>, vector<49x49xf32> -> vector<49x49xf32>
    %cst_47 = arith.constant 0.176776692 : f32
    %47 = vector.broadcast %cst_47 : f32 to vector<49x49xf32>
    %48 = arith.mulf %46, %47 : vector<49x49xf32>
    %c7 = arith.constant 7 : index
    %c0_48 = arith.constant 0 : index
    %c0_49 = arith.constant 0 : index
    %49 = vector.load %arg0[%c7, %c0_48, %c0_49] : memref<8x49x32xf32, #tpu.memory_space<vmem>>, vector<1x49x32xf32>
    %50 = vector.shape_cast %49 : vector<1x49x32xf32> to vector<49x32xf32>
    %c7_50 = arith.constant 7 : index
    %c0_51 = arith.constant 0 : index
    %c0_52 = arith.constant 0 : index
    %51 = vector.load %arg1[%c7_50, %c0_51, %c0_52] : memref<8x32x49xf32, #tpu.memory_space<vmem>>, vector<1x32x49xf32>
    %52 = vector.shape_cast %51 : vector<1x32x49xf32> to vector<32x49xf32>
    %cst_53 = arith.constant dense<0.000000e+00> : vector<49x49xf32>
    %53 = tpu.matmul %50, %52, %cst_53 {dimension_numbers = #tpu.dot_dimension_numbers<[1], [0], [0], [1], [0, 0, 1, 1], [], []>} : vector<49x32xf32>, vector<32x49xf32>, vector<49x49xf32> -> vector<49x49xf32>
    %cst_54 = arith.constant 0.176776692 : f32
    %54 = vector.broadcast %cst_54 : f32 to vector<49x49xf32>
    %55 = arith.mulf %53, %54 : vector<49x49xf32>
    %56 = arith.maximumf %6, %34 : vector<49x49xf32>
    %57 = arith.subf %6, %56 : vector<49x49xf32>
    %58 = math.exp %57 : vector<49x49xf32>
    %59 = arith.subf %34, %56 : vector<49x49xf32>
    %60 = math.exp %59 : vector<49x49xf32>
    %61 = arith.addf %58, %60 : vector<49x49xf32>
    %62 = arith.divf %58, %61 : vector<49x49xf32>
    %c0_55 = arith.constant 0 : index
    %c0_56 = arith.constant 0 : index
    %c0_57 = arith.constant 0 : index
    %63 = vector.load %arg2[%c0_55, %c0_56, %c0_57] : memref<8x49x32xf32, #tpu.memory_space<vmem>>, vector<1x49x32xf32>
    %64 = vector.shape_cast %63 : vector<1x49x32xf32> to vector<49x32xf32>
    %cst_58 = arith.constant dense<0.000000e+00> : vector<49x32xf32>
    %65 = tpu.matmul %62, %64, %cst_58 {dimension_numbers = #tpu.dot_dimension_numbers<[1], [0], [0], [1], [0, 0, 1, 1], [], []>} : vector<49x49xf32>, vector<49x32xf32>, vector<49x32xf32> -> vector<49x32xf32>
    %c0_59 = arith.constant 0 : index
    %c0_60 = arith.constant 0 : index
    %c0_61 = arith.constant 0 : index
    %66 = vector.load %arg3[%c0_59, %c0_60, %c0_61] : memref<8x49x32xf32, #tpu.memory_space<vmem>>, vector<1x49x32xf32>
    %67 = vector.shape_cast %66 : vector<1x49x32xf32> to vector<49x32xf32>
    %68 = vector.shape_cast %65 : vector<49x32xf32> to vector<1x49x32xf32>
    tpu.vector_store %arg3[%c0_59, %c0_60, %c0_61], %68 {strides = array<i32>} : memref<8x49x32xf32, #tpu.memory_space<vmem>>, vector<1x49x32xf32>,
    %69 = arith.divf %60, %61 : vector<49x49xf32>
    %c4_62 = arith.constant 4 : index
    %c0_63 = arith.constant 0 : index
    %c0_64 = arith.constant 0 : index
    %70 = vector.load %arg2[%c4_62, %c0_63, %c0_64] : memref<8x49x32xf32, #tpu.memory_space<vmem>>, vector<1x49x32xf32>
    %71 = vector.shape_cast %70 : vector<1x49x32xf32> to vector<49x32xf32>
    %cst_65 = arith.constant dense<0.000000e+00> : vector<49x32xf32>
    %72 = tpu.matmul %69, %71, %cst_65 {dimension_numbers = #tpu.dot_dimension_numbers<[1], [0], [0], [1], [0, 0, 1, 1], [], []>} : vector<49x49xf32>, vector<49x32xf32>, vector<49x32xf32> -> vector<49x32xf32>
    %c4_66 = arith.constant 4 : index
    %c0_67 = arith.constant 0 : index
    %c0_68 = arith.constant 0 : index
    %73 = vector.load %arg3[%c4_66, %c0_67, %c0_68] : memref<8x49x32xf32, #tpu.memory_space<vmem>>, vector<1x49x32xf32>
    %74 = vector.shape_cast %73 : vector<1x49x32xf32> to vector<49x32xf32>
    %75 = vector.shape_cast %72 : vector<49x32xf32> to vector<1x49x32xf32>
    tpu.vector_store %arg3[%c4_66, %c0_67, %c0_68], %75 {strides = array<i32>} : memref<8x49x32xf32, #tpu.memory_space<vmem>>, vector<1x49x32xf32>,
    %76 = arith.maximumf %13, %41 : vector<49x49xf32>
    %77 = arith.subf %13, %76 : vector<49x49xf32>
    %78 = math.exp %77 : vector<49x49xf32>
    %79 = arith.subf %41, %76 : vector<49x49xf32>
    %80 = math.exp %79 : vector<49x49xf32>
    %81 = arith.addf %78, %80 : vector<49x49xf32>
    %82 = arith.divf %78, %81 : vector<49x49xf32>
    %c1_69 = arith.constant 1 : index
    %c0_70 = arith.constant 0 : index
    %c0_71 = arith.constant 0 : index
    %83 = vector.load %arg2[%c1_69, %c0_70, %c0_71] : memref<8x49x32xf32, #tpu.memory_space<vmem>>, vector<1x49x32xf32>
    %84 = vector.shape_cast %83 : vector<1x49x32xf32> to vector<49x32xf32>
    %cst_72 = arith.constant dense<0.000000e+00> : vector<49x32xf32>
    %85 = tpu.matmul %82, %84, %cst_72 {dimension_numbers = #tpu.dot_dimension_numbers<[1], [0], [0], [1], [0, 0, 1, 1], [], []>} : vector<49x49xf32>, vector<49x32xf32>, vector<49x32xf32> -> vector<49x32xf32>
    %c1_73 = arith.constant 1 : index
    %c0_74 = arith.constant 0 : index
    %c0_75 = arith.constant 0 : index
    %86 = vector.load %arg3[%c1_73, %c0_74, %c0_75] : memref<8x49x32xf32, #tpu.memory_space<vmem>>, vector<1x49x32xf32>
    %87 = vector.shape_cast %86 : vector<1x49x32xf32> to vector<49x32xf32>
    %88 = vector.shape_cast %85 : vector<49x32xf32> to vector<1x49x32xf32>
    tpu.vector_store %arg3[%c1_73, %c0_74, %c0_75], %88 {strides = array<i32>} : memref<8x49x32xf32, #tpu.memory_space<vmem>>, vector<1x49x32xf32>,
    %89 = arith.divf %80, %81 : vector<49x49xf32>
    %c5_76 = arith.constant 5 : index
    %c0_77 = arith.constant 0 : index
    %c0_78 = arith.constant 0 : index
    %90 = vector.load %arg2[%c5_76, %c0_77, %c0_78] : memref<8x49x32xf32, #tpu.memory_space<vmem>>, vector<1x49x32xf32>
    %91 = vector.shape_cast %90 : vector<1x49x32xf32> to vector<49x32xf32>
    %cst_79 = arith.constant dense<0.000000e+00> : vector<49x32xf32>
    %92 = tpu.matmul %89, %91, %cst_79 {dimension_numbers = #tpu.dot_dimension_numbers<[1], [0], [0], [1], [0, 0, 1, 1], [], []>} : vector<49x49xf32>, vector<49x32xf32>, vector<49x32xf32> -> vector<49x32xf32>
    %c5_80 = arith.constant 5 : index
    %c0_81 = arith.constant 0 : index
    %c0_82 = arith.constant 0 : index
    %93 = vector.load %arg3[%c5_80, %c0_81, %c0_82] : memref<8x49x32xf32, #tpu.memory_space<vmem>>, vector<1x49x32xf32>
    %94 = vector.shape_cast %93 : vector<1x49x32xf32> to vector<49x32xf32>
    %95 = vector.shape_cast %92 : vector<49x32xf32> to vector<1x49x32xf32>
    tpu.vector_store %arg3[%c5_80, %c0_81, %c0_82], %95 {strides = array<i32>} : memref<8x49x32xf32, #tpu.memory_space<vmem>>, vector<1x49x32xf32>,
    %96 = arith.maximumf %20, %48 : vector<49x49xf32>
    %97 = arith.subf %20, %96 : vector<49x49xf32>
    %98 = math.exp %97 : vector<49x49xf32>
    %99 = arith.subf %48, %96 : vector<49x49xf32>
    %100 = math.exp %99 : vector<49x49xf32>
    %101 = arith.addf %98, %100 : vector<49x49xf32>
    %102 = arith.divf %98, %101 : vector<49x49xf32>
    %c2_83 = arith.constant 2 : index
    %c0_84 = arith.constant 0 : index
    %c0_85 = arith.constant 0 : index
    %103 = vector.load %arg2[%c2_83, %c0_84, %c0_85] : memref<8x49x32xf32, #tpu.memory_space<vmem>>, vector<1x49x32xf32>
    %104 = vector.shape_cast %103 : vector<1x49x32xf32> to vector<49x32xf32>
    %cst_86 = arith.constant dense<0.000000e+00> : vector<49x32xf32>
    %105 = tpu.matmul %102, %104, %cst_86 {dimension_numbers = #tpu.dot_dimension_numbers<[1], [0], [0], [1], [0, 0, 1, 1], [], []>} : vector<49x49xf32>, vector<49x32xf32>, vector<49x32xf32> -> vector<49x32xf32>
    %c2_87 = arith.constant 2 : index
    %c0_88 = arith.constant 0 : index
    %c0_89 = arith.constant 0 : index
    %106 = vector.load %arg3[%c2_87, %c0_88, %c0_89] : memref<8x49x32xf32, #tpu.memory_space<vmem>>, vector<1x49x32xf32>
    %107 = vector.shape_cast %106 : vector<1x49x32xf32> to vector<49x32xf32>
    %108 = vector.shape_cast %105 : vector<49x32xf32> to vector<1x49x32xf32>
    tpu.vector_store %arg3[%c2_87, %c0_88, %c0_89], %108 {strides = array<i32>} : memref<8x49x32xf32, #tpu.memory_space<vmem>>, vector<1x49x32xf32>,
    %109 = arith.divf %100, %101 : vector<49x49xf32>
    %c6_90 = arith.constant 6 : index
    %c0_91 = arith.constant 0 : index
    %c0_92 = arith.constant 0 : index
    %110 = vector.load %arg2[%c6_90, %c0_91, %c0_92] : memref<8x49x32xf32, #tpu.memory_space<vmem>>, vector<1x49x32xf32>
    %111 = vector.shape_cast %110 : vector<1x49x32xf32> to vector<49x32xf32>
    %cst_93 = arith.constant dense<0.000000e+00> : vector<49x32xf32>
    %112 = tpu.matmul %109, %111, %cst_93 {dimension_numbers = #tpu.dot_dimension_numbers<[1], [0], [0], [1], [0, 0, 1, 1], [], []>} : vector<49x49xf32>, vector<49x32xf32>, vector<49x32xf32> -> vector<49x32xf32>
    %c6_94 = arith.constant 6 : index
    %c0_95 = arith.constant 0 : index
    %c0_96 = arith.constant 0 : index
    %113 = vector.load %arg3[%c6_94, %c0_95, %c0_96] : memref<8x49x32xf32, #tpu.memory_space<vmem>>, vector<1x49x32xf32>
    %114 = vector.shape_cast %113 : vector<1x49x32xf32> to vector<49x32xf32>
    %115 = vector.shape_cast %112 : vector<49x32xf32> to vector<1x49x32xf32>
    tpu.vector_store %arg3[%c6_94, %c0_95, %c0_96], %115 {strides = array<i32>} : memref<8x49x32xf32, #tpu.memory_space<vmem>>, vector<1x49x32xf32>,
    %116 = arith.maximumf %27, %55 : vector<49x49xf32>
    %117 = arith.subf %27, %116 : vector<49x49xf32>
    %118 = math.exp %117 : vector<49x49xf32>
    %119 = arith.subf %55, %116 : vector<49x49xf32>
    %120 = math.exp %119 : vector<49x49xf32>
    %121 = arith.addf %118, %120 : vector<49x49xf32>
    %122 = arith.divf %118, %121 : vector<49x49xf32>
    %c3_97 = arith.constant 3 : index
    %c0_98 = arith.constant 0 : index
    %c0_99 = arith.constant 0 : index
    %123 = vector.load %arg2[%c3_97, %c0_98, %c0_99] : memref<8x49x32xf32, #tpu.memory_space<vmem>>, vector<1x49x32xf32>
    %124 = vector.shape_cast %123 : vector<1x49x32xf32> to vector<49x32xf32>
    %cst_100 = arith.constant dense<0.000000e+00> : vector<49x32xf32>
    %125 = tpu.matmul %122, %124, %cst_100 {dimension_numbers = #tpu.dot_dimension_numbers<[1], [0], [0], [1], [0, 0, 1, 1], [], []>} : vector<49x49xf32>, vector<49x32xf32>, vector<49x32xf32> -> vector<49x32xf32>
    %c3_101 = arith.constant 3 : index
    %c0_102 = arith.constant 0 : index
    %c0_103 = arith.constant 0 : index
    %126 = vector.load %arg3[%c3_101, %c0_102, %c0_103] : memref<8x49x32xf32, #tpu.memory_space<vmem>>, vector<1x49x32xf32>
    %127 = vector.shape_cast %126 : vector<1x49x32xf32> to vector<49x32xf32>
    %128 = vector.shape_cast %125 : vector<49x32xf32> to vector<1x49x32xf32>
    tpu.vector_store %arg3[%c3_101, %c0_102, %c0_103], %128 {strides = array<i32>} : memref<8x49x32xf32, #tpu.memory_space<vmem>>, vector<1x49x32xf32>,
    %129 = arith.divf %120, %121 : vector<49x49xf32>
    %c7_104 = arith.constant 7 : index
    %c0_105 = arith.constant 0 : index
    %c0_106 = arith.constant 0 : index
    %130 = vector.load %arg2[%c7_104, %c0_105, %c0_106] : memref<8x49x32xf32, #tpu.memory_space<vmem>>, vector<1x49x32xf32>
    %131 = vector.shape_cast %130 : vector<1x49x32xf32> to vector<49x32xf32>
    %cst_107 = arith.constant dense<0.000000e+00> : vector<49x32xf32>
    %132 = tpu.matmul %129, %131, %cst_107 {dimension_numbers = #tpu.dot_dimension_numbers<[1], [0], [0], [1], [0, 0, 1, 1], [], []>} : vector<49x49xf32>, vector<49x32xf32>, vector<49x32xf32> -> vector<49x32xf32>
    %c7_108 = arith.constant 7 : index
    %c0_109 = arith.constant 0 : index
    %c0_110 = arith.constant 0 : index
    %133 = vector.load %arg3[%c7_108, %c0_109, %c0_110] : memref<8x49x32xf32, #tpu.memory_space<vmem>>, vector<1x49x32xf32>
    %134 = vector.shape_cast %133 : vector<1x49x32xf32> to vector<49x32xf32>
    %135 = vector.shape_cast %132 : vector<49x32xf32> to vector<1x49x32xf32>
    tpu.vector_store %arg3[%c7_108, %c0_109, %c0_110], %135 {strides = array<i32>} : memref<8x49x32xf32, #tpu.memory_space<vmem>>, vector<1x49x32xf32>,
    return
  }
}

module attributes {stable_mosaic.version = 11 : i64} {
  func.func @_tail_kernel(%arg0: memref<98x128xf32, #tpu.memory_space<vmem>>, %arg1: memref<98x128xf32, #tpu.memory_space<vmem>>, %arg2: memref<2x128xf32, #tpu.memory_space<vmem>>, %arg3: memref<128x128xf32, #tpu.memory_space<vmem>>, %arg4: memref<1x128xf32, #tpu.memory_space<vmem>>, %arg5: memref<128x32xf32, #tpu.memory_space<vmem>>, %arg6: memref<1x32xf32, #tpu.memory_space<vmem>>, %arg7: memref<1x1xf32, #tpu.memory_space<vmem>>, %arg8: memref<2x32xf32, #tpu.memory_space<vmem>>) attributes {dimension_semantics = [], scalar_prefetch = 0 : i64, scratch_operands = 0 : i64, tpu.core_type = #tpu.core_type<tc>} {
    %c0 = arith.constant 0 : index
    %c0_0 = arith.constant 0 : index
    %0 = vector.load %arg0[%c0, %c0_0] : memref<98x128xf32, #tpu.memory_space<vmem>>, vector<98x128xf32>
    %c0_1 = arith.constant 0 : index
    %c0_2 = arith.constant 0 : index
    %1 = vector.load %arg3[%c0_1, %c0_2] : memref<128x128xf32, #tpu.memory_space<vmem>>, vector<128x128xf32>
    %cst = arith.constant dense<0.000000e+00> : vector<98x128xf32>
    %2 = tpu.matmul %0, %1, %cst {dimension_numbers = #tpu.dot_dimension_numbers<[1], [0], [0], [1], [0, 0, 1, 1], [], []>} : vector<98x128xf32>, vector<128x128xf32>, vector<98x128xf32> -> vector<98x128xf32>
    %c0_3 = arith.constant 0 : index
    %c0_4 = arith.constant 0 : index
    %3 = vector.load %arg4[%c0_3, %c0_4] : memref<1x128xf32, #tpu.memory_space<vmem>>, vector<1x128xf32>
    %4 = vector.broadcast %3 : vector<1x128xf32> to vector<98x128xf32>
    %5 = arith.addf %2, %4 : vector<98x128xf32>
    %6 = vector.shape_cast %5 : vector<98x128xf32> to vector<2x49x128xf32>
    %c0_5 = arith.constant 0 : index
    %c0_6 = arith.constant 0 : index
    %7 = vector.load %arg2[%c0_5, %c0_6] : memref<2x128xf32, #tpu.memory_space<vmem>>, vector<2x128xf32>
    %8 = vector.shape_cast %7 : vector<2x128xf32> to vector<2x1x128xf32>
    %c0_7 = arith.constant 0 : index
    %c0_8 = arith.constant 0 : index
    %9 = vector.load %arg1[%c0_7, %c0_8] : memref<98x128xf32, #tpu.memory_space<vmem>>, vector<98x128xf32>
    %10 = vector.shape_cast %9 : vector<98x128xf32> to vector<2x49x128xf32>
    %11 = vector.broadcast %8 : vector<2x1x128xf32> to vector<2x49x128xf32>
    %12 = arith.mulf %11, %10 : vector<2x49x128xf32>
    %c0_9 = arith.constant 0 : index
    %c0_10 = arith.constant 0 : index
    %13 = vector.load %arg7[%c0_9, %c0_10] : memref<1x1xf32, #tpu.memory_space<vmem>>, vector<1x1xf32>
    %14 = vector.shape_cast %13 : vector<1x1xf32> to vector<1x1x1xf32>
    %15 = vector.broadcast %14 : vector<1x1x1xf32> to vector<2x49x128xf32>
    %16 = arith.mulf %15, %6 : vector<2x49x128xf32>
    %17 = arith.addf %12, %16 : vector<2x49x128xf32>
    %cst_11 = arith.constant 9.99999997E-7 : f32
    %18 = vector.broadcast %cst_11 : f32 to vector<2x49x128xf32>
    %19 = arith.maximumf %17, %18 : vector<2x49x128xf32>
    %20 = arith.mulf %19, %19 : vector<2x49x128xf32>
    %21 = arith.mulf %20, %19 : vector<2x49x128xf32>
    %cst_12 = arith.constant dense<0.000000e+00> : vector<2x128xf32>
    %22 = vector.multi_reduction <add>, %21, %cst_12 [1] : vector<2x49x128xf32> to vector<2x128xf32>
    %cst_13 = arith.constant 4.900000e+01 : f32
    %23 = vector.broadcast %cst_13 : f32 to vector<2x128xf32>
    %24 = arith.divf %22, %23 : vector<2x128xf32>
    %25 = math.log %24 : vector<2x128xf32>
    %cst_14 = arith.constant 0.333333343 : f32
    %26 = vector.broadcast %cst_14 : f32 to vector<2x128xf32>
    %27 = arith.mulf %25, %26 : vector<2x128xf32>
    %28 = math.exp %27 : vector<2x128xf32>
    %c0_15 = arith.constant 0 : index
    %c0_16 = arith.constant 0 : index
    %29 = vector.load %arg5[%c0_15, %c0_16] : memref<128x32xf32, #tpu.memory_space<vmem>>, vector<128x32xf32>
    %cst_17 = arith.constant dense<0.000000e+00> : vector<2x32xf32>
    %30 = tpu.matmul %28, %29, %cst_17 {dimension_numbers = #tpu.dot_dimension_numbers<[1], [0], [0], [1], [0, 0, 1, 1], [], []>} : vector<2x128xf32>, vector<128x32xf32>, vector<2x32xf32> -> vector<2x32xf32>
    %c0_18 = arith.constant 0 : index
    %c0_19 = arith.constant 0 : index
    %31 = vector.load %arg6[%c0_18, %c0_19] : memref<1x32xf32, #tpu.memory_space<vmem>>, vector<1x32xf32>
    %32 = vector.broadcast %31 : vector<1x32xf32> to vector<2x32xf32>
    %33 = arith.addf %30, %32 : vector<2x32xf32>
    %34 = arith.mulf %33, %33 : vector<2x32xf32>
    %cst_20 = arith.constant dense<0.000000e+00> : vector<2xf32>
    %35 = vector.multi_reduction <add>, %34, %cst_20 [1] : vector<2x32xf32> to vector<2xf32>
    %36 = vector.shape_cast %35 : vector<2xf32> to vector<2x1xf32>
    %37 = math.rsqrt %36 : vector<2x1xf32>
    %38 = vector.broadcast %37 : vector<2x1xf32> to vector<2x32xf32>
    %39 = arith.mulf %33, %38 : vector<2x32xf32>
    %c0_21 = arith.constant 0 : index
    %c0_22 = arith.constant 0 : index
    %40 = vector.load %arg8[%c0_21, %c0_22] : memref<2x32xf32, #tpu.memory_space<vmem>>, vector<2x32xf32>
    tpu.vector_store %arg8[%c0_21, %c0_22], %39 {strides = array<i32>} : memref<2x32xf32, #tpu.memory_space<vmem>>, vector<2x32xf32>,
    return
  }
}

</mosaic_0001>

<bundles_post_ra>
// kernel: squeeze.3
= control target key start
LH: loop header
LB: loop body
LE: loop exit
PB: predicated region body
PF: predicated region fallthrough
CT: control target
= control target key end

     0   :  { %vm5_vm0 = vcmask 1041409   ;;  %vm9_vm1 = vcmask 1042434   ;;  %vm13_vm2 = vcmask 1043459   ;;  %vm17_vm3 = vcmask 1044484   ;;  %s4227_s27 = smov 127   ;;  %s4228_s11 = smov 125   ;;  %s7952_s0 = inlined_call_operand.vmem [shape: f32[1,2,4,32,49], index: 0, kind: input, shape index: {}]   ;;  %s7953_s1 = inlined_call_operand.vmem [shape: f32[8,49,32], index: 1, kind: output, shape index: {}]  }
   0x1   :  { %vm21_vm4 = vcmask 1045509   ;;  %vm25_vm5 = vcmask 1046534   ;;  %vm29_vm6 = vcmask 1047559   ;;  %v3227_v0 = vld [vmem:[%s7952_s0 + $0x4f] sm:$0x1]   ;;  %s4229_s28 = smov 126  }
   0x2   :  { %v3228_v1 = vld [vmem:[%s7952_s0 + $0x2e] sm:$0x2]   ;;  %v3251_v10 = vld [vmem:[%s7952_s0 + $0x4d] sm:$0x1]   ;;  %v3239_v24 = vld [vmem:[%s7952_s0 + $0x3e] sm:$0x1]  }
   0x3   :  { %v3229_v2 = vld [vmem:[%s7952_s0 + $0xd] sm:$0x4]   ;;  %v39_v4 = vsel %vm5_vm0, %v3228_v1, %v3227_v0  ;;  %v3252_v11 = vld [vmem:[%s7952_s0 + $0x2c] sm:$0x2]   ;;  %v3240_v25 = vld [vmem:[%s7952_s0 + $0x1d] sm:$0x2]  }
   0x4   :  { %v3230_v3 = vld [vmem:[%s7952_s0 + $0x6c] sm:$0x8]   ;;  %v43_v8 = vsel %vm9_vm1, %v3229_v2, %v39_v4  ;;  %v121_v13 = vsel %vm5_vm0, %v3252_v11, %v3251_v10  ;;  %v3253_v14 = vld [vmem:[%s7952_s0 + $0xb] sm:$0x4]   ;;  %v3241_v26 = vld [vmem:[%s7952_s0 + $0x7c] sm:$0x4]   ;;  %v80_v29 = vsel %vm5_vm0, %v3240_v25, %v3239_v24 }
   0x5   :  { %v3231_v5 = vld [vmem:[%s7952_s0 + $0xcb] sm:$0x10]   ;;  %v47_v12 = vsel %vm13_vm2, %v3230_v3, %v43_v8  ;;  %v3254_v15 = vld [vmem:[%s7952_s0 + $0x6a] sm:$0x8]   ;;  %v125_v18 = vsel %vm9_vm1, %v3253_v14, %v121_v13  ;;  %v3242_v30 = vld [vmem:[%s7952_s0 + $0x5b] sm:$0x8]   ;;  %v84_v35 = vsel %vm9_vm1, %v3241_v26, %v80_v29 }
   0x6   :  { %v3232_v6 = vld [vmem:[%s7952_s0 + $0xaa] sm:$0x20]   ;;  %v3255_v16 = vld [vmem:[%s7952_s0 + $0xc9] sm:$0x10]   ;;  %v51_v17 = vsel %vm17_vm3, %v3231_v5, %v47_v12  ;;  %v129_v23 = vsel %vm13_vm2, %v3254_v15, %v125_v18  ;;  %v3243_v31 = vld [vmem:[%s7952_s0 + $0xba] sm:$0x10]   ;;  %v88_v40 = vsel %vm13_vm2, %v3242_v30, %v84_v35 }
   0x7   :  { %v3233_v7 = vld [vmem:[%s7952_s0 + $0x89] sm:$0x40]   ;;  %v3256_v19 = vld [vmem:[%s7952_s0 + $0xa8] sm:$0x20]   ;;  %v55_v22 = vsel %vm21_vm4, %v3232_v6, %v51_v17  ;;  %v133_v28 = vsel %vm17_vm3, %v3255_v16, %v129_v23  ;;  %v3244_v32 = vld [vmem:[%s7952_s0 + $0x99] sm:$0x20]   ;;  %v92_v45 = vsel %vm17_vm3, %v3243_v31, %v88_v40 }
   0x8   :  { %v3234_v9 = vld [vmem:[%s7952_s0 + $0xe8] sm:$0x80]   ;;  %v3257_v20 = vld [vmem:[%s7952_s0 + $0x87] sm:$0x40]   ;;  %v59_v27 = vsel %vm25_vm5, %v3233_v7, %v55_v22  ;;  %v137_v34 = vsel %vm21_vm4, %v3256_v19, %v133_v28  ;;  %v3245_v36 = vld [vmem:[%s7952_s0 + $0xf8] sm:$0x40]   ;;  %v96_v50 = vsel %vm21_vm4, %v3244_v32, %v92_v45 }
   0x9   :  { %v3258_v21 = vld [vmem:[%s7952_s0 + $0xe6] sm:$0x80]   ;;  %v63_v33 = vsel %vm29_vm6, %v3234_v9, %v59_v27  ;;  %v3246_v37 = vld [vmem:[%s7952_s0 + $0xd7] sm:$0x80]   ;;  %v3263_v38 = vld [vmem:[%s7952_s0 + $0x3c] sm:$0x1]   ;;  %v141_v39 = vsel %vm25_vm5, %v3257_v20, %v137_v34  ;;  %v100_v54 = vsel %vm25_vm5, %v3245_v36, %v96_v50 }
   0xa   :  { %64 = vrot.lane.b32.xlu0 %v63_v33, %s4227_s27  ;;  %v3264_v41 = vld [vmem:[%s7952_s0 + $0x1b] sm:$0x2]   ;;  %v145_v44 = vsel %vm29_vm6, %v3258_v21, %v141_v39  ;;  %v3275_v53 = vld [vmem:[%s7952_s0 + $0x4b] sm:$0x1]   ;;  %v104_v59 = vsel %vm29_vm6, %v3246_v37, %v100_v54  ;;  %v3287_v4 = vld [vmem:[%s7952_s0 + $0x3a] sm:$0x1]  }
   0xb   :  { %v3265_v42 = vld [vmem:[%s7952_s0 + $0x7a] sm:$0x4]   ;;  %v162_v46 = vsel %vm5_vm0, %v3264_v41, %v3263_v38  ;;  %146 = vrot.lane.b32.xlu1 %v145_v44, %s4228_s11  ;;  %v3276_v56 = vld [vmem:[%s7952_s0 + $0x2a] sm:$0x2]   ;;  %v3288_v5 = vld [vmem:[%s7952_s0 + $0x19] sm:$0x2]  }
   0xc   :  { %v3266_v43 = vld [vmem:[%s7952_s0 + $0x59] sm:$0x8]   ;;  %v166_v51 = vsel %vm9_vm1, %v3265_v42, %v162_v46  ;;  %v3277_v57 = vld [vmem:[%s7952_s0 + $0x9] sm:$0x4]   ;;  %v203_v61 = vsel %vm5_vm0, %v3276_v56, %v3275_v53  ;;  %v244_v8 = vsel %vm5_vm0, %v3288_v5, %v3287_v4  ;;  %v3289_v9 = vld [vmem:[%s7952_s0 + $0x78] sm:$0x4]  }
   0xd   :  { %v3267_v47 = vld [vmem:[%s7952_s0 + $0xb8] sm:$0x10]   ;;  %v170_v55 = vsel %vm13_vm2, %v3266_v43, %v166_v51  ;;  %v3278_v58 = vld [vmem:[%s7952_s0 + $0x68] sm:$0x8]   ;;  %v207_v2 = vsel %vm9_vm1, %v3277_v57, %v203_v61  ;;  %v3290_v10 = vld [vmem:[%s7952_s0 + $0x57] sm:$0x8]   ;;  %v248_v14 = vsel %vm9_vm1, %v3289_v9, %v244_v8 }
   0xe   :  { %v3268_v48 = vld [vmem:[%s7952_s0 + $0x97] sm:$0x20]   ;;  %v174_v60 = vsel %vm17_vm3, %v3267_v47, %v170_v55  ;;  %v3279_v62 = vld [vmem:[%s7952_s0 + $0xc7] sm:$0x10]   ;;  %105 = vrot.lane.b32.xlu0 %v104_v59, %s4229_s28  ;;  %v211_v7 = vsel %vm13_vm2, %v3278_v58, %v207_v2  ;;  %v3291_v11 = vld [vmem:[%s7952_s0 + $0xb6] sm:$0x10]   ;;  %v252_v19 = vsel %vm13_vm2, %v3290_v10, %v248_v14 }
   0xf   :  { %v3269_v49 = vld [vmem:[%s7952_s0 + $0xf6] sm:$0x40]   ;;  %v3280_v63 = vld [vmem:[%s7952_s0 + $0xa6] sm:$0x20]   ;;  %v178_v1 = vsel %vm21_vm4, %v3268_v48, %v174_v60  ;;  %v215_v13 = vsel %vm17_vm3, %v3279_v62, %v211_v7  ;;  %v3292_v15 = vld [vmem:[%s7952_s0 + $0x95] sm:$0x20]   ;;  %v256_v23 = vsel %vm17_vm3, %v3291_v11, %v252_v19 }
  0x10   :  { %v3270_v52 = vld [vmem:[%s7952_s0 + $0xd5] sm:$0x80]   ;;  %v3281_v0 = vld [vmem:[%s7952_s0 + $0x85] sm:$0x40]   ;;  %v182_v6 = vsel %vm25_vm5, %v3269_v49, %v178_v1  ;;  %v3293_v16 = vld [vmem:[%s7952_s0 + $0xf4] sm:$0x40]   ;;  %v219_v18 = vsel %vm21_vm4, %v3280_v63, %v215_v13  ;;  %v260_v29 = vsel %vm21_vm4, %v3292_v15, %v256_v23 }
  0x11   :  { %v3282_v3 = vld [vmem:[%s7952_s0 + $0xe4] sm:$0x80]   ;;  %v186_v12 = vsel %vm29_vm6, %v3270_v52, %v182_v6  ;;  %v3294_v17 = vld [vmem:[%s7952_s0 + $0xd3] sm:$0x80]   ;;  %s4230_s18 = smov 124   ;;  %v223_v22 = vsel %vm25_vm5, %v3281_v0, %v219_v18  ;;  %s4231_s6 = smov 123   ;;  %v264_v34 = vsel %vm25_vm5, %v3293_v16, %v260_v29 }
  0x12   :  { %187 = vrot.lane.b32.xlu1 %v186_v12, %s4230_s18  ;;  %v3299_v20 = vld [vmem:[%s7952_s0 + $0x29] sm:$0x1]   ;;  %v227_v28 = vsel %vm29_vm6, %v3282_v3, %v223_v22  ;;  %v3311_v36 = vld [vmem:[%s7952_s0 + $0x18] sm:$0x1]   ;;  %v268_v39 = vsel %vm29_vm6, %v3294_v17, %v264_v34  ;;  %s4232_s19 = smov 122   ;;  %s4233_s7 = smov 121  }
  0x13   :  { %v3300_v21 = vld [vmem:[%s7952_s0 + $0x8] sm:$0x2]   ;;  %228 = vrot.lane.b32.xlu0 %v227_v28, %s4231_s6  ;;  %v3312_v37 = vld [vmem:[%s7952_s0 + $0x77] sm:$0x2]   ;;  %v3323_v51 = vld [vmem:[%s7952_s0 + $0x27] sm:$0x1]  }
  0x14   :  { %v285_v24 = vsel %vm5_vm0, %v3300_v21, %v3299_v20  ;;  %v3301_v25 = vld [vmem:[%s7952_s0 + $0x67] sm:$0x4]   ;;  %v3313_v38 = vld [vmem:[%s7952_s0 + $0x56] sm:$0x4]   ;;  %v326_v41 = vsel %vm5_vm0, %v3312_v37, %v3311_v36  ;;  %v3324_v52 = vld [vmem:[%s7952_s0 + $0x6] sm:$0x2]  }
  0x15   :  { %v3302_v26 = vld [vmem:[%s7952_s0 + $0x46] sm:$0x8]   ;;  %v289_v30 = vsel %vm9_vm1, %v3301_v25, %v285_v24  ;;  %v3314_v42 = vld [vmem:[%s7952_s0 + $0x35] sm:$0x8]   ;;  %v330_v46 = vsel %vm9_vm1, %v3313_v38, %v326_v41  ;;  %v3325_v53 = vld [vmem:[%s7952_s0 + $0x65] sm:$0x4]   ;;  %v367_v56 = vsel %vm5_vm0, %v3324_v52, %v3323_v51 }
  0x16   :  { %v3303_v27 = vld [vmem:[%s7952_s0 + $0xa5] sm:$0x10]   ;;  %v293_v35 = vsel %vm13_vm2, %v3302_v26, %v289_v30  ;;  %v3315_v43 = vld [vmem:[%s7952_s0 + $0x94] sm:$0x10]   ;;  %269 = vrot.lane.b32.xlu1 %v268_v39, %s4232_s19  ;;  %v334_v50 = vsel %vm13_vm2, %v3314_v42, %v330_v46  ;;  %v3326_v57 = vld [vmem:[%s7952_s0 + $0x44] sm:$0x8]   ;;  %v371_v61 = vsel %vm9_vm1, %v3325_v53, %v367_v56 }
  0x17   :  { %v3304_v31 = vld [vmem:[%s7952_s0 + $0x84] sm:$0x20]   ;;  %v297_v40 = vsel %vm17_vm3, %v3303_v27, %v293_v35  ;;  %v3316_v44 = vld [vmem:[%s7952_s0 + $0xf3] sm:$0x20]   ;;  %v338_v55 = vsel %vm17_vm3, %v3315_v43, %v334_v50  ;;  %v3327_v58 = vld [vmem:[%s7952_s0 + $0xa3] sm:$0x10]   ;;  %v375_v2 = vsel %vm13_vm2, %v3326_v57, %v371_v61 }
  0x18   :  { %v3305_v32 = vld [vmem:[%s7952_s0 + $0xe3] sm:$0x40]   ;;  %v301_v45 = vsel %vm21_vm4, %v3304_v31, %v297_v40  ;;  %v3317_v47 = vld [vmem:[%s7952_s0 + $0xd2] sm:$0x40]   ;;  %v3328_v59 = vld [vmem:[%s7952_s0 + $0x82] sm:$0x20]   ;;  %v342_v60 = vsel %vm21_vm4, %v3316_v44, %v338_v55  ;;  %v379_v7 = vsel %vm17_vm3, %v3327_v58, %v375_v2 }
  0x19   :  { %v3306_v33 = vld [vmem:[%s7952_s0 + $0xc2] sm:$0x80]   ;;  %v3318_v48 = vld [vmem:[%s7952_s0 + $0xb1] sm:$0x80]   ;;  %v305_v49 = vsel %vm25_vm5, %v3305_v32, %v301_v45  ;;  %v3329_v62 = vld [vmem:[%s7952_s0 + $0xe1] sm:$0x40]   ;;  %v346_v1 = vsel %vm25_vm5, %v3317_v47, %v342_v60  ;;  %v383_v12 = vsel %vm21_vm4, %v3328_v59, %v379_v7 }
  0x1a   :  { %v309_v54 = vsel %vm29_vm6, %v3306_v33, %v305_v49  ;;  %v3330_v63 = vld [vmem:[%s7952_s0 + $0xc0] sm:$0x80]   ;;  %v3335_v0 = vld [vmem:[%s7952_s0 + $0x16] sm:$0x1]   ;;  %v350_v6 = vsel %vm29_vm6, %v3318_v48, %v346_v1  ;;  %s4234_s26 = smov 120   ;;  %v387_v16 = vsel %vm25_vm5, %v3329_v62, %v383_v12  ;;  %s4235_s14 = smov 119  }
  0x1b   :  { %310 = vrot.lane.b32.xlu0 %v309_v54, %s4233_s7  ;;  %v3336_v3 = vld [vmem:[%s7952_s0 + $0x75] sm:$0x2]   ;;  %351 = vrot.lane.b32.xlu1 %v350_v6, %s4234_s26  ;;  %v3347_v15 = vld [vmem:[%s7952_s0 + $0x25] sm:$0x1]   ;;  %v391_v21 = vsel %vm29_vm6, %v3330_v63, %v387_v16  ;;  %s4236_s4 = smov 118   ;;  %s4237_s21 = smov 117  }
  0x1c   :  { %v3337_v4 = vld [vmem:[%s7952_s0 + $0x54] sm:$0x4]   ;;  %v408_v8 = vsel %vm5_vm0, %v3336_v3, %v3335_v0  ;;  %v3348_v18 = vld [vmem:[%s7952_s0 + $0x4] sm:$0x2]   ;;  %v3359_v30 = vld [vmem:[%s7952_s0 + $0x74] sm:$0x1]  }
  0x1d   :  { %v3338_v5 = vld [vmem:[%s7952_s0 + $0x33] sm:$0x8]   ;;  %v412_v13 = vsel %vm9_vm1, %v3337_v4, %v408_v8  ;;  %v3349_v19 = vld [vmem:[%s7952_s0 + $0x63] sm:$0x4]   ;;  %v449_v23 = vsel %vm5_vm0, %v3348_v18, %v3347_v15  ;;  %v3360_v31 = vld [vmem:[%s7952_s0 + $0x53] sm:$0x2]  }
  0x1e   :  { %v3339_v9 = vld [vmem:[%s7952_s0 + $0x92] sm:$0x10]   ;;  %v416_v17 = vsel %vm13_vm2, %v3338_v5, %v412_v13  ;;  %v3350_v20 = vld [vmem:[%s7952_s0 + $0x42] sm:$0x8]   ;;  %v453_v28 = vsel %vm9_vm1, %v3349_v19, %v449_v23  ;;  %v490_v34 = vsel %vm5_vm0, %v3360_v31, %v3359_v30  ;;  %v3361_v35 = vld [vmem:[%s7952_s0 + $0x32] sm:$0x4]  }
  0x1f   :  { %v3340_v10 = vld [vmem:[%s7952_s0 + $0xf1] sm:$0x20]   ;;  %v420_v22 = vsel %vm17_vm3, %v3339_v9, %v416_v17  ;;  %v3351_v24 = vld [vmem:[%s7952_s0 + $0xa1] sm:$0x10]   ;;  %392 = vrot.lane.b32.xlu0 %v391_v21, %s4235_s14  ;;  %v457_v33 = vsel %vm13_vm2, %v3350_v20, %v453_v28  ;;  %v3362_v36 = vld [vmem:[%s7952_s0 + $0x11] sm:$0x8]   ;;  %v494_v40 = vsel %vm9_vm1, %v3361_v35, %v490_v34 }
  0x20   :  { %v3341_v11 = vld [vmem:[%s7952_s0 + $0xd0] sm:$0x40]   ;;  %v3352_v25 = vld [vmem:[%s7952_s0 + $0x80] sm:$0x20]   ;;  %v424_v27 = vsel %vm21_vm4, %v3340_v10, %v420_v22  ;;  %v3363_v37 = vld [vmem:[%s7952_s0 + $0xf0] sm:$0x10]   ;;  %v461_v39 = vsel %vm17_vm3, %v3351_v24, %v457_v33  ;;  %v498_v45 = vsel %vm13_vm2, %v3362_v36, %v494_v40 }
  0x21   :  { %v3342_v14 = vld [vmem:[%s7952_s0 + $0xaf] sm:$0x80]   ;;  %v3353_v26 = vld [vmem:[%s7952_s0 + $0xdf] sm:$0x40]   ;;  %v428_v32 = vsel %vm25_vm5, %v3341_v11, %v424_v27  ;;  %v3364_v41 = vld [vmem:[%s7952_s0 + $0xcf] sm:$0x20]   ;;  %v465_v44 = vsel %vm21_vm4, %v3352_v25, %v461_v39  ;;  %v502_v49 = vsel %vm17_vm3, %v3363_v37, %v498_v45 }
  0x22   :  { %v3354_v29 = vld [vmem:[%s7952_s0 + $0xbe] sm:$0x80]   ;;  %v432_v38 = vsel %vm29_vm6, %v3342_v14, %v428_v32  ;;  %v3365_v42 = vld [vmem:[%s7952_s0 + $0xae] sm:$0x40]   ;;  %v3369_v46 = vld [vmem:[%s7952_s0 + $0x3] sm:$0x1]   ;;  %v469_v48 = vsel %vm25_vm5, %v3353_v26, %v465_v44  ;;  %v506_v55 = vsel %vm21_vm4, %v3364_v41, %v502_v49 }
  0x23   :  { %v3366_v43 = vld [vmem:[%s7952_s0 + $0x8d] sm:$0x80]   ;;  %433 = vrot.lane.b32.xlu1 %v432_v38, %s4236_s4  ;;  %v3370_v47 = vld [vmem:[%s7952_s0 + $0x62] sm:$0x2]   ;;  %v473_v54 = vsel %vm29_vm6, %v3354_v29, %v469_v48  ;;  %v510_v60 = vsel %vm25_vm5, %v3365_v42, %v506_v55  ;;  %v3381_v62 = vld [vmem:[%s7952_s0 + $0x72] sm:$0x1]  }
  0x24   :  { %v527_v50 = vsel %vm5_vm0, %v3370_v47, %v3369_v46  ;;  %v3371_v51 = vld [vmem:[%s7952_s0 + $0x41] sm:$0x4]   ;;  %474 = vrot.lane.b32.xlu0 %v473_v54, %s4237_s21  ;;  %v3382_v63 = vld [vmem:[%s7952_s0 + $0x51] sm:$0x2]   ;;  %v514_v1 = vsel %vm29_vm6, %v3366_v43, %v510_v60  ;;  %s4238_s5 = smov 116   ;;  %s4239_s22 = smov 115  }
  0x25   :  { %v3372_v52 = vld [vmem:[%s7952_s0 + $0x20] sm:$0x8]   ;;  %v531_v56 = vsel %vm9_vm1, %v3371_v51, %v527_v50  ;;  %v3383_v0 = vld [vmem:[%s7952_s0 + $0x30] sm:$0x4]   ;;  %v568_v3 = vsel %vm5_vm0, %v3382_v63, %v3381_v62  ;;  %v3391_v13 = vld [vmem:[%s7952_s0 + $0x1] sm:$0x1]  }
  0x26   :  { %v3373_v53 = vld [vmem:[%s7952_s0 + $0x7f] sm:$0x10]   ;;  %v535_v61 = vsel %vm13_vm2, %v3372_v52, %v531_v56  ;;  %v3384_v4 = vld [vmem:[%s7952_s0 + $0xf] sm:$0x8]   ;;  %v572_v8 = vsel %vm9_vm1, %v3383_v0, %v568_v3  ;;  %v3392_v14 = vld [vmem:[%s7952_s0 + $0x60] sm:$0x2]  }
  0x27   :  { %v3374_v57 = vld [vmem:[%s7952_s0 + $0xde] sm:$0x20]   ;;  %v539_v2 = vsel %vm17_vm3, %v3373_v53, %v535_v61  ;;  %v3385_v5 = vld [vmem:[%s7952_s0 + $0xee] sm:$0x10]   ;;  %515 = vrot.lane.b32.xlu1 %v514_v1, %s4238_s5  ;;  %v576_v12 = vsel %vm13_vm2, %v3384_v4, %v572_v8  ;;  %v3393_v15 = vld [vmem:[%s7952_s0 + $0x3f] sm:$0x4]   ;;  %v605_v18 = vsel %vm5_vm0, %v3392_v14, %v3391_v13 }
  0x28   :  { %v3375_v58 = vld [vmem:[%s7952_s0 + $0xbd] sm:$0x40]   ;;  %v3386_v6 = vld [vmem:[%s7952_s0 + $0xcd] sm:$0x20]   ;;  %v543_v7 = vsel %vm21_vm4, %v3374_v57, %v539_v2  ;;  %v580_v17 = vsel %vm17_vm3, %v3385_v5, %v576_v12  ;;  %v3394_v19 = vld [vmem:[%s7952_s0 + $0x1e] sm:$0x8]   ;;  %v609_v23 = vsel %vm9_vm1, %v3393_v15, %v605_v18 }
  0x29   :  { %v3376_v59 = vld [vmem:[%s7952_s0 + $0x9c] sm:$0x80]   ;;  %v3387_v9 = vld [vmem:[%s7952_s0 + $0xac] sm:$0x40]   ;;  %v547_v11 = vsel %vm25_vm5, %v3375_v58, %v543_v7  ;;  %v3395_v20 = vld [vmem:[%s7952_s0 + $0x7d] sm:$0x10]   ;;  %v584_v22 = vsel %vm21_vm4, %v3386_v6, %v580_v17  ;;  %v613_v28 = vsel %vm13_vm2, %v3394_v19, %v609_v23 }
  0x2a   :  { %v3388_v10 = vld [vmem:[%s7952_s0 + $0x8b] sm:$0x80]   ;;  %v551_v16 = vsel %vm29_vm6, %v3376_v59, %v547_v11  ;;  %v3396_v21 = vld [vmem:[%s7952_s0 + $0xdc] sm:$0x20]   ;;  %v3403_v26 = vld [vmem:[%s7952_s0 + $0x70] sm:$0x1]   ;;  %v588_v27 = vsel %vm25_vm5, %v3387_v9, %v584_v22  ;;  %v617_v33 = vsel %vm17_vm3, %v3395_v20, %v613_v28 }
  0x2b   :  { %552 = vrot.lane.b32.xlu0 %v551_v16, %s4239_s22  ;;  %v3397_v24 = vld [vmem:[%s7952_s0 + $0xbb] sm:$0x40]   ;;  %v3404_v29 = vld [vmem:[%s7952_s0 + $0x4f] sm:$0x2]   ;;  %v592_v32 = vsel %vm29_vm6, %v3388_v10, %v588_v27  ;;  %s4240_s12 = smov 114   ;;  %v621_v38 = vsel %vm21_vm4, %v3396_v21, %v617_v33  ;;  %s4241_s29 = smov 113  }
  0x2c   :  { %v3398_v25 = vld [vmem:[%s7952_s0 + $0x9a] sm:$0x80]   ;;  %v3405_v30 = vld [vmem:[%s7952_s0 + $0x2e] sm:$0x4]   ;;  %v646_v34 = vsel %vm5_vm0, %v3404_v29, %v3403_v26  ;;  %593 = vrot.lane.b32.xlu1 %v592_v32, %s4240_s12  ;;  %v3413_v41 = vld [vmem:[%s7952_s0 + $0x5f] sm:$0x1]   ;;  %v625_v42 = vsel %vm25_vm5, %v3397_v24, %v621_v38 }
  0x2d   :  { %v3406_v31 = vld [vmem:[%s7952_s0 + $0xd] sm:$0x8]   ;;  %v650_v39 = vsel %vm9_vm1, %v3405_v30, %v646_v34  ;;  %v3414_v44 = vld [vmem:[%s7952_s0 + $0x3e] sm:$0x2]   ;;  %v629_v47 = vsel %vm29_vm6, %v3398_v25, %v625_v42  ;;  %v3425_v56 = vld [vmem:[%s7952_s0 + $0x4e] sm:$0x1]  }
  0x2e   :  { %v3407_v35 = vld [vmem:[%s7952_s0 + $0xec] sm:$0x10]   ;;  %v654_v43 = vsel %vm13_vm2, %v3406_v31, %v650_v39  ;;  %v3415_v45 = vld [vmem:[%s7952_s0 + $0x1d] sm:$0x4]   ;;  %v683_v49 = vsel %vm5_vm0, %v3414_v44, %v3413_v41  ;;  %v3426_v57 = vld [vmem:[%s7952_s0 + $0x2d] sm:$0x2]  }
  0x2f   :  { %v3408_v36 = vld [vmem:[%s7952_s0 + $0xcb] sm:$0x20]   ;;  %v3416_v46 = vld [vmem:[%s7952_s0 + $0x7c] sm:$0x8]   ;;  %v658_v48 = vsel %vm17_vm3, %v3407_v35, %v654_v43  ;;  %630 = vrot.lane.b32.xlu0 %v629_v47, %s4241_s29  ;;  %v687_v54 = vsel %vm9_vm1, %v3415_v45, %v683_v49  ;;  %v724_v60 = vsel %vm5_vm0, %v3426_v57, %v3425_v56  ;;  %v3427_v61 = vld [vmem:[%s7952_s0 + $0xc] sm:$0x4]  }
  0x30   :  { %v3409_v37 = vld [vmem:[%s7952_s0 + $0xaa] sm:$0x40]   ;;  %v3417_v50 = vld [vmem:[%s7952_s0 + $0xdb] sm:$0x10]   ;;  %v662_v53 = vsel %vm21_vm4, %v3408_v36, %v658_v48  ;;  %v691_v59 = vsel %vm13_vm2, %v3416_v46, %v687_v54  ;;  %v3428_v62 = vld [vmem:[%s7952_s0 + $0x6b] sm:$0x8]   ;;  %v728_v2 = vsel %vm9_vm1, %v3427_v61, %v724_v60 }
  0x31   :  { %v3410_v40 = vld [vmem:[%s7952_s0 + $0x89] sm:$0x80]   ;;  %v3418_v51 = vld [vmem:[%s7952_s0 + $0xba] sm:$0x20]   ;;  %v666_v58 = vsel %vm25_vm5, %v3409_v37, %v662_v53  ;;  %v3429_v63 = vld [vmem:[%s7952_s0 + $0xca] sm:$0x10]   ;;  %v695_v1 = vsel %vm17_vm3, %v3417_v50, %v691_v59  ;;  %v732_v7 = vsel %vm13_vm2, %v3428_v62, %v728_v2 }
  0x32   :  { %v3419_v52 = vld [vmem:[%s7952_s0 + $0x99] sm:$0x40]   ;;  %v670_v0 = vsel %vm29_vm6, %v3410_v40, %v666_v58  ;;  %v3430_v3 = vld [vmem:[%s7952_s0 + $0xa9] sm:$0x20]   ;;  %s4242_s19 = smov 112   ;;  %v699_v6 = vsel %vm21_vm4, %v3418_v51, %v695_v1  ;;  %v736_v11 = vsel %vm17_vm3, %v3429_v63, %v732_v7  ;;  %s4243_s7 = smov 111  }
  0x33   :  { %v3420_v55 = vld [vmem:[%s7952_s0 + $0xf8] sm:$0x80]   ;;  %v3431_v4 = vld [vmem:[%s7952_s0 + $0x88] sm:$0x40]   ;;  %671 = vrot.lane.b32.xlu1 %v670_v0, %s4242_s19  ;;  %v3437_v8 = vld [vmem:[%s7952_s0 + $0x3d] sm:$0x1]   ;;  %v703_v10 = vsel %vm25_vm5, %v3419_v52, %v699_v6  ;;  %v740_v17 = vsel %vm21_vm4, %v3430_v3, %v736_v11 }
  0x34   :  { %v3432_v5 = vld [vmem:[%s7952_s0 + $0xe7] sm:$0x80]   ;;  %v3438_v9 = vld [vmem:[%s7952_s0 + $0x1c] sm:$0x2]   ;;  %v707_v16 = vsel %vm29_vm6, %v3420_v55, %v703_v10  ;;  %v744_v22 = vsel %vm25_vm5, %v3431_v4, %v740_v17  ;;  %v3449_v24 = vld [vmem:[%s7952_s0 + $0x4c] sm:$0x1]  }
  0x35   :  { %v765_v12 = vsel %vm5_vm0, %v3438_v9, %v3437_v8  ;;  %v3439_v13 = vld [vmem:[%s7952_s0 + $0x7b] sm:$0x4]   ;;  %708 = vrot.lane.b32.xlu0 %v707_v16, %s4243_s7  ;;  %v3450_v25 = vld [vmem:[%s7952_s0 + $0x2b] sm:$0x2]   ;;  %v748_v27 = vsel %vm29_vm6, %v3432_v5, %v744_v22  ;;  %s4244_s20 = smov 110   ;;  %s4245_s8 = smov 109  }
  0x36   :  { %v3440_v14 = vld [vmem:[%s7952_s0 + $0x5a] sm:$0x8]   ;;  %v769_v18 = vsel %vm9_vm1, %v3439_v13, %v765_v12  ;;  %v3451_v26 = vld [vmem:[%s7952_s0 + $0xa] sm:$0x4]   ;;  %v806_v29 = vsel %vm5_vm0, %v3450_v25, %v3449_v24  ;;  %v3461_v39 = vld [vmem:[%s7952_s0 + $0x3b] sm:$0x1]  }
  0x37   :  { %v3441_v15 = vld [vmem:[%s7952_s0 + $0xb9] sm:$0x10]   ;;  %v773_v23 = vsel %vm13_vm2, %v3440_v14, %v769_v18  ;;  %v3452_v30 = vld [vmem:[%s7952_s0 + $0x69] sm:$0x8]   ;;  %749 = vrot.lane.b32.xlu1 %v748_v27, %s4244_s20  ;;  %v810_v34 = vsel %vm9_vm1, %v3451_v26, %v806_v29  ;;  %v3462_v40 = vld [vmem:[%s7952_s0 + $0x1a] sm:$0x2]  }
  0x38   :  { %v3442_v19 = vld [vmem:[%s7952_s0 + $0x98] sm:$0x20]   ;;  %v777_v28 = vsel %vm17_vm3, %v3441_v15, %v773_v23  ;;  %v3453_v31 = vld [vmem:[%s7952_s0 + $0xc8] sm:$0x10]   ;;  %v814_v38 = vsel %vm13_vm2, %v3452_v30, %v810_v34  ;;  %v3463_v41 = vld [vmem:[%s7952_s0 + $0x79] sm:$0x4]   ;;  %v847_v44 = vsel %vm5_vm0, %v3462_v40, %v3461_v39 }
  0x39   :  { %v3443_v20 = vld [vmem:[%s7952_s0 + $0xf7] sm:$0x40]   ;;  %v3454_v32 = vld [vmem:[%s7952_s0 + $0xa7] sm:$0x20]   ;;  %v781_v33 = vsel %vm21_vm4, %v3442_v19, %v777_v28  ;;  %v818_v43 = vsel %vm17_vm3, %v3453_v31, %v814_v38  ;;  %v3464_v45 = vld [vmem:[%s7952_s0 + $0x58] sm:$0x8]   ;;  %v851_v49 = vsel %vm9_vm1, %v3463_v41, %v847_v44 }
  0x3a   :  { %v3444_v21 = vld [vmem:[%s7952_s0 + $0xd6] sm:$0x80]   ;;  %v3455_v35 = vld [vmem:[%s7952_s0 + $0x86] sm:$0x40]   ;;  %v785_v37 = vsel %vm25_vm5, %v3443_v20, %v781_v33  ;;  %v3465_v46 = vld [vmem:[%s7952_s0 + $0xb7] sm:$0x10]   ;;  %v822_v48 = vsel %vm21_vm4, %v3454_v32, %v818_v43  ;;  %v855_v54 = vsel %vm13_vm2, %v3464_v45, %v851_v49 }
  0x3b   :  { %v3456_v36 = vld [vmem:[%s7952_s0 + $0xe5] sm:$0x80]   ;;  %v789_v42 = vsel %vm29_vm6, %v3444_v21, %v785_v37  ;;  %v3466_v47 = vld [vmem:[%s7952_s0 + $0x96] sm:$0x20]   ;;  %v3473_v52 = vld [vmem:[%s7952_s0 + $0x4a] sm:$0x1]   ;;  %v826_v53 = vsel %vm25_vm5, %v3455_v35, %v822_v48  ;;  %v859_v59 = vsel %vm17_vm3, %v3465_v46, %v855_v54 }
  0x3c   :  { %790 = vrot.lane.b32.xlu0 %v789_v42, %s4245_s8  ;;  %v3467_v50 = vld [vmem:[%s7952_s0 + $0xf5] sm:$0x40]   ;;  %v3474_v55 = vld [vmem:[%s7952_s0 + $0x29] sm:$0x2]   ;;  %v830_v58 = vsel %vm29_vm6, %v3456_v36, %v826_v53  ;;  %s4246_s27 = smov 108   ;;  %v863_v0 = vsel %vm21_vm4, %v3466_v47, %v859_v59  ;;  %s4247_s15 = smov 107  }
  0x3d   :  { %v3468_v51 = vld [vmem:[%s7952_s0 + $0xd4] sm:$0x80]   ;;  %v3475_v56 = vld [vmem:[%s7952_s0 + $0x8] sm:$0x4]   ;;  %v888_v60 = vsel %vm5_vm0, %v3474_v55, %v3473_v52  ;;  %831 = vrot.lane.b32.xlu1 %v830_v58, %s4246_s27  ;;  %v3485_v3 = vld [vmem:[%s7952_s0 + $0x19] sm:$0x1]   ;;  %v867_v4 = vsel %vm25_vm5, %v3467_v50, %v863_v0 }
  0x3e   :  { %v3476_v57 = vld [vmem:[%s7952_s0 + $0x67] sm:$0x8]   ;;  %v892_v1 = vsel %vm9_vm1, %v3475_v56, %v888_v60  ;;  %v3486_v6 = vld [vmem:[%s7952_s0 + $0x78] sm:$0x2]   ;;  %v871_v9 = vsel %vm29_vm6, %v3468_v51, %v867_v4  ;;  %v3497_v18 = vld [vmem:[%s7952_s0 + $0x28] sm:$0x1]  }
  0x3f   :  { %v3477_v61 = vld [vmem:[%s7952_s0 + $0xc6] sm:$0x10]   ;;  %v896_v5 = vsel %vm13_vm2, %v3476_v57, %v892_v1  ;;  %v3487_v7 = vld [vmem:[%s7952_s0 + $0x57] sm:$0x4]   ;;  %v929_v11 = vsel %vm5_vm0, %v3486_v6, %v3485_v3  ;;  %v3498_v19 = vld [vmem:[%s7952_s0 + $0x7] sm:$0x2]  }
  0x40   :  { %v3478_v62 = vld [vmem:[%s7952_s0 + $0xa5] sm:$0x20]   ;;  %v3488_v8 = vld [vmem:[%s7952_s0 + $0x36] sm:$0x8]   ;;  %v900_v10 = vsel %vm17_vm3, %v3477_v61, %v896_v5  ;;  %872 = vrot.lane.b32.xlu0 %v871_v9, %s4247_s15  ;;  %v933_v16 = vsel %vm9_vm1, %v3487_v7, %v929_v11  ;;  %v970_v22 = vsel %vm5_vm0, %v3498_v19, %v3497_v18  ;;  %v3499_v23 = vld [vmem:[%s7952_s0 + $0x66] sm:$0x4]  }
  0x41   :  { %v3479_v63 = vld [vmem:[%s7952_s0 + $0x84] sm:$0x40]   ;;  %v3489_v12 = vld [vmem:[%s7952_s0 + $0x95] sm:$0x10]   ;;  %v904_v15 = vsel %vm21_vm4, %v3478_v62, %v900_v10  ;;  %v937_v21 = vsel %vm13_vm2, %v3488_v8, %v933_v16  ;;  %v3500_v24 = vld [vmem:[%s7952_s0 + $0x45] sm:$0x8]   ;;  %v974_v28 = vsel %vm9_vm1, %v3499_v23, %v970_v22 }
  0x42   :  { %v3480_v2 = vld [vmem:[%s7952_s0 + $0xe3] sm:$0x80]   ;;  %v3490_v13 = vld [vmem:[%s7952_s0 + $0xf4] sm:$0x20]   ;;  %v908_v20 = vsel %vm25_vm5, %v3479_v63, %v904_v15  ;;  %v3501_v25 = vld [vmem:[%s7952_s0 + $0xa4] sm:$0x10]   ;;  %v941_v27 = vsel %vm17_vm3, %v3489_v12, %v937_v21  ;;  %v978_v33 = vsel %vm13_vm2, %v3500_v24, %v974_v28 }
  0x43   :  { %v3491_v14 = vld [vmem:[%s7952_s0 + $0xd3] sm:$0x40]   ;;  %v912_v26 = vsel %vm29_vm6, %v3480_v2, %v908_v20  ;;  %v3502_v29 = vld [vmem:[%s7952_s0 + $0x83] sm:$0x20]   ;;  %s4248_s5 = smov 106   ;;  %v945_v32 = vsel %vm21_vm4, %v3490_v13, %v941_v27  ;;  %v982_v37 = vsel %vm17_vm3, %v3501_v25, %v978_v33  ;;  %s4249_s22 = smov 105  }
  0x44   :  { %v3492_v17 = vld [vmem:[%s7952_s0 + $0xb2] sm:$0x80]   ;;  %v3503_v30 = vld [vmem:[%s7952_s0 + $0xe2] sm:$0x40]   ;;  %913 = vrot.lane.b32.xlu1 %v912_v26, %s4248_s5  ;;  %v3509_v34 = vld [vmem:[%s7952_s0 + $0x17] sm:$0x1]   ;;  %v949_v36 = vsel %vm25_vm5, %v3491_v14, %v945_v32  ;;  %v986_v43 = vsel %vm21_vm4, %v3502_v29, %v982_v37 }
  0x45   :  { %v3504_v31 = vld [vmem:[%s7952_s0 + $0xc1] sm:$0x80]   ;;  %v3510_v35 = vld [vmem:[%s7952_s0 + $0x76] sm:$0x2]   ;;  %v953_v42 = vsel %vm29_vm6, %v3492_v17, %v949_v36  ;;  %v990_v48 = vsel %vm25_vm5, %v3503_v30, %v986_v43  ;;  %v3521_v50 = vld [vmem:[%s7952_s0 + $0x26] sm:$0x1]  }
  0x46   :  { %v1011_v38 = vsel %vm5_vm0, %v3510_v35, %v3509_v34  ;;  %v3511_v39 = vld [vmem:[%s7952_s0 + $0x55] sm:$0x4]   ;;  %954 = vrot.lane.b32.xlu0 %v953_v42, %s4249_s22  ;;  %v3522_v51 = vld [vmem:[%s7952_s0 + $0x5] sm:$0x2]   ;;  %v994_v53 = vsel %vm29_vm6, %v3504_v31, %v990_v48  ;;  %s4250_s6 = smov 104   ;;  %s4251_s23 = smov 103  }
  0x47   :  { %v3512_v40 = vld [vmem:[%s7952_s0 + $0x34] sm:$0x8]   ;;  %v1015_v44 = vsel %vm9_vm1, %v3511_v39, %v1011_v38  ;;  %v3523_v52 = vld [vmem:[%s7952_s0 + $0x64] sm:$0x4]   ;;  %v1052_v55 = vsel %vm5_vm0, %v3522_v51, %v3521_v50  ;;  %v3533_v1 = vld [vmem:[%s7952_s0 + $0x15] sm:$0x1]  }
  0x48   :  { %v3513_v41 = vld [vmem:[%s7952_s0 + $0x93] sm:$0x10]   ;;  %v1019_v49 = vsel %vm13_vm2, %v3512_v40, %v1015_v44  ;;  %v3524_v56 = vld [vmem:[%s7952_s0 + $0x43] sm:$0x8]   ;;  %995 = vrot.lane.b32.xlu1 %v994_v53, %s4250_s6  ;;  %v1056_v60 = vsel %vm9_vm1, %v3523_v52, %v1052_v55  ;;  %v3534_v2 = vld [vmem:[%s7952_s0 + $0x74] sm:$0x2]  }
  0x49   :  { %v3514_v45 = vld [vmem:[%s7952_s0 + $0xf2] sm:$0x20]   ;;  %v1023_v54 = vsel %vm17_vm3, %v3513_v41, %v1019_v49  ;;  %v3525_v57 = vld [vmem:[%s7952_s0 + $0xa2] sm:$0x10]   ;;  %v1060_v0 = vsel %vm13_vm2, %v3524_v56, %v1056_v60  ;;  %v3535_v3 = vld [vmem:[%s7952_s0 + $0x53] sm:$0x4]   ;;  %v1093_v6 = vsel %vm5_vm0, %v3534_v2, %v3533_v1 }
  0x4a   :  { %v3515_v46 = vld [vmem:[%s7952_s0 + $0xd1] sm:$0x40]   ;;  %v3526_v58 = vld [vmem:[%s7952_s0 + $0x81] sm:$0x20]   ;;  %v1027_v59 = vsel %vm21_vm4, %v3514_v45, %v1023_v54  ;;  %v1064_v5 = vsel %vm17_vm3, %v3525_v57, %v1060_v0  ;;  %v3536_v7 = vld [vmem:[%s7952_s0 + $0x32] sm:$0x8]   ;;  %v1097_v11 = vsel %vm9_vm1, %v3535_v3, %v1093_v6 }
  0x4b   :  { %v3516_v47 = vld [vmem:[%s7952_s0 + $0xb0] sm:$0x80]   ;;  %v3527_v61 = vld [vmem:[%s7952_s0 + $0xe0] sm:$0x40]   ;;  %v1031_v63 = vsel %vm25_vm5, %v3515_v46, %v1027_v59  ;;  %v3537_v8 = vld [vmem:[%s7952_s0 + $0x91] sm:$0x10]   ;;  %v1068_v10 = vsel %vm21_vm4, %v3526_v58, %v1064_v5  ;;  %v1101_v16 = vsel %vm13_vm2, %v3536_v7, %v1097_v11 }
  0x4c   :  { %v3528_v62 = vld [vmem:[%s7952_s0 + $0xbf] sm:$0x80]   ;;  %v1035_v4 = vsel %vm29_vm6, %v3516_v47, %v1031_v63  ;;  %v3538_v9 = vld [vmem:[%s7952_s0 + $0xf0] sm:$0x20]   ;;  %v3545_v14 = vld [vmem:[%s7952_s0 + $0x4] sm:$0x1]   ;;  %v1072_v15 = vsel %vm25_vm5, %v3527_v61, %v1068_v10  ;;  %v1105_v21 = vsel %vm17_vm3, %v3537_v8, %v1101_v16 }
  0x4d   :  { %1036 = vrot.lane.b32.xlu0 %v1035_v4, %s4251_s23  ;;  %v3539_v12 = vld [vmem:[%s7952_s0 + $0xcf] sm:$0x40]   ;;  %v3546_v17 = vld [vmem:[%s7952_s0 + $0x63] sm:$0x2]   ;;  %v1076_v20 = vsel %vm29_vm6, %v3528_v62, %v1072_v15  ;;  %s4252_s13 = smov 102   ;;  %v1109_v26 = vsel %vm21_vm4, %v3538_v9, %v1105_v21  ;;  %s4253_s30 = smov 101  }
  0x4e   :  { %v3540_v13 = vld [vmem:[%s7952_s0 + $0xae] sm:$0x80]   ;;  %v3547_v18 = vld [vmem:[%s7952_s0 + $0x42] sm:$0x4]   ;;  %v1134_v22 = vsel %vm5_vm0, %v3546_v17, %v3545_v14  ;;  %1077 = vrot.lane.b32.xlu1 %v1076_v20, %s4252_s13  ;;  %v3557_v29 = vld [vmem:[%s7952_s0 + $0x73] sm:$0x1]   ;;  %v1113_v30 = vsel %vm25_vm5, %v3539_v12, %v1109_v26 }
  0x4f   :  { %v3548_v19 = vld [vmem:[%s7952_s0 + $0x21] sm:$0x8]   ;;  %v1138_v27 = vsel %vm9_vm1, %v3547_v18, %v1134_v22  ;;  %v3558_v32 = vld [vmem:[%s7952_s0 + $0x52] sm:$0x2]   ;;  %v1117_v35 = vsel %vm29_vm6, %v3540_v13, %v1113_v30  ;;  %v3567_v44 = vld [vmem:[%s7952_s0 + $0x2] sm:$0x1]  }
  0x50   :  { %v3549_v23 = vld [vmem:[%s7952_s0 + $0x80] sm:$0x10]   ;;  %v1142_v31 = vsel %vm13_vm2, %v3548_v19, %v1138_v27  ;;  %v3559_v33 = vld [vmem:[%s7952_s0 + $0x31] sm:$0x4]   ;;  %v1175_v37 = vsel %vm5_vm0, %v3558_v32, %v3557_v29  ;;  %v3568_v45 = vld [vmem:[%s7952_s0 + $0x61] sm:$0x2]  }
  0x51   :  { %v3550_v24 = vld [vmem:[%s7952_s0 + $0xdf] sm:$0x20]   ;;  %v3560_v34 = vld [vmem:[%s7952_s0 + $0x10] sm:$0x8]   ;;  %v1146_v36 = vsel %vm17_vm3, %v3549_v23, %v1142_v31  ;;  %1118 = vrot.lane.b32.xlu0 %v1117_v35, %s4253_s30  ;;  %v1179_v42 = vsel %vm9_vm1, %v3559_v33, %v1175_v37  ;;  %v1212_v48 = vsel %vm5_vm0, %v3568_v45, %v3567_v44  ;;  %v3569_v49 = vld [vmem:[%s7952_s0 + $0x40] sm:$0x4]  }
  0x52   :  { %v3551_v25 = vld [vmem:[%s7952_s0 + $0xbe] sm:$0x40]   ;;  %v3561_v38 = vld [vmem:[%s7952_s0 + $0xef] sm:$0x10]   ;;  %v1150_v41 = vsel %vm21_vm4, %v3550_v24, %v1146_v36  ;;  %v1183_v47 = vsel %vm13_vm2, %v3560_v34, %v1179_v42  ;;  %v3570_v50 = vld [vmem:[%s7952_s0 + $0x1f] sm:$0x8]   ;;  %v1216_v54 = vsel %vm9_vm1, %v3569_v49, %v1212_v48 }
  0x53   :  { %v3552_v28 = vld [vmem:[%s7952_s0 + $0x9d] sm:$0x80]   ;;  %v3562_v39 = vld [vmem:[%s7952_s0 + $0xce] sm:$0x20]   ;;  %v1154_v46 = vsel %vm25_vm5, %v3551_v25, %v1150_v41  ;;  %v3571_v51 = vld [vmem:[%s7952_s0 + $0x7e] sm:$0x10]   ;;  %v1187_v53 = vsel %vm17_vm3, %v3561_v38, %v1183_v47  ;;  %v1220_v59 = vsel %vm13_vm2, %v3570_v50, %v1216_v54 }
  0x54   :  { %v3563_v40 = vld [vmem:[%s7952_s0 + $0xad] sm:$0x40]   ;;  %v1158_v52 = vsel %vm29_vm6, %v3552_v28, %v1154_v46  ;;  %v3572_v55 = vld [vmem:[%s7952_s0 + $0xdd] sm:$0x20]   ;;  %s4254_s20 = smov 100   ;;  %v1191_v58 = vsel %vm21_vm4, %v3562_v39, %v1187_v53  ;;  %v1224_v63 = vsel %vm17_vm3, %v3571_v51, %v1220_v59  ;;  %s4255_s8 = smov 99  }
  0x55   :  { %v3564_v43 = vld [vmem:[%s7952_s0 + $0x8c] sm:$0x80]   ;;  %v3573_v56 = vld [vmem:[%s7952_s0 + $0xbc] sm:$0x40]   ;;  %1159 = vrot.lane.b32.xlu1 %v1158_v52, %s4254_s20  ;;  %v3579_v60 = vld [vmem:[%s7952_s0 + $0x71] sm:$0x1]   ;;  %v1195_v62 = vsel %vm25_vm5, %v3563_v40, %v1191_v58  ;;  %v1228_v5 = vsel %vm21_vm4, %v3572_v55, %v1224_v63 }
  0x56   :  { %v3574_v57 = vld [vmem:[%s7952_s0 + $0x9b] sm:$0x80]   ;;  %v3580_v61 = vld [vmem:[%s7952_s0 + $0x50] sm:$0x2]   ;;  %v1199_v4 = vsel %vm29_vm6, %v3564_v43, %v1195_v62  ;;  %v1232_v10 = vsel %vm25_vm5, %v3573_v56, %v1228_v5  ;;  %v1285_v12 = vld [vmem:[%s7952_s0] sm:$0x1]  }
  0x57   :  { %v1253_v0 = vsel %vm5_vm0, %v3580_v61, %v3579_v60  ;;  %v3581_v1 = vld [vmem:[%s7952_s0 + $0x2f] sm:$0x4]   ;;  %1200 = vrot.lane.b32.xlu0 %v1199_v4, %s4255_s8  ;;  %v3589_v13 = vld [vmem:[%s7952_s0 + $0x5f] sm:$0x2]   ;;  %v1236_v15 = vsel %vm29_vm6, %v3574_v57, %v1232_v10  ;;  %s4256_s21 = smov 98   ;;  %s4257_s9 = smov 97  }
  0x58   :  { %v3582_v2 = vld [vmem:[%s7952_s0 + $0xe] sm:$0x8]   ;;  %v1257_v6 = vsel %vm9_vm1, %v3581_v1, %v1253_v0  ;;  %v3590_v14 = vld [vmem:[%s7952_s0 + $0x3e] sm:$0x4]   ;;  %v1289_v17 = vsel %vm5_vm0, %v3589_v13, %v1285_v12  ;;  %v3600_v27 = vld [vmem:[%s7952_s0 + $0x6f] sm:$0x1]  }
  0x59   :  { %v3583_v3 = vld [vmem:[%s7952_s0 + $0xed] sm:$0x10]   ;;  %v1261_v11 = vsel %vm13_vm2, %v3582_v2, %v1257_v6  ;;  %v3591_v18 = vld [vmem:[%s7952_s0 + $0x1d] sm:$0x8]   ;;  %1237 = vrot.lane.b32.xlu1 %v1236_v15, %s4256_s21  ;;  %v1293_v22 = vsel %vm9_vm1, %v3590_v14, %v1289_v17  ;;  %v3601_v28 = vld [vmem:[%s7952_s0 + $0x4e] sm:$0x2]  }
  0x5a   :  { %v3584_v7 = vld [vmem:[%s7952_s0 + $0xcc] sm:$0x20]   ;;  %v1265_v16 = vsel %vm17_vm3, %v3583_v3, %v1261_v11  ;;  %v3592_v19 = vld [vmem:[%s7952_s0 + $0x7c] sm:$0x10]   ;;  %v1297_v26 = vsel %vm13_vm2, %v3591_v18, %v1293_v22  ;;  %v3602_v29 = vld [vmem:[%s7952_s0 + $0x2d] sm:$0x4]   ;;  %v1330_v32 = vsel %vm5_vm0, %v3601_v28, %v3600_v27 }
  0x5b   :  { %v3585_v8 = vld [vmem:[%s7952_s0 + $0xab] sm:$0x40]   ;;  %v3593_v20 = vld [vmem:[%s7952_s0 + $0xdb] sm:$0x20]   ;;  %v1269_v21 = vsel %vm21_vm4, %v3584_v7, %v1265_v16  ;;  %v1301_v31 = vsel %vm17_vm3, %v3592_v19, %v1297_v26  ;;  %v3603_v33 = vld [vmem:[%s7952_s0 + $0xc] sm:$0x8]   ;;  %v1334_v37 = vsel %vm9_vm1, %v3602_v29, %v1330_v32 }
  0x5c   :  { %v3586_v9 = vld [vmem:[%s7952_s0 + $0x8a] sm:$0x80]   ;;  %v3594_v23 = vld [vmem:[%s7952_s0 + $0xba] sm:$0x40]   ;;  %v1273_v25 = vsel %vm25_vm5, %v3585_v8, %v1269_v21  ;;  %v3604_v34 = vld [vmem:[%s7952_s0 + $0xeb] sm:$0x10]   ;;  %v1305_v36 = vsel %vm21_vm4, %v3593_v20, %v1301_v31  ;;  %v1338_v42 = vsel %vm13_vm2, %v3603_v33, %v1334_v37 }
  0x5d   :  { %v3595_v24 = vld [vmem:[%s7952_s0 + $0x99] sm:$0x80]   ;;  %v1277_v30 = vsel %vm29_vm6, %v3586_v9, %v1273_v25  ;;  %v3605_v35 = vld [vmem:[%s7952_s0 + $0xca] sm:$0x20]   ;;  %v3610_v40 = vld [vmem:[%s7952_s0 + $0x3e] sm:$0x1]   ;;  %v1309_v41 = vsel %vm25_vm5, %v3594_v23, %v1305_v36  ;;  %v1342_v47 = vsel %vm17_vm3, %v3604_v34, %v1338_v42 }
  0x5e   :  { %1278 = vrot.lane.b32.xlu0 %v1277_v30, %s4257_s9  ;;  %v3606_v38 = vld [vmem:[%s7952_s0 + $0xa9] sm:$0x40]   ;;  %v3611_v43 = vld [vmem:[%s7952_s0 + $0x1d] sm:$0x2]   ;;  %v1313_v46 = vsel %vm29_vm6, %v3595_v24, %v1309_v41  ;;  %s4258_s28 = smov 96   ;;  %v1346_v52 = vsel %vm21_vm4, %v3605_v35, %v1342_v47  ;;  %s4259_s16 = smov 95  }
  0x5f   :  { %v3607_v39 = vld [vmem:[%s7952_s0 + $0x88] sm:$0x80]   ;;  %v3612_v44 = vld [vmem:[%s7952_s0 + $0x7c] sm:$0x4]   ;;  %v1367_v48 = vsel %vm5_vm0, %v3611_v43, %v3610_v40  ;;  %1314 = vrot.lane.b32.xlu1 %v1313_v46, %s4258_s28  ;;  %v3622_v55 = vld [vmem:[%s7952_s0 + $0x4d] sm:$0x1]   ;;  %v1350_v56 = vsel %vm25_vm5, %v3606_v38, %v1346_v52 }
  0x60   :  { %v3613_v45 = vld [vmem:[%s7952_s0 + $0x5b] sm:$0x8]   ;;  %v1371_v53 = vsel %vm9_vm1, %v3612_v44, %v1367_v48  ;;  %v3623_v58 = vld [vmem:[%s7952_s0 + $0x2c] sm:$0x2]   ;;  %v1354_v61 = vsel %vm29_vm6, %v3607_v39, %v1350_v56  ;;  %v3634_v6 = vld [vmem:[%s7952_s0 + $0x3c] sm:$0x1]  }
  0x61   :  { %v3614_v49 = vld [vmem:[%s7952_s0 + $0xba] sm:$0x10]   ;;  %v1375_v57 = vsel %vm13_vm2, %v3613_v45, %v1371_v53  ;;  %v3624_v59 = vld [vmem:[%s7952_s0 + $0xb] sm:$0x4]   ;;  %v1408_v63 = vsel %vm5_vm0, %v3623_v58, %v3622_v55  ;;  %v3635_v7 = vld [vmem:[%s7952_s0 + $0x1b] sm:$0x2]  }
  0x62   :  { %v3615_v50 = vld [vmem:[%s7952_s0 + $0x99] sm:$0x20]   ;;  %v3625_v60 = vld [vmem:[%s7952_s0 + $0x6a] sm:$0x8]   ;;  %v1379_v62 = vsel %vm17_vm3, %v3614_v49, %v1375_v57  ;;  %1355 = vrot.lane.b32.xlu0 %v1354_v61, %s4259_s16  ;;  %v1412_v4 = vsel %vm9_vm1, %v3624_v59, %v1408_v63  ;;  %v1449_v10 = vsel %vm5_vm0, %v3635_v7, %v3634_v6  ;;  %v3636_v11 = vld [vmem:[%s7952_s0 + $0x7a] sm:$0x4]  }
  0x63   :  { %v3616_v51 = vld [vmem:[%s7952_s0 + $0xf8] sm:$0x40]   ;;  %v3626_v0 = vld [vmem:[%s7952_s0 + $0xc9] sm:$0x10]   ;;  %v1383_v3 = vsel %vm21_vm4, %v3615_v50, %v1379_v62  ;;  %v1416_v9 = vsel %vm13_vm2, %v3625_v60, %v1412_v4  ;;  %v3637_v12 = vld [vmem:[%s7952_s0 + $0x59] sm:$0x8]   ;;  %v1453_v16 = vsel %vm9_vm1, %v3636_v11, %v1449_v10 }
  0x64   :  { %v3617_v54 = vld [vmem:[%s7952_s0 + $0xd7] sm:$0x80]   ;;  %v3627_v1 = vld [vmem:[%s7952_s0 + $0xa8] sm:$0x20]   ;;  %v1387_v8 = vsel %vm25_vm5, %v3616_v51, %v1383_v3  ;;  %v3638_v13 = vld [vmem:[%s7952_s0 + $0xb8] sm:$0x10]   ;;  %v1420_v15 = vsel %vm17_vm3, %v3626_v0, %v1416_v9  ;;  %v1457_v21 = vsel %vm13_vm2, %v3637_v12, %v1453_v16 }
  0x65   :  { %v3628_v2 = vld [vmem:[%s7952_s0 + $0x87] sm:$0x40]   ;;  %v1391_v14 = vsel %vm29_vm6, %v3617_v54, %v1387_v8  ;;  %v3639_v17 = vld [vmem:[%s7952_s0 + $0x97] sm:$0x20]   ;;  %s4260_s6 = smov 94   ;;  %v1424_v20 = vsel %vm21_vm4, %v3627_v1, %v1420_v15  ;;  %v1461_v25 = vsel %vm17_vm3, %v3638_v13, %v1457_v21  ;;  %s4261_s23 = smov 93  }
  0x66   :  { %v3629_v5 = vld [vmem:[%s7952_s0 + $0xe6] sm:$0x80]   ;;  %v3640_v18 = vld [vmem:[%s7952_s0 + $0xf6] sm:$0x40]   ;;  %1392 = vrot.lane.b32.xlu1 %v1391_v14, %s4260_s6  ;;  %v3646_v22 = vld [vmem:[%s7952_s0 + $0x4b] sm:$0x1]   ;;  %v1428_v24 = vsel %vm25_vm5, %v3628_v2, %v1424_v20  ;;  %v1465_v31 = vsel %vm21_vm4, %v3639_v17, %v1461_v25 }
  0x67   :  { %v3641_v19 = vld [vmem:[%s7952_s0 + $0xd5] sm:$0x80]   ;;  %v3647_v23 = vld [vmem:[%s7952_s0 + $0x2a] sm:$0x2]   ;;  %v1432_v30 = vsel %vm29_vm6, %v3629_v5, %v1428_v24  ;;  %v1469_v36 = vsel %vm25_vm5, %v3640_v18, %v1465_v31  ;;  %v3658_v38 = vld [vmem:[%s7952_s0 + $0x3a] sm:$0x1]  }
  0x68   :  { %v1490_v26 = vsel %vm5_vm0, %v3647_v23, %v3646_v22  ;;  %v3648_v27 = vld [vmem:[%s7952_s0 + $0x9] sm:$0x4]   ;;  %1433 = vrot.lane.b32.xlu0 %v1432_v30, %s4261_s23  ;;  %v3659_v39 = vld [vmem:[%s7952_s0 + $0x19] sm:$0x2]   ;;  %v1473_v41 = vsel %vm29_vm6, %v3641_v19, %v1469_v36  ;;  %s4262_s7 = smov 92   ;;  %s4263_s24 = smov 91  }
  0x69   :  { %v3649_v28 = vld [vmem:[%s7952_s0 + $0x68] sm:$0x8]   ;;  %v1494_v32 = vsel %vm9_vm1, %v3648_v27, %v1490_v26  ;;  %v3660_v40 = vld [vmem:[%s7952_s0 + $0x78] sm:$0x4]   ;;  %v1531_v43 = vsel %vm5_vm0, %v3659_v39, %v3658_v38  ;;  %v3670_v53 = vld [vmem:[%s7952_s0 + $0x29] sm:$0x1]  }
  0x6a   :  { %v3650_v29 = vld [vmem:[%s7952_s0 + $0xc7] sm:$0x10]   ;;  %v1498_v37 = vsel %vm13_vm2, %v3649_v28, %v1494_v32  ;;  %v3661_v44 = vld [vmem:[%s7952_s0 + $0x57] sm:$0x8]   ;;  %1474 = vrot.lane.b32.xlu1 %v1473_v41, %s4262_s7  ;;  %v1535_v48 = vsel %vm9_vm1, %v3660_v40, %v1531_v43  ;;  %v3671_v54 = vld [vmem:[%s7952_s0 + $0x8] sm:$0x2]  }
  0x6b   :  { %v3651_v33 = vld [vmem:[%s7952_s0 + $0xa6] sm:$0x20]   ;;  %v1502_v42 = vsel %vm17_vm3, %v3650_v29, %v1498_v37  ;;  %v3662_v45 = vld [vmem:[%s7952_s0 + $0xb6] sm:$0x10]   ;;  %v1539_v52 = vsel %vm13_vm2, %v3661_v44, %v1535_v48  ;;  %v3672_v55 = vld [vmem:[%s7952_s0 + $0x67] sm:$0x4]   ;;  %v1572_v58 = vsel %vm5_vm0, %v3671_v54, %v3670_v53 }
  0x6c   :  { %v3652_v34 = vld [vmem:[%s7952_s0 + $0x85] sm:$0x40]   ;;  %v3663_v46 = vld [vmem:[%s7952_s0 + $0x95] sm:$0x20]   ;;  %v1506_v47 = vsel %vm21_vm4, %v3651_v33, %v1502_v42  ;;  %v1543_v57 = vsel %vm17_vm3, %v3662_v45, %v1539_v52  ;;  %v3673_v59 = vld [vmem:[%s7952_s0 + $0x46] sm:$0x8]   ;;  %v1576_v63 = vsel %vm9_vm1, %v3672_v55, %v1572_v58 }
  0x6d   :  { %v3653_v35 = vld [vmem:[%s7952_s0 + $0xe4] sm:$0x80]   ;;  %v3664_v49 = vld [vmem:[%s7952_s0 + $0xf4] sm:$0x40]   ;;  %v1510_v51 = vsel %vm25_vm5, %v3652_v34, %v1506_v47  ;;  %v3674_v60 = vld [vmem:[%s7952_s0 + $0xa5] sm:$0x10]   ;;  %v1547_v62 = vsel %vm21_vm4, %v3663_v46, %v1543_v57  ;;  %v1580_v4 = vsel %vm13_vm2, %v3673_v59, %v1576_v63 }
  0x6e   :  { %v3665_v50 = vld [vmem:[%s7952_s0 + $0xd3] sm:$0x80]   ;;  %v1514_v56 = vsel %vm29_vm6, %v3653_v35, %v1510_v51  ;;  %v3675_v61 = vld [vmem:[%s7952_s0 + $0x84] sm:$0x20]   ;;  %v3682_v2 = vld [vmem:[%s7952_s0 + $0x18] sm:$0x1]   ;;  %v1551_v3 = vsel %vm25_vm5, %v3664_v49, %v1547_v62  ;;  %v1584_v9 = vsel %vm17_vm3, %v3674_v60, %v1580_v4 }
  0x6f   :  { %1515 = vrot.lane.b32.xlu0 %v1514_v56, %s4263_s24  ;;  %v3676_v0 = vld [vmem:[%s7952_s0 + $0xe3] sm:$0x40]   ;;  %v3683_v5 = vld [vmem:[%s7952_s0 + $0x77] sm:$0x2]   ;;  %v1555_v8 = vsel %vm29_vm6, %v3665_v50, %v1551_v3  ;;  %s4264_s14 = smov 90   ;;  %v1588_v14 = vsel %vm21_vm4, %v3675_v61, %v1584_v9  ;;  %s4265_s2 = smov 89  }
  0x70   :  { %v3677_v1 = vld [vmem:[%s7952_s0 + $0xc2] sm:$0x80]   ;;  %v3684_v6 = vld [vmem:[%s7952_s0 + $0x56] sm:$0x4]   ;;  %v1613_v10 = vsel %vm5_vm0, %v3683_v5, %v3682_v2  ;;  %1556 = vrot.lane.b32.xlu1 %v1555_v8, %s4264_s14  ;;  %v3694_v17 = vld [vmem:[%s7952_s0 + $0x27] sm:$0x1]   ;;  %v1592_v18 = vsel %vm25_vm5, %v3676_v0, %v1588_v14 }
  0x71   :  { %v3685_v7 = vld [vmem:[%s7952_s0 + $0x35] sm:$0x8]   ;;  %v1617_v15 = vsel %vm9_vm1, %v3684_v6, %v1613_v10  ;;  %v3695_v20 = vld [vmem:[%s7952_s0 + $0x6] sm:$0x2]   ;;  %v1596_v23 = vsel %vm29_vm6, %v3677_v1, %v1592_v18  ;;  %v3706_v32 = vld [vmem:[%s7952_s0 + $0x16] sm:$0x1]  }
  0x72   :  { %v3686_v11 = vld [vmem:[%s7952_s0 + $0x94] sm:$0x10]   ;;  %v1621_v19 = vsel %vm13_vm2, %v3685_v7, %v1617_v15  ;;  %v3696_v21 = vld [vmem:[%s7952_s0 + $0x65] sm:$0x4]   ;;  %v1654_v25 = vsel %vm5_vm0, %v3695_v20, %v3694_v17  ;;  %v3707_v33 = vld [vmem:[%s7952_s0 + $0x75] sm:$0x2]  }
  0x73   :  { %v3687_v12 = vld [vmem:[%s7952_s0 + $0xf3] sm:$0x20]   ;;  %v3697_v22 = vld [vmem:[%s7952_s0 + $0x44] sm:$0x8]   ;;  %v1625_v24 = vsel %vm17_vm3, %v3686_v11, %v1621_v19  ;;  %1597 = vrot.lane.b32.xlu0 %v1596_v23, %s4265_s2  ;;  %v1658_v30 = vsel %vm9_vm1, %v3696_v21, %v1654_v25  ;;  %v1695_v36 = vsel %vm5_vm0, %v3707_v33, %v3706_v32  ;;  %v3708_v37 = vld [vmem:[%s7952_s0 + $0x54] sm:$0x4]  }
  0x74   :  { %v3688_v13 = vld [vmem:[%s7952_s0 + $0xd2] sm:$0x40]   ;;  %v3698_v26 = vld [vmem:[%s7952_s0 + $0xa3] sm:$0x10]   ;;  %v1629_v29 = vsel %vm21_vm4, %v3687_v12, %v1625_v24  ;;  %v1662_v35 = vsel %vm13_vm2, %v3697_v22, %v1658_v30  ;;  %v3709_v38 = vld [vmem:[%s7952_s0 + $0x33] sm:$0x8]   ;;  %v1699_v42 = vsel %vm9_vm1, %v3708_v37, %v1695_v36 }
  0x75   :  { %v3689_v16 = vld [vmem:[%s7952_s0 + $0xb1] sm:$0x80]   ;;  %v3699_v27 = vld [vmem:[%s7952_s0 + $0x82] sm:$0x20]   ;;  %v1633_v34 = vsel %vm25_vm5, %v3688_v13, %v1629_v29  ;;  %v3710_v39 = vld [vmem:[%s7952_s0 + $0x92] sm:$0x10]   ;;  %v1666_v41 = vsel %vm17_vm3, %v3698_v26, %v1662_v35  ;;  %v1703_v47 = vsel %vm13_vm2, %v3709_v38, %v1699_v42 }
  0x76   :  { %v3700_v28 = vld [vmem:[%s7952_s0 + $0xe1] sm:$0x40]   ;;  %v1637_v40 = vsel %vm29_vm6, %v3689_v16, %v1633_v34  ;;  %v3711_v43 = vld [vmem:[%s7952_s0 + $0xf1] sm:$0x20]   ;;  %s4266_s21 = smov 88   ;;  %v1670_v46 = vsel %vm21_vm4, %v3699_v27, %v1666_v41  ;;  %v1707_v51 = vsel %vm17_vm3, %v3710_v39, %v1703_v47  ;;  %s4267_s9 = smov 87  }
  0x77   :  { %v3701_v31 = vld [vmem:[%s7952_s0 + $0xc0] sm:$0x80]   ;;  %v3712_v44 = vld [vmem:[%s7952_s0 + $0xd0] sm:$0x40]   ;;  %1638 = vrot.lane.b32.xlu1 %v1637_v40, %s4266_s21  ;;  %v3718_v48 = vld [vmem:[%s7952_s0 + $0x25] sm:$0x1]   ;;  %v1674_v50 = vsel %vm25_vm5, %v3700_v28, %v1670_v46  ;;  %v1711_v57 = vsel %vm21_vm4, %v3711_v43, %v1707_v51 }
  0x78   :  { %v3713_v45 = vld [vmem:[%s7952_s0 + $0xaf] sm:$0x80]   ;;  %v3719_v49 = vld [vmem:[%s7952_s0 + $0x4] sm:$0x2]   ;;  %v1678_v56 = vsel %vm29_vm6, %v3701_v31, %v1674_v50  ;;  %v1715_v62 = vsel %vm25_vm5, %v3712_v44, %v1711_v57  ;;  %v3730_v0 = vld [vmem:[%s7952_s0 + $0x14] sm:$0x1]  }
  0x79   :  { %v1736_v52 = vsel %vm5_vm0, %v3719_v49, %v3718_v48  ;;  %v3720_v53 = vld [vmem:[%s7952_s0 + $0x63] sm:$0x4]   ;;  %1679 = vrot.lane.b32.xlu0 %v1678_v56, %s4267_s9  ;;  %v3731_v1 = vld [vmem:[%s7952_s0 + $0x73] sm:$0x2]   ;;  %v1719_v3 = vsel %vm29_vm6, %v3713_v45, %v1715_v62  ;;  %s4268_s22 = smov 86   ;;  %s4269_s10 = smov 85  }
  0x7a   :  { %v3721_v54 = vld [vmem:[%s7952_s0 + $0x42] sm:$0x8]   ;;  %v1740_v58 = vsel %vm9_vm1, %v3720_v53, %v1736_v52  ;;  %v3732_v2 = vld [vmem:[%s7952_s0 + $0x52] sm:$0x4]   ;;  %v1777_v5 = vsel %vm5_vm0, %v3731_v1, %v3730_v0  ;;  %v3742_v16 = vld [vmem:[%s7952_s0 + $0x3] sm:$0x1]  }
  0x7b   :  { %v3722_v55 = vld [vmem:[%s7952_s0 + $0xa1] sm:$0x10]   ;;  %v1744_v63 = vsel %vm13_vm2, %v3721_v54, %v1740_v58  ;;  %v3733_v6 = vld [vmem:[%s7952_s0 + $0x31] sm:$0x8]   ;;  %1720 = vrot.lane.b32.xlu1 %v1719_v3, %s4268_s22  ;;  %v1781_v11 = vsel %vm9_vm1, %v3732_v2, %v1777_v5  ;;  %v3743_v17 = vld [vmem:[%s7952_s0 + $0x62] sm:$0x2]  }
  0x7c   :  { %v3723_v59 = vld [vmem:[%s7952_s0 + $0x80] sm:$0x20]   ;;  %v1748_v4 = vsel %vm17_vm3, %v3722_v55, %v1744_v63  ;;  %v3734_v7 = vld [vmem:[%s7952_s0 + $0x90] sm:$0x10]   ;;  %v5665_v9 = vpop.permute.xlu0 %64   ;;  %v1785_v15 = vsel %vm13_vm2, %v3733_v6, %v1781_v11  ;;  %v3744_v18 = vld [vmem:[%s7952_s0 + $0x41] sm:$0x4]   ;;  %v1818_v22 = vsel %vm5_vm0, %v3743_v17, %v3742_v16 }
  0x7d   :  { %v3724_v60 = vld [vmem:[%s7952_s0 + $0xdf] sm:$0x40]   ;;  %v3735_v8 = vld [vmem:[%s7952_s0 + $0xef] sm:$0x20]   ;;  %v1752_v10 = vsel %vm21_vm4, %v3723_v59, %v1748_v4  ;;  %v5686_v19 = vpop.permute.xlu1 %146   ;;  %v1789_v21 = vsel %vm17_vm3, %v3734_v7, %v1785_v15  ;;  %v3745_v23 = vld [vmem:[%s7952_s0 + $0x20] sm:$0x8]   ;;  %v1822_v27 = vsel %vm9_vm1, %v3744_v18, %v1818_v22 }
  0x7e   :  { %v3725_v61 = vld [vmem:[%s7952_s0 + $0xbe] sm:$0x80]   ;;  %v3736_v12 = vld [vmem:[%s7952_s0 + $0xce] sm:$0x40]   ;;  %v1756_v14 = vsel %vm25_vm5, %v3724_v60, %v1752_v10  ;;  %v3746_v24 = vld [vmem:[%s7952_s0 + $0x7f] sm:$0x10]   ;;  %v1793_v26 = vsel %vm21_vm4, %v3735_v8, %v1789_v21  ;;  %v1826_v32 = vsel %vm13_vm2, %v3745_v23, %v1822_v27 }
  0x7f   :  { %v3737_v13 = vld [vmem:[%s7952_s0 + $0xad] sm:$0x80]   ;;  %v1760_v20 = vsel %vm29_vm6, %v3725_v61, %v1756_v14  ;;  %v3747_v25 = vld [vmem:[%s7952_s0 + $0xde] sm:$0x20]   ;;  %v3754_v30 = vld [vmem:[%s7952_s0 + $0x72] sm:$0x1]   ;;  %v1797_v31 = vsel %vm25_vm5, %v3736_v12, %v1793_v26  ;;  %v1830_v38 = vsel %vm17_vm3, %v3746_v24, %v1826_v32 }
  0x80   :  { %1761 = vrot.lane.b32.xlu0 %v1760_v20, %s4269_s10  ;;  %v3748_v28 = vld [vmem:[%s7952_s0 + $0xbd] sm:$0x40]   ;;  %v3755_v33 = vld [vmem:[%s7952_s0 + $0x51] sm:$0x2]   ;;  %v5722_v36 = vpop.permute.xlu0 %105   ;;  %v1801_v37 = vsel %vm29_vm6, %v3737_v13, %v1797_v31  ;;  %s4270_s29 = smov 84   ;;  %v1834_v43 = vsel %vm21_vm4, %v3747_v25, %v1830_v38  ;;  %s4271_s17 = smov 83  }
  0x81   :  { %v3749_v29 = vld [vmem:[%s7952_s0 + $0x9c] sm:$0x80]   ;;  %v3756_v34 = vld [vmem:[%s7952_s0 + $0x30] sm:$0x4]   ;;  %v1859_v39 = vsel %vm5_vm0, %v3755_v33, %v3754_v30  ;;  %1802 = vrot.lane.b32.xlu1 %v1801_v37, %s4270_s29  ;;  %v3764_v46 = vld [vmem:[%s7952_s0 + $0x1] sm:$0x1]   ;;  %v1838_v47 = vsel %vm25_vm5, %v3748_v28, %v1834_v43 }
  0x82   :  { %v3757_v35 = vld [vmem:[%s7952_s0 + $0xf] sm:$0x8]   ;;  %v1863_v44 = vsel %vm9_vm1, %v3756_v34, %v1859_v39  ;;  %v3765_v49 = vld [vmem:[%s7952_s0 + $0x60] sm:$0x2]   ;;  %v1842_v53 = vsel %vm29_vm6, %v3749_v29, %v1838_v47  ;;  %v3776_v62 = vld [vmem:[%s7952_s0 + $0x70] sm:$0x1]  }
  0x83   :  { %v3758_v40 = vld [vmem:[%s7952_s0 + $0xee] sm:$0x10]   ;;  %v1867_v48 = vsel %vm13_vm2, %v3757_v35, %v1863_v44  ;;  %v3766_v50 = vld [vmem:[%s7952_s0 + $0x3f] sm:$0x4]   ;;  %v1896_v55 = vsel %vm5_vm0, %v3765_v49, %v3764_v46  ;;  %v3777_v63 = vld [vmem:[%s7952_s0 + $0x4f] sm:$0x2]  }
  0x84   :  { %v3759_v41 = vld [vmem:[%s7952_s0 + $0xcd] sm:$0x20]   ;;  %v3767_v51 = vld [vmem:[%s7952_s0 + $0x1e] sm:$0x8]   ;;  %v5755_v52 = vpop.permute.xlu1 %187   ;;  %v1871_v54 = vsel %vm17_vm3, %v3758_v40, %v1867_v48  ;;  %1843 = vrot.lane.b32.xlu0 %v1842_v53, %s4271_s17  ;;  %v1900_v60 = vsel %vm9_vm1, %v3766_v50, %v1896_v55  ;;  %v1937_v2 = vsel %vm5_vm0, %v3777_v63, %v3776_v62  ;;  %v3778_v3 = vld [vmem:[%s7952_s0 + $0x2e] sm:$0x4]  }
  0x85   :  { %v3760_v42 = vld [vmem:[%s7952_s0 + $0xac] sm:$0x40]   ;;  %v3768_v56 = vld [vmem:[%s7952_s0 + $0x7d] sm:$0x10]   ;;  %v1875_v59 = vsel %vm21_vm4, %v3759_v41, %v1871_v54  ;;  %v1904_v1 = vsel %vm13_vm2, %v3767_v51, %v1900_v60  ;;  %v3779_v4 = vld [vmem:[%s7952_s0 + $0xd] sm:$0x8]   ;;  %v5792_v6 = vpop.permute.xlu0 %228   ;;  %v1941_v10 = vsel %vm9_vm1, %v3778_v3, %v1937_v2 }
  0x86   :  { %v3761_v45 = vld [vmem:[%s7952_s0 + $0x8b] sm:$0x80]   ;;  %v3769_v57 = vld [vmem:[%s7952_s0 + $0xdc] sm:$0x20]   ;;  %v1879_v0 = vsel %vm25_vm5, %v3760_v42, %v1875_v59  ;;  %v3780_v5 = vld [vmem:[%s7952_s0 + $0xec] sm:$0x10]   ;;  %v1908_v8 = vsel %vm17_vm3, %v3768_v56, %v1904_v1  ;;  %v1945_v15 = vsel %vm13_vm2, %v3779_v4, %v1941_v10 }
  0x87   :  { %v3770_v58 = vld [vmem:[%s7952_s0 + $0xbb] sm:$0x40]   ;;  %v1883_v7 = vsel %vm29_vm6, %v3761_v45, %v1879_v0  ;;  %v3781_v11 = vld [vmem:[%s7952_s0 + $0xcb] sm:$0x20]   ;;  %s4272_s7 = smov 82   ;;  %v1912_v14 = vsel %vm21_vm4, %v3769_v57, %v1908_v8  ;;  %v1949_v21 = vsel %vm17_vm3, %v3780_v5, %v1945_v15  ;;  %s4273_s24 = smov 81  }
  0x88   :  { %v3771_v61 = vld [vmem:[%s7952_s0 + $0x9a] sm:$0x80]   ;;  %v3782_v12 = vld [vmem:[%s7952_s0 + $0xaa] sm:$0x40]   ;;  %1884 = vrot.lane.b32.xlu1 %v1883_v7, %s4272_s7  ;;  %v3786_v16 = vld [vmem:[%s7952_s0 + $0x4f] sm:$0x1]   ;;  %v5814_v18 = vpop.permute.xlu1 %269   ;;  %v1916_v20 = vsel %vm25_vm5, %v3770_v58, %v1912_v14  ;;  %v1953_v27 = vsel %vm21_vm4, %v3781_v11, %v1949_v21 }
  0x89   :  { %v3783_v13 = vld [vmem:[%s7952_s0 + $0x89] sm:$0x80]   ;;  %v3787_v17 = vld [vmem:[%s7952_s0 + $0x2e] sm:$0x2]   ;;  %v1920_v26 = vsel %vm29_vm6, %v3771_v61, %v1916_v20  ;;  %v1957_v32 = vsel %vm25_vm5, %v3782_v12, %v1953_v27  ;;  %v3798_v34 = vld [vmem:[%s7952_s0 + $0x3e] sm:$0x1]  }
  0x8a   :  { %v1974_v22 = vsel %vm5_vm0, %v3787_v17, %v3786_v16  ;;  %v3788_v23 = vld [vmem:[%s7952_s0 + $0xd] sm:$0x4]   ;;  %1921 = vrot.lane.b32.xlu0 %v1920_v26, %s4273_s24  ;;  %v3799_v35 = vld [vmem:[%s7952_s0 + $0x1d] sm:$0x2]   ;;  %v1961_v39 = vsel %vm29_vm6, %v3783_v13, %v1957_v32  ;;  %s4274_s8 = smov 80   ;;  %s4275_s25 = smov 31  }
  0x8b   :  { %v3789_v24 = vld [vmem:[%s7952_s0 + $0x6c] sm:$0x8]   ;;  %v1978_v28 = vsel %vm9_vm1, %v3788_v23, %v1974_v22  ;;  %v3800_v37 = vld [vmem:[%s7952_s0 + $0x7c] sm:$0x4]   ;;  %v2015_v41 = vsel %vm5_vm0, %v3799_v35, %v3798_v34  ;;  %v3810_v51 = vld [vmem:[%s7952_s0 + $0x4d] sm:$0x1]  }
  0x8c   :  { %v3790_v25 = vld [vmem:[%s7952_s0 + $0xcb] sm:$0x10]   ;;  %v1982_v33 = vsel %vm13_vm2, %v3789_v24, %v1978_v28  ;;  %v3801_v42 = vld [vmem:[%s7952_s0 + $0x5b] sm:$0x8]   ;;  %1962 = vrot.lane.b32.xlu1 %v1961_v39, %s4274_s8  ;;  %v2019_v46 = vsel %vm9_vm1, %v3800_v37, %v2015_v41  ;;  %v3811_v53 = vld [vmem:[%s7952_s0 + $0x2c] sm:$0x2]  }
  0x8d   :  { %v3791_v29 = vld [vmem:[%s7952_s0 + $0xaa] sm:$0x20]   ;;  %v5851_v38 = vpop.permute.xlu0 %310   ;;  %v1986_v40 = vsel %vm17_vm3, %v3790_v25, %v1982_v33  ;;  %v3802_v43 = vld [vmem:[%s7952_s0 + $0xba] sm:$0x10]   ;;  %v2023_v50 = vsel %vm13_vm2, %v3801_v42, %v2019_v46  ;;  %v3812_v54 = vld [vmem:[%s7952_s0 + $0xb] sm:$0x4]   ;;  %v5884_v55 = vpop.permute.xlu1 %351   ;;  %v2056_v58 = vsel %vm5_vm0, %v3811_v53, %v3810_v51 }
  0x8e   :  { %v3792_v30 = vld [vmem:[%s7952_s0 + $0x89] sm:$0x40]   ;;  %v3803_v44 = vld [vmem:[%s7952_s0 + $0x99] sm:$0x20]   ;;  %v1990_v45 = vsel %vm21_vm4, %v3791_v29, %v1986_v40  ;;  %v2027_v57 = vsel %vm17_vm3, %v3802_v43, %v2023_v50  ;;  %v3813_v59 = vld [vmem:[%s7952_s0 + $0x6a] sm:$0x8]   ;;  %v2060_v63 = vsel %vm9_vm1, %v3812_v54, %v2056_v58 }
  0x8f   :  { %v3793_v31 = vld [vmem:[%s7952_s0 + $0xe8] sm:$0x80]   ;;  %v3804_v47 = vld [vmem:[%s7952_s0 + $0xf8] sm:$0x40]   ;;  %v1994_v49 = vsel %vm25_vm5, %v3792_v30, %v1990_v45  ;;  %v3814_v60 = vld [vmem:[%s7952_s0 + $0xc9] sm:$0x10]   ;;  %v2031_v62 = vsel %vm21_vm4, %v3803_v44, %v2027_v57  ;;  %v2064_v4 = vsel %vm13_vm2, %v3813_v59, %v2060_v63 }
  0x90   :  { %v3805_v48 = vld [vmem:[%s7952_s0 + $0xd7] sm:$0x80]   ;;  %v1998_v56 = vsel %vm29_vm6, %v3793_v31, %v1994_v49  ;;  %v3815_v61 = vld [vmem:[%s7952_s0 + $0xa8] sm:$0x20]   ;;  %v3822_v2 = vld [vmem:[%s7952_s0 + $0x3c] sm:$0x1]   ;;  %v2035_v3 = vsel %vm25_vm5, %v3804_v47, %v2031_v62  ;;  %v2068_v12 = vsel %vm17_vm3, %v3814_v60, %v2064_v4 }
  0x91   :  { %1999 = vrot.lane.b32.xlu0 %v1998_v56, %s4275_s25  ;;  %v3816_v0 = vld [vmem:[%s7952_s0 + $0x87] sm:$0x40]   ;;  %v3823_v5 = vld [vmem:[%s7952_s0 + $0x1b] sm:$0x2]   ;;  %v5920_v10 = vpop.permute.xlu0 %392   ;;  %v2039_v11 = vsel %vm29_vm6, %v3805_v48, %v2035_v3  ;;  %s4276_s15 = smov 30   ;;  %v2072_v17 = vsel %vm21_vm4, %v3815_v61, %v2068_v12  ;;  %s4277_s3 = smov 29  }
  0x92   :  { %v3817_v1 = vld [vmem:[%s7952_s0 + $0xe6] sm:$0x80]   ;;  %v3824_v7 = vld [vmem:[%s7952_s0 + $0x7a] sm:$0x4]   ;;  %v2097_v13 = vsel %vm5_vm0, %v3823_v5, %v3822_v2  ;;  %2040 = vrot.lane.b32.xlu1 %v2039_v11, %s4276_s15  ;;  %v3834_v22 = vld [vmem:[%s7952_s0 + $0x4b] sm:$0x1]   ;;  %v2076_v23 = vsel %vm25_vm5, %v3816_v0, %v2072_v17 }
  0x93   :  { %v3825_v8 = vld [vmem:[%s7952_s0 + $0x59] sm:$0x8]   ;;  %v2101_v20 = vsel %vm9_vm1, %v3824_v7, %v2097_v13  ;;  %v3835_v25 = vld [vmem:[%s7952_s0 + $0x2a] sm:$0x2]   ;;  %v2080_v29 = vsel %vm29_vm6, %v3817_v1, %v2076_v23  ;;  %v3846_v40 = vld [vmem:[%s7952_s0 + $0x1a] sm:$0x1]  }
  0x94   :  { %v3826_v14 = vld [vmem:[%s7952_s0 + $0xb8] sm:$0x10]   ;;  %v2105_v24 = vsel %vm13_vm2, %v3825_v8, %v2101_v20  ;;  %v3836_v26 = vld [vmem:[%s7952_s0 + $0x9] sm:$0x4]   ;;  %v2138_v31 = vsel %vm5_vm0, %v3835_v25, %v3834_v22  ;;  %v3847_v41 = vld [vmem:[%s7952_s0 + $0x79] sm:$0x2]  }
  0x95   :  { %v3827_v15 = vld [vmem:[%s7952_s0 + $0x97] sm:$0x20]   ;;  %v3837_v27 = vld [vmem:[%s7952_s0 + $0x68] sm:$0x8]   ;;  %v5953_v28 = vpop.permute.xlu1 %433   ;;  %v2109_v30 = vsel %vm17_vm3, %v3826_v14, %v2105_v24  ;;  %2081 = vrot.lane.b32.xlu0 %v2080_v29, %s4277_s3  ;;  %v2142_v37 = vsel %vm9_vm1, %v3836_v26, %v2138_v31  ;;  %v2179_v44 = vsel %vm5_vm0, %v3847_v41, %v3846_v40  ;;  %v3848_v45 = vld [vmem:[%s7952_s0 + $0x58] sm:$0x4]  }
  0x96   :  { %v3828_v16 = vld [vmem:[%s7952_s0 + $0xf6] sm:$0x40]   ;;  %v3838_v32 = vld [vmem:[%s7952_s0 + $0xc7] sm:$0x10]   ;;  %v2113_v35 = vsel %vm21_vm4, %v3827_v15, %v2109_v30  ;;  %v2146_v43 = vsel %vm13_vm2, %v3837_v27, %v2142_v37  ;;  %v3849_v46 = vld [vmem:[%s7952_s0 + $0x37] sm:$0x8]   ;;  %v5990_v48 = vpop.permute.xlu0 %474   ;;  %v2183_v51 = vsel %vm9_vm1, %v3848_v45, %v2179_v44 }
  0x97   :  { %v3829_v21 = vld [vmem:[%s7952_s0 + $0xd5] sm:$0x80]   ;;  %v3839_v33 = vld [vmem:[%s7952_s0 + $0xa6] sm:$0x20]   ;;  %v2117_v42 = vsel %vm25_vm5, %v3828_v16, %v2113_v35  ;;  %v3850_v47 = vld [vmem:[%s7952_s0 + $0x96] sm:$0x10]   ;;  %v2150_v50 = vsel %vm17_vm3, %v3838_v32, %v2146_v43  ;;  %v2187_v58 = vsel %vm13_vm2, %v3849_v46, %v2183_v51 }
  0x98   :  { %v3840_v34 = vld [vmem:[%s7952_s0 + $0x85] sm:$0x40]   ;;  %v2121_v49 = vsel %vm29_vm6, %v3829_v21, %v2117_v42  ;;  %v3851_v53 = vld [vmem:[%s7952_s0 + $0xf5] sm:$0x20]   ;;  %s4278_s22 = smov 28   ;;  %v2154_v57 = vsel %vm21_vm4, %v3839_v33, %v2150_v50  ;;  %v2191_v63 = vsel %vm17_vm3, %v3850_v47, %v2187_v58  ;;  %s4279_s10 = smov 27  }
  0x99   :  { %v3841_v39 = vld [vmem:[%s7952_s0 + $0xe4] sm:$0x80]   ;;  %v3852_v54 = vld [vmem:[%s7952_s0 + $0xd4] sm:$0x40]   ;;  %2122 = vrot.lane.b32.xlu1 %v2121_v49, %s4278_s22  ;;  %v3858_v59 = vld [vmem:[%s7952_s0 + $0x29] sm:$0x1]   ;;  %v6012_v61 = vpop.permute.xlu1 %515   ;;  %v2158_v62 = vsel %vm25_vm5, %v3840_v34, %v2154_v57  ;;  %v2195_v5 = vsel %vm21_vm4, %v3851_v53, %v2191_v63 }
  0x9a   :  { %v3853_v56 = vld [vmem:[%s7952_s0 + $0xb3] sm:$0x80]   ;;  %v3859_v60 = vld [vmem:[%s7952_s0 + $0x8] sm:$0x2]   ;;  %v2162_v4 = vsel %vm29_vm6, %v3841_v39, %v2158_v62  ;;  %v2199_v13 = vsel %vm25_vm5, %v3852_v54, %v2195_v5  ;;  %v3870_v15 = vld [vmem:[%s7952_s0 + $0x18] sm:$0x1]  }
  0x9b   :  { %v2220_v0 = vsel %vm5_vm0, %v3859_v60, %v3858_v59  ;;  %v3860_v1 = vld [vmem:[%s7952_s0 + $0x67] sm:$0x4]   ;;  %2163 = vrot.lane.b32.xlu0 %v2162_v4, %s4279_s10  ;;  %v3871_v16 = vld [vmem:[%s7952_s0 + $0x77] sm:$0x2]   ;;  %v2203_v21 = vsel %vm29_vm6, %v3853_v56, %v2199_v13  ;;  %s4280_s23 = smov 26   ;;  %s4281_s11 = smov 25  }
  0x9c   :  { %v3861_v2 = vld [vmem:[%s7952_s0 + $0x46] sm:$0x8]   ;;  %v2224_v7 = vsel %vm9_vm1, %v3860_v1, %v2220_v0  ;;  %v3872_v17 = vld [vmem:[%s7952_s0 + $0x56] sm:$0x4]   ;;  %v2261_v23 = vsel %vm5_vm0, %v3871_v16, %v3870_v15  ;;  %v3882_v34 = vld [vmem:[%s7952_s0 + $0x27] sm:$0x1]  }
  0x9d   :  { %v3862_v3 = vld [vmem:[%s7952_s0 + $0xa5] sm:$0x10]   ;;  %v2228_v14 = vsel %vm13_vm2, %v3861_v2, %v2224_v7  ;;  %v6049_v20 = vpop.permute.xlu0 %552   ;;  %v3873_v24 = vld [vmem:[%s7952_s0 + $0x35] sm:$0x8]   ;;  %2204 = vrot.lane.b32.xlu1 %v2203_v21, %s4280_s23  ;;  %v2265_v29 = vsel %vm9_vm1, %v3872_v17, %v2261_v23  ;;  %v3883_v35 = vld [vmem:[%s7952_s0 + $0x6] sm:$0x2]  }
  0x9e   :  { %v3863_v8 = vld [vmem:[%s7952_s0 + $0x84] sm:$0x20]   ;;  %v2232_v22 = vsel %vm17_vm3, %v3862_v3, %v2228_v14  ;;  %v3874_v25 = vld [vmem:[%s7952_s0 + $0x94] sm:$0x10]   ;;  %v2269_v33 = vsel %vm13_vm2, %v3873_v24, %v2265_v29  ;;  %v3884_v37 = vld [vmem:[%s7952_s0 + $0x65] sm:$0x4]   ;;  %v6084_v39 = vpop.permute.xlu1 %593   ;;  %v2302_v42 = vsel %vm5_vm0, %v3883_v35, %v3882_v34 }
  0x9f   :  { %v3864_v11 = vld [vmem:[%s7952_s0 + $0xe3] sm:$0x40]   ;;  %v3875_v26 = vld [vmem:[%s7952_s0 + $0xf3] sm:$0x20]   ;;  %v2236_v27 = vsel %vm21_vm4, %v3863_v8, %v2232_v22  ;;  %v2273_v41 = vsel %vm17_vm3, %v3874_v25, %v2269_v33  ;;  %v3885_v43 = vld [vmem:[%s7952_s0 + $0x44] sm:$0x8]   ;;  %v2306_v47 = vsel %vm9_vm1, %v3884_v37, %v2302_v42 }
  0xa0   :  { %v3865_v12 = vld [vmem:[%s7952_s0 + $0xc2] sm:$0x80]   ;;  %v3876_v30 = vld [vmem:[%s7952_s0 + $0xd2] sm:$0x40]   ;;  %v2240_v32 = vsel %vm25_vm5, %v3864_v11, %v2236_v27  ;;  %v6095_v44 = vld [vmem:[%s7952_s0 + $0xa3] sm:$0x10]   ;;  %v2277_v46 = vsel %vm21_vm4, %v3875_v26, %v2273_v41  ;;  %v2310_v53 = vsel %vm13_vm2, %v3885_v43, %v2306_v47 }
  0xa1   :  { %v6071_v31 = vld [vmem:[%s7952_s0 + $0xb1] sm:$0x80]   ;;  %v2244_v40 = vsel %vm29_vm6, %v3865_v12, %v2240_v32  ;;  %v6100_v45 = vld [vmem:[%s7952_s0 + $0x82] sm:$0x20]   ;;  %vm31_vm7 = vcmask 261120   ;;  %v2281_v51 = vsel %vm25_vm5, %v3876_v30, %v2277_v46  ;;  %s4282_s24 = smov 24  }
  0xa2   :  { %2245 = vrot.lane.b32.xlu0 %v2244_v40, %s4281_s11  ;;  %v6107_v49 = vld [vmem:[%s7952_s0 + $0xe1] sm:$0x40]   ;;  %3235 = vst.msk [vmem:[%s7953_s1 + $0x87] ss:$-56 sm:$0x7] %vm31_vm7, %v5665_v9   ;;  %s4283_s18 = smov 23  }
  0xa3   :  { %v6112_v50 = vld [vmem:[%s7952_s0 + $0xc0] sm:$0x80]   ;;  %3236 = vst.msk [vmem:[%s7953_s1 - $0x139] ss:$168 sm:$0x18] %vm31_vm7, %v5665_v9   ;;  %s4284_s14 = smov 22  }
  0xa4   :  { %3237 = vst.msk [vmem:[%s7953_s1 + $0x247] ss:$-56 sm:$0x60] %vm31_vm7, %v5665_v9   ;;  %3238 = vst.msk [vmem:[%s7953_s1 + $0x198] sm:$0x80] %vm31_vm7, %v5665_v9   ;;  %s4285_s4 = smov 21  }
  0xa5   :  { %v3894_v9 = vld [vmem:[%s7952_s0 + $0x16] sm:$0x1]   ;;  %3259 = vst.msk [vmem:[%s7953_s1 + $0x84] ss:$-56 sm:$0x7] %vm31_vm7, %v5686_v19   ;;  %v672_v0 = vpop.permute.xlu1 %671   ;;  %s4286_s21 = smov 20  }
  0xa6   :  { %v3895_v54 = vld [vmem:[%s7952_s0 + $0x75] sm:$0x2]   ;;  %3260 = vst.msk [vmem:[%s7953_s1 - $0x13c] ss:$168 sm:$0x18] %vm31_vm7, %v5686_v19   ;;  %s4287_s5 = smov 19  }
  0xa7   :  { %v6145_v56 = vld [vmem:[%s7952_s0 + $0x54] sm:$0x4]   ;;  %3261 = vst.msk [vmem:[%s7953_s1 + $0x244] ss:$-56 sm:$0x60] %vm31_vm7, %v5686_v19   ;;  %s4288_s22 = smov 18  }
  0xa8   :  { %3262 = vst.msk [vmem:[%s7953_s1 + $0x195] sm:$0x80] %vm31_vm7, %v5686_v19   ;;  %3247 = vst.msk [vmem:[%s7953_s1 + $0x66] ss:$-56 sm:$0x3] %vm31_vm7, %v5722_v36   ;;  %v631_v19 = vpop.permute.xlu0 %630   ;;  %s4289_s12 = smov 17  }
  0xa9   :  { %3248 = vst.msk [vmem:[%s7953_s1 + $0x146] ss:$-56 sm:$0xc] %vm31_vm7, %v5722_v36   ;;  %3249 = vst.msk [vmem:[%s7953_s1 + $0x226] ss:$-56 sm:$0x30] %vm31_vm7, %v5722_v36   ;;  %v6521_v34 = vpop.permute.xlu1 %749  }
  0xaa   :  { %3250 = vst.msk [vmem:[%s7953_s1 + $0x306] ss:$-56 sm:$0xc0] %vm31_vm7, %v5722_v36   ;;  %3271 = vst.msk [vmem:[%s7953_s1 + $0x63] ss:$-56 sm:$0x3] %vm31_vm7, %v5755_v52   ;;  %v2285_v36 = vsel %vm29_vm6, %v6071_v31, %v2281_v51 }
  0xab   :  { %3272 = vst.msk [vmem:[%s7953_s1 + $0x143] ss:$-56 sm:$0xc] %vm31_vm7, %v5755_v52   ;;  %3273 = vst.msk [vmem:[%s7953_s1 + $0x223] ss:$-56 sm:$0x30] %vm31_vm7, %v5755_v52   ;;  %2286 = vrot.lane.b32.xlu1 %v2285_v36, %s4282_s24 }
  0xac   :  { %3274 = vst.msk [vmem:[%s7953_s1 + $0x303] ss:$-56 sm:$0xc0] %vm31_vm7, %v5755_v52   ;;  %3283 = vst.msk [vmem:[%s7953_s1 + $0x81] ss:$-56 sm:$0x7] %vm31_vm7, %v5792_v6   ;;  %v2314_v52 = vsel %vm17_vm3, %v6095_v44, %v2310_v53  ;;  %v709_v21 = vpop.permute.xlu0 %708  }
  0xad   :  { %3284 = vst.msk [vmem:[%s7953_s1 - $0x13f] ss:$168 sm:$0x18] %vm31_vm7, %v5792_v6   ;;  %3285 = vst.msk [vmem:[%s7953_s1 + $0x241] ss:$-56 sm:$0x60] %vm31_vm7, %v5792_v6  }
  0xae   :  { %3286 = vst.msk [vmem:[%s7953_s1 + $0x192] sm:$0x80] %vm31_vm7, %v5792_v6   ;;  %3295 = vst.msk [vmem:[%s7953_s1 + $0x60] ss:$-56 sm:$0x3] %vm31_vm7, %v5814_v18   ;;  %v2343_v6 = vsel %vm5_vm0, %v3895_v54, %v3894_v9  ;;  %s4290_s29 = smov 16  }
  0xaf   :  { %3296 = vst.msk [vmem:[%s7953_s1 + $0x140] ss:$-56 sm:$0xc] %vm31_vm7, %v5814_v18   ;;  %3297 = vst.msk [vmem:[%s7953_s1 + $0x220] ss:$-56 sm:$0x30] %vm31_vm7, %v5814_v18  }
  0xb0   :  { %3298 = vst.msk [vmem:[%s7953_s1 + $0x300] ss:$-56 sm:$0xc0] %vm31_vm7, %v5814_v18   ;;  %3307 = vst.msk [vmem:[%s7953_s1 + $0x46] ss:$-56 sm:$0x3] %vm31_vm7, %v5851_v38   ;;  %v6555_v54 = vpop.permute.xlu0 %790  }
  0xb1   :  { %3308 = vst.msk [vmem:[%s7953_s1 + $0x126] ss:$-56 sm:$0xc] %vm31_vm7, %v5851_v38   ;;  %3309 = vst.msk [vmem:[%s7953_s1 + $0x206] ss:$-56 sm:$0x30] %vm31_vm7, %v5851_v38  }
  0xb2   :  { %3310 = vst.msk [vmem:[%s7953_s1 + $0x2e6] ss:$-56 sm:$0xc0] %vm31_vm7, %v5851_v38   ;;  %3319 = vst.msk [vmem:[%s7953_s1 + $0x25] ss:$168 sm:$0x3] %vm31_vm7, %v5884_v55  }
  0xb3   :  { %3320 = vst.msk [vmem:[%s7953_s1 + $0x105] ss:$-56 sm:$0xc] %vm31_vm7, %v5884_v55   ;;  %3321 = vst.msk [vmem:[%s7953_s1 - $0x19b] ss:$168 sm:$0x30] %vm31_vm7, %v5884_v55  }
  0xb4   :  { %3322 = vst.msk [vmem:[%s7953_s1 + $0x2c5] ss:$-56 sm:$0xc0] %vm31_vm7, %v5884_v55   ;;  %3331 = vst.msk [vmem:[%s7953_s1 + $0x43] ss:$-56 sm:$0x3] %vm31_vm7, %v5920_v10  }
  0xb5   :  { %3332 = vst.msk [vmem:[%s7953_s1 + $0x123] ss:$-56 sm:$0xc] %vm31_vm7, %v5920_v10   ;;  %3333 = vst.msk [vmem:[%s7953_s1 + $0x203] ss:$-56 sm:$0x30] %vm31_vm7, %v5920_v10  }
  0xb6   :  { %3334 = vst.msk [vmem:[%s7953_s1 + $0x2e3] ss:$-56 sm:$0xc0] %vm31_vm7, %v5920_v10   ;;  %3343 = vst.msk [vmem:[%s7953_s1 + $0x22] ss:$168 sm:$0x3] %vm31_vm7, %v5953_v28   ;;  %v2318_v10 = vsel %vm21_vm4, %v6100_v45, %v2314_v52 }
  0xb7   :  { %3344 = vst.msk [vmem:[%s7953_s1 + $0x102] ss:$-56 sm:$0xc] %vm31_vm7, %v5953_v28   ;;  %3345 = vst.msk [vmem:[%s7953_s1 - $0x19e] ss:$168 sm:$0x30] %vm31_vm7, %v5953_v28   ;;  %v2322_v59 = vsel %vm25_vm5, %v6107_v49, %v2318_v10 }
  0xb8   :  { %3346 = vst.msk [vmem:[%s7953_s1 + $0x2c2] ss:$-56 sm:$0xc0] %vm31_vm7, %v5953_v28   ;;  %3355 = vst.msk [vmem:[%s7953_s1 + $0x40] ss:$-56 sm:$0x3] %vm31_vm7, %v5990_v48   ;;  %v2347_v28 = vsel %vm9_vm1, %v6145_v56, %v2343_v6  ;;  %v2326_v1 = vsel %vm29_vm6, %v6112_v50, %v2322_v59 }
  0xb9   :  { %3356 = vst.msk [vmem:[%s7953_s1 + $0x120] ss:$-56 sm:$0xc] %vm31_vm7, %v5990_v48   ;;  %3357 = vst.msk [vmem:[%s7953_s1 + $0x200] ss:$-56 sm:$0x30] %vm31_vm7, %v5990_v48   ;;  %2327 = vrot.lane.b32.xlu0 %v2326_v1, %s4283_s18 }
  0xba   :  { %3358 = vst.msk [vmem:[%s7953_s1 + $0x2e0] ss:$-56 sm:$0xc0] %vm31_vm7, %v5990_v48   ;;  %3367 = vst.msk [vmem:[%s7953_s1 + $0xc7] ss:$-56 sm:$0xf] %vm31_vm7, %v6012_v61  }
  0xbb   :  { %3368 = vst.msk [vmem:[%s7953_s1 + $0x287] ss:$-56 sm:$0xf0] %vm31_vm7, %v6012_v61   ;;  %3377 = vst.msk [vmem:[%s7953_s1 + $0x5] ss:$168 sm:$0x3] %vm31_vm7, %v6049_v20  }
  0xbc   :  { %3378 = vst.msk [vmem:[%s7953_s1 + $0xe5] ss:$-56 sm:$0xc] %vm31_vm7, %v6049_v20   ;;  %3379 = vst.msk [vmem:[%s7953_s1 - $0x1bb] ss:$168 sm:$0x30] %vm31_vm7, %v6049_v20  }
  0xbd   :  { %3380 = vst.msk [vmem:[%s7953_s1 + $0x2a5] ss:$-56 sm:$0xc0] %vm31_vm7, %v6049_v20   ;;  %3389 = vst.msk [vmem:[%s7953_s1 + $0xc4] ss:$-56 sm:$0xf] %vm31_vm7, %v6084_v39  }
  0xbe   :  { %3390 = vst.msk [vmem:[%s7953_s1 + $0x284] ss:$-56 sm:$0xf0] %vm31_vm7, %v6084_v39   ;;  %v3897_v18 = vld [vmem:[%s7952_s0 + $0x33] sm:$0x8]   ;;  %s4291_s19 = smov 15  }
  0xbf   :  { %v3898_v38 = vld [vmem:[%s7952_s0 + $0x92] sm:$0x10]   ;;  %3399 = vst.msk [vmem:[%s7953_s1 + $0x2] ss:$168 sm:$0x3] %vm31_vm7, %v631_v19   ;;  %v2351_v60 = vsel %vm13_vm2, %v3897_v18, %v2347_v28  ;;  %s4292_s7 = smov 14  }
  0xc0   :  { %v3899_v55 = vld [vmem:[%s7952_s0 + $0xf1] sm:$0x20]   ;;  %3400 = vst.msk [vmem:[%s7953_s1 + $0xe2] ss:$-56 sm:$0xc] %vm31_vm7, %v631_v19   ;;  %v2355_v2 = vsel %vm17_vm3, %v3898_v38, %v2351_v60  ;;  %s4293_s20 = smov 13  }
  0xc1   :  { %3401 = vst.msk [vmem:[%s7953_s1 - $0x1be] ss:$168 sm:$0x30] %vm31_vm7, %v631_v19   ;;  %3402 = vst.msk [vmem:[%s7953_s1 + $0x2a2] ss:$-56 sm:$0xc0] %vm31_vm7, %v631_v19   ;;  %v2359_v8 = vsel %vm21_vm4, %v3899_v55, %v2355_v2 }
  0xc2   :  { %v3900_v48 = vld [vmem:[%s7952_s0 + $0xd0] sm:$0x40]   ;;  %v3906_v58 = vld [vmem:[%s7952_s0 + $0x5] sm:$0x1]   ;;  %v3918_v13 = vld [vmem:[%s7952_s0 + $0x74] sm:$0x1]  }
  0xc3   :  { %v3901_v57 = vld [vmem:[%s7952_s0 + $0xaf] sm:$0x80]   ;;  %v3907_v61 = vld [vmem:[%s7952_s0 + $0x64] sm:$0x2]   ;;  %v2363_v14 = vsel %vm25_vm5, %v3900_v48, %v2359_v8  ;;  %v3919_v16 = vld [vmem:[%s7952_s0 + $0x53] sm:$0x2]  }
  0xc4   :  { %v3908_v62 = vld [vmem:[%s7952_s0 + $0x43] sm:$0x4]   ;;  %v2384_v3 = vsel %vm5_vm0, %v3907_v61, %v3906_v58  ;;  %3411 = vst.msk [vmem:[%s7953_s1 + $0xc1] ss:$-56 sm:$0xf] %vm31_vm7, %v672_v0   ;;  %v2367_v22 = vsel %vm29_vm6, %v3901_v57, %v2363_v14  ;;  %v2425_v24 = vsel %vm5_vm0, %v3919_v16, %v3918_v13  ;;  %s4294_s8 = smov 12  }
  0xc5   :  { %v3909_v63 = vld [vmem:[%s7952_s0 + $0x22] sm:$0x8]   ;;  %3412 = vst.msk [vmem:[%s7953_s1 + $0x281] ss:$-56 sm:$0xf0] %vm31_vm7, %v672_v0   ;;  %v2388_v11 = vsel %vm9_vm1, %v3908_v62, %v2384_v3  ;;  %2368 = vrot.lane.b32.xlu1 %v2367_v22, %s4284_s14  ;;  %s4295_s27 = smov 11  }
  0xc6   :  { %v3910_v4 = vld [vmem:[%s7952_s0 + $0x81] sm:$0x10]   ;;  %v2392_v15 = vsel %vm13_vm2, %v3909_v63, %v2388_v11  ;;  %v3920_v17 = vld [vmem:[%s7952_s0 + $0x32] sm:$0x4]   ;;  %3424 = vst.msk [vmem:[%s7953_s1 + $0x1b1] sm:$0x80] %vm31_vm7, %v709_v21   ;;  %v6592_v63 = vpop.permute.xlu1 %831  }
  0xc7   :  { %v3911_v5 = vld [vmem:[%s7952_s0 + $0xe0] sm:$0x20]   ;;  %v3921_v20 = vld [vmem:[%s7952_s0 + $0x11] sm:$0x8]   ;;  %v2396_v23 = vsel %vm17_vm3, %v3910_v4, %v2392_v15  ;;  %v2429_v30 = vsel %vm9_vm1, %v3920_v17, %v2425_v24  ;;  %v3928_v32 = vld [vmem:[%s7952_s0 + $0x3] sm:$0x1]  }
  0xc8   :  { %v3912_v7 = vld [vmem:[%s7952_s0 + $0xbf] sm:$0x40]   ;;  %v3922_v25 = vld [vmem:[%s7952_s0 + $0xf0] sm:$0x10]   ;;  %v2400_v29 = vsel %vm21_vm4, %v3911_v5, %v2396_v23  ;;  %v3929_v33 = vld [vmem:[%s7952_s0 + $0x62] sm:$0x2]   ;;  %v2433_v37 = vsel %vm13_vm2, %v3921_v20, %v2429_v30  ;;  %v6625_v20 = vpop.permute.xlu0 %872  }
  0xc9   :  { %v3913_v12 = vld [vmem:[%s7952_s0 + $0x9e] sm:$0x80]   ;;  %v3923_v26 = vld [vmem:[%s7952_s0 + $0xcf] sm:$0x20]   ;;  %v2404_v35 = vsel %vm25_vm5, %v3912_v7, %v2400_v29  ;;  %v2462_v39 = vsel %vm5_vm0, %v3929_v33, %v3928_v32  ;;  %v3930_v40 = vld [vmem:[%s7952_s0 + $0x41] sm:$0x4]   ;;  %v2437_v44 = vsel %vm17_vm3, %v3922_v25, %v2433_v37 }
  0xca   :  { %v3924_v27 = vld [vmem:[%s7952_s0 + $0xae] sm:$0x40]   ;;  %3421 = vst.msk [vmem:[%s7953_s1 + $0xa0] ss:$-56 sm:$0x7] %vm31_vm7, %v709_v21   ;;  %v2408_v43 = vsel %vm29_vm6, %v3913_v12, %v2404_v35  ;;  %v2466_v45 = vsel %vm9_vm1, %v3930_v40, %v2462_v39  ;;  %v2441_v50 = vsel %vm21_vm4, %v3923_v26, %v2437_v44  ;;  %s4296_s15 = smov 10  }
  0xcb   :  { %3422 = vst.msk [vmem:[%s7953_s1 - $0x120] ss:$168 sm:$0x18] %vm31_vm7, %v709_v21   ;;  %3423 = vst.msk [vmem:[%s7953_s1 + $0x260] ss:$-56 sm:$0x60] %vm31_vm7, %v709_v21   ;;  %2409 = vrot.lane.b32.xlu0 %v2408_v43, %s4285_s4  ;;  %v2445_v56 = vsel %vm25_vm5, %v3924_v27, %v2441_v50 }
  0xcc   :  { %v3925_v31 = vld [vmem:[%s7952_s0 + $0x8d] sm:$0x80]   ;;  %v3931_v41 = vld [vmem:[%s7952_s0 + $0x20] sm:$0x8]   ;;  %v3940_v53 = vld [vmem:[%s7952_s0 + $0x72] sm:$0x1]  }
  0xcd   :  { %v3932_v42 = vld [vmem:[%s7952_s0 + $0x7f] sm:$0x10]   ;;  %v2470_v51 = vsel %vm13_vm2, %v3931_v41, %v2466_v45  ;;  %v3941_v9 = vld [vmem:[%s7952_s0 + $0x51] sm:$0x2]   ;;  %v2449_v38 = vsel %vm29_vm6, %v3925_v31, %v2445_v56  ;;  %v3950_v60 = vld [vmem:[%s7952_s0 + $0x1] sm:$0x1]   ;;  %v6661_v41 = vpop.permute.xlu1 %913  }
  0xce   :  { %v3933_v46 = vld [vmem:[%s7952_s0 + $0xde] sm:$0x20]   ;;  %v2474_v19 = vsel %vm17_vm3, %v3932_v42, %v2470_v51  ;;  %v2503_v36 = vsel %vm5_vm0, %v3941_v9, %v3940_v53  ;;  %v3942_v52 = vld [vmem:[%s7952_s0 + $0x30] sm:$0x4]   ;;  %2450 = vrot.lane.b32.xlu1 %v2449_v38, %s4286_s21  ;;  %v3951_v61 = vld [vmem:[%s7952_s0 + $0x60] sm:$0x2]  }
  0xcf   :  { %v3934_v47 = vld [vmem:[%s7952_s0 + $0xbd] sm:$0x40]   ;;  %v3943_v6 = vld [vmem:[%s7952_s0 + $0xf] sm:$0x8]   ;;  %v2478_v55 = vsel %vm21_vm4, %v3933_v46, %v2474_v19  ;;  %v2507_v10 = vsel %vm9_vm1, %v3942_v52, %v2503_v36  ;;  %v3952_v62 = vld [vmem:[%s7952_s0 + $0x3f] sm:$0x4]   ;;  %v2540_v2 = vsel %vm5_vm0, %v3951_v61, %v3950_v60 }
  0xd0   :  { %v3935_v49 = vld [vmem:[%s7952_s0 + $0x9c] sm:$0x80]   ;;  %v3944_v18 = vld [vmem:[%s7952_s0 + $0xee] sm:$0x10]   ;;  %v2482_v58 = vsel %vm25_vm5, %v3934_v47, %v2478_v55  ;;  %v2511_v59 = vsel %vm13_vm2, %v3943_v6, %v2507_v10  ;;  %v3953_v3 = vld [vmem:[%s7952_s0 + $0x1e] sm:$0x8]   ;;  %v2544_v8 = vsel %vm9_vm1, %v3952_v62, %v2540_v2  ;;  %v6694_v6 = vpop.permute.xlu0 %954  }
  0xd1   :  { %v3945_v28 = vld [vmem:[%s7952_s0 + $0xcd] sm:$0x20]   ;;  %v2486_v0 = vsel %vm29_vm6, %v3935_v49, %v2482_v58  ;;  %v2515_v1 = vsel %vm17_vm3, %v3944_v18, %v2511_v59  ;;  %v3954_v4 = vld [vmem:[%s7952_s0 + $0x7d] sm:$0x10]   ;;  %v2548_v14 = vsel %vm13_vm2, %v3953_v3, %v2544_v8  ;;  %v3962_v15 = vld [vmem:[%s7952_s0 + $0x70] sm:$0x1]   ;;  %v6719_v62 = vpop.permute.xlu1 %995  }
  0xd2   :  { %v3946_v48 = vld [vmem:[%s7952_s0 + $0xac] sm:$0x40]   ;;  %v3955_v5 = vld [vmem:[%s7952_s0 + $0xdc] sm:$0x20]   ;;  %2487 = vrot.lane.b32.xlu0 %v2486_v0, %s4287_s5  ;;  %v2519_v7 = vsel %vm21_vm4, %v3945_v28, %v2515_v1  ;;  %v3963_v16 = vld [vmem:[%s7952_s0 + $0x4f] sm:$0x2]   ;;  %v2552_v22 = vsel %vm17_vm3, %v3954_v4, %v2548_v14 }
  0xd3   :  { %v3947_v57 = vld [vmem:[%s7952_s0 + $0x8b] sm:$0x80]   ;;  %v3956_v11 = vld [vmem:[%s7952_s0 + $0xbb] sm:$0x40]   ;;  %v2523_v13 = vsel %vm25_vm5, %v3946_v48, %v2519_v7  ;;  %v3964_v17 = vld [vmem:[%s7952_s0 + $0x2e] sm:$0x4]   ;;  %v2581_v23 = vsel %vm5_vm0, %v3963_v16, %v3962_v15  ;;  %v2556_v27 = vsel %vm21_vm4, %v3955_v5, %v2552_v22 }
  0xd4   :  { %v3957_v12 = vld [vmem:[%s7952_s0 + $0x9a] sm:$0x80]   ;;  %v2527_v21 = vsel %vm29_vm6, %v3947_v57, %v2523_v13  ;;  %v3965_v24 = vld [vmem:[%s7952_s0 + $0xd] sm:$0x8]   ;;  %v2585_v29 = vsel %vm9_vm1, %v3964_v17, %v2581_v23  ;;  %v3972_v32 = vld [vmem:[%s7952_s0 + $0x3f] sm:$0x1]   ;;  %v2560_v33 = vsel %vm25_vm5, %v3956_v11, %v2556_v27  ;;  %v6753_v22 = vpop.permute.xlu0 %1036  }
  0xd5   :  { %v3966_v25 = vld [vmem:[%s7952_s0 + $0xec] sm:$0x10]   ;;  %2528 = vrot.lane.b32.xlu1 %v2527_v21, %s4288_s22  ;;  %v2589_v35 = vsel %vm13_vm2, %v3965_v24, %v2585_v29  ;;  %v3973_v37 = vld [vmem:[%s7952_s0 + $0x1e] sm:$0x2]   ;;  %v2564_v42 = vsel %vm29_vm6, %v3957_v12, %v2560_v33  ;;  %v3984_v53 = vld [vmem:[%s7952_s0 + $0x4e] sm:$0x1]  }
  0xd6   :  { %v3967_v26 = vld [vmem:[%s7952_s0 + $0xcb] sm:$0x20]   ;;  %v3974_v39 = vld [vmem:[%s7952_s0 + $0x7d] sm:$0x4]   ;;  %v2593_v43 = vsel %vm17_vm3, %v3966_v25, %v2589_v35  ;;  %v2618_v44 = vsel %vm5_vm0, %v3973_v37, %v3972_v32  ;;  %2565 = vrot.lane.b32.xlu0 %v2564_v42, %s4289_s12  ;;  %v3985_v19 = vld [vmem:[%s7952_s0 + $0x2d] sm:$0x2]  }
  0xd7   :  { %v3968_v30 = vld [vmem:[%s7952_s0 + $0xaa] sm:$0x40]   ;;  %v3975_v40 = vld [vmem:[%s7952_s0 + $0x5c] sm:$0x8]   ;;  %v2597_v49 = vsel %vm21_vm4, %v3967_v26, %v2593_v43  ;;  %v2622_v50 = vsel %vm9_vm1, %v3974_v39, %v2618_v44  ;;  %v3986_v36 = vld [vmem:[%s7952_s0 + $0xc] sm:$0x4]   ;;  %v2659_v55 = vsel %vm5_vm0, %v3985_v19, %v3984_v53 }
  0xd8   :  { %v3969_v31 = vld [vmem:[%s7952_s0 + $0x89] sm:$0x80]   ;;  %v3976_v45 = vld [vmem:[%s7952_s0 + $0xbb] sm:$0x10]   ;;  %v2601_v9 = vsel %vm25_vm5, %v3968_v30, %v2597_v49  ;;  %v2626_v56 = vsel %vm13_vm2, %v3975_v40, %v2622_v50  ;;  %v3987_v52 = vld [vmem:[%s7952_s0 + $0x6b] sm:$0x8]   ;;  %v2663_v58 = vsel %vm9_vm1, %v3986_v36, %v2659_v55 }
  0xd9   :  { %v3977_v46 = vld [vmem:[%s7952_s0 + $0x9a] sm:$0x20]   ;;  %v2605_v18 = vsel %vm29_vm6, %v3969_v31, %v2601_v9  ;;  %v2630_v38 = vsel %vm17_vm3, %v3976_v45, %v2626_v56  ;;  %v3988_v10 = vld [vmem:[%s7952_s0 + $0xca] sm:$0x10]   ;;  %v3996_v60 = vld [vmem:[%s7952_s0 + $0x3d] sm:$0x1]   ;;  %v2667_v1 = vsel %vm13_vm2, %v3987_v52, %v2663_v58  ;;  %v6790_v45 = vpop.permute.xlu1 %1077  }
  0xda   :  { %v3978_v47 = vld [vmem:[%s7952_s0 + $0xf9] sm:$0x40]   ;;  %v3989_v28 = vld [vmem:[%s7952_s0 + $0xa9] sm:$0x20]   ;;  %2606 = vrot.lane.b32.xlu1 %v2605_v18, %s4290_s29  ;;  %v2634_v57 = vsel %vm21_vm4, %v3977_v46, %v2630_v38  ;;  %v3997_v61 = vld [vmem:[%s7952_s0 + $0x1c] sm:$0x2]   ;;  %v2671_v8 = vsel %vm17_vm3, %v3988_v10, %v2667_v1 }
  0xdb   :  { %v3979_v51 = vld [vmem:[%s7952_s0 + $0xd8] sm:$0x80]   ;;  %v3990_v48 = vld [vmem:[%s7952_s0 + $0x88] sm:$0x40]   ;;  %v2638_v0 = vsel %vm25_vm5, %v3978_v47, %v2634_v57  ;;  %v2700_v2 = vsel %vm5_vm0, %v3997_v61, %v3996_v60  ;;  %v3998_v3 = vld [vmem:[%s7952_s0 + $0x7b] sm:$0x4]   ;;  %v2675_v15 = vsel %vm21_vm4, %v3989_v28, %v2671_v8  ;;  %v6823_v28 = vpop.permute.xlu0 %1118  }
  0xdc   :  { %v3991_v59 = vld [vmem:[%s7952_s0 + $0xe7] sm:$0x80]   ;;  %v3999_v4 = vld [vmem:[%s7952_s0 + $0x5a] sm:$0x8]   ;;  %v2642_v7 = vsel %vm29_vm6, %v3979_v51, %v2638_v0  ;;  %v2704_v11 = vsel %vm9_vm1, %v3998_v3, %v2700_v2  ;;  %v4008_v17 = vld [vmem:[%s7952_s0 + $0x4c] sm:$0x1]   ;;  %v2679_v23 = vsel %vm25_vm5, %v3990_v48, %v2675_v15 }
  0xdd   :  { %v4000_v5 = vld [vmem:[%s7952_s0 + $0xb9] sm:$0x10]   ;;  %2643 = vrot.lane.b32.xlu0 %v2642_v7, %s4291_s19  ;;  %v2708_v16 = vsel %vm13_vm2, %v3999_v4, %v2704_v11  ;;  %v4009_v21 = vld [vmem:[%s7952_s0 + $0x2b] sm:$0x2]   ;;  %v2683_v30 = vsel %vm29_vm6, %v3991_v59, %v2679_v23  ;;  %v4020_v42 = vld [vmem:[%s7952_s0 + $0x3b] sm:$0x1]  }
  0xde   :  { %v4001_v12 = vld [vmem:[%s7952_s0 + $0x98] sm:$0x20]   ;;  %v2712_v24 = vsel %vm17_vm3, %v4000_v5, %v2708_v16  ;;  %v2741_v25 = vsel %vm5_vm0, %v4009_v21, %v4008_v17  ;;  %v4010_v26 = vld [vmem:[%s7952_s0 + $0xa] sm:$0x4]   ;;  %2684 = vrot.lane.b32.xlu1 %v2683_v30, %s4292_s7  ;;  %v4021_v43 = vld [vmem:[%s7952_s0 + $0x1a] sm:$0x2]  }
  0xdf   :  { %v4002_v13 = vld [vmem:[%s7952_s0 + $0xf7] sm:$0x40]   ;;  %v4011_v27 = vld [vmem:[%s7952_s0 + $0x69] sm:$0x8]   ;;  %v2716_v31 = vsel %vm21_vm4, %v4001_v12, %v2712_v24  ;;  %v2745_v32 = vsel %vm9_vm1, %v4010_v26, %v2741_v25  ;;  %v4022_v44 = vld [vmem:[%s7952_s0 + $0x79] sm:$0x4]   ;;  %v2782_v49 = vsel %vm5_vm0, %v4021_v43, %v4020_v42 }
  0xe0   :  { %v4003_v14 = vld [vmem:[%s7952_s0 + $0xd6] sm:$0x80]   ;;  %v4012_v29 = vld [vmem:[%s7952_s0 + $0xc8] sm:$0x10]   ;;  %v2720_v39 = vsel %vm25_vm5, %v4002_v13, %v2716_v31  ;;  %v2749_v40 = vsel %vm13_vm2, %v4011_v27, %v2745_v32  ;;  %v4023_v50 = vld [vmem:[%s7952_s0 + $0x58] sm:$0x8]   ;;  %v2786_v56 = vsel %vm9_vm1, %v4022_v44, %v2782_v49  ;;  %v6859_v13 = vpop.permute.xlu1 %1159  }
  0xe1   :  { %v4013_v33 = vld [vmem:[%s7952_s0 + $0xa7] sm:$0x20]   ;;  %v2724_v46 = vsel %vm29_vm6, %v4003_v14, %v2720_v39  ;;  %v2753_v47 = vsel %vm17_vm3, %v4012_v29, %v2749_v40  ;;  %v4024_v51 = vld [vmem:[%s7952_s0 + $0xb7] sm:$0x10]   ;;  %v2790_v18 = vsel %vm13_vm2, %v4023_v50, %v2786_v56  ;;  %v4032_v38 = vld [vmem:[%s7952_s0 + $0x2a] sm:$0x1]  }
  0xe2   :  { %v4014_v35 = vld [vmem:[%s7952_s0 + $0x86] sm:$0x40]   ;;  %v4025_v53 = vld [vmem:[%s7952_s0 + $0x96] sm:$0x20]   ;;  %2725 = vrot.lane.b32.xlu0 %v2724_v46, %s4293_s20  ;;  %v2757_v9 = vsel %vm21_vm4, %v4013_v33, %v2753_v47  ;;  %v4033_v55 = vld [vmem:[%s7952_s0 + $0x9] sm:$0x2]   ;;  %v2794_v57 = vsel %vm17_vm3, %v4024_v51, %v2790_v18 }
  0xe3   :  { %v4015_v37 = vld [vmem:[%s7952_s0 + $0xe5] sm:$0x80]   ;;  %v4026_v19 = vld [vmem:[%s7952_s0 + $0xf5] sm:$0x40]   ;;  %v2761_v52 = vsel %vm25_vm5, %v4014_v35, %v2757_v9  ;;  %v4034_v10 = vld [vmem:[%s7952_s0 + $0x68] sm:$0x4]   ;;  %v2823_v58 = vsel %vm5_vm0, %v4033_v55, %v4032_v38  ;;  %v2798_v0 = vsel %vm21_vm4, %v4025_v53, %v2794_v57  ;;  %v6892_v35 = vpop.permute.xlu0 %1200  }
  0xe4   :  { %v4027_v36 = vld [vmem:[%s7952_s0 + $0xd4] sm:$0x80]   ;;  %v2765_v48 = vsel %vm29_vm6, %v4015_v37, %v2761_v52  ;;  %v4035_v59 = vld [vmem:[%s7952_s0 + $0x47] sm:$0x8]   ;;  %v2827_v1 = vsel %vm9_vm1, %v4034_v10, %v2823_v58  ;;  %v4044_v4 = vld [vmem:[%s7952_s0 + $0x19] sm:$0x1]   ;;  %v2802_v5 = vsel %vm25_vm5, %v4026_v19, %v2798_v0  ;;  %v6917_v53 = vpop.permute.xlu1 %1237  }
  0xe5   :  { %v4036_v60 = vld [vmem:[%s7952_s0 + $0xa6] sm:$0x10]   ;;  %2766 = vrot.lane.b32.xlu1 %v2765_v48, %s4294_s8  ;;  %v2831_v7 = vsel %vm13_vm2, %v4035_v59, %v2827_v1  ;;  %v4045_v8 = vld [vmem:[%s7952_s0 + $0x78] sm:$0x2]   ;;  %v2806_v14 = vsel %vm29_vm6, %v4027_v36, %v2802_v5  ;;  %v4056_v27 = vld [vmem:[%s7952_s0 + $0x28] sm:$0x1]  }
  0xe6   :  { %v4037_v61 = vld [vmem:[%s7952_s0 + $0x85] sm:$0x20]   ;;  %v4046_v11 = vld [vmem:[%s7952_s0 + $0x57] sm:$0x4]   ;;  %v2835_v15 = vsel %vm17_vm3, %v4036_v60, %v2831_v7  ;;  %v2864_v16 = vsel %vm5_vm0, %v4045_v8, %v4044_v4  ;;  %2807 = vrot.lane.b32.xlu0 %v2806_v14, %s4295_s27  ;;  %v4057_v31 = vld [vmem:[%s7952_s0 + $0x7] sm:$0x2]  }
  0xe7   :  { %v4038_v2 = vld [vmem:[%s7952_s0 + $0xe4] sm:$0x40]   ;;  %v4047_v12 = vld [vmem:[%s7952_s0 + $0x36] sm:$0x8]   ;;  %v2839_v24 = vsel %vm21_vm4, %v4037_v61, %v2835_v15  ;;  %v2868_v25 = vsel %vm9_vm1, %v4046_v11, %v2864_v16  ;;  %v4058_v32 = vld [vmem:[%s7952_s0 + $0x66] sm:$0x4]   ;;  %v2905_v40 = vsel %vm5_vm0, %v4057_v31, %v4056_v27  ;;  %v6951_v1 = vpop.permute.xlu0 %1278  }
  0xe8   :  { %v4039_v3 = vld [vmem:[%s7952_s0 + $0xc3] sm:$0x80]   ;;  %v4048_v17 = vld [vmem:[%s7952_s0 + $0x95] sm:$0x10]   ;;  %v2843_v29 = vsel %vm25_vm5, %v4038_v2, %v2839_v24  ;;  %v2872_v30 = vsel %vm13_vm2, %v4047_v12, %v2868_v25  ;;  %v4059_v33 = vld [vmem:[%s7952_s0 + $0x45] sm:$0x8]   ;;  %v2909_v47 = vsel %vm9_vm1, %v4058_v32, %v2905_v40  ;;  %v6988_v27 = vpop.permute.xlu1 %1314  }
  0xe9   :  { %v4049_v21 = vld [vmem:[%s7952_s0 + $0xf4] sm:$0x20]   ;;  %v2847_v37 = vsel %vm29_vm6, %v4039_v3, %v2843_v29  ;;  %v2876_v39 = vsel %vm17_vm3, %v4048_v17, %v2872_v30  ;;  %v4060_v42 = vld [vmem:[%s7952_s0 + $0xa4] sm:$0x10]   ;;  %v4068_v50 = vld [vmem:[%s7952_s0 + $0x17] sm:$0x1]   ;;  %v2913_v56 = vsel %vm13_vm2, %v4059_v33, %v2909_v47 }
  0xea   :  { %v4050_v23 = vld [vmem:[%s7952_s0 + $0xd3] sm:$0x40]   ;;  %v4061_v43 = vld [vmem:[%s7952_s0 + $0x83] sm:$0x20]   ;;  %2848 = vrot.lane.b32.xlu1 %v2847_v37, %s4296_s15  ;;  %v2880_v46 = vsel %vm21_vm4, %v4049_v21, %v2876_v39  ;;  %v4069_v51 = vld [vmem:[%s7952_s0 + $0x76] sm:$0x2]   ;;  %v2917_v55 = vsel %vm17_vm3, %v4060_v42, %v2913_v56 }
  0xeb   :  { %v4051_v26 = vld [vmem:[%s7952_s0 + $0xb2] sm:$0x80]   ;;  %v4062_v44 = vld [vmem:[%s7952_s0 + $0xe2] sm:$0x40]   ;;  %v2884_v9 = vsel %vm25_vm5, %v4050_v23, %v2880_v46  ;;  %v2946_v19 = vsel %vm5_vm0, %v4069_v51, %v4068_v50  ;;  %v4070_v36 = vld [vmem:[%s7952_s0 + $0x55] sm:$0x4]   ;;  %v2921_v59 = vsel %vm21_vm4, %v4061_v43, %v2917_v55 }
  0xec   :  { %v4063_v49 = vld [vmem:[%s7952_s0 + $0xc1] sm:$0x80]   ;;  %v4071_v52 = vld [vmem:[%s7952_s0 + $0x34] sm:$0x8]   ;;  %v2888_v38 = vsel %vm29_vm6, %v4051_v26, %v2884_v9  ;;  %v2950_v10 = vsel %vm9_vm1, %v4070_v36, %v2946_v19  ;;  %s4297_s5 = smov 9   ;;  %v2925_v2 = vsel %vm25_vm5, %v4062_v44, %v2921_v59  ;;  %s4298_s22 = smov 8  }
  0xed   :  { %v4072_v18 = vld [vmem:[%s7952_s0 + $0x93] sm:$0x10]   ;;  %2889 = vrot.lane.b32.xlu0 %v2888_v38, %s4297_s5  ;;  %v2954_v60 = vsel %vm13_vm2, %v4071_v52, %v2950_v10  ;;  %v4080_v61 = vld [vmem:[%s7952_s0 + $0x26] sm:$0x1]   ;;  %v2929_v11 = vsel %vm29_vm6, %v4063_v49, %v2925_v2  ;;  %v4092_v24 = vld [vmem:[%s7952_s0 + $0x15] sm:$0x1]   ;;  %v7034_v49 = vpop.permute.xlu0 %1355  }
  0xee   :  { %v4073_v48 = vld [vmem:[%s7952_s0 + $0xf2] sm:$0x20]   ;;  %v4081_v0 = vld [vmem:[%s7952_s0 + $0x5] sm:$0x2]   ;;  %v2958_v3 = vsel %vm17_vm3, %v4072_v18, %v2954_v60  ;;  %2930 = vrot.lane.b32.xlu1 %v2929_v11, %s4298_s22  ;;  %v4093_v25 = vld [vmem:[%s7952_s0 + $0x74] sm:$0x2]   ;;  %v7086_v60 = vpop.permute.xlu1 %1392  }
  0xef   :  { %v4074_v57 = vld [vmem:[%s7952_s0 + $0xd1] sm:$0x40]   ;;  %v2987_v4 = vsel %vm5_vm0, %v4081_v0, %v4080_v61  ;;  %v4082_v5 = vld [vmem:[%s7952_s0 + $0x64] sm:$0x4]   ;;  %v2962_v12 = vsel %vm21_vm4, %v4073_v48, %v2958_v3  ;;  %v4094_v26 = vld [vmem:[%s7952_s0 + $0x53] sm:$0x4]   ;;  %v3028_v31 = vsel %vm5_vm0, %v4093_v25, %v4092_v24 }
  0xf0   :  { %v4075_v58 = vld [vmem:[%s7952_s0 + $0xb0] sm:$0x80]   ;;  %v4083_v7 = vld [vmem:[%s7952_s0 + $0x43] sm:$0x8]   ;;  %v2991_v14 = vsel %vm9_vm1, %v4082_v5, %v2987_v4  ;;  %v2966_v21 = vsel %vm25_vm5, %v4074_v57, %v2962_v12  ;;  %v4095_v32 = vld [vmem:[%s7952_s0 + $0x32] sm:$0x8]   ;;  %v3032_v40 = vsel %vm9_vm1, %v4094_v26, %v3028_v31 }
  0xf1   :  { %v4084_v8 = vld [vmem:[%s7952_s0 + $0xa2] sm:$0x10]   ;;  %v2995_v23 = vsel %vm13_vm2, %v4083_v7, %v2991_v14  ;;  %v2970_v29 = vsel %vm29_vm6, %v4075_v58, %v2966_v21  ;;  %v4096_v33 = vld [vmem:[%s7952_s0 + $0x91] sm:$0x10]   ;;  %s4299_s6 = smov 7   ;;  %vm751_vm8 = vcmask 252928   ;;  %v3036_v46 = vsel %vm13_vm2, %v4095_v32, %v3032_v40 }
  0xf2   :  { %v4085_v15 = vld [vmem:[%s7952_s0 + $0x81] sm:$0x20]   ;;  %v2999_v30 = vsel %vm17_vm3, %v4084_v8, %v2995_v23  ;;  %v4097_v37 = vld [vmem:[%s7952_s0 + $0xf0] sm:$0x20]   ;;  %2971 = vrot.lane.b32.xlu0 %v2970_v29, %s4299_s6  ;;  %3436 = vst.msk [vmem:[%s7953_s1 + $0x197] sm:$0x80] %vm751_vm8, %v6521_v34   ;;  %v3040_v51 = vsel %vm17_vm3, %v4096_v33, %v3036_v46  ;;  %v7170_v33 = vpop.permute.xlu1 %1474  }
  0xf3   :  { %v4086_v16 = vld [vmem:[%s7952_s0 + $0xe0] sm:$0x40]   ;;  %v3003_v39 = vsel %vm21_vm4, %v4085_v15, %v2999_v30  ;;  %v4098_v42 = vld [vmem:[%s7952_s0 + $0xcf] sm:$0x40]   ;;  %vm792_vm9 = vcmask 244736   ;;  %s4300_s8 = smov 6   ;;  %v3044_v36 = vsel %vm21_vm4, %v4097_v37, %v3040_v51 }
  0xf4   :  { %v4087_v17 = vld [vmem:[%s7952_s0 + $0xbf] sm:$0x80]   ;;  %v4099_v43 = vld [vmem:[%s7952_s0 + $0xae] sm:$0x80]   ;;  %v3007_v44 = vsel %vm25_vm5, %v4086_v16, %v3003_v39  ;;  %v4105_v47 = vld [vmem:[%s7952_s0 + $0x63] sm:$0x2]   ;;  %v3048_v10 = vsel %vm25_vm5, %v4098_v42, %v3044_v36 }
  0xf5   :  { %3433 = vst.msk [vmem:[%s7953_s1 + $0x86] ss:$-56 sm:$0x7] %vm751_vm8, %v6521_v34   ;;  %3434 = vst.msk [vmem:[%s7953_s1 - $0x13a] ss:$168 sm:$0x18] %vm751_vm8, %v6521_v34   ;;  %v3011_v50 = vsel %vm29_vm6, %v4087_v17, %v3007_v44  ;;  %v3052_v61 = vsel %vm29_vm6, %v4099_v43, %v3048_v10  ;;  %v7132_v17 = vpop.permute.xlu0 %1433  }
  0xf6   :  { %3435 = vst.msk [vmem:[%s7953_s1 + $0x246] ss:$-56 sm:$0x60] %vm751_vm8, %v6521_v34   ;;  %v4104_v34 = vld [vmem:[%s7952_s0 + $0x4] sm:$0x1]   ;;  %3012 = vrot.lane.b32.xlu1 %v3011_v50, %s4300_s8  ;;  %s4301_s27 = smov 5  }
  0xf7   :  { %3445 = vst.msk [vmem:[%s7953_s1 + $0x65] ss:$-56 sm:$0x3] %vm792_vm9, %v6555_v54   ;;  %3446 = vst.msk [vmem:[%s7953_s1 + $0x145] ss:$-56 sm:$0xc] %vm792_vm9, %v6555_v54   ;;  %3053 = vrot.lane.b32.xlu0 %v3052_v61, %s4301_s27 }
  0xf8   :  { %3447 = vst.msk [vmem:[%s7953_s1 + $0x225] ss:$-56 sm:$0x30] %vm792_vm9, %v6555_v54   ;;  %3448 = vst.msk [vmem:[%s7953_s1 + $0x305] ss:$-56 sm:$0xc0] %vm792_vm9, %v6555_v54   ;;  %v3069_v54 = vsel %vm5_vm0, %v4105_v47, %v4104_v34 }
  0xf9   :  { %v4106_v9 = vld [vmem:[%s7952_s0 + $0x42] sm:$0x4]   ;;  %v4116_v57 = vld [vmem:[%s7952_s0 + $0x73] sm:$0x1]   ;;  %vm833_vm10 = vcmask 236544   ;;  %vm874_vm11 = vcmask 228352  }
  0xfa   :  { %v4107_v56 = vld [vmem:[%s7952_s0 + $0x21] sm:$0x8]   ;;  %v3073_v52 = vsel %vm9_vm1, %v4106_v9, %v3069_v54  ;;  %v4117_v58 = vld [vmem:[%s7952_s0 + $0x52] sm:$0x2]   ;;  %3460 = vst.msk [vmem:[%s7953_s1 + $0x194] sm:$0x80] %vm833_vm10, %v6592_v63  }
  0xfb   :  { %v4108_v19 = vld [vmem:[%s7952_s0 + $0x80] sm:$0x10]   ;;  %v3077_v48 = vsel %vm13_vm2, %v4107_v56, %v3073_v52  ;;  %v4118_v59 = vld [vmem:[%s7952_s0 + $0x31] sm:$0x4]   ;;  %v3110_v2 = vsel %vm5_vm0, %v4117_v58, %v4116_v57  ;;  %v4127_v16 = vld [vmem:[%s7952_s0 + $0x61] sm:$0x2]  }
  0xfc   :  { %v4109_v18 = vld [vmem:[%s7952_s0 + $0xdf] sm:$0x20]   ;;  %v3081_v0 = vsel %vm17_vm3, %v4108_v19, %v3077_v48  ;;  %v4119_v3 = vld [vmem:[%s7952_s0 + $0x10] sm:$0x8]   ;;  %v3114_v8 = vsel %vm9_vm1, %v4118_v59, %v3110_v2  ;;  %v4128_v24 = vld [vmem:[%s7952_s0 + $0x40] sm:$0x4]   ;;  %v7200_v19 = vpop.permute.xlu0 %1515  }
  0xfd   :  { %v4110_v38 = vld [vmem:[%s7952_s0 + $0xbe] sm:$0x40]   ;;  %v4120_v4 = vld [vmem:[%s7952_s0 + $0xef] sm:$0x10]   ;;  %v3085_v7 = vsel %vm21_vm4, %v4109_v18, %v3081_v0  ;;  %v3118_v15 = vsel %vm13_vm2, %v4119_v3, %v3114_v8  ;;  %v4129_v25 = vld [vmem:[%s7952_s0 + $0x1f] sm:$0x8]  }
  0xfe   :  { %v4111_v55 = vld [vmem:[%s7952_s0 + $0x9d] sm:$0x80]   ;;  %v4121_v5 = vld [vmem:[%s7952_s0 + $0xce] sm:$0x20]   ;;  %v3089_v14 = vsel %vm25_vm5, %v4110_v38, %v3085_v7  ;;  %v3122_v23 = vsel %vm17_vm3, %v4120_v4, %v3118_v15  ;;  %v4130_v26 = vld [vmem:[%s7952_s0 + $0x7e] sm:$0x10]  }
  0xff   :  { %v4122_v11 = vld [vmem:[%s7952_s0 + $0xad] sm:$0x40]   ;;  %3457 = vst.msk [vmem:[%s7953_s1 + $0x83] ss:$-56 sm:$0x7] %vm833_vm10, %v6592_v63   ;;  %v3093_v21 = vsel %vm29_vm6, %v4111_v55, %v3089_v14  ;;  %s4302_s29 = smov 4   ;;  %v3126_v29 = vsel %vm21_vm4, %v4121_v5, %v3122_v23 }
 0x100   :  { %v4123_v12 = vld [vmem:[%s7952_s0 + $0x8c] sm:$0x80]   ;;  %3458 = vst.msk [vmem:[%s7953_s1 - $0x13d] ss:$168 sm:$0x18] %vm833_vm10, %v6592_v63   ;;  %3094 = vrot.lane.b32.xlu1 %v3093_v21, %s4302_s29  ;;  %v3130_v37 = vsel %vm25_vm5, %v4122_v11, %v3126_v29  ;;  %s4303_s17 = smov 3  }
 0x101   :  { %3459 = vst.msk [vmem:[%s7953_s1 + $0x243] ss:$-56 sm:$0x60] %vm833_vm10, %v6592_v63   ;;  %v4126_v63 = vld [vmem:[%s7952_s0 + $0x2] sm:$0x1]   ;;  %v3134_v44 = vsel %vm29_vm6, %v4123_v12, %v3130_v37  ;;  %vm915_vm12 = vcmask 220160  }
 0x102   :  { %3469 = vst.msk [vmem:[%s7953_s1 + $0x62] ss:$-56 sm:$0x3] %vm874_vm11, %v6625_v20   ;;  %3470 = vst.msk [vmem:[%s7953_s1 + $0x142] ss:$-56 sm:$0xc] %vm874_vm11, %v6625_v20   ;;  %3135 = vrot.lane.b32.xlu0 %v3134_v44, %s4303_s17 }
 0x103   :  { %3471 = vst.msk [vmem:[%s7953_s1 + $0x222] ss:$-56 sm:$0x30] %vm874_vm11, %v6625_v20   ;;  %3472 = vst.msk [vmem:[%s7953_s1 + $0x302] ss:$-56 sm:$0xc0] %vm874_vm11, %v6625_v20   ;;  %v3147_v20 = vsel %vm5_vm0, %v4127_v16, %v4126_v63 }
 0x104   :  { %v3151_v30 = vsel %vm9_vm1, %v4128_v24, %v3147_v20  ;;  %v4131_v31 = vld [vmem:[%s7952_s0 + $0xdd] sm:$0x20]   ;;  %v4138_v40 = vld [vmem:[%s7952_s0 + $0x71] sm:$0x1]   ;;  %3484 = vst.msk [vmem:[%s7953_s1 + $0x191] sm:$0x80] %vm915_vm12, %v6661_v41  }
 0x105   :  { %v4132_v32 = vld [vmem:[%s7952_s0 + $0xbc] sm:$0x40]   ;;  %v3155_v39 = vsel %vm13_vm2, %v4129_v25, %v3151_v30  ;;  %v4139_v42 = vld [vmem:[%s7952_s0 + $0x50] sm:$0x2]   ;;  %vm956_vm13 = vcmask 211968   ;;  %vm997_vm14 = vcmask 203776  }
 0x106   :  { %v4140_v43 = vld [vmem:[%s7952_s0 + $0x2f] sm:$0x4]   ;;  %v3159_v46 = vsel %vm17_vm3, %v4130_v26, %v3155_v39  ;;  %v4133_v34 = vld [vmem:[%s7952_s0 + $0x9b] sm:$0x80]   ;;  %v3188_v47 = vsel %vm5_vm0, %v4139_v42, %v4138_v40  ;;  %vm1038_vm15 = vcmask 195584   ;;  %vm1079_vm8 = vcmask 187392  }
 0x107   :  { %v4141_v50 = vld [vmem:[%s7952_s0 + $0xe] sm:$0x8]   ;;  %v3163_v54 = vsel %vm21_vm4, %v4131_v31, %v3159_v46  ;;  %v3192_v9 = vsel %vm9_vm1, %v4140_v43, %v3188_v47  ;;  %3481 = vst.msk [vmem:[%s7953_s1 + $0x80] ss:$-56 sm:$0x7] %vm915_vm12, %v6661_v41   ;;  %s4304_s19 = smov 2  }
 0x108   :  { %v4142_v51 = vld [vmem:[%s7952_s0 + $0xed] sm:$0x10]   ;;  %v3167_v36 = vsel %vm25_vm5, %v4132_v32, %v3163_v54  ;;  %v3196_v52 = vsel %vm13_vm2, %v4141_v50, %v3192_v9  ;;  %3482 = vst.msk [vmem:[%s7953_s1 - $0x140] ss:$168 sm:$0x18] %vm915_vm12, %v6661_v41   ;;  %vm1120_vm9 = vcmask 179200  }
 0x109   :  { %v4143_v56 = vld [vmem:[%s7952_s0 + $0xcc] sm:$0x20]   ;;  %3483 = vst.msk [vmem:[%s7953_s1 + $0x240] ss:$-56 sm:$0x60] %vm915_vm12, %v6661_v41   ;;  %v3171_v41 = vsel %vm29_vm6, %v4133_v34, %v3167_v36  ;;  %v3200_v38 = vsel %vm17_vm3, %v4142_v51, %v3196_v52  ;;  %vm1161_vm10 = vcmask 171008  }
 0x10a   :  { %v4144_v18 = vld [vmem:[%s7952_s0 + $0xab] sm:$0x40]   ;;  %3493 = vst.msk [vmem:[%s7953_s1 + $0x27] ss:$168 sm:$0x3] %vm956_vm13, %v6694_v6   ;;  %3172 = vrot.lane.b32.xlu1 %v3171_v41, %s4304_s19  ;;  %vm1202_vm11 = vcmask 162816  }
 0x10b   :  { %v4145_v55 = vld [vmem:[%s7952_s0 + $0x8a] sm:$0x80]   ;;  %3494 = vst.msk [vmem:[%s7953_s1 + $0x107] ss:$-56 sm:$0xc] %vm956_vm13, %v6694_v6   ;;  %vm1239_vm12 = vcmask 154624  }
 0x10c   :  { %3495 = vst.msk [vmem:[%s7953_s1 - $0x199] ss:$168 sm:$0x30] %vm956_vm13, %v6694_v6   ;;  %3496 = vst.msk [vmem:[%s7953_s1 + $0x2c7] ss:$-56 sm:$0xc0] %vm956_vm13, %v6694_v6   ;;  %v3204_v6 = vsel %vm21_vm4, %v4143_v56, %v3200_v38 }
 0x10d   :  { %3505 = vst.msk [vmem:[%s7953_s1 + $0x45] ss:$-56 sm:$0x3] %vm997_vm14, %v6719_v62   ;;  %3506 = vst.msk [vmem:[%s7953_s1 + $0x125] ss:$-56 sm:$0xc] %vm997_vm14, %v6719_v62  }
 0x10e   :  { %3507 = vst.msk [vmem:[%s7953_s1 + $0x205] ss:$-56 sm:$0x30] %vm997_vm14, %v6719_v62   ;;  %3508 = vst.msk [vmem:[%s7953_s1 + $0x2e5] ss:$-56 sm:$0xc0] %vm997_vm14, %v6719_v62   ;;  %v1557_v62 = vpop.permute.xlu1 %1556  }
 0x10f   :  { %3517 = vst.msk [vmem:[%s7953_s1 + $0x24] ss:$168 sm:$0x3] %vm1038_vm15, %v6753_v22   ;;  %3518 = vst.msk [vmem:[%s7953_s1 + $0x104] ss:$-56 sm:$0xc] %vm1038_vm15, %v6753_v22  }
 0x110   :  { %3519 = vst.msk [vmem:[%s7953_s1 - $0x19c] ss:$168 sm:$0x30] %vm1038_vm15, %v6753_v22   ;;  %3520 = vst.msk [vmem:[%s7953_s1 + $0x2c4] ss:$-56 sm:$0xc0] %vm1038_vm15, %v6753_v22   ;;  %v3208_v22 = vsel %vm25_vm5, %v4144_v18, %v3204_v6 }
 0x111   :  { %3529 = vst.msk [vmem:[%s7953_s1 + $0x42] ss:$-56 sm:$0x3] %vm1079_vm8, %v6790_v45   ;;  %3530 = vst.msk [vmem:[%s7953_s1 + $0x122] ss:$-56 sm:$0xc] %vm1079_vm8, %v6790_v45  }
 0x112   :  { %3531 = vst.msk [vmem:[%s7953_s1 + $0x202] ss:$-56 sm:$0x30] %vm1079_vm8, %v6790_v45   ;;  %3532 = vst.msk [vmem:[%s7953_s1 + $0x2e2] ss:$-56 sm:$0xc0] %vm1079_vm8, %v6790_v45   ;;  %v3212_v45 = vsel %vm29_vm6, %v4145_v55, %v3208_v22 }
 0x113   :  { %3541 = vst.msk [vmem:[%s7953_s1 + $0x21] ss:$168 sm:$0x3] %vm1120_vm9, %v6823_v28   ;;  %3542 = vst.msk [vmem:[%s7953_s1 + $0x101] ss:$-56 sm:$0xc] %vm1120_vm9, %v6823_v28  }
 0x114   :  { %3543 = vst.msk [vmem:[%s7953_s1 - $0x19f] ss:$168 sm:$0x30] %vm1120_vm9, %v6823_v28   ;;  %3544 = vst.msk [vmem:[%s7953_s1 + $0x2c1] ss:$-56 sm:$0xc0] %vm1120_vm9, %v6823_v28   ;;  %v1598_v28 = vpop.permute.xlu0 %1597  }
 0x115   :  { %3553 = vst.msk [vmem:[%s7953_s1 + $0x7] ss:$168 sm:$0x3] %vm1161_vm10, %v6859_v13   ;;  %3554 = vst.msk [vmem:[%s7953_s1 + $0xe7] ss:$-56 sm:$0xc] %vm1161_vm10, %v6859_v13  }
 0x116   :  { %3555 = vst.msk [vmem:[%s7953_s1 - $0x1b9] ss:$168 sm:$0x30] %vm1161_vm10, %v6859_v13   ;;  %3556 = vst.msk [vmem:[%s7953_s1 + $0x2a7] ss:$-56 sm:$0xc0] %vm1161_vm10, %v6859_v13   ;;  %v1639_v13 = vpop.permute.xlu1 %1638  }
 0x117   :  { %3565 = vst.msk [vmem:[%s7953_s1 + $0xc6] ss:$-56 sm:$0xf] %vm1202_vm11, %v6892_v35   ;;  %3566 = vst.msk [vmem:[%s7953_s1 + $0x286] ss:$-56 sm:$0xf0] %vm1202_vm11, %v6892_v35  }
 0x118   :  { %vm1280_vm13 = vcmask 146432   ;;  %vm1316_vm14 = vcmask 138240   ;;  %3575 = vst.msk [vmem:[%s7953_s1 + $0x4] ss:$168 sm:$0x3] %vm1239_vm12, %v6917_v53   ;;  %vm1357_vm15 = vcmask 130048   ;;  %v1680_v35 = vpop.permute.xlu0 %1679  }
 0x119   :  { %3576 = vst.msk [vmem:[%s7953_s1 + $0xe4] ss:$-56 sm:$0xc] %vm1239_vm12, %v6917_v53   ;;  %3577 = vst.msk [vmem:[%s7953_s1 - $0x1bc] ss:$168 sm:$0x30] %vm1239_vm12, %v6917_v53  }
 0x11a   :  { %3578 = vst.msk [vmem:[%s7953_s1 + $0x2a4] ss:$-56 sm:$0xc0] %vm1239_vm12, %v6917_v53   ;;  %vm1394_vm8 = vcmask 121856   ;;  %vm1435_vm9 = vcmask 113664   ;;  %s4305_s18 = smov 1   ;;  %v1721_v53 = vpop.permute.xlu1 %1720  }
 0x11b   :  { %3587 = vst.msk [vmem:[%s7953_s1 + $0xc3] ss:$-56 sm:$0xf] %vm1280_vm13, %v6951_v1   ;;  %3588 = vst.msk [vmem:[%s7953_s1 + $0x283] ss:$-56 sm:$0xf0] %vm1280_vm13, %v6951_v1   ;;  %3213 = vrot.lane.b32.xlu0 %v3212_v45, %s4305_s18 }
 0x11c   :  { %3596 = vst.msk [vmem:[%s7953_s1 + $0x1] ss:$168 sm:$0x3] %vm1316_vm14, %v6988_v27   ;;  %3597 = vst.msk [vmem:[%s7953_s1 + $0xe1] ss:$-56 sm:$0xc] %vm1316_vm14, %v6988_v27   ;;  %v1762_v48 = vpop.permute.xlu0 %1761  }
 0x11d   :  { %3598 = vst.msk [vmem:[%s7953_s1 - $0x1bf] ss:$168 sm:$0x30] %vm1316_vm14, %v6988_v27   ;;  %3599 = vst.msk [vmem:[%s7953_s1 + $0x2a1] ss:$-56 sm:$0xc0] %vm1316_vm14, %v6988_v27  }
 0x11e   :  { %3608 = vst.msk [vmem:[%s7953_s1 + $0xc0] ss:$-56 sm:$0xf] %vm1357_vm15, %v7034_v49   ;;  %3609 = vst.msk [vmem:[%s7953_s1 + $0x280] ss:$-56 sm:$0xf0] %vm1357_vm15, %v7034_v49   ;;  %v1803_v2 = vpop.permute.xlu1 %1802  }
 0x11f   :  { %3618 = vst.msk [vmem:[%s7953_s1 + $0x67] ss:$-56 sm:$0x3] %vm1394_vm8, %v7086_v60   ;;  %3619 = vst.msk [vmem:[%s7953_s1 + $0x147] ss:$-56 sm:$0xc] %vm1394_vm8, %v7086_v60  }
 0x120   :  { %3620 = vst.msk [vmem:[%s7953_s1 + $0x227] ss:$-56 sm:$0x30] %vm1394_vm8, %v7086_v60   ;;  %3621 = vst.msk [vmem:[%s7953_s1 + $0x307] ss:$-56 sm:$0xc0] %vm1394_vm8, %v7086_v60   ;;  %v1844_v8 = vpop.permute.xlu0 %1843  }
 0x121   :  { %3630 = vst.msk [vmem:[%s7953_s1 + $0x85] ss:$-56 sm:$0x7] %vm1435_vm9, %v7132_v17   ;;  %3631 = vst.msk [vmem:[%s7953_s1 - $0x13b] ss:$168 sm:$0x18] %vm1435_vm9, %v7132_v17  }
 0x122   :  { %3632 = vst.msk [vmem:[%s7953_s1 + $0x245] ss:$-56 sm:$0x60] %vm1435_vm9, %v7132_v17   ;;  %3633 = vst.msk [vmem:[%s7953_s1 + $0x196] sm:$0x80] %vm1435_vm9, %v7132_v17   ;;  %vm1476_vm10 = vcmask 105472   ;;  %v1885_v12 = vpop.permute.xlu1 %1884  }
 0x123   :  { %vm1517_vm11 = vcmask 97280   ;;  %vm1558_vm12 = vcmask 89088   ;;  %vm1599_vm13 = vcmask 80896   ;;  %3642 = vst.msk [vmem:[%s7953_s1 + $0x64] ss:$-56 sm:$0x3] %vm1476_vm10, %v7170_v33  }
 0x124   :  { %3643 = vst.msk [vmem:[%s7953_s1 + $0x144] ss:$-56 sm:$0xc] %vm1476_vm10, %v7170_v33   ;;  %3644 = vst.msk [vmem:[%s7953_s1 + $0x224] ss:$-56 sm:$0x30] %vm1476_vm10, %v7170_v33   ;;  %v1922_v14 = vpop.permute.xlu0 %1921  }
 0x125   :  { %3645 = vst.msk [vmem:[%s7953_s1 + $0x304] ss:$-56 sm:$0xc0] %vm1476_vm10, %v7170_v33   ;;  %vm1640_vm14 = vcmask 72704   ;;  %vm1681_vm15 = vcmask 64512   ;;  %vm1722_vm8 = vcmask 56320  }
 0x126   :  { %3654 = vst.msk [vmem:[%s7953_s1 + $0x82] ss:$-56 sm:$0x7] %vm1517_vm11, %v7200_v19   ;;  %3655 = vst.msk [vmem:[%s7953_s1 - $0x13e] ss:$168 sm:$0x18] %vm1517_vm11, %v7200_v19   ;;  %v1963_v15 = vpop.permute.xlu1 %1962  }
 0x127   :  { %3656 = vst.msk [vmem:[%s7953_s1 + $0x242] ss:$-56 sm:$0x60] %vm1517_vm11, %v7200_v19   ;;  %3657 = vst.msk [vmem:[%s7953_s1 + $0x193] sm:$0x80] %vm1517_vm11, %v7200_v19   ;;  %vm1763_vm9 = vcmask 48128  }
 0x128   :  { %3666 = vst.msk [vmem:[%s7953_s1 + $0x61] ss:$-56 sm:$0x3] %vm1558_vm12, %v1557_v62   ;;  %3667 = vst.msk [vmem:[%s7953_s1 + $0x141] ss:$-56 sm:$0xc] %vm1558_vm12, %v1557_v62   ;;  %v2000_v63 = vpop.permute.xlu0 %1999  }
 0x129   :  { %3668 = vst.msk [vmem:[%s7953_s1 + $0x221] ss:$-56 sm:$0x30] %vm1558_vm12, %v1557_v62   ;;  %3669 = vst.msk [vmem:[%s7953_s1 + $0x301] ss:$-56 sm:$0xc0] %vm1558_vm12, %v1557_v62  }
 0x12a   :  { %3678 = vst.msk [vmem:[%s7953_s1 + $0x47] ss:$-56 sm:$0x3] %vm1599_vm13, %v1598_v28   ;;  %3679 = vst.msk [vmem:[%s7953_s1 + $0x127] ss:$-56 sm:$0xc] %vm1599_vm13, %v1598_v28   ;;  %v2041_v16 = vpop.permute.xlu1 %2040  }
 0x12b   :  { %3680 = vst.msk [vmem:[%s7953_s1 + $0x207] ss:$-56 sm:$0x30] %vm1599_vm13, %v1598_v28   ;;  %3681 = vst.msk [vmem:[%s7953_s1 + $0x2e7] ss:$-56 sm:$0xc0] %vm1599_vm13, %v1598_v28  }
 0x12c   :  { %3690 = vst.msk [vmem:[%s7953_s1 + $0x26] ss:$168 sm:$0x3] %vm1640_vm14, %v1639_v13   ;;  %3691 = vst.msk [vmem:[%s7953_s1 + $0x106] ss:$-56 sm:$0xc] %vm1640_vm14, %v1639_v13   ;;  %v2082_v17 = vpop.permute.xlu0 %2081  }
 0x12d   :  { %3692 = vst.msk [vmem:[%s7953_s1 - $0x19a] ss:$168 sm:$0x30] %vm1640_vm14, %v1639_v13   ;;  %3693 = vst.msk [vmem:[%s7953_s1 + $0x2c6] ss:$-56 sm:$0xc0] %vm1640_vm14, %v1639_v13  }
 0x12e   :  { %3702 = vst.msk [vmem:[%s7953_s1 + $0x44] ss:$-56 sm:$0x3] %vm1681_vm15, %v1680_v35   ;;  %3703 = vst.msk [vmem:[%s7953_s1 + $0x124] ss:$-56 sm:$0xc] %vm1681_vm15, %v1680_v35   ;;  %v2123_v21 = vpop.permute.xlu1 %2122  }
 0x12f   :  { %3704 = vst.msk [vmem:[%s7953_s1 + $0x204] ss:$-56 sm:$0x30] %vm1681_vm15, %v1680_v35   ;;  %3705 = vst.msk [vmem:[%s7953_s1 + $0x2e4] ss:$-56 sm:$0xc0] %vm1681_vm15, %v1680_v35  }
 0x130   :  { %v2_v1 = vld [vmem:[%s7952_s0] sm:$0x1]   ;;  %3714 = vst.msk [vmem:[%s7953_s1 + $0x23] ss:$168 sm:$0x3] %vm1722_vm8, %v1721_v53   ;;  %vm2124_vm10 = vcmask 261344   ;;  %v2164_v23 = vpop.permute.xlu0 %2163  }
 0x131   :  { %v3220_v27 = vld [vmem:[%s7952_s0 + $0x1f] sm:$0x2]   ;;  %3715 = vst.msk [vmem:[%s7953_s1 + $0x103] ss:$-56 sm:$0xc] %vm1722_vm8, %v1721_v53   ;;  %vm2165_vm11 = vcmask 261336  }
 0x132   :  { %3716 = vst.msk [vmem:[%s7953_s1 - $0x19d] ss:$168 sm:$0x30] %vm1722_vm8, %v1721_v53   ;;  %3717 = vst.msk [vmem:[%s7953_s1 + $0x2c3] ss:$-56 sm:$0xc0] %vm1722_vm8, %v1721_v53   ;;  %v6_v57 = vsel %vm5_vm0, %v3220_v27, %v2_v1  ;;  %v2205_v20 = vpop.permute.xlu1 %2204  }
 0x133   :  { %v3221_v49 = vld [vmem:[%s7952_s0 + $0x3e] sm:$0x4]   ;;  %3726 = vst.msk [vmem:[%s7953_s1 + $0x41] ss:$-56 sm:$0x3] %vm1763_vm9, %v1762_v48   ;;  %vm1804_vm0 = vcmask 39936  }
 0x134   :  { %v3222_v10 = vld [vmem:[%s7952_s0 + $0x5d] sm:$0x8]   ;;  %3727 = vst.msk [vmem:[%s7953_s1 + $0x121] ss:$-56 sm:$0xc] %vm1763_vm9, %v1762_v48   ;;  %v10_v59 = vsel %vm9_vm1, %v3221_v49, %v6_v57  ;;  %vm1845_vm1 = vcmask 31744   ;;  %v2246_v24 = vpop.permute.xlu0 %2245  }
 0x135   :  { %v3223_v58 = vld [vmem:[%s7952_s0 + $0x7c] sm:$0x10]   ;;  %3728 = vst.msk [vmem:[%s7953_s1 + $0x201] ss:$-56 sm:$0x30] %vm1763_vm9, %v1762_v48   ;;  %v14_v61 = vsel %vm13_vm2, %v3222_v10, %v10_v59  ;;  %vm1886_vm2 = vcmask 23552  }
 0x136   :  { %3729 = vst.msk [vmem:[%s7953_s1 + $0x2e1] ss:$-56 sm:$0xc0] %vm1763_vm9, %v1762_v48   ;;  %v3224_v60 = vld [vmem:[%s7952_s0 + $0x9b] sm:$0x20]   ;;  %v18_v3 = vsel %vm17_vm3, %v3223_v58, %v14_v61  ;;  %vm1923_vm3 = vcmask 15360   ;;  %v2287_v25 = vpop.permute.xlu1 %2286  }
 0x137   :  { %v3225_v0 = vld [vmem:[%s7952_s0 + $0xba] sm:$0x40]   ;;  %3738 = vst.msk [vmem:[%s7953_s1 + $0x20] ss:$168 sm:$0x3] %vm1804_vm0, %v1803_v2   ;;  %v22_v5 = vsel %vm21_vm4, %v3224_v60, %v18_v3  ;;  %vm1964_vm4 = vcmask 7168  }
 0x138   :  { %v3226_v4 = vld [vmem:[%s7952_s0 + $0xd9] sm:$0x80]   ;;  %3739 = vst.msk [vmem:[%s7953_s1 + $0x100] ss:$-56 sm:$0xc] %vm1804_vm0, %v1803_v2   ;;  %v26_v7 = vsel %vm25_vm5, %v3225_v0, %v22_v5  ;;  %vm2001_vm5 = vcmask 261368   ;;  %v2328_v26 = vpop.permute.xlu0 %2327  }
 0x139   :  { %3740 = vst.msk [vmem:[%s7953_s1 - $0x1a0] ss:$168 sm:$0x30] %vm1804_vm0, %v1803_v2   ;;  %3741 = vst.msk [vmem:[%s7953_s1 + $0x2c0] ss:$-56 sm:$0xc0] %vm1804_vm0, %v1803_v2   ;;  %v30_v11 = vsel %vm29_vm6, %v3226_v4, %v26_v7 }
 0x13a   :  { %3750 = vst.msk [vmem:[%s7953_s1 + $0x6] ss:$168 sm:$0x3] %vm1845_vm1, %v1844_v8   ;;  %3751 = vst.msk [vmem:[%s7953_s1 + $0xe6] ss:$-56 sm:$0xc] %vm1845_vm1, %v1844_v8   ;;  %v2369_v29 = vpop.permute.xlu1 %2368  }
 0x13b   :  { %3752 = vst.msk [vmem:[%s7953_s1 - $0x1ba] ss:$168 sm:$0x30] %vm1845_vm1, %v1844_v8   ;;  %3753 = vst.msk [vmem:[%s7953_s1 + $0x2a6] ss:$-56 sm:$0xc0] %vm1845_vm1, %v1844_v8  }
 0x13c   :  { %32 = vst.msk [vmem:[%s7953_s1] ss:$56 sm:$0xf] %vm31_vm7, %v30_v11   ;;  %33 = vst.msk [vmem:[%s7953_s1] ss:$56 sm:$0xf0] %vm31_vm7, %v30_v11  }
 0x13d   :  { %3762 = vst.msk [vmem:[%s7953_s1 + $0xc5] ss:$-56 sm:$0xf] %vm1886_vm2, %v1885_v12   ;;  %3763 = vst.msk [vmem:[%s7953_s1 + $0x285] ss:$-56 sm:$0xf0] %vm1886_vm2, %v1885_v12   ;;  %v2410_v30 = vpop.permute.xlu0 %2409  }
 0x13e   :  { %3772 = vst.msk [vmem:[%s7953_s1 + $0x3] ss:$168 sm:$0x3] %vm1923_vm3, %v1922_v14   ;;  %3773 = vst.msk [vmem:[%s7953_s1 + $0xe3] ss:$-56 sm:$0xc] %vm1923_vm3, %v1922_v14  }
 0x13f   :  { %3774 = vst.msk [vmem:[%s7953_s1 - $0x1bd] ss:$168 sm:$0x30] %vm1923_vm3, %v1922_v14   ;;  %3775 = vst.msk [vmem:[%s7953_s1 + $0x2a3] ss:$-56 sm:$0xc0] %vm1923_vm3, %v1922_v14  }
 0x140   :  { %3784 = vst.msk [vmem:[%s7953_s1 + $0xc2] ss:$-56 sm:$0xf] %vm1964_vm4, %v1963_v15   ;;  %3785 = vst.msk [vmem:[%s7953_s1 + $0x282] ss:$-56 sm:$0xf0] %vm1964_vm4, %v1963_v15   ;;  %v2451_v31 = vpop.permute.xlu1 %2450  }
 0x141   :  { %3794 = vst.msk [vmem:[%s7953_s1 + $0x86] ss:$-56 sm:$0x7] %vm2001_vm5, %v2000_v63   ;;  %3795 = vst.msk [vmem:[%s7953_s1 - $0x13a] ss:$168 sm:$0x18] %vm2001_vm5, %v2000_v63  }
 0x142   :  { %3796 = vst.msk [vmem:[%s7953_s1 + $0x246] ss:$-56 sm:$0x60] %vm2001_vm5, %v2000_v63   ;;  %3797 = vst.msk [vmem:[%s7953_s1 + $0x197] sm:$0x80] %vm2001_vm5, %v2000_v63   ;;  %vm2042_vm6 = vcmask 261360  }
 0x143   :  { %3806 = vst.msk [vmem:[%s7953_s1 + $0x65] ss:$-56 sm:$0x3] %vm2042_vm6, %v2041_v16   ;;  %3807 = vst.msk [vmem:[%s7953_s1 + $0x145] ss:$-56 sm:$0xc] %vm2042_vm6, %v2041_v16  }
 0x144   :  { %3808 = vst.msk [vmem:[%s7953_s1 + $0x225] ss:$-56 sm:$0x30] %vm2042_vm6, %v2041_v16   ;;  %3809 = vst.msk [vmem:[%s7953_s1 + $0x305] ss:$-56 sm:$0xc0] %vm2042_vm6, %v2041_v16   ;;  %v2488_v32 = vpop.permute.xlu0 %2487  }
 0x145   :  { %vm2083_vm7 = vcmask 261352   ;;  %3830 = vst.msk [vmem:[%s7953_s1 + $0x62] ss:$-56 sm:$0x3] %vm2124_vm10, %v2123_v21   ;;  %vm2206_vm12 = vcmask 261328   ;;  %vm2247_vm13 = vcmask 261320  }
 0x146   :  { %3818 = vst.msk [vmem:[%s7953_s1 + $0x83] ss:$-56 sm:$0x7] %vm2083_vm7, %v2082_v17   ;;  %3819 = vst.msk [vmem:[%s7953_s1 - $0x13d] ss:$168 sm:$0x18] %vm2083_vm7, %v2082_v17  }
 0x147   :  { %3820 = vst.msk [vmem:[%s7953_s1 + $0x243] ss:$-56 sm:$0x60] %vm2083_vm7, %v2082_v17   ;;  %3821 = vst.msk [vmem:[%s7953_s1 + $0x194] sm:$0x80] %vm2083_vm7, %v2082_v17   ;;  %vm2288_vm14 = vcmask 261312   ;;  %v2529_v33 = vpop.permute.xlu1 %2528  }
 0x148   :  { %3831 = vst.msk [vmem:[%s7953_s1 + $0x142] ss:$-56 sm:$0xc] %vm2124_vm10, %v2123_v21   ;;  %3832 = vst.msk [vmem:[%s7953_s1 + $0x222] ss:$-56 sm:$0x30] %vm2124_vm10, %v2123_v21   ;;  %v2566_v37 = vpop.permute.xlu0 %2565  }
 0x149   :  { %3833 = vst.msk [vmem:[%s7953_s1 + $0x302] ss:$-56 sm:$0xc0] %vm2124_vm10, %v2123_v21   ;;  %vm2329_vm15 = vcmask 261304   ;;  %vm2370_vm8 = vcmask 261296   ;;  %vm2411_vm9 = vcmask 261288  }
 0x14a   :  { %3842 = vst.msk [vmem:[%s7953_s1 + $0x80] ss:$-56 sm:$0x7] %vm2165_vm11, %v2164_v23   ;;  %3843 = vst.msk [vmem:[%s7953_s1 - $0x140] ss:$168 sm:$0x18] %vm2165_vm11, %v2164_v23  }
 0x14b   :  { %3844 = vst.msk [vmem:[%s7953_s1 + $0x240] ss:$-56 sm:$0x60] %vm2165_vm11, %v2164_v23   ;;  %3845 = vst.msk [vmem:[%s7953_s1 + $0x191] sm:$0x80] %vm2165_vm11, %v2164_v23   ;;  %vm2452_vm0 = vcmask 261280  }
 0x14c   :  { %3854 = vst.msk [vmem:[%s7953_s1 + $0x27] ss:$168 sm:$0x3] %vm2206_vm12, %v2205_v20   ;;  %3855 = vst.msk [vmem:[%s7953_s1 + $0x107] ss:$-56 sm:$0xc] %vm2206_vm12, %v2205_v20   ;;  %v2607_v39 = vpop.permute.xlu1 %2606  }
 0x14d   :  { %3856 = vst.msk [vmem:[%s7953_s1 - $0x199] ss:$168 sm:$0x30] %vm2206_vm12, %v2205_v20   ;;  %3857 = vst.msk [vmem:[%s7953_s1 + $0x2c7] ss:$-56 sm:$0xc0] %vm2206_vm12, %v2205_v20  }
 0x14e   :  { %3866 = vst.msk [vmem:[%s7953_s1 + $0x45] ss:$-56 sm:$0x3] %vm2247_vm13, %v2246_v24   ;;  %3867 = vst.msk [vmem:[%s7953_s1 + $0x125] ss:$-56 sm:$0xc] %vm2247_vm13, %v2246_v24  }
 0x14f   :  { %3868 = vst.msk [vmem:[%s7953_s1 + $0x205] ss:$-56 sm:$0x30] %vm2247_vm13, %v2246_v24   ;;  %3869 = vst.msk [vmem:[%s7953_s1 + $0x2e5] ss:$-56 sm:$0xc0] %vm2247_vm13, %v2246_v24   ;;  %v2644_v40 = vpop.permute.xlu0 %2643  }
 0x150   :  { %3878 = vst.msk [vmem:[%s7953_s1 + $0x24] ss:$168 sm:$0x3] %vm2288_vm14, %v2287_v25   ;;  %3879 = vst.msk [vmem:[%s7953_s1 + $0x104] ss:$-56 sm:$0xc] %vm2288_vm14, %v2287_v25   ;;  %v2685_v42 = vpop.permute.xlu1 %2684  }
 0x151   :  { %3880 = vst.msk [vmem:[%s7953_s1 - $0x19c] ss:$168 sm:$0x30] %vm2288_vm14, %v2287_v25   ;;  %3881 = vst.msk [vmem:[%s7953_s1 + $0x2c4] ss:$-56 sm:$0xc0] %vm2288_vm14, %v2287_v25  }
 0x152   :  { %3890 = vst.msk [vmem:[%s7953_s1 + $0x42] ss:$-56 sm:$0x3] %vm2329_vm15, %v2328_v26   ;;  %3891 = vst.msk [vmem:[%s7953_s1 + $0x122] ss:$-56 sm:$0xc] %vm2329_vm15, %v2328_v26  }
 0x153   :  { %3892 = vst.msk [vmem:[%s7953_s1 + $0x202] ss:$-56 sm:$0x30] %vm2329_vm15, %v2328_v26   ;;  %3893 = vst.msk [vmem:[%s7953_s1 + $0x2e2] ss:$-56 sm:$0xc0] %vm2329_vm15, %v2328_v26  }
 0x154   :  { %3902 = vst.msk [vmem:[%s7953_s1 + $0x21] ss:$168 sm:$0x3] %vm2370_vm8, %v2369_v29   ;;  %3903 = vst.msk [vmem:[%s7953_s1 + $0x101] ss:$-56 sm:$0xc] %vm2370_vm8, %v2369_v29   ;;  %v2726_v43 = vpop.permute.xlu0 %2725  }
 0x155   :  { %3904 = vst.msk [vmem:[%s7953_s1 - $0x19f] ss:$168 sm:$0x30] %vm2370_vm8, %v2369_v29   ;;  %3905 = vst.msk [vmem:[%s7953_s1 + $0x2c1] ss:$-56 sm:$0xc0] %vm2370_vm8, %v2369_v29  }
 0x156   :  { %3914 = vst.msk [vmem:[%s7953_s1 + $0x7] ss:$168 sm:$0x3] %vm2411_vm9, %v2410_v30   ;;  %3915 = vst.msk [vmem:[%s7953_s1 + $0xe7] ss:$-56 sm:$0xc] %vm2411_vm9, %v2410_v30  }
 0x157   :  { %3916 = vst.msk [vmem:[%s7953_s1 - $0x1b9] ss:$168 sm:$0x30] %vm2411_vm9, %v2410_v30   ;;  %3917 = vst.msk [vmem:[%s7953_s1 + $0x2a7] ss:$-56 sm:$0xc0] %vm2411_vm9, %v2410_v30   ;;  %v2767_v44 = vpop.permute.xlu1 %2766  }
 0x158   :  { %vm2489_vm1 = vcmask 261272   ;;  %3926 = vst.msk [vmem:[%s7953_s1 + $0xc6] ss:$-56 sm:$0xf] %vm2452_vm0, %v2451_v31   ;;  %vm2530_vm2 = vcmask 261264   ;;  %vm2567_vm3 = vcmask 261256   ;;  %v2808_v46 = vpop.permute.xlu0 %2807  }
 0x159   :  { %3927 = vst.msk [vmem:[%s7953_s1 + $0x286] ss:$-56 sm:$0xf0] %vm2452_vm0, %v2451_v31   ;;  %vm2608_vm4 = vcmask 261248   ;;  %vm2645_vm5 = vcmask 261240   ;;  %vm2686_vm6 = vcmask 261232  }
 0x15a   :  { %3936 = vst.msk [vmem:[%s7953_s1 + $0x4] ss:$168 sm:$0x3] %vm2489_vm1, %v2488_v32   ;;  %3937 = vst.msk [vmem:[%s7953_s1 + $0xe4] ss:$-56 sm:$0xc] %vm2489_vm1, %v2488_v32  }
 0x15b   :  { %3938 = vst.msk [vmem:[%s7953_s1 - $0x1bc] ss:$168 sm:$0x30] %vm2489_vm1, %v2488_v32   ;;  %3939 = vst.msk [vmem:[%s7953_s1 + $0x2a4] ss:$-56 sm:$0xc0] %vm2489_vm1, %v2488_v32  }
 0x15c   :  { %3948 = vst.msk [vmem:[%s7953_s1 + $0xc3] ss:$-56 sm:$0xf] %vm2530_vm2, %v2529_v33   ;;  %3949 = vst.msk [vmem:[%s7953_s1 + $0x283] ss:$-56 sm:$0xf0] %vm2530_vm2, %v2529_v33   ;;  %v2849_v34 = vpop.permute.xlu1 %2848  }
 0x15d   :  { %3958 = vst.msk [vmem:[%s7953_s1 + $0x1] ss:$168 sm:$0x3] %vm2567_vm3, %v2566_v37   ;;  %3959 = vst.msk [vmem:[%s7953_s1 + $0xe1] ss:$-56 sm:$0xc] %vm2567_vm3, %v2566_v37  }
 0x15e   :  { %3960 = vst.msk [vmem:[%s7953_s1 - $0x1bf] ss:$168 sm:$0x30] %vm2567_vm3, %v2566_v37   ;;  %3961 = vst.msk [vmem:[%s7953_s1 + $0x2a1] ss:$-56 sm:$0xc0] %vm2567_vm3, %v2566_v37  }
 0x15f   :  { %3970 = vst.msk [vmem:[%s7953_s1 + $0xc0] ss:$-56 sm:$0xf] %vm2608_vm4, %v2607_v39   ;;  %3971 = vst.msk [vmem:[%s7953_s1 + $0x280] ss:$-56 sm:$0xf0] %vm2608_vm4, %v2607_v39   ;;  %v2890_v47 = vpop.permute.xlu0 %2889  }
 0x160   :  { %3980 = vst.msk [vmem:[%s7953_s1 + $0x67] ss:$-56 sm:$0x3] %vm2645_vm5, %v2644_v40   ;;  %3981 = vst.msk [vmem:[%s7953_s1 + $0x147] ss:$-56 sm:$0xc] %vm2645_vm5, %v2644_v40   ;;  %v2931_v50 = vpop.permute.xlu1 %2930  }
 0x161   :  { %3982 = vst.msk [vmem:[%s7953_s1 + $0x227] ss:$-56 sm:$0x30] %vm2645_vm5, %v2644_v40   ;;  %3983 = vst.msk [vmem:[%s7953_s1 + $0x307] ss:$-56 sm:$0xc0] %vm2645_vm5, %v2644_v40  }
 0x162   :  { %vm2727_vm7 = vcmask 261224   ;;  %3992 = vst.msk [vmem:[%s7953_s1 + $0x85] ss:$-56 sm:$0x7] %vm2686_vm6, %v2685_v42   ;;  %3995 = vst.msk [vmem:[%s7953_s1 + $0x196] sm:$0x80] %vm2686_vm6, %v2685_v42  }
 0x163   :  { %3993 = vst.msk [vmem:[%s7953_s1 - $0x13b] ss:$168 sm:$0x18] %vm2686_vm6, %v2685_v42   ;;  %3994 = vst.msk [vmem:[%s7953_s1 + $0x245] ss:$-56 sm:$0x60] %vm2686_vm6, %v2685_v42  }
 0x164   :  { %4004 = vst.msk [vmem:[%s7953_s1 + $0x64] ss:$-56 sm:$0x3] %vm2727_vm7, %v2726_v43   ;;  %4005 = vst.msk [vmem:[%s7953_s1 + $0x144] ss:$-56 sm:$0xc] %vm2727_vm7, %v2726_v43   ;;  %v2972_v51 = vpop.permute.xlu0 %2971  }
 0x165   :  { %4006 = vst.msk [vmem:[%s7953_s1 + $0x224] ss:$-56 sm:$0x30] %vm2727_vm7, %v2726_v43   ;;  %4007 = vst.msk [vmem:[%s7953_s1 + $0x304] ss:$-56 sm:$0xc0] %vm2727_vm7, %v2726_v43  }
 0x166   :  { %vm2768_vm10 = vcmask 261216   ;;  %vm2809_vm11 = vcmask 261208   ;;  %vm2850_vm12 = vcmask 261200   ;;  %vm2891_vm13 = vcmask 261192  }
 0x167   :  { %4016 = vst.msk [vmem:[%s7953_s1 + $0x82] ss:$-56 sm:$0x7] %vm2768_vm10, %v2767_v44   ;;  %4017 = vst.msk [vmem:[%s7953_s1 - $0x13e] ss:$168 sm:$0x18] %vm2768_vm10, %v2767_v44  }
 0x168   :  { %4018 = vst.msk [vmem:[%s7953_s1 + $0x242] ss:$-56 sm:$0x60] %vm2768_vm10, %v2767_v44   ;;  %4019 = vst.msk [vmem:[%s7953_s1 + $0x193] sm:$0x80] %vm2768_vm10, %v2767_v44   ;;  %vm2932_vm14 = vcmask 261184   ;;  %v3013_v54 = vpop.permute.xlu1 %3012  }
 0x169   :  { %4028 = vst.msk [vmem:[%s7953_s1 + $0x61] ss:$-56 sm:$0x3] %vm2809_vm11, %v2808_v46   ;;  %4029 = vst.msk [vmem:[%s7953_s1 + $0x141] ss:$-56 sm:$0xc] %vm2809_vm11, %v2808_v46   ;;  %v3054_v9 = vpop.permute.xlu0 %3053  }
 0x16a   :  { %4030 = vst.msk [vmem:[%s7953_s1 + $0x221] ss:$-56 sm:$0x30] %vm2809_vm11, %v2808_v46   ;;  %4031 = vst.msk [vmem:[%s7953_s1 + $0x301] ss:$-56 sm:$0xc0] %vm2809_vm11, %v2808_v46  }
 0x16b   :  { %4040 = vst.msk [vmem:[%s7953_s1 + $0x47] ss:$-56 sm:$0x3] %vm2850_vm12, %v2849_v34   ;;  %4041 = vst.msk [vmem:[%s7953_s1 + $0x127] ss:$-56 sm:$0xc] %vm2850_vm12, %v2849_v34  }
 0x16c   :  { %4042 = vst.msk [vmem:[%s7953_s1 + $0x207] ss:$-56 sm:$0x30] %vm2850_vm12, %v2849_v34   ;;  %4043 = vst.msk [vmem:[%s7953_s1 + $0x2e7] ss:$-56 sm:$0xc0] %vm2850_vm12, %v2849_v34  }
 0x16d   :  { %4052 = vst.msk [vmem:[%s7953_s1 + $0x26] ss:$168 sm:$0x3] %vm2891_vm13, %v2890_v47   ;;  %4053 = vst.msk [vmem:[%s7953_s1 + $0x106] ss:$-56 sm:$0xc] %vm2891_vm13, %v2890_v47  }
 0x16e   :  { %4054 = vst.msk [vmem:[%s7953_s1 - $0x19a] ss:$168 sm:$0x30] %vm2891_vm13, %v2890_v47   ;;  %4055 = vst.msk [vmem:[%s7953_s1 + $0x2c6] ss:$-56 sm:$0xc0] %vm2891_vm13, %v2890_v47  }
 0x16f   :  { %vm2973_vm15 = vcmask 261176   ;;  %4064 = vst.msk [vmem:[%s7953_s1 + $0x44] ss:$-56 sm:$0x3] %vm2932_vm14, %v2931_v50   ;;  %vm3014_vm8 = vcmask 261168   ;;  %vm3055_vm9 = vcmask 261160  }
 0x170   :  { %4065 = vst.msk [vmem:[%s7953_s1 + $0x124] ss:$-56 sm:$0xc] %vm2932_vm14, %v2931_v50   ;;  %4066 = vst.msk [vmem:[%s7953_s1 + $0x204] ss:$-56 sm:$0x30] %vm2932_vm14, %v2931_v50  }
 0x171   :  { %4067 = vst.msk [vmem:[%s7953_s1 + $0x2e4] ss:$-56 sm:$0xc0] %vm2932_vm14, %v2931_v50   ;;  %vm3096_vm0 = vcmask 261152   ;;  %vm3137_vm1 = vcmask 261144   ;;  %vm3174_vm2 = vcmask 261136  }
 0x172   :  { %4076 = vst.msk [vmem:[%s7953_s1 + $0x23] ss:$168 sm:$0x3] %vm2973_vm15, %v2972_v51   ;;  %4077 = vst.msk [vmem:[%s7953_s1 + $0x103] ss:$-56 sm:$0xc] %vm2973_vm15, %v2972_v51   ;;  %v3095_v56 = vpop.permute.xlu1 %3094  }
 0x173   :  { %4078 = vst.msk [vmem:[%s7953_s1 - $0x19d] ss:$168 sm:$0x30] %vm2973_vm15, %v2972_v51   ;;  %4079 = vst.msk [vmem:[%s7953_s1 + $0x2c3] ss:$-56 sm:$0xc0] %vm2973_vm15, %v2972_v51  }
 0x174   :  { %4088 = vst.msk [vmem:[%s7953_s1 + $0x41] ss:$-56 sm:$0x3] %vm3014_vm8, %v3013_v54   ;;  %4089 = vst.msk [vmem:[%s7953_s1 + $0x121] ss:$-56 sm:$0xc] %vm3014_vm8, %v3013_v54   ;;  %v3136_v19 = vpop.permute.xlu0 %3135  }
 0x175   :  { %4090 = vst.msk [vmem:[%s7953_s1 + $0x201] ss:$-56 sm:$0x30] %vm3014_vm8, %v3013_v54   ;;  %4091 = vst.msk [vmem:[%s7953_s1 + $0x2e1] ss:$-56 sm:$0xc0] %vm3014_vm8, %v3013_v54  }
 0x176   :  { %4100 = vst.msk [vmem:[%s7953_s1 + $0x20] ss:$168 sm:$0x3] %vm3055_vm9, %v3054_v9   ;;  %4101 = vst.msk [vmem:[%s7953_s1 + $0x100] ss:$-56 sm:$0xc] %vm3055_vm9, %v3054_v9  }
 0x177   :  { %4102 = vst.msk [vmem:[%s7953_s1 - $0x1a0] ss:$168 sm:$0x30] %vm3055_vm9, %v3054_v9   ;;  %4103 = vst.msk [vmem:[%s7953_s1 + $0x2c0] ss:$-56 sm:$0xc0] %vm3055_vm9, %v3054_v9  }
 0x178   :  { %4112 = vst.msk [vmem:[%s7953_s1 + $0x6] ss:$168 sm:$0x3] %vm3096_vm0, %v3095_v56   ;;  %4113 = vst.msk [vmem:[%s7953_s1 + $0xe6] ss:$-56 sm:$0xc] %vm3096_vm0, %v3095_v56  }
 0x179   :  { %4114 = vst.msk [vmem:[%s7953_s1 - $0x1ba] ss:$168 sm:$0x30] %vm3096_vm0, %v3095_v56   ;;  %4115 = vst.msk [vmem:[%s7953_s1 + $0x2a6] ss:$-56 sm:$0xc0] %vm3096_vm0, %v3095_v56  }
 0x17a   :  { %4124 = vst.msk [vmem:[%s7953_s1 + $0xc5] ss:$-56 sm:$0xf] %vm3137_vm1, %v3136_v19   ;;  %4125 = vst.msk [vmem:[%s7953_s1 + $0x285] ss:$-56 sm:$0xf0] %vm3137_vm1, %v3136_v19  }
 0x17b   :  { %vm3215_vm3 = vcmask 261128  }
 0x17c   :  { %v3173_v36 = vpop.permute.xlu1 %3172  }
 0x17d   :  { %4134 = vst.msk [vmem:[%s7953_s1 + $0x3] ss:$168 sm:$0x3] %vm3174_vm2, %v3173_v36   ;;  %4135 = vst.msk [vmem:[%s7953_s1 + $0xe3] ss:$-56 sm:$0xc] %vm3174_vm2, %v3173_v36  }
 0x17e   :  { %4136 = vst.msk [vmem:[%s7953_s1 - $0x1bd] ss:$168 sm:$0x30] %vm3174_vm2, %v3173_v36   ;;  %4137 = vst.msk [vmem:[%s7953_s1 + $0x2a3] ss:$-56 sm:$0xc0] %vm3174_vm2, %v3173_v36  }
 0x18d   :  { %v3214_v52 = vpop.permute.xlu0 %3213  }
 0x18e   :  { %4146 = vst.msk [vmem:[%s7953_s1 + $0xc2] ss:$-56 sm:$0xf] %vm3215_vm3, %v3214_v52   ;;  %4147 = vst.msk [vmem:[%s7953_s1 + $0x282] ss:$-56 sm:$0xf0] %vm3215_vm3, %v3214_v52  }

// kernel: val_attention_forward.3
= control target key start
LH: loop header
LB: loop body
LE: loop exit
PB: predicated region body
PF: predicated region fallthrough
CT: control target
= control target key end

     0   :  { %s5216_s0 = inlined_call_operand.vmem [shape: f32[98,128], index: 0, kind: input, shape index: {}]   ;;  %s5217_s1 = inlined_call_operand.vmem [shape: f32[2,32], index: 1, kind: input, shape index: {}]   ;;  %s5218_s2 = inlined_call_operand.vmem [shape: f32[2,32], index: 2, kind: input, shape index: {}]   ;;  %s5219_s3 = inlined_call_operand.hbm [shape: f32[128,128], index: 3, kind: input, shape index: {}]   ;;  %s5220_s4 = inlined_call_operand.vmem [shape: f32[32,128], index: 4, kind: input, shape index: {}]   ;;  %s5221_s5 = inlined_call_operand.vmem [shape: f32[1,128], index: 5, kind: input, shape index: {}]   ;;  %s5222_s6 = inlined_call_operand.hbm [shape: f32[128,128], index: 6, kind: input, shape index: {}]   ;;  %s5223_s7 = inlined_call_operand.vmem [shape: f32[1,128], index: 7, kind: input, shape index: {}]   ;;  %s5224_s8 = inlined_call_operand.vmem [shape: f32[1,49], index: 8, kind: input, shape index: {}]   ;;  %s5225_s9 = inlined_call_operand.<no memory space> [shape: f32[1,1], index: 9, kind: input, shape index: {}]   ;;  %s5226_s10 = inlined_call_operand.vmem [shape: f32[128,384], index: 10, kind: input, shape index: {}]   ;;  %s5227_s11 = inlined_call_operand.vmem [shape: f32[1,384], index: 11, kind: input, shape index: {}]   ;;  %s5228_s13 = inlined_call_operand.vmem [shape: f32[2,128], index: 13, kind: output, shape index: {0}]   ;;  %s5229_s14 = inlined_call_operand.vmem [shape: f32[98,384], index: 14, kind: output, shape index: {1}]   ;;  %s5230_s12 = inlined_call_operand.<no memory space> [shape: f32[1,1], index: 12, kind: input, shape index: {}]  }
   0x1   :  { %v20_v0 = vstv %s5225_s9  ;;  %v22_v1 = vstv %s5230_s12 }
   0x2   :  { %21 = vst [vmem:[#allocation2] sm:$0x1] %v20_v0  ;;  %23 = vst [vmem:[#allocation3] sm:$0x1] %v22_v1 }
   0x3   :  { %24 = vsyncpa [#allocation5], 0 }
   0x4   :  { %25 = vsyncpa [#allocation7], 0  ;;  %s3597_s17 = smov [#allocation4]   ;;  %s3549_s21 = scalar_lea.hbm %s5219_s3, 2048 }
   0x5   :  { %s37_s18 = sshll.u32 %s3597_s17, 4  ;;  %p3550_p0 = scmp.ne.s32.totalorder %s5219_s3, %s3549_s21  ;;  %s38_s18 = int_to_ptr.vmem [resolvable:$true] %s37_s18 }
   0x6   :  { %p3553_p1 = scmp.lt.u32.totalorder %s3549_s21, %s5219_s3 }
   0x8   :  { %p3555_p2 = pnand %p3553_p1, %p3550_p0 }
   0xa   :  { %3558 = shalt.err (!%p3555_p2)
}
   0xb   :  { %s3559_s12 = scalar_lea.vmem %s38_s18, 2048  ;;  %p3564_p4 = scmp.lt.s32.totalorder %s38_s18, %s38_s18 }
   0xc   :  { %p3560_p3 = scmp.ne.s32.totalorder %s38_s18, %s3559_s12  ;;  %p3565_p5 = scmp.lt.s32.totalorder %s3559_s12, %s3559_s12 }
   0xe   :  { %p3566_p6 = por %p3565_p5, %p3564_p4 }
  0x10   :  { %p3567_p7 = pnand %p3566_p6, %p3560_p3 }
  0x12   :  { %3570 = shalt.err (!%p3567_p7)
}
  0x13   :  { %s3598_s25 = smov 128   ;;  %s3599_s26 = smov 8  }
  0x14   :  { %43 = dma.hbm_to_vmem [thread:$0]  %s5219_s3, 2048, %s38_s18, [#allocation5], %s3598_s25, %s3598_s25, %s3599_s26  }
  0x15   :  { %s3600_s29 = smov [#allocation6]   ;;  %s3571_s17 = scalar_lea.hbm %s5222_s6, 2048 }
  0x16   :  { %s53_s30 = sshll.u32 %s3600_s29, 4  ;;  %p3572_p8 = scmp.ne.s32.totalorder %s5222_s6, %s3571_s17  ;;  %s54_s30 = int_to_ptr.vmem [resolvable:$true] %s53_s30 }
  0x17   :  { %p3575_p9 = scmp.lt.u32.totalorder %s3571_s17, %s5222_s6 }
  0x19   :  { %p3577_p10 = pnand %p3575_p9, %p3572_p8 }
  0x1b   :  { %3580 = shalt.err (!%p3577_p10)
}
  0x1c   :  { %s3581_s23 = scalar_lea.vmem %s54_s30, 2048  ;;  %p3586_p12 = scmp.lt.s32.totalorder %s54_s30, %s54_s30 }
  0x1d   :  { %p3582_p11 = scmp.ne.s32.totalorder %s54_s30, %s3581_s23  ;;  %p3587_p13 = scmp.lt.s32.totalorder %s3581_s23, %s3581_s23 }
  0x1f   :  { %p3588_p0 = por %p3587_p13, %p3586_p12 }
  0x21   :  { %p3589_p1 = pnand %p3588_p0, %p3582_p11 }
  0x23   :  { %3592 = shalt.err (!%p3589_p1)
}
  0x24   :  { %59 = dma.hbm_to_vmem [thread:$0]  %s5222_s6, 2048, %s54_s30, [#allocation7], %s3598_s25, %s3598_s25, %s3599_s26  }
  0x25   :  { %3593 = dma.done.wait [#allocation5], 2048  }
  0x26   :  { %3594 = vsyncadd [#allocation5], 4294965248 }
  0x27   :  { %3595 = dma.done.wait [#allocation7], 2048  }
  0x28   :  { %3596 = vsyncadd [#allocation7], 4294965248  ;;  %v5232_v2 = vmov 0.0|0.0   ;;  %vm3602_vm0 = vmmov 0   ;;  %v5234_v3 = vmov 0.0   ;;  %v179_v4 = vld [vmem:[#allocation4] sm:$0xff] }
  0x29   :  { %3409 = vmatprep.subr.bf16.mxu1 %v5232_v2  ;;  %3403 = vmatprep.subr.bf16.mxu0 %v5232_v2  ;;  %v180_v5 = vld [vmem:[#allocation4 + $0x8] sm:$0xff]  ;;  %v181_v6 = vld [vmem:[#allocation4 + $0x10] sm:$0xff]  ;;  %v182_v8 = vld [vmem:[#allocation4 + $0x18] sm:$0xff]  ;;  %vm92_vm1 = vcmask 261120   ;;  %vm2022_vm2 = vcmask 1040384   ;;  %vm2072_vm3 = vcmask 1041409  }
  0x2a   :  { %3223 = vmatprep.mubr.msk.f32.mxu0 %vm3602_vm0, %v5234_v3  ;;  %3258 = vmatprep.mubr.msk.f32.mxu1 %vm3602_vm0, %v5234_v3  ;;  %v3410_v7 = vpack.c.bf16 %v180_v5, %v179_v4  ;;  %v81_v9 = vld [vmem:[%s5220_s4] sm:$0xff]  ;;  %v3413_v10 = vpack.c.bf16 %v182_v8, %v181_v6  ;;  %v82_v12 = vld [vmem:[%s5220_s4 + $0x8] sm:$0xff]  ;;  %v83_v15 = vld [vmem:[%s5220_s4 + $0x10] sm:$0xff]  ;;  %vm2309_vm4 = vcmask 130112   ;;  %vm2316_vm5 = vcmask 195712  }
  0x2b   :  { %v183_v11 = vld [vmem:[#allocation4 + $0x20] sm:$0xff]  ;;  %v184_v13 = vld [vmem:[#allocation4 + $0x28] sm:$0xff]  ;;  %v3404_v14 = vpack.c.bf16 %v82_v12, %v81_v9  ;;  %v84_v16 = vld [vmem:[%s5220_s4 + $0x18] sm:$0xff]  ;;  %vm2323_vm6 = vcmask 261312   ;;  %vm2330_vm7 = vcmask 326912   ;;  %vm2337_vm8 = vcmask 392512  }
  0x2c   :  { %3411 = vmatpush3.bf16.msra.mxu1 %v3410_v7  ;;  %v3407_v17 = vpack.c.bf16 %v84_v16, %v83_v15  ;;  %v78_v18 = vld [vmem:[%s5217_s1] sm:$0x3]  ;;  %v3416_v20 = vpack.c.bf16 %v184_v13, %v183_v11  ;;  %v185_v21 = vld [vmem:[#allocation4 + $0x30] sm:$0xff]  ;;  %v187_v26 = vld [vmem:[#allocation4 + $0x40] sm:$0xff]  ;;  %v3604_v13 = vmov 1966171168   ;;  %v5231_v15 = vlaneseq }
  0x2d   :  { %3412 = vmatprep.subr.bf16.mxu1 %v5232_v2  ;;  %3405 = vmatpush3.bf16.msra.mxu0 %v3404_v14  ;;  %v79_v19 = vld [vmem:[%s5218_s2] sm:$0x3]  ;;  %v188_v27 = vld [vmem:[#allocation4 + $0x48] sm:$0xff]  ;;  %v189_v29 = vld [vmem:[#allocation4 + $0x50] sm:$0xff]  ;;  %v340_v14 = vunpack.c.l.s4 %v3604_v13  ;;  %vm2344_vm9 = vcmask 458112   ;;  %vm2382_vm10 = vcmask 394240  }
  0x2e   :  { %3406 = vmatprep.subr.bf16.mxu0 %v5232_v2  ;;  %v186_v22 = vld [vmem:[#allocation4 + $0x38] sm:$0xff]  ;;  %v80_v23 = vmul.f32 %v79_v19, %v78_v18  ;;  %v3422_v28 = vpack.c.bf16 %v188_v27, %v187_v26  ;;  %v191_v32 = vld [vmem:[#allocation4 + $0x60] sm:$0xff]  ;;  %v192_v33 = vld [vmem:[#allocation4 + $0x68] sm:$0xff] }
  0x2f   :  { %v3419_v24 = vpack.c.bf16 %v186_v22, %v185_v21  ;;  %v3130_v25 = vld [vmem:[%s5224_s8] ss:$0 sm:$0xff]  ;;  %v3428_v34 = vpack.c.bf16 %v192_v33, %v191_v32  ;;  %v193_v35 = vld [vmem:[#allocation4 + $0x70] sm:$0xff]  ;;  %v167_v39 = vld [vmem:[%s5216_s0 + $0x8] sm:$0xff]  ;;  %v341_v16 = vunpack.c.0.s8 %v340_v14 }
  0x30   :  { %3414 = vmatpush3.bf16.msra.mxu1 %v3413_v10  ;;  %2195 = vbcast.lane.b32.xlu0 %v3130_v25, 256  ;;  %v190_v30 = vld [vmem:[#allocation4 + $0x58] sm:$0xff]  ;;  %v168_v40 = vld [vmem:[%s5216_s0 + $0x10] sm:$0xff]  ;;  %v171_v43 = vld [vmem:[%s5216_s0 + $0x28] sm:$0xff] }
  0x31   :  { %3415 = vmatprep.subr.bf16.mxu1 %v5232_v2  ;;  %3408 = vmatpush3.bf16.msra.mxu0 %v3407_v17  ;;  %v3425_v31 = vpack.c.bf16 %v190_v30, %v189_v29  ;;  %v194_v36 = vld [vmem:[#allocation4 + $0x78] sm:$0xff]  ;;  %v172_v44 = vld [vmem:[%s5216_s0 + $0x30] sm:$0xff]  ;;  %v175_v47 = vld [vmem:[%s5216_s0 + $0x48] sm:$0xff]  ;;  %v3895_v17 = vshrl.u32 %v5231_v15, 7 }
  0x32   :  { %3433 = vmatprep.subr.bf16.mxu0 %v5232_v2  ;;  %2199 = vbcast.lane.b32.xlu1 %v3130_v25, 264  ;;  %v3431_v37 = vpack.c.bf16 %v194_v36, %v193_v35  ;;  %v166_v38 = vld [vmem:[%s5216_s0] sm:$0xff]  ;;  %v169_v41 = vld [vmem:[%s5216_s0 + $0x18] sm:$0xff]  ;;  %v176_v48 = vld [vmem:[%s5216_s0 + $0x50] sm:$0xff] }
  0x33   :  { %v170_v42 = vld [vmem:[%s5216_s0 + $0x20] sm:$0xff]  ;;  %v173_v45 = vld [vmem:[%s5216_s0 + $0x38] sm:$0xff]  ;;  %v2426_v51 = vld [vmem:[%s5226_s10 + $0x10] sm:$0xff]  ;;  %5276 = vst [vmem:[#allocation18_spill] sm:$0xff] %v3895_v17  ;;  %v3901_v19 = vsub.s32 %v341_v16, %v3895_v17 }
  0x34   :  { %3417 = vmatpush3.bf16.msra.mxu1 %v3416_v20  ;;  %3224 = vmatmul.mubr.msk.f32.vlgmr.msra.gmra.mrb[0].mxu0 %vm92_vm1, %v80_v23  ;;  %v174_v46 = vld [vmem:[%s5216_s0 + $0x40] sm:$0xff]  ;;  %v177_v49 = vld [vmem:[%s5216_s0 + $0x58] sm:$0xff]  ;;  %v2429_v52 = vld [vmem:[%s5226_s10 + $0x28] sm:$0xff] }
  0x35   :  { %3418 = vmatprep.subr.bf16.mxu1 %v5232_v2  ;;  %3329 = vmatprep.mubr.msk.f32.mxu0 %vm3602_vm0, %v5234_v3  ;;  %v178_v50 = vld [vmem:[%s5216_s0 + $0x60] sm:$0x3]  ;;  %v3821_v53 = vpack.c.bf16 %v2429_v52, %v2426_v51  ;;  %v2435_v55 = vld [vmem:[%s5226_s10 + $0x58] sm:$0xff]  ;;  %v2438_v57 = vld [vmem:[%s5226_s10 + $0x70] sm:$0xff] }
  0x36   :  { %2211 = vbcast.lane.b32.xlu0 %v3130_v25, 288  ;;  %2203 = vbcast.lane.b32.xlu1 %v3130_v25, 272  ;;  %v2432_v54 = vld [vmem:[%s5226_s10 + $0x40] sm:$0xff]  ;;  %v2441_v58 = vld [vmem:[%s5226_s10 + $0x88] sm:$0xff]  ;;  %v2447_v61 = vld [vmem:[%s5226_s10 + $0xb8] sm:$0xff] }
  0x37   :  { %5268 = vst [vmem:[#allocation10_spill] sm:$0xff] %v3821_v53  ;;  %v3831_v56 = vpack.c.bf16 %v2435_v55, %v2432_v54  ;;  %v3841_v59 = vpack.c.bf16 %v2441_v58, %v2438_v57  ;;  %v2444_v60 = vld [vmem:[%s5226_s10 + $0xa0] sm:$0xff]  ;;  %v2450_v63 = vld [vmem:[%s5226_s10 + $0xd0] sm:$0xff]  ;;  %v2453_v0 = vld [vmem:[%s5226_s10 + $0xe8] sm:$0xff] }
  0x38   :  { %3420 = vmatpush3.bf16.msra.mxu1 %v3419_v24  ;;  %v3851_v62 = vpack.c.bf16 %v2447_v61, %v2444_v60  ;;  %v3861_v1 = vpack.c.bf16 %v2453_v0, %v2450_v63  ;;  %v2456_v4 = vld [vmem:[%s5226_s10 + $0x100] sm:$0xff]  ;;  %v2459_v5 = vld [vmem:[%s5226_s10 + $0x118] sm:$0xff]  ;;  %v2462_v7 = vld [vmem:[%s5226_s10 + $0x130] sm:$0xff]  ;;  %v3905_v24 = vsub.s32 0, %v3895_v17 }
  0x39   :  { %3421 = vmatprep.subr.bf16.mxu1 %v5232_v2  ;;  %5269 = vst [vmem:[#allocation11_spill] sm:$0xff] %v3831_v56  ;;  %5270 = vst [vmem:[#allocation12_spill] sm:$0xff] %v3841_v59  ;;  %v3871_v6 = vpack.c.bf16 %v2459_v5, %v2456_v4  ;;  %v2465_v8 = vld [vmem:[%s5226_s10 + $0x148] sm:$0xff]  ;;  %v2468_v10 = vld [vmem:[%s5226_s10 + $0x160] sm:$0xff] }
  0x3a   :  { %2207 = vbcast.lane.b32.xlu1 %v3130_v25, 280  ;;  %5271 = vst [vmem:[#allocation13_spill] sm:$0xff] %v3851_v62  ;;  %5272 = vst [vmem:[#allocation14_spill] sm:$0xff] %v3861_v1  ;;  %v3881_v9 = vpack.c.bf16 %v2465_v8, %v2462_v7  ;;  %v2471_v11 = vld [vmem:[%s5226_s10 + $0x178] sm:$0xff]  ;;  %v3127_v18 = vld [vmem:[%s5221_s5] ss:$0 sm:$0xff] }
  0x3b   :  { %5273 = vst [vmem:[#allocation15_spill] sm:$0xff] %v3871_v6  ;;  %v3891_v12 = vpack.c.bf16 %v2471_v11, %v2468_v10  ;;  %5277 = vst [vmem:[#allocation19_spill] sm:$0xff] %v3905_v24  ;;  %v2047_v33 = vld [vmem:[#allocation6] sm:$0xff]  ;;  %v2052_v63 = vld [vmem:[#allocation6 + $0x28] sm:$0xff] }
  0x3c   :  { %3423 = vmatpush3.bf16.msra.mxu1 %v3422_v28  ;;  %5274 = vst [vmem:[#allocation16_spill] sm:$0xff] %v3881_v9  ;;  %v2051_v61 = vld [vmem:[#allocation6 + $0x20] sm:$0xff] }
  0x3d   :  { %3424 = vmatprep.subr.bf16.mxu1 %v5232_v2  ;;  %5275 = vst [vmem:[#allocation17_spill] sm:$0xff] %v3891_v12  ;;  %v3440_v7 = vpack.c.bf16 %v2052_v63, %v2051_v61 }
  0x40   :  { %3426 = vmatpush3.bf16.msra.mxu1 %v3425_v31 }
  0x41   :  { %3427 = vmatprep.subr.bf16.mxu1 %v5232_v2 }
  0x44   :  { %3429 = vmatpush3.bf16.msra.mxu1 %v3428_v34  ;;  %v2048_v34 = vld [vmem:[#allocation6 + $0x8] sm:$0xff] }
  0x45   :  { %3430 = vmatprep.subr.bf16.mxu1 %v5232_v2  ;;  %v3434_v35 = vpack.c.bf16 %v2048_v34, %v2047_v33 }
  0x47   :  { %3435 = vmatpush3.bf16.msra.mxu0 %v3434_v35 }
  0x48   :  { %3432 = vmatpush3.bf16.msra.mxu1 %v3431_v37  ;;  %3436 = vmatprep.subr.bf16.mxu0 %v5232_v2 }
  0x49   :  { %3513 = vmatprep.subr.bf16.mxu1 %v5232_v2 }
  0x4b   :  { %3259 = vmatmul.mubr.f32.vlgmr.msra.gmra.mrb[0].mxu1 %v166_v38 }
  0x4c   :  { %3261 = vmatprep.mubr.msk.f32.mxu1 %vm3602_vm0, %v5234_v3  ;;  %3521 = vmatpush3.bf16.msra.mxu1 %v3821_v53 }
  0x4d   :  { %3514 = vmatprep.subr.bf16.mxu1 %v5232_v2 }
  0x4f   :  { %3262 = vmatmul.mubr.f32.gmra.mrb[2].mxu1 %v167_v39 }
  0x50   :  { %3264 = vmatprep.mubr.msk.f32.mxu1 %vm3602_vm0, %v5234_v3  ;;  %3522 = vmatpush3.bf16.msra.mxu1 %v3831_v56 }
  0x51   :  { %3515 = vmatprep.subr.bf16.mxu1 %v5232_v2 }
  0x53   :  { %3265 = vmatmul.mubr.f32.gmra.mrb[4].mxu1 %v168_v40  ;;  %v2049_v40 = vld [vmem:[#allocation6 + $0x10] sm:$0xff] }
  0x54   :  { %3267 = vmatprep.mubr.msk.f32.mxu1 %vm3602_vm0, %v5234_v3  ;;  %3523 = vmatpush3.bf16.msra.mxu1 %v3841_v59 }
  0x55   :  { %3516 = vmatprep.subr.bf16.mxu1 %v5232_v2 }
  0x57   :  { %3268 = vmatmul.mubr.f32.gmra.mrb[6].mxu1 %v169_v41  ;;  %v2050_v41 = vld [vmem:[#allocation6 + $0x18] sm:$0xff] }
  0x58   :  { %3270 = vmatprep.mubr.msk.f32.mxu1 %vm3602_vm0, %v5234_v3  ;;  %3524 = vmatpush3.bf16.msra.mxu1 %v3851_v62 }
  0x59   :  { %3517 = vmatprep.subr.bf16.mxu1 %v5232_v2 }
  0x5b   :  { %3271 = vmatmul.mubr.f32.gmra.mrb[8].mxu1 %v170_v42  ;;  %v3437_v42 = vpack.c.bf16 %v2050_v41, %v2049_v40 }
  0x5c   :  { %3273 = vmatprep.mubr.msk.f32.mxu1 %vm3602_vm0, %v5234_v3  ;;  %3525 = vmatpush3.bf16.msra.mxu1 %v3861_v1 }
  0x5d   :  { %3518 = vmatprep.subr.bf16.mxu1 %v5232_v2  ;;  %3438 = vmatpush3.bf16.msra.mxu0 %v3437_v42 }
  0x5e   :  { %3439 = vmatprep.subr.bf16.mxu0 %v5232_v2 }
  0x5f   :  { %3274 = vmatmul.mubr.f32.gmra.mrb[10].mxu1 %v171_v43 }
  0x60   :  { %3276 = vmatprep.mubr.msk.f32.mxu1 %vm3602_vm0, %v5234_v3  ;;  %3526 = vmatpush3.bf16.msra.mxu1 %v3871_v6 }
  0x61   :  { %3519 = vmatprep.subr.bf16.mxu1 %v5232_v2  ;;  %3441 = vmatpush3.bf16.msra.mxu0 %v3440_v7 }
  0x62   :  { %3442 = vmatprep.subr.bf16.mxu0 %v5232_v2 }
  0x63   :  { %3277 = vmatmul.mubr.f32.gmra.mrb[12].mxu1 %v172_v44 }
  0x64   :  { %3279 = vmatprep.mubr.msk.f32.mxu1 %vm3602_vm0, %v5234_v3  ;;  %3527 = vmatpush3.bf16.msra.mxu1 %v3881_v9 }
  0x65   :  { %3520 = vmatprep.subr.bf16.mxu1 %v5232_v2 }
  0x67   :  { %3280 = vmatmul.mubr.f32.gmra.mrb[14].mxu1 %v173_v45 }
  0x68   :  { %3282 = vmatprep.mubr.msk.f32.mxu1 %vm3602_vm0, %v5234_v3  ;;  %3528 = vmatpush3.bf16.msra.mxu1 %v3891_v12 }
  0x6b   :  { %3283 = vmatmul.mubr.f32.gmra.mrb[16].mxu1 %v174_v46 }
  0x6c   :  { %3285 = vmatprep.mubr.msk.f32.mxu1 %vm3602_vm0, %v5234_v3 }
  0x6f   :  { %3286 = vmatmul.mubr.f32.gmra.mrb[18].mxu1 %v175_v47 }
  0x70   :  { %3288 = vmatprep.mubr.msk.f32.mxu1 %vm3602_vm0, %v5234_v3 }
  0x73   :  { %3289 = vmatmul.mubr.f32.gmra.mrb[20].mxu1 %v176_v48 }
  0x74   :  { %3291 = vmatprep.mubr.msk.f32.mxu1 %vm3602_vm0, %v5234_v3 }
  0x77   :  { %3292 = vmatmul.mubr.f32.gmra.mrb[22].mxu1 %v177_v49 }
  0x78   :  { %3294 = vmatprep.mubr.msk.f32.mxu1 %vm3602_vm0, %v5234_v3 }
  0x7b   :  { %3295 = vmatmul.mubr.f32.gmra.mrb[24].mxu1 %v178_v50 }
  0x7c   :  { %3367 = vmatprep.mubr.msk.f32.mxu1 %vm3602_vm0, %v5234_v3 }
 0x107   :  { %v162_v20 = vpop.f32.mrb[0].mxu0 }
 0x108   :  { %v163_v21 = vadd.f32 %v3127_v18, %v162_v20  ;;  %v3225_v22 = vpop.f32.mrb[1].mxu0 }
 0x10a   :  { %v1053_v23 = vrot.slane %v163_v21, %v3901_v19 }
 0x10c   :  { %v1054_v25 = vcombine.high %v1053_v23, %v1053_v23  ;;  %v1061_v26 = vrot.slane %v1053_v23, %v3901_v19 }
 0x10e   :  { %v1068_v27 = vrot.slane %v1054_v25, %v3901_v19  ;;  %v1072_v28 = vrot.slane %v1061_v26, %v3905_v24 }
 0x110   :  { %v1076_v29 = vrot.slane %v1068_v27, %v3905_v24  ;;  %v1077_v30 = vcombine.high %v1072_v28, %v1072_v28  ;;  %v1084_v31 = vrot.slane %v1072_v28, %v3901_v19 }
 0x112   :  { %v1126_v32 = vcombine.high %v1076_v29, %v1076_v29  ;;  %v1091_v36 = vrot.slane %v1077_v30, %v3901_v19  ;;  %v1092_v37 = vcombine.high %v1084_v31, %v1084_v31  ;;  %v1133_v38 = vrot.slane %v1076_v29, %v3901_v19 }
 0x113   :  { %v3917_v44 = vrot.slane %v1084_v31, %v3901_v19 }
 0x114   :  { %v1140_v39 = vrot.slane %v1126_v32, %v3901_v19  ;;  %v1093_v43 = vcombine.high %v1091_v36, %v1091_v36  ;;  %v3920_v45 = vrot.slane %v1091_v36, %v3901_v19  ;;  %v3923_v46 = vrot.slane %v1092_v37, %v3901_v19 }
 0x115   :  { %v1141_v47 = vcombine.high %v1133_v38, %v1133_v38  ;;  %v3926_v49 = vrot.slane %v1133_v38, %v3901_v19  ;;  %v3938_v58 = vcombine.high %v3917_v44, %v3917_v44 }
 0x116   :  { %v1142_v48 = vcombine.high %v1140_v39, %v1140_v39  ;;  %v3931_v55 = vrot.slane %v1093_v43, %v3901_v19  ;;  %v3934_v57 = vrot.slane %v1140_v39, %v3901_v19  ;;  %v3942_v60 = vcombine.high %v3920_v45, %v3920_v45 }
 0x117   :  { %v3947_v8 = vrot.slane %v1141_v47, %v3901_v19  ;;  %v3954_v11 = vcombine.high %v3923_v46, %v3923_v46  ;;  %v3958_v14 = vcombine.high %v3926_v49, %v3926_v49 }
 0x118   :  { %v3950_v10 = vrot.slane %v1142_v48, %v3901_v19  ;;  %v3964_v23 = vcombine.high %v3931_v55, %v3931_v55 }
 0x11e   :  { %v261_v50 = vpop.f32.mrb[0].mxu1 }
 0x11f   :  { %v338_v51 = vcombine.high %v261_v50, %v261_v50  ;;  %v345_v52 = vrot.slane %v261_v50, %v3901_v19  ;;  %v3260_v54 = vpop.f32.mrb[1].mxu1 }
 0x121   :  { %v352_v0 = vrot.slane %v338_v51, %v3901_v19  ;;  %v353_v4 = vcombine.high %v345_v52, %v345_v52  ;;  %v361_v5 = vrot.slane %v345_v52, %v3901_v19 }
 0x122   :  { %v266_v13 = vpop.f32.mrb[2].mxu1 }
 0x123   :  { %v354_v16 = vcombine.high %v352_v0, %v352_v0  ;;  %v368_v18 = vrot.slane %v352_v0, %v3901_v19  ;;  %v375_v20 = vrot.slane %v353_v4, %v3901_v19  ;;  %v383_v21 = vcombine.high %v361_v5, %v361_v5  ;;  %v3263_v22 = vpop.f32.mrb[3].mxu1 }
 0x124   :  { %v3967_v25 = vadd.f32 %v3917_v44, %v361_v5  ;;  %v387_v26 = vcombine.high %v266_v13, %v266_v13  ;;  %v394_v27 = vrot.slane %v266_v13, %v3901_v19  ;;  %v4006_v5 = vcombine.high %v3934_v57, %v3934_v57 }
 0x125   :  { %v382_v28 = vrot.slane %v354_v16, %v3901_v19  ;;  %v384_v29 = vcombine.high %v368_v18, %v368_v18  ;;  %v385_v30 = vcombine.high %v375_v20, %v375_v20  ;;  %v3973_v31 = vadd.f32 %v3923_v46, %v375_v20 }
 0x126   :  { %v3976_v32 = vadd.f32 %v3938_v58, %v383_v21  ;;  %v3979_v33 = vadd.f32 %v3920_v45, %v368_v18  ;;  %v401_v34 = vrot.slane %v387_v26, %v3901_v19  ;;  %v402_v35 = vcombine.high %v394_v27, %v394_v27  ;;  %v271_v36 = vpop.f32.mrb[4].mxu1 }
 0x127   :  { %v386_v37 = vcombine.high %v382_v28, %v382_v28  ;;  %v3983_v38 = vadd.f32 %v3954_v11, %v385_v30  ;;  %v3986_v39 = vadd.f32 %v3931_v55, %v382_v28  ;;  %v3989_v40 = vadd.f32 %v3942_v60, %v384_v29  ;;  %v3266_v41 = vpop.f32.mrb[5].mxu1 }
 0x128   :  { %v1387_v42 = vcombine.low %v3967_v25, %v3973_v31  ;;  %v403_v43 = vcombine.high %v401_v34, %v401_v34  ;;  %v410_v47 = vrot.slane %v394_v27, %v3901_v19  ;;  %v417_v48 = vrot.slane %v401_v34, %v3901_v19 }
 0x129   :  { %v3996_v50 = vadd.f32 %v3964_v23, %v386_v37  ;;  %v1388_v51 = vcombine.low %v3976_v32, %v3983_v38  ;;  %v1389_v52 = vcombine.low %v3979_v33, %v3986_v39  ;;  %v424_v54 = vrot.slane %v402_v35, %v3901_v19 }
 0x12a   :  { %v431_v61 = vrot.slane %v403_v43, %v3901_v19  ;;  %v432_v63 = vcombine.high %v410_v47, %v410_v47  ;;  %v433_v0 = vcombine.high %v417_v48, %v417_v48  ;;  %v276_v4 = vpop.f32.mrb[6].mxu1  ;;  %v4012_v18 = vcombine.high %v3947_v8, %v3947_v8 }
 0x12b   :  { %v434_v13 = vcombine.high %v424_v54, %v424_v54  ;;  %v3269_v16 = vpop.f32.mrb[7].mxu1  ;;  %v4016_v20 = vcombine.high %v3950_v10, %v3950_v10  ;;  %v1199_v22 = vadd.f32 %v3917_v44, %v410_v47  ;;  %v1200_v25 = vadd.f32 %v3923_v46, %v424_v54 }
 0x12c   :  { %v435_v21 = vcombine.high %v431_v61, %v431_v61  ;;  %v1201_v26 = vadd.f32 %v3938_v58, %v432_v63  ;;  %v1203_v28 = vadd.f32 %v3920_v45, %v417_v48  ;;  %v1204_v29 = vadd.f32 %v3931_v55, %v431_v61 }
 0x12d   :  { %v1202_v27 = vadd.f32 %v3954_v11, %v434_v13  ;;  %v1205_v30 = vadd.f32 %v3942_v60, %v433_v0  ;;  %v1436_v34 = vcombine.low %v1199_v22, %v1200_v25  ;;  %v436_v35 = vcombine.high %v271_v36, %v271_v36 }
 0x12e   :  { %v1206_v31 = vadd.f32 %v3964_v23, %v435_v21  ;;  %v443_v37 = vrot.slane %v271_v36, %v3901_v19  ;;  %v4027_v41 = vpop.f32.mrb[8].mxu1  ;;  %v1438_v47 = vcombine.low %v1203_v28, %v1204_v29  ;;  %v485_v54 = vcombine.high %v276_v4, %v276_v4 }
 0x12f   :  { %v1437_v43 = vcombine.low %v1201_v26, %v1202_v27  ;;  %v492_v63 = vrot.slane %v276_v4, %v3901_v19  ;;  %v3272_v13 = vpop.f32.mrb[9].mxu1  ;;  %v1446_v48 = vrot.slane %v1436_v34, %v3901_v19  ;;  %v450_v61 = vrot.slane %v436_v35, %v3901_v19 }
 0x130   :  { %v1439_v16 = vcombine.low %v1205_v30, %v1206_v31  ;;  %v451_v0 = vcombine.high %v443_v37, %v443_v37  ;;  %v4034_v22 = vrot.slane %v1438_v47, %v3901_v19  ;;  %v459_v36 = vrot.slane %v443_v37, %v3901_v19 }
 0x131   :  { %v1453_v21 = vrot.slane %v1437_v43, %v3901_v19  ;;  %v499_v25 = vrot.slane %v485_v54, %v3901_v19  ;;  %v452_v4 = vcombine.high %v450_v61, %v450_v61  ;;  %v466_v27 = vrot.slane %v450_v61, %v3901_v19 }
 0x132   :  { %v4039_v26 = vrot.slane %v1439_v16, %v3901_v19  ;;  %v473_v28 = vrot.slane %v451_v0, %v3901_v19  ;;  %v4043_v29 = vpop.f32.mrb[10].mxu1  ;;  %v481_v31 = vcombine.high %v459_v36, %v459_v36  ;;  %v1207_v34 = vadd.f32 %v3917_v44, %v459_v36 }
 0x133   :  { %v1468_v30 = vcombine.low %v1446_v48, %v1453_v21  ;;  %v500_v35 = vcombine.high %v492_v63, %v492_v63  ;;  %v3275_v43 = vpop.f32.mrb[11].mxu1  ;;  %v480_v47 = vrot.slane %v452_v4, %v3901_v19  ;;  %v482_v54 = vcombine.high %v466_v27, %v466_v27 }
 0x134   :  { %v483_v13 = vcombine.high %v473_v28, %v473_v28  ;;  %v4050_v16 = vrot.slane %v1387_v42, %v3901_v19  ;;  %v1208_v61 = vadd.f32 %v3923_v46, %v473_v28  ;;  %v1209_v0 = vadd.f32 %v3938_v58, %v481_v31 }
 0x135   :  { %v1211_v48 = vadd.f32 %v3920_v45, %v466_v27  ;;  %v484_v21 = vcombine.high %v480_v47, %v480_v47  ;;  %v1212_v43 = vadd.f32 %v3931_v55, %v480_v47  ;;  %v4058_v15 = vadd.f32 %v3942_v60, %v482_v54 }
 0x136   :  { %v1210_v36 = vadd.f32 %v3954_v11, %v483_v13  ;;  %v4060_v4 = vpop.f32.mrb[12].mxu1  ;;  %v1485_v2 = vcombine.low %v1207_v34, %v1208_v61  ;;  %v501_v3 = vcombine.high %v499_v25, %v499_v25  ;;  %v508_v42 = vrot.slane %v492_v63, %v3901_v19 }
 0x137   :  { %v515_v28 = vrot.slane %v499_v25, %v3901_v19  ;;  %v3278_v37 = vpop.f32.mrb[13].mxu1  ;;  %v4065_v31 = vadd.f32 %v3964_v23, %v484_v21  ;;  %v1487_v7 = vcombine.low %v1211_v48, %v1212_v43  ;;  %v522_v13 = vrot.slane %v500_v35, %v3901_v19 }
 0x138   :  { %v1486_v27 = vcombine.low %v1209_v0, %v1210_v36  ;;  %v4072_v47 = vrot.slane %v1388_v51, %v3901_v19  ;;  %v529_v34 = vrot.slane %v501_v3, %v3901_v19  ;;  %v530_v54 = vcombine.high %v508_v42, %v508_v42 }
 0x139   :  { %v531_v63 = vcombine.high %v515_v28, %v515_v28  ;;  %v4079_v25 = vrot.slane %v1389_v52, %v3901_v19  ;;  %v4082_v37 = vrot.slane %v1468_v30, %v3901_v19  ;;  %v532_v61 = vcombine.high %v522_v13, %v522_v13 }
 0x13a   :  { %v4086_v32 = vpop.f32.mrb[14].mxu1  ;;  %v533_v38 = vcombine.high %v529_v34, %v529_v34  ;;  %v1215_v3 = vadd.f32 %v3917_v44, %v508_v42  ;;  %v1216_v51 = vadd.f32 %v3923_v46, %v522_v13  ;;  %v1217_v0 = vadd.f32 %v3938_v58, %v530_v54 }
 0x13b   :  { %v3281_v48 = vpop.f32.mrb[15].mxu1  ;;  %v1218_v33 = vadd.f32 %v3954_v11, %v532_v61  ;;  %v1219_v39 = vadd.f32 %v3920_v45, %v515_v28  ;;  %v1220_v52 = vadd.f32 %v3931_v55, %v529_v34  ;;  %v4095_v30 = vadd.f32 %v3942_v60, %v531_v63 }
 0x13c   :  { %v4098_v21 = vadd.f32 %v3964_v23, %v533_v38  ;;  %v1534_v36 = vcombine.low %v1215_v3, %v1216_v51  ;;  %v534_v43 = vcombine.high %v4027_v41, %v4027_v41  ;;  %v541_v42 = vrot.slane %v4027_v41, %v3901_v19 }
 0x13d   :  { %v1535_v13 = vcombine.low %v1217_v0, %v1218_v33  ;;  %v1536_v54 = vcombine.low %v1219_v39, %v1220_v52  ;;  %v583_v28 = vcombine.high %v4043_v29, %v4043_v29  ;;  %v590_v34 = vrot.slane %v4043_v29, %v3901_v19 }
 0x13e   :  { %v4108_v63 = vpop.f32.mrb[16].mxu1  ;;  %v4111_v61 = vrot.slane %v1485_v2, %v3901_v19  ;;  %v548_v3 = vrot.slane %v534_v43, %v3901_v19  ;;  %v549_v51 = vcombine.high %v541_v42, %v541_v42  ;;  %v4117_v0 = vrot.slane %v1486_v27, %v3901_v19 }
 0x13f   :  { %v3284_v41 = vpop.f32.mrb[17].mxu1  ;;  %v4120_v48 = vrot.slane %v1487_v7, %v3901_v19  ;;  %v557_v29 = vrot.slane %v541_v42, %v3901_v19  ;;  %v597_v33 = vrot.slane %v583_v28, %v3901_v19  ;;  %v598_v38 = vcombine.high %v590_v34, %v590_v34 }
 0x140   :  { %v550_v39 = vcombine.high %v548_v3, %v548_v3  ;;  %v564_v2 = vrot.slane %v548_v3, %v3901_v19  ;;  %v571_v52 = vrot.slane %v549_v51, %v3901_v19  ;;  %v606_v27 = vrot.slane %v590_v34, %v3901_v19 }
 0x141   :  { %v579_v35 = vcombine.high %v557_v29, %v557_v29  ;;  %v4127_v43 = vadd.f32 %v3917_v44, %v557_v29  ;;  %v599_v41 = vcombine.high %v597_v33, %v597_v33  ;;  %v613_v29 = vrot.slane %v597_v33, %v3901_v19 }
 0x142   :  { %v4130_v24 = vpop.f32.mrb[18].mxu1  ;;  %v578_v7 = vrot.slane %v550_v39, %v3901_v19  ;;  %v580_v42 = vcombine.high %v564_v2, %v564_v2  ;;  %v581_v17 = vcombine.high %v571_v52, %v571_v52  ;;  %v4134_v28 = vadd.f32 %v3923_v46, %v571_v52 }
 0x143   :  { %v3287_v3 = vpop.f32.mrb[19].mxu1  ;;  %v4137_v51 = vadd.f32 %v3938_v58, %v579_v35  ;;  %v4140_v12 = vadd.f32 %v3920_v45, %v564_v2  ;;  %v620_v34 = vrot.slane %v598_v38, %v3901_v19  ;;  %v627_v2 = vrot.slane %v599_v41, %v3901_v19 }
 0x144   :  { %v582_v9 = vcombine.high %v578_v7, %v578_v7  ;;  %v4145_v6 = vadd.f32 %v3954_v11, %v581_v17  ;;  %v4148_v39 = vadd.f32 %v3931_v55, %v578_v7  ;;  %v4151_v52 = vadd.f32 %v3942_v60, %v580_v42 }
 0x145   :  { %v628_v3 = vcombine.high %v606_v27, %v606_v27  ;;  %v629_v1 = vcombine.high %v613_v29, %v613_v29  ;;  %v630_v42 = vcombine.high %v620_v34, %v620_v34  ;;  %v4166_v59 = vrot.slane %v1534_v36, %v3901_v19 }
 0x146   :  { %v4156_v33 = vpop.f32.mrb[20].mxu1  ;;  %v4159_v38 = vadd.f32 %v3964_v23, %v582_v9  ;;  %v631_v35 = vcombine.high %v627_v2, %v627_v2  ;;  %v1231_v41 = vadd.f32 %v3917_v44, %v606_v27  ;;  %v1232_v56 = vadd.f32 %v3923_v46, %v620_v34 }
 0x147   :  { %5278 = vst [vmem:[#allocation20_spill] sm:$0xff] %v4156_v33  ;;  %v3290_v62 = vpop.f32.mrb[21].mxu1  ;;  %v4171_v53 = vrot.slane %v1535_v13, %v3901_v19  ;;  %v4174_v9 = vrot.slane %v1536_v54, %v3901_v19  ;;  %v1233_v7 = vadd.f32 %v3938_v58, %v628_v3  ;;  %v1235_v36 = vadd.f32 %v3920_v45, %v613_v29 }
 0x148   :  { %v1234_v62 = vadd.f32 %v3954_v11, %v630_v42  ;;  %v1236_v33 = vadd.f32 %v3931_v55, %v627_v2  ;;  %v1237_v27 = vadd.f32 %v3942_v60, %v629_v1  ;;  %v1238_v13 = vadd.f32 %v3964_v23, %v631_v35 }
 0x149   :  { %v1632_v34 = vcombine.low %v1231_v41, %v1232_v56  ;;  %v5279_v54 = vcombine.low %v3989_v40, %v3996_v50  ;;  %v1419_v58 = vcombine.low %v4050_v16, %v4072_v47  ;;  %v632_v55 = vcombine.high %v4060_v4, %v4060_v4 }
 0x14a   :  { %v4183_v46 = vpop.f32.mrb[22].mxu1  ;;  %v1633_v3 = vcombine.low %v1233_v7, %v1234_v62  ;;  %v1634_v45 = vcombine.low %v1235_v36, %v1236_v33  ;;  %v639_v1 = vrot.slane %v4060_v4, %v3901_v19  ;;  %v1635_v60 = vcombine.low %v1237_v27, %v1238_v13 }
 0x14b   :  { %v1418_v17 = vrot.slane %v5279_v54, %v3901_v19  ;;  %v3293_v11 = vpop.f32.mrb[23].mxu1  ;;  %v4197_v56 = vrot.slane %v1632_v34, %v3901_v19  ;;  %v1427_v40 = vrot.slane %v1419_v58, %v3901_v19  ;;  %v646_v47 = vrot.slane %v632_v55, %v3901_v19 }
 0x14c   :  { %v4202_v50 = vrot.slane %v1633_v3, %v3901_v19  ;;  %v4205_v16 = vrot.slane %v1634_v45, %v3901_v19  ;;  %v647_v29 = vcombine.high %v639_v1, %v639_v1  ;;  %v4211_v4 = vrot.slane %v1635_v60, %v3901_v19 }
 0x14d   :  { %v1420_v23 = vcombine.low %v4079_v25, %v1418_v17  ;;  %v655_v25 = vrot.slane %v639_v1, %v3901_v19  ;;  %v5280_v33 = vcombine.low %v4034_v22, %v4039_v26  ;;  %v648_v41 = vcombine.high %v646_v47, %v646_v47 }
 0x14e   :  { %v4208_v35 = vpop.f32.mrb[24].mxu1  ;;  %v662_v62 = vrot.slane %v646_v47, %v3901_v19  ;;  %v669_v36 = vrot.slane %v647_v29, %v3901_v19 }
 0x14f   :  { %v1434_v2 = vrot.slane %v1420_v23, %v3901_v19  ;;  %v1483_v17 = vrot.slane %v5280_v33, %v3901_v19  ;;  %v3296_v7 = vpop.f32.mrb[25].mxu1  ;;  %v677_v34 = vcombine.high %v655_v25, %v655_v25  ;;  %v4228_v54 = vadd.f32 %v3917_v44, %v655_v25 }
 0x150   :  { %v676_v22 = vrot.slane %v648_v41, %v3901_v19  ;;  %v678_v26 = vcombine.high %v662_v62, %v662_v62  ;;  %v679_v58 = vcombine.high %v669_v36, %v669_v36  ;;  %v4232_v11 = vadd.f32 %v3926_v49, %v669_v36 }
 0x151   :  { %v4225_v13 = vcombine.low %v1427_v40, %v1434_v2  ;;  %v4236_v3 = vadd.f32 %v3947_v8, %v677_v34  ;;  %v4239_v45 = vadd.f32 %v4012_v18, %v662_v62  ;;  %v4242_v55 = vcombine.low %v4082_v37, %v1483_v17 }
 0x152   :  { %v681_v44 = vcombine.high %v4086_v32, %v4086_v32  ;;  %v680_v1 = vcombine.high %v676_v22, %v676_v22  ;;  %v4247_v60 = vadd.f32 %v3958_v14, %v679_v58  ;;  %v4250_v23 = vadd.f32 %v3934_v57, %v676_v22 }
 0x153   :  { %5281 = vst [vmem:[#allocation21_spill] sm:$0xff] %v4225_v13  ;;  %2145 = vadd.xlane.f32.xlu0 %v4225_v13  ;;  %5282 = vst [vmem:[#allocation22_spill] sm:$0xff] %v4242_v55  ;;  %v4253_v40 = vadd.f32 %v3950_v10, %v678_v26  ;;  %3368 = vmatmul.mubr.f32.vlgmr.msra.gmra.mrb[26].mxu1 %v4242_v55  ;;  %v688_v37 = vrot.slane %v4086_v32, %v3901_v19  ;;  %v5284_v41 = vmov 0.0  }
 0x154   :  { %v695_v29 = vrot.slane %v681_v44, %v3901_v19  ;;  %v5283_v2 = vcombine.low %v4058_v15, %v4065_v31  ;;  %v4270_v7 = vadd.f32 %v4006_v5, %v680_v1  ;;  %3370 = vmatprep.mubr.msk.f32.mxu1 %vm3602_vm0, %v5284_v41  ;;  %v1517_v32 = vcombine.low %v4111_v61, %v4117_v0 }
 0x155   :  { %v5285_v15 = vcombine.low %v4127_v43, %v4134_v28  ;;  %v696_v62 = vcombine.high %v688_v37, %v688_v37  ;;  %v704_v34 = vrot.slane %v688_v37, %v3901_v19 }
 0x156   :  { %v1516_v25 = vrot.slane %v5283_v2, %v3901_v19  ;;  %v697_v36 = vcombine.high %v695_v29, %v695_v29  ;;  %v711_v22 = vrot.slane %v695_v29, %v3901_v19  ;;  %v1525_v61 = vrot.slane %v1517_v32, %v3901_v19 }
 0x157   :  { %v4280_v31 = vrot.slane %v5285_v15, %v3901_v19  ;;  %2147 = vadd.xlane.f32.xlu0 %v4242_v55  ;;  %v718_v0 = vrot.slane %v696_v62, %v3901_v19  ;;  %v726_v28 = vcombine.high %v704_v34, %v704_v34  ;;  %v4292_v44 = vadd.f32 %v4016_v20, %v704_v34 }
 0x158   :  { %v1518_v58 = vcombine.low %v4120_v48, %v1516_v25  ;;  %v725_v43 = vrot.slane %v697_v36, %v3901_v19  ;;  %v727_v1 = vcombine.high %v711_v22, %v711_v22  ;;  %v4295_v37 = vadd.f32 %v4012_v18, %v711_v22 }
 0x159   :  { %v730_v2 = vcombine.high %v4108_v63, %v4108_v63  ;;  %v728_v48 = vcombine.high %v718_v0, %v718_v0  ;;  %v4301_v32 = vadd.f32 %v3926_v49, %v718_v0  ;;  %v4304_v15 = vadd.f32 %v3947_v8, %v726_v28 }
 0x15a   :  { %v1532_v29 = vrot.slane %v1518_v58, %v3901_v19  ;;  %v729_v25 = vcombine.high %v725_v43, %v725_v43  ;;  %v4307_v62 = vadd.f32 %v3934_v57, %v725_v43  ;;  %v4310_v36 = vadd.f32 %v3950_v10, %v727_v1 }
 0x15b   :  { %v4317_v58 = vadd.f32 %v3958_v14, %v728_v48  ;;  %v737_v28 = vrot.slane %v4108_v63, %v3901_v19  ;;  %v744_v43 = vrot.slane %v730_v2, %v3901_v19  ;;  %v5288_v63 = vcombine.low %v4137_v51, %v4145_v6 }
 0x15c   :  { %v4314_v22 = vcombine.low %v1525_v61, %v1532_v29  ;;  %v4329_v61 = vadd.f32 %v4006_v5, %v729_v25  ;;  %v5287_v29 = vcombine.low %v4095_v30, %v4098_v21  ;;  %v1566_v21 = vcombine.low %v4166_v59, %v4171_v53 }
 0x15d   :  { %v1600_v2 = vrot.slane %v5288_v63, %v3901_v19  ;;  %v745_v34 = vcombine.high %v737_v28, %v737_v28  ;;  %v746_v26 = vcombine.high %v744_v43, %v744_v43  ;;  %v753_v25 = vrot.slane %v737_v28, %v3901_v19 }
 0x15e   :  { %5286 = vst [vmem:[#allocation23_spill] sm:$0xff] %v4314_v22  ;;  %3371 = vmatmul.mubr.f32.gmra.mrb[28].mxu1 %v4314_v22  ;;  %2149 = vadd.xlane.f32.xlu0 %v4314_v22  ;;  %v1565_v48 = vrot.slane %v5287_v29, %v3901_v19  ;;  %v760_v17 = vrot.slane %v744_v43, %v3901_v19 }
 0x15f   :  { %3373 = vmatprep.mubr.msk.f32.mxu1 %vm3602_vm0, %v5284_v41  ;;  %v767_v6 = vrot.slane %v745_v34, %v3901_v19  ;;  %v774_v51 = vrot.slane %v746_v26, %v3901_v19  ;;  %v779_v63 = vcombine.high %v4130_v24, %v4130_v24  ;;  %v775_v1 = vcombine.high %v753_v25, %v753_v25 }
 0x160   :  { %v1567_v29 = vcombine.low %v4174_v9, %v1565_v48  ;;  %v776_v33 = vcombine.high %v760_v17, %v760_v17  ;;  %v4355_v28 = vadd.f32 %v4016_v20, %v753_v25  ;;  %v4358_v43 = vadd.f32 %v4012_v18, %v760_v17 }
 0x161   :  { %v777_v30 = vcombine.high %v767_v6, %v767_v6  ;;  %v778_v0 = vcombine.high %v774_v51, %v774_v51  ;;  %v4361_v53 = vadd.f32 %v3926_v49, %v767_v6  ;;  %v4364_v59 = vadd.f32 %v3934_v57, %v774_v51 }
 0x162   :  { %v4367_v9 = vadd.f32 %v3947_v8, %v775_v1  ;;  %v4370_v26 = vadd.f32 %v3950_v10, %v776_v33  ;;  %v1574_v17 = vrot.slane %v1566_v21, %v3901_v19  ;;  %v1581_v1 = vrot.slane %v1567_v29, %v3901_v19 }
 0x163   :  { %v4376_v48 = vadd.f32 %v3958_v14, %v777_v30  ;;  %v786_v33 = vrot.slane %v4130_v24, %v3901_v19  ;;  %v793_v51 = vrot.slane %v779_v63, %v3901_v19  ;;  %v4387_v34 = vadd.f32 %v4006_v5, %v778_v0 }
 0x164   :  { %v5289_v30 = vcombine.low %v4151_v52, %v4159_v38  ;;  %v5290_v25 = vcombine.low %v4140_v12, %v4148_v39  ;;  %v4399_v47 = vcombine.low %v1574_v17, %v1581_v1  ;;  %v1615_v24 = vcombine.low %v4280_v31, %v1600_v2 }
 0x165   :  { %v794_v63 = vcombine.high %v786_v33, %v786_v33  ;;  %v795_v0 = vcombine.high %v793_v51, %v793_v51  ;;  %v802_v27 = vrot.slane %v786_v33, %v3901_v19  ;;  %v809_v42 = vrot.slane %v793_v51, %v3901_v19 }
 0x166   :  { %v1614_v21 = vrot.slane %v5289_v30, %v3901_v19  ;;  %v1607_v6 = vrot.slane %v5290_v25, %v3901_v19  ;;  %5291 = vst [vmem:[#allocation24_spill] sm:$0xff] %v4399_v47  ;;  %3374 = vmatmul.mubr.f32.gmra.mrb[30].mxu1 %v4399_v47  ;;  %2151 = vadd.xlane.f32.xlu0 %v4399_v47 }
 0x167   :  { %v1623_v52 = vrot.slane %v1615_v24, %v3901_v19  ;;  %v816_v38 = vrot.slane %v794_v63, %v3901_v19  ;;  %v823_v31 = vrot.slane %v795_v0, %v3901_v19  ;;  %v824_v2 = vcombine.high %v802_v27, %v802_v27  ;;  %3376 = vmatprep.mubr.msk.f32.mxu1 %vm3602_vm0, %v5284_v41 }
 0x168   :  { %v1616_v39 = vcombine.low %v1607_v6, %v1614_v21  ;;  %v825_v17 = vcombine.high %v809_v42, %v809_v42  ;;  %v4414_v25 = vadd.f32 %v4016_v20, %v802_v27  ;;  %v4417_v1 = vadd.f32 %v4012_v18, %v809_v42 }
 0x169   :  { %v5292_v33 = vcombine.low %v4197_v56, %v4202_v50  ;;  %v826_v30 = vcombine.high %v816_v38, %v816_v38  ;;  %v827_v21 = vcombine.high %v823_v31, %v823_v31  ;;  %v4425_v24 = vadd.f32 %v3926_v49, %v816_v38 }
 0x16a   :  { %v1630_v6 = vrot.slane %v1616_v39, %v3901_v19  ;;  %v4428_v63 = vadd.f32 %v3947_v8, %v824_v2  ;;  %v4431_v27 = vadd.f32 %v3934_v57, %v823_v31  ;;  %v4434_v42 = vadd.f32 %v3950_v10, %v825_v17 }
 0x16b   :  { %v1672_v51 = vrot.slane %v5292_v33, %v3901_v19  ;;  %5293 = vst [vmem:[#allocation25_spill] sm:$0xff] %v4425_v24  ;;  %v4441_v56 = vadd.f32 %v3958_v14, %v826_v30  ;;  %v2636_v50 = vcombine.low %v4414_v25, %v4425_v24  ;;  %v5297_v38 = vcombine.low %v4205_v16, %v4211_v4 }
 0x16c   :  { %5294 = vst [vmem:[#allocation26_spill] sm:$0xff] %v4431_v27  ;;  %5295 = vst [vmem:[#allocation27_spill] sm:$0xff] %v4434_v42  ;;  %v4438_v39 = vcombine.low %v1623_v52, %v1630_v6  ;;  %v1687_v2 = vrot.slane %v4228_v54, %v3901_v19  ;;  %v2017_v52 = vadd.f32 %v4242_v55, %v4225_v13  ;;  %v5298_v6 = vld [vmem:[#allocation20_spill] sm:$0xff] }
 0x16d   :  { %v1679_v31 = vrot.slane %v5297_v38, %v3901_v19  ;;  %v828_v33 = vcombine.high %v5298_v6, %v5298_v6  ;;  %v835_v30 = vrot.slane %v5298_v6, %v3901_v19  ;;  %v4472_v6 = vadd.f32 %v4006_v5, %v827_v21 }
 0x16e   :  { %5296 = vst [vmem:[#allocation28_spill] sm:$0xff] %v4438_v39  ;;  %3377 = vmatmul.mubr.f32.gmra.mrb[32].mxu1 %v4438_v39  ;;  %v1694_v38 = vrot.slane %v1687_v2, %v3901_v19  ;;  %v2018_v17 = vadd.f32 %v2017_v52, %v4314_v22 }
 0x16f   :  { %v4462_v4 = vcombine.low %v1672_v51, %v1679_v31  ;;  %3379 = vmatprep.mubr.msk.f32.mxu1 %vm3602_vm0, %v5284_v41  ;;  %v842_v0 = vrot.slane %v828_v33, %v3901_v19  ;;  %v843_v12 = vcombine.high %v835_v30, %v835_v30  ;;  %v851_v29 = vrot.slane %v835_v30, %v3901_v19 }
 0x170   :  { %v2023_v55 = vsel %vm2022_vm2, %v1694_v38, 0.0  ;;  %5300 = vst [vmem:[#allocation29_spill] sm:$0xff] %v4472_v6  ;;  %v877_v51 = vcombine.high %v4183_v46, %v4183_v46  ;;  %v884_v31 = vrot.slane %v4183_v46, %v3901_v19  ;;  %v2019_v2 = vadd.f32 %v2018_v17, %v4399_v47 }
 0x171   :  { %5299 = vst [vmem:[#allocation20_spill] sm:$0xff] %v4462_v4  ;;  %2157 = vadd.xlane.f32.xlu0 %v2023_v55  ;;  %v844_v52 = vcombine.high %v842_v0, %v842_v0  ;;  %v858_v33 = vrot.slane %v842_v0, %v3901_v19  ;;  %v865_v16 = vrot.slane %v843_v12, %v3901_v19 }
 0x172   :  { %v873_v30 = vcombine.high %v851_v29, %v851_v29  ;;  %v4482_v38 = vadd.f32 %v4016_v20, %v851_v29  ;;  %3380 = vmatmul.mubr.f32.gmra.mrb[34].mxu1 %v4462_v4  ;;  %v891_v22 = vrot.slane %v877_v51, %v3901_v19  ;;  %v2020_v46 = vadd.f32 %v2019_v2, %v4438_v39 }
 0x173   :  { %v872_v17 = vrot.slane %v844_v52, %v3901_v19  ;;  %v874_v47 = vcombine.high %v858_v33, %v858_v33  ;;  %v875_v13 = vcombine.high %v865_v16, %v865_v16  ;;  %3382 = vmatprep.mubr.msk.f32.mxu1 %vm3602_vm0, %v5284_v41  ;;  %v1272_v12 = vadd.f32 %v3926_v49, %v865_v16 }
 0x174   :  { %5301 = vst [vmem:[#allocation30_spill] sm:$0xff] %v4482_v38  ;;  %v4494_v29 = vadd.f32 %v3947_v8, %v873_v30  ;;  %v4497_v0 = vadd.f32 %v4012_v18, %v858_v33  ;;  %v2021_v2 = vadd.f32 %v2020_v46, %v4462_v4  ;;  %v892_v42 = vcombine.high %v884_v31, %v884_v31 }
 0x175   :  { %v876_v21 = vcombine.high %v872_v17, %v872_v17  ;;  %v4503_v52 = vadd.f32 %v3958_v14, %v875_v13  ;;  %v4506_v24 = vadd.f32 %v3934_v57, %v872_v17  ;;  %2153 = vadd.xlane.f32.xlu0 %v4438_v39  ;;  %v4510_v16 = vadd.f32 %v3950_v10, %v874_v47 }
 0x176   :  { %5302 = vst [vmem:[#allocation31_spill] sm:$0xff] %v4497_v0  ;;  %v1891_v33 = vcombine.low %v1272_v12, %v4494_v29  ;;  %v2685_v30 = vcombine.low %v4482_v38, %v1272_v12  ;;  %v5305_v46 = vcombine.low %v4228_v54, %v4232_v11  ;;  %v5306_v39 = vcombine.low %v4292_v44, %v4301_v32 }
 0x177   :  { %5303 = vst [vmem:[#allocation32_spill] sm:$0xff] %v4503_v52  ;;  %5304 = vst [vmem:[#allocation33_spill] sm:$0xff] %v4506_v24  ;;  %v1892_v13 = vcombine.low %v4503_v52, %v4497_v0  ;;  %v2024_v38 = vadd.f32 %v2023_v55, %v2021_v2  ;;  %v5307_v6 = vcombine.low %v4355_v28, %v4361_v53 }
 0x178   :  { %v2499_v51 = vrot.slane %v5305_v46, %v3901_v19  ;;  %v4528_v12 = vrot.slane %v5306_v39, %v3901_v19  ;;  %v893_v46 = vcombine.high %v891_v22, %v891_v22  ;;  %v4539_v17 = vrot.slane %v2636_v50, %v3901_v19 }
 0x179   :  { %v4536_v27 = vrot.slane %v5307_v6, %v3901_v19  ;;  %v900_v47 = vrot.slane %v884_v31, %v3901_v19  ;;  %v907_v0 = vrot.slane %v891_v22, %v3901_v19  ;;  %2155 = vadd.xlane.f32.xlu0 %v4462_v4  ;;  %v4545_v55 = vrot.slane %v1891_v33, %v3901_v19 }
 0x17a   :  { %v914_v39 = vrot.slane %v892_v42, %v3901_v19  ;;  %v921_v2 = vrot.slane %v893_v46, %v3901_v19  ;;  %v4550_v54 = vadd.f32 %v4006_v5, %v876_v21  ;;  %v4553_v6 = vrot.slane %v2685_v30, %v3901_v19 }
 0x17b   :  { %v922_v50 = vcombine.high %v900_v47, %v900_v47  ;;  %v923_v24 = vcombine.high %v907_v0, %v907_v0  ;;  %v1279_v31 = vadd.f32 %v4016_v20, %v900_v47  ;;  %v2025_v22 = vrot.slane %v2024_v38, 4 }
 0x17c   :  { %v924_v52 = vcombine.high %v914_v39, %v914_v39  ;;  %v4557_v4 = vadd.f32 %v3926_v49, %v914_v39  ;;  %v4560_v33 = vadd.f32 %v4012_v18, %v907_v0  ;;  %v4566_v21 = vadd.f32 %v3934_v57, %v921_v2 }
 0x17d   :  { %v4563_v42 = vadd.f32 %v3947_v8, %v922_v50  ;;  %v4569_v30 = vadd.f32 %v3950_v10, %v923_v24  ;;  %v5308_v47 = vcombine.low %v4236_v3, %v4247_v60  ;;  %v1894_v18 = vcombine.low %v4550_v54, %v1279_v31 }
 0x17e   :  { %v4576_v39 = vadd.f32 %v3958_v14, %v924_v52  ;;  %v2734_v0 = vcombine.low %v1279_v31, %v4557_v4  ;;  %v4583_v57 = vrot.slane %v1892_v13, %v3901_v19  ;;  %v4591_v52 = vadd.f32 %v2025_v22, %v2024_v38 }
 0x17f   :  { %v2506_v46 = vrot.slane %v5308_v47, %v3901_v19  ;;  %v925_v50 = vcombine.high %v921_v2, %v921_v2  ;;  %v4598_v13 = vrot.slane %v1894_v18, %v3901_v19  ;;  %v5310_v10 = vcombine.low %v4239_v45, %v4250_v23 }
 0x180   :  { %5309 = vst [vmem:[#allocation34_spill] sm:$0xff] %v4591_v52  ;;  %v5311_v38 = vcombine.low %v4253_v40, %v4270_v7  ;;  %v1695_v14 = vcombine.low %v4232_v11, %v4236_v3  ;;  %v1696_v31 = vcombine.low %v4247_v60, %v4239_v45  ;;  %v1697_v18 = vcombine.low %v4250_v23, %v4253_v40 }
 0x181   :  { %v2513_v24 = vrot.slane %v5310_v10, %v3901_v19  ;;  %v2521_v2 = vcombine.low %v2499_v51, %v2506_v46  ;;  %v5312_v47 = vcombine.low %v4270_v7, %v4292_v44  ;;  %v4619_v8 = vrot.slane %v2734_v0, %v3901_v19 }
 0x182   :  { %v2520_v22 = vrot.slane %v5311_v38, %v3901_v19  ;;  %v932_v11 = vrot.slane %v4208_v35, %v3901_v19  ;;  %v1705_v3 = vrot.slane %v1695_v14, %v3901_v19  ;;  %v1712_v45 = vrot.slane %v1696_v31, %v3901_v19 }
 0x183   :  { %v1726_v10 = vrot.slane %v5312_v47, %v3901_v19  ;;  %v2529_v51 = vrot.slane %v2521_v2, %v3901_v19  ;;  %v1719_v60 = vrot.slane %v1697_v18, %v3901_v19  ;;  %v4628_v23 = vadd.f32 %v4006_v5, %v925_v50 }
 0x184   :  { %v2522_v52 = vcombine.low %v2513_v24, %v2520_v22  ;;  %v933_v7 = vcombine.high %v932_v11, %v932_v11  ;;  %v940_v44 = vrot.slane %v932_v11, %v3901_v19  ;;  %v5313_v46 = vcombine.low %v4304_v15, %v4317_v58 }
 0x185   :  { %v1727_v35 = vcombine.low %v1705_v3, %v1712_v45  ;;  %v1728_v24 = vcombine.low %v1719_v60, %v1726_v10  ;;  %v2737_v14 = vcombine.low %v4569_v30, %v4628_v23  ;;  %v5314_v5 = vcombine.low %v4295_v37, %v4307_v62 }
 0x186   :  { %v2536_v40 = vrot.slane %v2522_v52, %v3901_v19  ;;  %v2555_v0 = vrot.slane %v5313_v46, %v3901_v19  ;;  %v947_v52 = vrot.slane %v933_v7, %v3901_v19  ;;  %v4646_v31 = vadd.f32 %v4016_v20, %v940_v44 }
 0x187   :  { %v2562_v50 = vrot.slane %v5314_v5, %v3901_v19  ;;  %v5315_v38 = vcombine.low %v4310_v36, %v4329_v61  ;;  %v1735_v2 = vrot.slane %v1727_v35, %v3901_v19  ;;  %v1742_v18 = vrot.slane %v1728_v24, %v3901_v19 }
 0x188   :  { %v4642_v47 = vcombine.low %v2529_v51, %v2536_v40  ;;  %v2570_v10 = vcombine.low %v4528_v12, %v2555_v0  ;;  %v1744_v51 = vcombine.low %v4301_v32, %v4304_v15  ;;  %v4659_v11 = vadd.f32 %v3926_v49, %v947_v52 }
 0x189   :  { %v2569_v22 = vrot.slane %v5315_v38, %v3901_v19  ;;  %v1943_v20 = vcombine.low %v4628_v23, %v4646_v31  ;;  %v1745_v45 = vcombine.low %v4317_v58, %v4295_v37  ;;  %v1743_v60 = vcombine.low %v1735_v2, %v1742_v18 }
 0x18a   :  { %3383 = vmatmul.mubr.f32.gmra.mrb[36].mxu1 %v4642_v47  ;;  %v2578_v12 = vrot.slane %v2570_v10, %v3901_v19  ;;  %v1746_v32 = vcombine.low %v4307_v62, %v4310_v36  ;;  %v1754_v15 = vrot.slane %v1744_v51, %v3901_v19  ;;  %v2783_v40 = vcombine.low %v4646_v31, %v4659_v11  ;;  %v2425_v31 = vld [vmem:[%s5226_s10 + $0x8] sm:$0xff] }
 0x18b   :  { %v2571_v3 = vcombine.low %v2562_v50, %v2569_v22  ;;  %3385 = vmatprep.mubr.msk.f32.mxu1 %vm3602_vm0, %v5284_v41  ;;  %v4672_v49 = vrot.slane %v1943_v20, %v3901_v19  ;;  %v1761_v37 = vrot.slane %v1745_v45, %v3901_v19  ;;  %2159 = vadd.xlane.f32.xlu1 %v1743_v60 }
 0x18c   :  { %v1768_v58 = vrot.slane %v1746_v32, %v3901_v19  ;;  %v5316_v44 = vcombine.low %v4329_v61, %v4355_v28  ;;  %v5317_v36 = vcombine.low %v4367_v9, %v4376_v48  ;;  %v5318_v0 = vcombine.low %v4358_v43, %v4364_v59  ;;  %v5325_v32 = vld [vmem:[#allocation29_spill] sm:$0xff] }
 0x18d   :  { %v2585_v7 = vrot.slane %v2571_v3, %v3901_v19  ;;  %v1776_v5 = vcombine.low %v1754_v15, %v1761_v37  ;;  %v5319_v50 = vcombine.low %v4370_v26, %v4387_v34  ;;  %v1793_v61 = vcombine.low %v4361_v53, %v4367_v9  ;;  %v4733_v37 = vld [vmem:[%s5224_s8] ss:$0 sm:$0xff] }
 0x18e   :  { %v1775_v62 = vrot.slane %v5316_v44, %v3901_v19  ;;  %v2604_v46 = vrot.slane %v5317_v36, %v3901_v19  ;;  %v2611_v35 = vrot.slane %v5318_v0, %v3901_v19  ;;  %v1794_v22 = vcombine.low %v4376_v48, %v4358_v43  ;;  %v5327_v36 = vld [vmem:[#allocation25_spill] sm:$0xff] }
 0x18f   :  { %v4691_v24 = vcombine.low %v2578_v12, %v2585_v7  ;;  %v2618_v52 = vrot.slane %v5319_v50, %v3901_v19  ;;  %v1795_v2 = vcombine.low %v4364_v59, %v4370_v26  ;;  %v1784_v18 = vrot.slane %v1776_v5, %v3901_v19  ;;  %v5324_v12 = vld [vmem:[#allocation27_spill] sm:$0xff]  ;;  %2219 = vbcast.lane.b32.xlu0 %v4733_v37, 304 }
 0x190   :  { %v1777_v28 = vcombine.low %v1768_v58, %v1775_v62  ;;  %v2619_v38 = vcombine.low %v4536_v27, %v2604_v46  ;;  %v1803_v51 = vrot.slane %v1793_v61, %v3901_v19  ;;  %v5320_v53 = vcombine.low %v4387_v34, %v4414_v25  ;;  %v5322_v34 = vld [vmem:[#allocation26_spill] sm:$0xff] }
 0x191   :  { %3386 = vmatmul.mubr.f32.gmra.mrb[38].mxu1 %v4691_v24  ;;  %v2620_v10 = vcombine.low %v2611_v35, %v2618_v52  ;;  %v1810_v59 = vrot.slane %v1794_v22, %v3901_v19  ;;  %v1817_v26 = vrot.slane %v1795_v2, %v3901_v19  ;;  %v5321_v20 = vcombine.low %v4428_v63, %v4441_v56 }
 0x192   :  { %v1824_v9 = vrot.slane %v5320_v53, %v3901_v19  ;;  %v1791_v27 = vrot.slane %v1777_v28, %v3901_v19  ;;  %3388 = vmatprep.mubr.msk.f32.mxu1 %vm3602_vm0, %v5284_v41  ;;  %v2627_v43 = vrot.slane %v2619_v38, %v3901_v19  ;;  %v5323_v25 = vcombine.low %v4417_v1, %v5322_v34 }
 0x193   :  { %v2634_v48 = vrot.slane %v2620_v10, %v3901_v19  ;;  %v2653_v3 = vrot.slane %v5321_v20, %v3901_v19  ;;  %v5326_v15 = vcombine.low %v5324_v12, %v5325_v32  ;;  %v1825_v44 = vcombine.low %v1803_v51, %v1810_v59  ;;  %v5330_v51 = vld [vmem:[#allocation32_spill] sm:$0xff]  ;;  %v5332_v59 = vld [vmem:[#allocation31_spill] sm:$0xff] }
 0x194   :  { %v2660_v45 = vrot.slane %v5323_v25, %v3901_v19  ;;  %v1792_v58 = vcombine.low %v1784_v18, %v1791_v27  ;;  %v1826_v62 = vcombine.low %v1817_v26, %v1824_v9  ;;  %v1842_v46 = vcombine.low %v5327_v36, %v4428_v63  ;;  %v5333_v26 = vld [vmem:[#allocation33_spill] sm:$0xff] }
 0x195   :  { %v2667_v7 = vrot.slane %v5326_v15, %v3901_v19  ;;  %v4738_v0 = vcombine.low %v2627_v43, %v2634_v48  ;;  %v2668_v35 = vcombine.low %v4539_v17, %v2653_v3  ;;  %v1843_v50 = vcombine.low %v4441_v56, %v4417_v1 }
 0x196   :  { %2161 = vadd.xlane.f32.xlu1 %v1792_v58  ;;  %v2031_v52 = vadd.f32 %v1792_v58, %v1743_v60  ;;  %v1833_v61 = vrot.slane %v1825_v44, %v3901_v19  ;;  %v1840_v28 = vrot.slane %v1826_v62, %v3901_v19  ;;  %v1844_v38 = vcombine.low %v5322_v34, %v5324_v12  ;;  %v5328_v60 = vld [vmem:[#allocation30_spill] sm:$0xff]  ;;  %v2053_v62 = vld [vmem:[#allocation6 + $0x30] sm:$0xff] }
 0x197   :  { %v2669_v5 = vcombine.low %v2660_v45, %v2667_v7  ;;  %3389 = vmatmul.mubr.f32.gmra.mrb[40].mxu1 %v4738_v0  ;;  %v2676_v63 = vrot.slane %v2668_v35, %v3901_v19  ;;  %v1852_v17 = vrot.slane %v1842_v46, %v3901_v19  ;;  %v1859_v2 = vrot.slane %v1843_v50, %v3901_v19 }
 0x198   :  { %v1841_v1 = vcombine.low %v1833_v61, %v1840_v28  ;;  %3391 = vmatprep.mubr.msk.f32.mxu1 %vm3602_vm0, %v5284_v41  ;;  %v1866_v56 = vrot.slane %v1844_v38, %v3901_v19  ;;  %v5329_v18 = vcombine.low %v5325_v32, %v5328_v60  ;;  %v5331_v53 = vcombine.low %v4494_v29, %v5330_v51  ;;  %v2056_v60 = vld [vmem:[#allocation6 + $0x48] sm:$0xff] }
 0x199   :  { %v2683_v22 = vrot.slane %v2669_v5, %v3901_v19  ;;  %v1874_v43 = vcombine.low %v1852_v17, %v1859_v2  ;;  %v5334_v48 = vcombine.low %v5332_v59, %v5333_v26  ;;  %v5335_v3 = vcombine.low %v4510_v16, %v4550_v54  ;;  %v2057_v59 = vld [vmem:[#allocation6 + $0x50] sm:$0xff] }
 0x19a   :  { %v1873_v10 = vrot.slane %v5329_v18, %v3901_v19  ;;  %v2702_v9 = vrot.slane %v5331_v53, %v3901_v19  ;;  %2163 = vadd.xlane.f32.xlu1 %v1841_v1  ;;  %v2032_v25 = vadd.f32 %v2031_v52, %v1841_v1  ;;  %v5336_v29 = vcombine.low %v5333_v26, %v4510_v16  ;;  %v2058_v26 = vld [vmem:[#allocation6 + $0x58] sm:$0xff] }
 0x19b   :  { %v4763_v27 = vcombine.low %v2676_v63, %v2683_v22  ;;  %v2709_v20 = vrot.slane %v5334_v48, %v3901_v19  ;;  %v2716_v34 = vrot.slane %v5335_v3, %v3901_v19  ;;  %v1882_v15 = vrot.slane %v1874_v43, %v3901_v19 }
 0x19c   :  { %v1875_v45 = vcombine.low %v1866_v56, %v1873_v10  ;;  %v2717_v12 = vcombine.low %v4553_v6, %v2702_v9  ;;  %v1915_v32 = vrot.slane %v5336_v29, %v3901_v19  ;;  %v1923_v58 = vcombine.low %v4545_v55, %v4583_v57  ;;  %v2054_v6 = vld [vmem:[#allocation6 + $0x38] sm:$0xff]  ;;  %v2055_v56 = vld [vmem:[#allocation6 + $0x40] sm:$0xff]  ;;  %v2060_v29 = vld [vmem:[#allocation6 + $0x68] sm:$0xff] }
 0x19d   :  { %3392 = vmatmul.mubr.f32.gmra.mrb[42].mxu1 %v4763_v27  ;;  %v2718_v7 = vcombine.low %v2709_v20, %v2716_v34  ;;  %v5337_v54 = vcombine.low %v4557_v4, %v4563_v42  ;;  %v5338_v55 = vcombine.low %v4576_v39, %v4560_v33  ;;  %v5339_v5 = vcombine.low %v4566_v21, %v4569_v30 }
 0x19e   :  { %v1889_v36 = vrot.slane %v1875_v45, %v3901_v19  ;;  %3394 = vmatprep.mubr.msk.f32.mxu1 %vm3602_vm0, %v5284_v41  ;;  %v2725_v16 = vrot.slane %v2717_v12, %v3901_v19  ;;  %v1924_v46 = vcombine.low %v1915_v32, %v4598_v13  ;;  %v1931_v4 = vrot.slane %v1923_v58, %v3901_v19  ;;  %v2059_v12 = vld [vmem:[#allocation6 + $0x60] sm:$0xff] }
 0x19f   :  { %v1950_v44 = vrot.slane %v5337_v54, %v3901_v19  ;;  %v1957_v57 = vrot.slane %v5338_v55, %v3901_v19  ;;  %v2732_v35 = vrot.slane %v2718_v7, %v3901_v19  ;;  %v1964_v50 = vrot.slane %v5339_v5, %v3901_v19 }
 0x1a0   :  { %v1995_v52 = vrot.slane %v4659_v11, %v3901_v19  ;;  %v1890_v61 = vcombine.low %v1882_v15, %v1889_v36  ;;  %v1938_v13 = vrot.slane %v1924_v46, %v3901_v19  ;;  %v3443_v38 = vpack.c.bf16 %v2054_v6, %v2053_v62  ;;  %v2061_v62 = vld [vmem:[#allocation6 + $0x70] sm:$0xff]  ;;  %v2062_v6 = vld [vmem:[#allocation6 + $0x78] sm:$0xff] }
 0x1a1   :  { %v1972_v28 = vcombine.low %v1950_v44, %v1957_v57  ;;  %v4804_v63 = vcombine.low %v2725_v16, %v2732_v35  ;;  %v1973_v22 = vcombine.low %v1964_v50, %v4672_v49  ;;  %v5340_v2 = vcombine.low %v4563_v42, %v4576_v39  ;;  %v2428_v11 = vld [vmem:[%s5226_s10 + $0x20] sm:$0xff]  ;;  %v2427_v50 = vld [vmem:[%s5226_s10 + $0x18] sm:$0xff] }
 0x1a2   :  { %v2002_v17 = vrot.slane %v1995_v52, %v3901_v19  ;;  %2165 = vadd.xlane.f32.xlu1 %v1890_v61  ;;  %v2033_v18 = vadd.f32 %v2032_v25, %v1890_v61  ;;  %v1939_v10 = vcombine.low %v1931_v4, %v1938_v13  ;;  %3444 = vmatpush3.bf16.msra.mxu0 %v3443_v38  ;;  %v5342_v43 = vmov 0.0|0.0   ;;  %v2431_v61 = vld [vmem:[%s5226_s10 + $0x38] sm:$0xff]  ;;  %v2434_v13 = vld [vmem:[%s5226_s10 + $0x50] sm:$0xff] }
 0x1a3   :  { %v2751_v1 = vrot.slane %v5340_v2, %v3901_v19  ;;  %v1980_v51 = vrot.slane %v1972_v28, %v3901_v19  ;;  %3395 = vmatmul.mubr.f32.gmra.mrb[44].mxu1 %v4804_v63  ;;  %v1987_v53 = vrot.slane %v1973_v22, %v3901_v19  ;;  %v5341_v9 = vcombine.low %v4560_v33, %v4566_v21  ;;  %v5343_v21 = vld [vmem:[#allocation34_spill] sm:$0xff]  ;;  %v2430_v2 = vld [vmem:[%s5226_s10 + $0x30] sm:$0xff] }
 0x1a4   :  { %v2036_v49 = vsel %vm2022_vm2, %v2002_v17, 0.0  ;;  %v2765_v39 = vrot.slane %v2737_v14, %v3901_v19  ;;  %3445 = vmatprep.subr.bf16.mxu0 %v5342_v43  ;;  %v2034_v48 = vadd.f32 %v2033_v18, %v1939_v10  ;;  %3397 = vmatprep.mubr.msk.f32.mxu1 %vm3602_vm0, %v5284_v41  ;;  %v3446_v3 = vpack.c.bf16 %v2056_v60, %v2055_v56  ;;  %v2437_v60 = vld [vmem:[%s5226_s10 + $0x68] sm:$0xff]  ;;  %v2440_v18 = vld [vmem:[%s5226_s10 + $0x80] sm:$0xff] }
 0x1a5   :  { %v2758_v42 = vrot.slane %v5341_v9, %v3901_v19  ;;  %v2766_v20 = vcombine.low %v4619_v8, %v2751_v1  ;;  %v1988_v34 = vcombine.low %v1980_v51, %v1987_v53  ;;  %v3449_v33 = vpack.c.bf16 %v2058_v26, %v2057_v59  ;;  %v2433_v1 = vld [vmem:[%s5226_s10 + $0x48] sm:$0xff]  ;;  %v2436_v53 = vld [vmem:[%s5226_s10 + $0x60] sm:$0xff]  ;;  %v2443_v9 = vld [vmem:[%s5226_s10 + $0x98] sm:$0xff] }
 0x1a6   :  { %2171 = vadd.xlane.f32.xlu1 %v2036_v49  ;;  %3447 = vmatpush3.bf16.msra.mxu0 %v3446_v3  ;;  %v2027_v45 = vrot.slane %v5343_v21, 2  ;;  %v3605_v32 = vmov 0   ;;  %v2790_v7 = vrot.slane %v2783_v40, %v3901_v19  ;;  %v3452_v58 = vpack.c.bf16 %v2060_v29, %v2059_v12  ;;  %v2442_v26 = vld [vmem:[%s5226_s10 + $0x90] sm:$0xff]  ;;  %v2452_v3 = vld [vmem:[%s5226_s10 + $0xe0] sm:$0xff]  ;;  %v2457_v12 = vld [vmem:[%s5226_s10 + $0x108] sm:$0xff] }
 0x1a7   :  { %v2767_v25 = vcombine.low %v2758_v42, %v2765_v39  ;;  %v2035_v30 = vadd.f32 %v2034_v48, %v1988_v34  ;;  %v2774_v23 = vrot.slane %v2766_v20, %v3901_v19  ;;  %3448 = vmatprep.subr.bf16.mxu0 %v5342_v43  ;;  %3538 = vset.pattern.permute.xlu1 %v3605_v32  ;;  %v2446_v42 = vld [vmem:[%s5226_s10 + $0xb0] sm:$0xff]  ;;  %v2445_v48 = vld [vmem:[%s5226_s10 + $0xa8] sm:$0xff] }
 0x1a8   :  { %3539 = vset.pattern.permute.xlu0 %v3605_v32  ;;  %v2028_v54 = vadd.f32 %v2027_v45, %v5343_v21  ;;  %v4850_v36 = vrot.slane %v2790_v7, %v3901_v19  ;;  %v3455_v16 = vpack.c.bf16 %v2062_v6, %v2061_v62  ;;  %v3457_v57 = vpack.c.bf16 %v2428_v11, %v2425_v31  ;;  %v2449_v20 = vld [vmem:[%s5226_s10 + $0xc8] sm:$0xff]  ;;  %v2455_v21 = vld [vmem:[%s5226_s10 + $0xf8] sm:$0xff]  ;;  %v2458_v45 = vld [vmem:[%s5226_s10 + $0x110] sm:$0xff] }
 0x1a9   :  { %v2781_v14 = vrot.slane %v2767_v25, %v3901_v19  ;;  %v2037_v8 = vadd.f32 %v2036_v49, %v2035_v30  ;;  %v2424_v19 = vld [vmem:[%s5226_s10] sm:$0xff]  ;;  %v3461_v17 = vpack.c.bf16 %v2434_v13, %v2431_v61  ;;  %v3465_v51 = vpack.c.bf16 %v2440_v18, %v2437_v60  ;;  %v2439_v49 = vld [vmem:[%s5226_s10 + $0x78] sm:$0xff]  ;;  %v2461_v29 = vld [vmem:[%s5226_s10 + $0x128] sm:$0xff] }
 0x1aa   :  { %2167 = vadd.xlane.f32.xlu1 %v1939_v10  ;;  %3450 = vmatpush3.bf16.msra.mxu0 %v3449_v33  ;;  %v2029_v46 = vrot.slane %v2028_v54, 1  ;;  %v3459_v22 = vpack.c.bf16 %v2427_v50, %v2424_v19  ;;  %v3463_v10 = vpack.c.bf16 %v2433_v1, %v2430_v2  ;;  %v3467_v39 = vpack.c.bf16 %v2439_v49, %v2436_v53  ;;  %v2448_v25 = vld [vmem:[%s5226_s10 + $0xc0] sm:$0xff]  ;;  %v2451_v33 = vld [vmem:[%s5226_s10 + $0xd8] sm:$0xff]  ;;  %v2470_v62 = vld [vmem:[%s5226_s10 + $0x170] sm:$0xff]  ;;  %v2200_v2 = vpop.permute.xlu1 %2199 }
 0x1ab   :  { %v4832_v15 = vcombine.low %v2774_v23, %v2781_v14  ;;  %v2038_v44 = vrot.slane %v2037_v8, 4  ;;  %3451 = vmatprep.subr.bf16.mxu0 %v5342_v43  ;;  %v3469_v59 = vpack.c.bf16 %v2446_v42, %v2443_v9  ;;  %v3475_v30 = vpack.c.bf16 %v2451_v33, %v2448_v25  ;;  %v2454_v14 = vld [vmem:[%s5226_s10 + $0xf0] sm:$0xff]  ;;  %v2464_v32 = vld [vmem:[%s5226_s10 + $0x140] sm:$0xff] }
 0x1ac   :  { %v2030_v4 = vadd.f32 %v2029_v46, %v2028_v54  ;;  %v3477_v23 = vpack.c.bf16 %v2458_v45, %v2455_v21  ;;  %v3481_v7 = vpack.c.bf16 %v2464_v32, %v2461_v29  ;;  %v2463_v54 = vld [vmem:[%s5226_s10 + $0x138] sm:$0xff]  ;;  %v2466_v11 = vld [vmem:[%s5226_s10 + $0x150] sm:$0xff]  ;;  %v4947_v46 = vpop.permute.xlu0 %2195  ;;  %v5353_v60 = vld [vmem:[#allocation14_spill] sm:$0xff] }
 0x1ad   :  { %3398 = vmatmul.mubr.f32.gmra.mrb[46].mxu1 %v4832_v15  ;;  %v2039_v40 = vadd.f32 %v2038_v44, %v2037_v8  ;;  %v3479_v8 = vpack.c.bf16 %v2457_v12, %v2454_v14  ;;  %v2467_v44 = vld [vmem:[%s5226_s10 + $0x158] sm:$0xff]  ;;  %v5348_v19 = vld [vmem:[#allocation23_spill] sm:$0xff] }
 0x1ae   :  { %3400 = vmatprep.mubr.msk.f32.mxu1 %vm3602_vm0, %v5284_v41  ;;  %2169 = vadd.xlane.f32.xlu1 %v1988_v34  ;;  %v2045_v28 = vmul.f32 0.020408163, %v2030_v4  ;;  %v3473_v34 = vpack.c.bf16 %v2452_v3, %v2449_v20  ;;  %v3485_v31 = vpack.c.bf16 %v2470_v62, %v2467_v44  ;;  %v2204_v53 = vpop.permute.xlu1 %2203  ;;  %v5355_v49 = vld [vmem:[#allocation15_spill] sm:$0xff]  ;;  %v5356_v42 = vld [vmem:[#allocation16_spill] sm:$0xff] }
 0x1af   :  { %3453 = vmatpush3.bf16.msra.mxu0 %v3452_v58  ;;  %v2040_v55 = vrot.slane %v2039_v40, 2  ;;  %v2460_v58 = vld [vmem:[%s5226_s10 + $0x120] sm:$0xff] }
 0x1b0   :  { %3454 = vmatprep.subr.bf16.mxu0 %v5342_v43  ;;  %v3483_v6 = vpack.c.bf16 %v2463_v54, %v2460_v58  ;;  %v4955_v4 = vpop.permute.xlu0 %2211 }
 0x1b1   :  { %3401 = vmatmul.mubr.f32.gmra.mrb[48].mxu1 %v4850_v36  ;;  %v2041_v35 = vadd.f32 %v2040_v55, %v2039_v40  ;;  %v2469_v40 = vld [vmem:[%s5226_s10 + $0x168] sm:$0xff]  ;;  %v5344_v55 = vld [vmem:[#allocation21_spill] sm:$0xff] }
 0x1b3   :  { %3456 = vmatpush3.bf16.msra.mxu0 %v3455_v16  ;;  %v2042_v5 = vrot.slane %v2041_v35, 1  ;;  %v3487_v16 = vpack.c.bf16 %v2469_v40, %v2466_v11 }
 0x1b4   :  { %3458 = vmatprep.subr.bf16.mxu0 %v3457_v57  ;;  %v5345_v57 = vld [vmem:[#allocation10_spill] sm:$0xff] }
 0x1b5   :  { %v2043_v52 = vadd.f32 %v2042_v5, %v2041_v35  ;;  %v5346_v35 = vld [vmem:[#allocation22_spill] sm:$0xff]  ;;  %v5347_v5 = vld [vmem:[#allocation11_spill] sm:$0xff] }
 0x1b7   :  { %v2046_v38 = vmul.f32 0.020408163, %v2043_v52  ;;  %v5349_v52 = vld [vmem:[#allocation12_spill] sm:$0xff] }
 0x1b9   :  { %v2073_v56 = vsel %vm2072_vm3, %v2046_v38, %v2045_v28  ;;  %v5350_v28 = vld [vmem:[#allocation24_spill] sm:$0xff] }
 0x1ba   :  { %3330 = vmatmul.mubr.f32.vlgmr.msra.gmra.mrb[2].mxu0 %v2073_v56  ;;  %v5352_v56 = vld [vmem:[#allocation28_spill] sm:$0xff] }
 0x1bb   :  { %3460 = vmatpush1.bf16.msra.mxu0 %v3459_v22  ;;  %2869 = vmatprep.mubr.f32.mxu0 %v5284_v41  ;;  %v5351_v22 = vld [vmem:[#allocation13_spill] sm:$0xff] }
 0x1bc   :  { %3462 = vmatprep.subr.bf16.mxu0 %v3461_v17 }
 0x1bf   :  { %3464 = vmatpush1.bf16.msra.mxu0 %v3463_v10  ;;  %2215 = vbcast.lane.b32.xlu1 %v4733_v37, 296  ;;  %v3471_v37 = vpack.c.bf16 %v2445_v48, %v2442_v26  ;;  %v5354_v10 = vld [vmem:[#allocation20_spill] sm:$0xff]  ;;  %v2208_v48 = vpop.permute.xlu1 %2207 }
 0x1c0   :  { %3466 = vmatprep.subr.bf16.mxu0 %v3465_v51 }
 0x1c3   :  { %3468 = vmatpush1.bf16.msra.mxu0 %v3467_v39  ;;  %v5357_v39 = vld [vmem:[#allocation17_spill] sm:$0xff] }
 0x1c4   :  { %3470 = vmatprep.subr.bf16.mxu0 %v3469_v59 }
 0x1c7   :  { %3472 = vmatpush1.bf16.msra.mxu0 %v3471_v37 }
 0x1c8   :  { %3474 = vmatprep.subr.bf16.mxu0 %v3473_v34  ;;  %v5002_v34 = vld [vmem:[%s5227_s11] sm:$0x7] }
 0x1cb   :  { %3476 = vmatpush1.bf16.msra.mxu0 %v3475_v30 }
 0x1cc   :  { %3478 = vmatprep.subr.bf16.mxu0 %v3477_v23 }
 0x1cf   :  { %3480 = vmatpush1.bf16.msra.mxu0 %v3479_v8 }
 0x1d0   :  { %3482 = vmatprep.subr.bf16.mxu0 %v3481_v7 }
 0x1d3   :  { %3484 = vmatpush1.bf16.msra.mxu0 %v3483_v6 }
 0x1d4   :  { %3486 = vmatprep.subr.bf16.mxu0 %v3485_v31 }
 0x1d7   :  { %3488 = vmatpush1.bf16.msra.mxu0 %v3487_v16 }
 0x1d8   :  { %3489 = vmatprep.subr.bf16.mxu0 %v5342_v43 }
 0x1da   :  { %2870 = vmatmul.mubr.f32.vlgmr.msra.gmra.mrb[4].mxu0 %v5344_v55 }
 0x1db   :  { %2875 = vmatprep.mubr.f32.mxu0 %v5284_v41  ;;  %3491 = vmatpush3.bf16.msra.mxu0 %v5345_v57 }
 0x1dc   :  { %3492 = vmatprep.subr.bf16.mxu0 %v5342_v43 }
 0x1de   :  { %2876 = vmatmul.mubr.f32.gmra.mrb[6].mxu0 %v5346_v35 }
 0x1df   :  { %2881 = vmatprep.mubr.f32.mxu0 %v5284_v41  ;;  %3494 = vmatpush3.bf16.msra.mxu0 %v5347_v5 }
 0x1e0   :  { %3495 = vmatprep.subr.bf16.mxu0 %v5342_v43  ;;  %v2146_v50 = vpop.xlane.xlu0 %2145 }
 0x1e1   :  { %v2174_v61 = vmul.f32 0.0078125, %v2146_v50 }
 0x1e2   :  { %2882 = vmatmul.mubr.f32.gmra.mrb[8].mxu0 %v5348_v19 }
 0x1e3   :  { %2887 = vmatprep.mubr.f32.mxu0 %v5284_v41  ;;  %3497 = vmatpush3.bf16.msra.mxu0 %v5349_v52  ;;  %v2228_v13 = vmul.f32 %v4947_v46, %v2174_v61 }
 0x1e4   :  { %3498 = vmatprep.subr.bf16.mxu0 %v5342_v43  ;;  %v2148_v38 = vpop.xlane.xlu0 %2147 }
 0x1e5   :  { %v2175_v17 = vmul.f32 0.0078125, %v2148_v38  ;;  %2257 = vperm.xlu1 %3538, %v2228_v13  }
 0x1e6   :  { %2888 = vmatmul.mubr.f32.gmra.mrb[10].mxu0 %v5350_v28 }
 0x1e7   :  { %2893 = vmatprep.mubr.f32.mxu0 %v5284_v41  ;;  %3500 = vmatpush3.bf16.msra.mxu0 %v5351_v22  ;;  %v2229_v1 = vmul.f32 %v2200_v2, %v2175_v17 }
 0x1e8   :  { %3501 = vmatprep.subr.bf16.mxu0 %v5342_v43 }
 0x1e9   :  { %2260 = vperm.xlu0 %3539, %v2229_v1  }
 0x1ea   :  { %2894 = vmatmul.mubr.f32.gmra.mrb[12].mxu0 %v5352_v56 }
 0x1eb   :  { %2899 = vmatprep.mubr.f32.mxu0 %v5284_v41  ;;  %3503 = vmatpush3.bf16.msra.mxu0 %v5353_v60  ;;  %v2150_v18 = vpop.xlane.xlu0 %2149 }
 0x1ec   :  { %3504 = vmatprep.subr.bf16.mxu0 %v5342_v43  ;;  %v2176_v51 = vmul.f32 0.0078125, %v2150_v18 }
 0x1ee   :  { %2900 = vmatmul.mubr.f32.gmra.mrb[14].mxu0 %v5354_v10  ;;  %v2230_v9 = vmul.f32 %v2204_v53, %v2176_v51 }
 0x1ef   :  { %2905 = vmatprep.mubr.f32.mxu0 %v5284_v41  ;;  %3506 = vmatpush3.bf16.msra.mxu0 %v5355_v49 }
 0x1f0   :  { %3507 = vmatprep.subr.bf16.mxu0 %v5342_v43  ;;  %2263 = vperm.xlu0 %3539, %v2230_v9  }
 0x1f2   :  { %2906 = vmatmul.mubr.f32.gmra.mrb[16].mxu0 %v4642_v47 }
 0x1f3   :  { %2911 = vmatprep.mubr.f32.mxu0 %v5284_v41  ;;  %3509 = vmatpush3.bf16.msra.mxu0 %v5356_v42  ;;  %v2152_v59 = vpop.xlane.xlu0 %2151 }
 0x1f4   :  { %3510 = vmatprep.subr.bf16.mxu0 %v5342_v43  ;;  %v2177_v26 = vmul.f32 0.0078125, %v2152_v59 }
 0x1f6   :  { %2912 = vmatmul.mubr.f32.gmra.mrb[18].mxu0 %v4691_v24  ;;  %v2231_v47 = vmul.f32 %v2208_v48, %v2177_v26 }
 0x1f7   :  { %2917 = vmatprep.mubr.f32.mxu0 %v5284_v41  ;;  %3512 = vmatpush3.bf16.msra.mxu0 %v5357_v39 }
 0x1f8   :  { %2266 = vperm.xlu0 %3539, %v2231_v47  }
 0x1fa   :  { %2918 = vmatmul.mubr.f32.gmra.mrb[20].mxu0 %v4738_v0 }
 0x1fb   :  { %2923 = vmatprep.mubr.f32.mxu0 %v5284_v41 }
 0x1fe   :  { %2924 = vmatmul.mubr.f32.gmra.mrb[22].mxu0 %v4763_v27  ;;  %v2158_v24 = vpop.xlane.xlu0 %2157 }
 0x1ff   :  { %2929 = vmatprep.mubr.f32.mxu0 %v5284_v41  ;;  %v2180_v13 = vmul.f32 0.0078125, %v2158_v24 }
 0x202   :  { %2930 = vmatmul.mubr.f32.gmra.mrb[24].mxu0 %v4804_v63  ;;  %v2154_v43 = vpop.xlane.xlu0 %2153 }
 0x203   :  { %2935 = vmatprep.mubr.f32.mxu0 %v5284_v41  ;;  %v2178_v20 = vmul.f32 0.0078125, %v2154_v43 }
 0x205   :  { %v2232_v0 = vmul.f32 %v4955_v4, %v2178_v20 }
 0x206   :  { %2936 = vmatmul.mubr.f32.gmra.mrb[26].mxu0 %v4832_v15  ;;  %v5358_v15 = vld [vmem:[#allocation18_spill] sm:$0xff]  ;;  %v2156_v11 = vpop.xlane.xlu0 %2155 }
 0x207   :  { %2941 = vmatprep.mubr.f32.mxu0 %v5284_v41  ;;  %2269 = vperm.xlu0 %3539, %v2232_v0   ;;  %v2484_v37 = vsub.s32 2, %v5358_v15  ;;  %v2179_v16 = vmul.f32 0.0078125, %v2156_v11 }
 0x209   :  { %v5005_v33 = vrot.slane %v5002_v34, %v2484_v37 }
 0x20a   :  { %2942 = vmatmul.mubr.f32.gmra.mrb[28].mxu0 %v4850_v36  ;;  %v2220_v61 = vpop.permute.xlu0 %2219 }
 0x20b   :  { %3364 = vmatprep.mubr.msk.f32.mxu0 %vm3602_vm0, %v5284_v41 }
 0x20e   :  { %3365 = vmatmul.mubr.f32.vlgmr.msra.gmra.mrb[30].mxu0 %v5344_v55 }
 0x218   :  { %v2160_v27 = vpop.xlane.xlu1 %2159 }
 0x219   :  { %v2181_v63 = vmul.f32 0.0078125, %v2160_v27 }
 0x21b   :  { %v2235_v3 = vmul.f32 %v4947_v46, %v2181_v63 }
 0x21d   :  { %2278 = vperm.xlu1 %3538, %v2235_v3  }
 0x223   :  { %v2162_v25 = vpop.xlane.xlu1 %2161 }
 0x224   :  { %v2182_v36 = vmul.f32 0.0078125, %v2162_v25 }
 0x226   :  { %v2236_v41 = vmul.f32 %v2200_v2, %v2182_v36  ;;  %v3019_v30 = vpop.f32.mrb[26].mxu1  ;;  %v3133_v2 = vld [vmem:[#allocation3] ss:$0 sm:$0xff] }
 0x227   :  { %v2164_v21 = vpop.xlane.xlu1 %2163  ;;  %v3020_v23 = vadd.f32 %v3019_v30, %v5005_v33  ;;  %v3369_v14 = vpop.f32.mrb[27].mxu1  ;;  %v2480_v30 = vsub.s32 1, %v5358_v15 }
 0x228   :  { %v2183_v45 = vmul.f32 0.0078125, %v2164_v21  ;;  %2281 = vperm.xlu1 %3538, %v2236_v41  }
 0x229   :  { %3083 = vst [vmem:[%s5229_s14 + $0x28] sm:$0xff] %v3020_v23  ;;  %v5359_v23 = vld [vmem:[#allocation19_spill] sm:$0xff] }
 0x22a   :  { %v2237_v12 = vmul.f32 %v2204_v53, %v2183_v45  ;;  %v5065_v14 = vrot.slane %v5002_v34, %v5359_v23 }
 0x22c   :  { %2284 = vperm.xlu1 %3538, %v2237_v12   ;;  %v5068_v12 = vrot.slane %v5002_v34, %v2480_v30 }
 0x22f   :  { %v2166_v29 = vpop.xlane.xlu1 %2165 }
 0x230   :  { %v2184_v32 = vmul.f32 0.0078125, %v2166_v29 }
 0x231   :  { %v3024_v58 = vpop.f32.mrb[28].mxu1 }
 0x232   :  { %v2238_v8 = vmul.f32 %v2208_v48, %v2184_v32  ;;  %v3025_v54 = vadd.f32 %v3024_v58, %v5005_v33  ;;  %v3372_v44 = vpop.f32.mrb[29].mxu1 }
 0x233   :  { %v2172_v7 = vpop.xlane.xlu1 %2171 }
 0x234   :  { %2287 = vperm.xlu1 %3538, %v2238_v8   ;;  %3086 = vst [vmem:[%s5229_s14 + $0x40] sm:$0xff] %v3025_v54  ;;  %v2187_v19 = vmul.f32 0.0078125, %v2172_v7 }
 0x236   :  { %v2241_v28 = vmul.f32 %v2220_v61, %v2187_v19 }
 0x237   :  { %v2168_v62 = vpop.xlane.xlu1 %2167 }
 0x238   :  { %v2185_v6 = vmul.f32 0.0078125, %v2168_v62 }
 0x239   :  { %v3029_v55 = vpop.f32.mrb[30].mxu1 }
 0x23a   :  { %v2239_v31 = vmul.f32 %v4955_v4, %v2185_v6  ;;  %v3030_v35 = vadd.f32 %v3029_v55, %v5005_v33  ;;  %v3375_v5 = vpop.f32.mrb[31].mxu1  ;;  %v2234_v4 = vmul.f32 %v2220_v61, %v2180_v13 }
 0x23b   :  { %v2170_v40 = vpop.xlane.xlu1 %2169 }
 0x23c   :  { %2290 = vperm.xlu1 %3538, %v2239_v31   ;;  %v2186_v46 = vmul.f32 0.0078125, %v2170_v40  ;;  %3089 = vst [vmem:[%s5229_s14 + $0x58] sm:$0xff] %v3030_v35  ;;  %v5360_v40 = vlaneseq }
 0x23f   :  { %v2216_v57 = vpop.permute.xlu1 %2215 }
 0x240   :  { %v2233_v50 = vmul.f32 %v2216_v57, %v2179_v16  ;;  %v2240_v52 = vmul.f32 %v2216_v57, %v2186_v46  ;;  %v2299_v16 = vand.u32 127, %v5360_v40 }
 0x241   :  { %v3034_v38 = vpop.f32.mrb[32].mxu1 }
 0x242   :  { %2293 = vperm.xlu1 %3538, %v2240_v52   ;;  %2272 = vperm.xlu0 %3539, %v2233_v50   ;;  %v3035_v22 = vadd.f32 %v3034_v38, %v5005_v33  ;;  %v3378_v17 = vpop.f32.mrb[33].mxu1  ;;  %v2304_v55 = vadd.s32 4294967288, %v2299_v16  ;;  %v2311_v19 = vadd.s32 4294967280, %v2299_v16  ;;  %v2318_v52 = vadd.s32 4294967272, %v2299_v16 }
 0x244   :  { %3092 = vst [vmem:[%s5229_s14 + $0x70] sm:$0xff] %v3035_v22 }
 0x245   :  { %v3039_v1 = vpop.f32.mrb[34].mxu1 }
 0x246   :  { %2296 = vperm.xlu1 %3538, %v2241_v28   ;;  %2275 = vperm.xlu0 %3539, %v2234_v4   ;;  %v3040_v56 = vadd.f32 %v3039_v1, %v5005_v33  ;;  %v3381_v60 = vpop.f32.mrb[35].mxu1  ;;  %v2307_v4 = vsub.s32 %v2304_v55, %v5358_v15  ;;  %v2325_v28 = vadd.s32 4294967264, %v2299_v16  ;;  %v2302_v1 = vsub.s32 %v2299_v16, %v5358_v15 }
 0x248   :  { %3095 = vst [vmem:[%s5229_s14 + $0x88] sm:$0xff] %v3040_v56  ;;  %v2314_v56 = vsub.s32 %v2311_v19, %v5358_v15 }
 0x24a   :  { %2407 = vperm.xlu1 %3538, %v3133_v2   ;;  %v2332_v2 = vadd.s32 4294967256, %v2299_v16 }
 0x25d   :  { %v3044_v18 = vpop.f32.mrb[36].mxu1 }
 0x25e   :  { %v3045_v10 = vadd.f32 %v3044_v18, %v5005_v33  ;;  %v3384_v51 = vpop.f32.mrb[37].mxu1  ;;  %v2321_v18 = vsub.s32 %v2318_v52, %v5358_v15 }
 0x260   :  { %3098 = vst [vmem:[%s5229_s14 + $0xa0] sm:$0xff] %v3045_v10 }
 0x264   :  { %v3049_v53 = vpop.f32.mrb[38].mxu1  ;;  %v5058_v21 = vpop.permute.xlu1 %2257 }
 0x265   :  { %v3050_v49 = vadd.f32 %v3049_v53, %v5005_v33  ;;  %v3387_v9 = vpop.f32.mrb[39].mxu1 }
 0x267   :  { %3101 = vst [vmem:[%s5229_s14 + $0xb8] sm:$0xff] %v3050_v49  ;;  %v2328_v49 = vsub.s32 %v2325_v28, %v5358_v15 }
 0x268   :  { %v5070_v29 = vpop.permute.xlu0 %2260 }
 0x269   :  { %v2308_v53 = vrot.slane %v5070_v29, %v2307_v4 }
 0x26a   :  { %v3054_v42 = vpop.f32.mrb[40].mxu1 }
 0x26b   :  { %v3055_v39 = vadd.f32 %v3054_v42, %v5005_v33  ;;  %v3390_v59 = vpop.f32.mrb[41].mxu1 }
 0x26d   :  { %3104 = vst [vmem:[%s5229_s14 + $0xd0] sm:$0xff] %v3055_v39  ;;  %v2339_v39 = vadd.s32 4294967248, %v2299_v16 }
 0x26f   :  { %v5082_v44 = vpop.permute.xlu0 %2263  ;;  %v2342_v30 = vsub.s32 %v2339_v39, %v5358_v15 }
 0x270   :  { %v3059_v26 = vpop.f32.mrb[42].mxu1 }
 0x271   :  { %v3060_v48 = vadd.f32 %v3059_v26, %v5005_v33  ;;  %v3393_v47 = vpop.f32.mrb[43].mxu1 }
 0x272   :  { %v2303_v47 = vrot.slane %v5058_v21, %v2302_v1 }
 0x273   :  { %3107 = vst [vmem:[%s5229_s14 + $0xe8] sm:$0xff] %v3060_v48  ;;  %v2335_v48 = vsub.s32 %v2332_v2, %v5358_v15 }
 0x276   :  { %v3064_v24 = vpop.f32.mrb[44].mxu1 }
 0x277   :  { %v3065_v43 = vadd.f32 %v3064_v24, %v5005_v33  ;;  %v3396_v20 = vpop.f32.mrb[45].mxu1  ;;  %v2267_v50 = vpop.permute.xlu0 %2266  ;;  %v2315_v24 = vrot.slane %v5082_v44, %v2314_v56 }
 0x278   :  { %v2322_v20 = vrot.slane %v2267_v50, %v2321_v18 }
 0x279   :  { %3110 = vst [vmem:[%s5229_s14 + $0x100] sm:$0xff] %v3065_v43 }
 0x280   :  { %v3069_v0 = vpop.f32.mrb[46].mxu1 }
 0x281   :  { %v3070_v27 = vadd.f32 %v3069_v0, %v5005_v33  ;;  %v3399_v63 = vpop.f32.mrb[47].mxu1 }
 0x283   :  { %3113 = vst [vmem:[%s5229_s14 + $0x118] sm:$0xff] %v3070_v27 }
 0x284   :  { %v3074_v3 = vpop.f32.mrb[48].mxu1 }
 0x285   :  { %v3075_v37 = vadd.f32 %v3074_v3, %v5005_v33  ;;  %v3402_v25 = vpop.f32.mrb[49].mxu1 }
 0x286   :  { %v2270_v60 = vpop.permute.xlu0 %2269 }
 0x287   :  { %3116 = vst [vmem:[%s5229_s14 + $0x130] sm:$0x3] %v3075_v37  ;;  %v2310_v37 = vsel %vm2309_vm4, %v2308_v53, %v2303_v47  ;;  %v2329_v25 = vrot.slane %v2270_v60, %v2328_v49 }
 0x28d   :  { %v5056_v36 = vpop.f32.mrb[2].mxu0 }
 0x28e   :  { %v3331_v41 = vpop.f32.mrb[3].mxu0 }
 0x29c   :  { %v5060_v45 = vpop.permute.xlu1 %2278 }
 0x29d   :  { %v2349_v0 = vrot.slane %v5060_v45, %v2302_v1 }
 0x2a7   :  { %v5072_v32 = vpop.permute.xlu1 %2281 }
 0x2a8   :  { %v2353_v59 = vrot.slane %v5072_v32, %v2307_v4 }
 0x2aa   :  { %v2354_v23 = vsel %vm2309_vm4, %v2353_v59, %v2349_v0 }
 0x2ab   :  { %v5085_v31 = vpop.permute.xlu1 %2284 }
 0x2ac   :  { %v2358_v43 = vrot.slane %v5085_v31, %v2314_v56 }
 0x2ad   :  { %v2871_v8 = vpop.f32.mrb[4].mxu0 }
 0x2ae   :  { %v2872_v7 = vadd.f32 %v2871_v8, %v5065_v14  ;;  %v2873_v58 = vpop.f32.mrb[5].mxu0 }
 0x2af   :  { %v2874_v54 = vadd.f32 %v2873_v58, %v5068_v12  ;;  %v2359_v58 = vsel %vm2316_vm5, %v2358_v43, %v2354_v23 }
 0x2b0   :  { %3078 = vst [vmem:[%s5229_s14] sm:$0xff] %v2872_v7  ;;  %v2317_v7 = vsel %vm2316_vm5, %v2315_v24, %v2310_v37 }
 0x2b1   :  { %3079 = vst [vmem:[%s5229_s14 + $0x8] sm:$0xff] %v2874_v54  ;;  %v2877_v34 = vpop.f32.mrb[6].mxu0 }
 0x2b2   :  { %v2878_v62 = vadd.f32 %v2877_v34, %v5065_v14  ;;  %v2879_v6 = vpop.f32.mrb[7].mxu0  ;;  %v2324_v34 = vsel %vm2323_vm6, %v2322_v20, %v2317_v7 }
 0x2b3   :  { %v2880_v11 = vadd.f32 %v2879_v6, %v5068_v12  ;;  %v2288_v61 = vpop.permute.xlu1 %2287  ;;  %v2331_v6 = vsel %vm2330_vm7, %v2329_v25, %v2324_v34 }
 0x2b4   :  { %3081 = vst [vmem:[%s5229_s14 + $0x18] sm:$0xff] %v2878_v62  ;;  %v2363_v27 = vrot.slane %v2288_v61, %v2321_v18 }
 0x2b5   :  { %3082 = vst [vmem:[%s5229_s14 + $0x20] sm:$0xff] %v2880_v11  ;;  %v2883_v46 = vpop.f32.mrb[8].mxu0 }
 0x2b6   :  { %v2884_v57 = vadd.f32 %v2883_v46, %v5065_v14  ;;  %v2885_v35 = vpop.f32.mrb[9].mxu0  ;;  %v2364_v44 = vsel %vm2323_vm6, %v2363_v27, %v2359_v58 }
 0x2b7   :  { %v2886_v5 = vadd.f32 %v2885_v35, %v5068_v12 }
 0x2b8   :  { %3084 = vst [vmem:[%s5229_s14 + $0x30] sm:$0xff] %v2884_v57 }
 0x2b9   :  { %3085 = vst [vmem:[%s5229_s14 + $0x38] sm:$0xff] %v2886_v5  ;;  %v2889_v13 = vpop.f32.mrb[10].mxu0 }
 0x2ba   :  { %v2890_v38 = vadd.f32 %v2889_v13, %v5065_v14  ;;  %v2891_v22 = vpop.f32.mrb[11].mxu0 }
 0x2bb   :  { %v2892_v17 = vadd.f32 %v2891_v22, %v5068_v12  ;;  %v2291_v10 = vpop.permute.xlu1 %2290 }
 0x2bc   :  { %3087 = vst [vmem:[%s5229_s14 + $0x48] sm:$0xff] %v2890_v38  ;;  %v2368_v41 = vrot.slane %v2291_v10, %v2328_v49 }
 0x2bd   :  { %3088 = vst [vmem:[%s5229_s14 + $0x50] sm:$0xff] %v2892_v17  ;;  %v2895_v51 = vpop.f32.mrb[12].mxu0 }
 0x2be   :  { %v2896_v9 = vadd.f32 %v2895_v51, %v5065_v14  ;;  %v2897_v42 = vpop.f32.mrb[13].mxu0  ;;  %v2369_v31 = vsel %vm2330_vm7, %v2368_v41, %v2364_v44 }
 0x2bf   :  { %v2898_v26 = vadd.f32 %v2897_v42, %v5068_v12 }
 0x2c0   :  { %3090 = vst [vmem:[%s5229_s14 + $0x60] sm:$0xff] %v2896_v9 }
 0x2c1   :  { %3091 = vst [vmem:[%s5229_s14 + $0x68] sm:$0xff] %v2898_v26  ;;  %v2273_v63 = vpop.permute.xlu0 %2272  ;;  %v2294_v3 = vpop.permute.xlu1 %2293 }
 0x2c2   :  { %v2901_v21 = vpop.f32.mrb[14].mxu0  ;;  %v2336_v29 = vrot.slane %v2273_v63, %v2335_v48  ;;  %v2373_v32 = vrot.slane %v2294_v3, %v2335_v48 }
 0x2c3   :  { %v2902_v45 = vadd.f32 %v2901_v21, %v5065_v14  ;;  %v2903_v8 = vpop.f32.mrb[15].mxu0  ;;  %v3129_v21 = vld [vmem:[%s5223_s7] ss:$0 sm:$0xff] }
 0x2c4   :  { %v2904_v54 = vadd.f32 %v2903_v8, %v5068_v12  ;;  %v2338_v46 = vsel %vm2337_vm8, %v2336_v29, %v2331_v6  ;;  %v2374_v55 = vsel %vm2337_vm8, %v2373_v32, %v2369_v31 }
 0x2c5   :  { %3093 = vst [vmem:[%s5229_s14 + $0x78] sm:$0xff] %v2902_v45  ;;  %v2276_v15 = vpop.permute.xlu0 %2275  ;;  %v2297_v62 = vpop.permute.xlu1 %2296 }
 0x2c6   :  { %3094 = vst [vmem:[%s5229_s14 + $0x80] sm:$0xff] %v2904_v54  ;;  %v2343_v11 = vrot.slane %v2276_v15, %v2342_v30  ;;  %v2378_v40 = vrot.slane %v2297_v62, %v2342_v30  ;;  %v2907_v16 = vpop.f32.mrb[16].mxu0 }
 0x2c7   :  { %v2908_v57 = vadd.f32 %v2907_v16, %v5065_v14  ;;  %v2909_v35 = vpop.f32.mrb[17].mxu0 }
 0x2c8   :  { %v2910_v5 = vadd.f32 %v2909_v35, %v5068_v12  ;;  %v2345_v19 = vsel %vm2344_vm9, %v2343_v11, %v2338_v46  ;;  %v2379_v50 = vsel %vm2344_vm9, %v2378_v40, %v2374_v55 }
 0x2c9   :  { %3096 = vst [vmem:[%s5229_s14 + $0x90] sm:$0xff] %v2908_v57  ;;  %v2380_v52 = vsel %vm2072_vm3, %v2379_v50, %v2345_v19  ;;  %v2913_v61 = vpop.f32.mrb[18].mxu0  ;;  %v2408_v32 = vpop.permute.xlu1 %2407 }
 0x2ca   :  { %3097 = vst [vmem:[%s5229_s14 + $0x98] sm:$0xff] %v2910_v5  ;;  %v2383_v13 = vsel %vm2382_vm10, %v2380_v52, 0.0  ;;  %v2914_v4 = vadd.f32 %v2913_v61, %v5065_v14  ;;  %v2915_v28 = vpop.f32.mrb[19].mxu0 }
 0x2cb   :  { %2384 = vadd.xlane.f32.xlu0 %v2383_v13  ;;  %v2916_v38 = vadd.f32 %v2915_v28, %v5068_v12 }
 0x2cc   :  { %3099 = vst [vmem:[%s5229_s14 + $0xa8] sm:$0xff] %v2914_v4 }
 0x2cd   :  { %3100 = vst [vmem:[%s5229_s14 + $0xb0] sm:$0xff] %v2916_v38  ;;  %v2919_v22 = vpop.f32.mrb[20].mxu0 }
 0x2ce   :  { %v2920_v17 = vadd.f32 %v2919_v22, %v5065_v14  ;;  %v2921_v2 = vpop.f32.mrb[21].mxu0 }
 0x2cf   :  { %v2922_v1 = vadd.f32 %v2921_v2, %v5068_v12 }
 0x2d0   :  { %3102 = vst [vmem:[%s5229_s14 + $0xc0] sm:$0xff] %v2920_v17 }
 0x2d1   :  { %3103 = vst [vmem:[%s5229_s14 + $0xc8] sm:$0xff] %v2922_v1  ;;  %v2925_v56 = vpop.f32.mrb[22].mxu0 }
 0x2d2   :  { %v2926_v60 = vadd.f32 %v2925_v56, %v5065_v14  ;;  %v2927_v18 = vpop.f32.mrb[23].mxu0 }
 0x2d3   :  { %v2928_v10 = vadd.f32 %v2927_v18, %v5068_v12 }
 0x2d4   :  { %3105 = vst [vmem:[%s5229_s14 + $0xd8] sm:$0xff] %v2926_v60 }
 0x2d5   :  { %3106 = vst [vmem:[%s5229_s14 + $0xe0] sm:$0xff] %v2928_v10  ;;  %v2931_v51 = vpop.f32.mrb[24].mxu0 }
 0x2d6   :  { %v2932_v53 = vadd.f32 %v2931_v51, %v5065_v14  ;;  %v2933_v49 = vpop.f32.mrb[25].mxu0 }
 0x2d7   :  { %v2934_v9 = vadd.f32 %v2933_v49, %v5068_v12 }
 0x2d8   :  { %3108 = vst [vmem:[%s5229_s14 + $0xf0] sm:$0xff] %v2932_v53 }
 0x2d9   :  { %3109 = vst [vmem:[%s5229_s14 + $0xf8] sm:$0xff] %v2934_v9  ;;  %v2937_v42 = vpop.f32.mrb[26].mxu0 }
 0x2da   :  { %v2938_v39 = vadd.f32 %v2937_v42, %v5065_v14  ;;  %v2939_v59 = vpop.f32.mrb[27].mxu0 }
 0x2db   :  { %v2940_v26 = vadd.f32 %v2939_v59, %v5068_v12 }
 0x2dc   :  { %3111 = vst [vmem:[%s5229_s14 + $0x108] sm:$0xff] %v2938_v39 }
 0x2dd   :  { %3112 = vst [vmem:[%s5229_s14 + $0x110] sm:$0xff] %v2940_v26  ;;  %v2943_v48 = vpop.f32.mrb[28].mxu0 }
 0x2de   :  { %v2944_v47 = vadd.f32 %v2943_v48, %v5065_v14  ;;  %v2945_v24 = vpop.f32.mrb[29].mxu0  ;;  %v3131_v14 = vld [vmem:[#allocation2] ss:$0 sm:$0xff] }
 0x2df   :  { %v2946_v43 = vadd.f32 %v2945_v24, %v5068_v12 }
 0x2e0   :  { %3114 = vst [vmem:[%s5229_s14 + $0x120] sm:$0x3] %v2944_v47 }
 0x2e1   :  { %3115 = vst [vmem:[%s5229_s14 + $0x128] sm:$0x3] %v2946_v43  ;;  %v3014_v20 = vpop.f32.mrb[30].mxu0 }
 0x2e2   :  { %v3015_v0 = vadd.f32 %v3014_v20, %v5005_v33  ;;  %v3366_v27 = vpop.f32.mrb[31].mxu0  ;;  %v2142_v33 = vadd.f32 %v3129_v21, %v5056_v36 }
 0x2e4   :  { %3080 = vst [vmem:[%s5229_s14 + $0x10] sm:$0xff] %v3015_v0  ;;  %v3132_v30 = vmul.f32 -1.442695, %v2142_v33 }
 0x358   :  { %v2385_v63 = vpop.xlane.xlu0 %2384 }
 0x359   :  { %v2393_v3 = vadd.f32 %v3131_v14, %v2385_v63 }
 0x35b   :  { %v3134_v12 = vmul.f32 -1.442695, %v2393_v3 }
 0x35d   :  { %3540 = vpow2.f32 %v3134_v12 }
 0x367   :  { %v3541_v37 = vpop.eup %3540 }
 0x368   :  { %v2414_v25 = vadd.f32 1.0, %v3541_v37 }
 0x36a   :  { %3542 = vrcp.f32 %v2414_v25 }
 0x36b   :  { %3544 = vpow2.f32 %v3132_v30 }
 0x374   :  { %v3543_v41 = vpop.eup %3542 }
 0x375   :  { %2419 = vperm.xlu1 %3538, %v3543_v41   ;;  %v3545_v23 = vpop.eup %3544 }
 0x376   :  { %v2398_v29 = vadd.f32 1.0, %v3545_v23 }
 0x378   :  { %3546 = vrcp.f32 %v2398_v29 }
 0x382   :  { %v3547_v45 = vpop.eup %3546 }
 0x383   :  { %v2410_v8 = vmul.f32 %v3547_v45, %v2408_v32 }
 0x3f4   :  { %v2420_v7 = vpop.permute.xlu1 %2419 }
 0x3f5   :  { %v2422_v58 = vmul.f32 %v2420_v7, %v2410_v8 }
 0x3f7   :  { %2423 = vst [vmem:[%s5228_s13] sm:$0x3] %v2422_v58 }
 0x3f8   :  { %3125 = vsyncpa [#allocation5], 1 }
 0x3f9   :  { %3126 = vsyncpa [#allocation7], 1 }

// kernel: val_attention_forward.4
= control target key start
LH: loop header
LB: loop body
LE: loop exit
PB: predicated region body
PF: predicated region fallthrough
CT: control target
= control target key end

     0   :  { %v5666_v0 = vmov 0.0|0.0   ;;  %vm3873_vm0 = vmmov 0   ;;  %v5668_v8 = vmov 0.0   ;;  %vm25_vm1 = vcmask 261120   ;;  %s5662_s1 = inlined_call_operand.vmem [shape: f32[8,32,49], index: 1, kind: input, shape index: {}]   ;;  %s5663_s0 = inlined_call_operand.vmem [shape: f32[8,49,32], index: 0, kind: input, shape index: {}]   ;;  %s5664_s2 = inlined_call_operand.vmem [shape: f32[8,49,32], index: 2, kind: input, shape index: {}]   ;;  %s5665_s3 = inlined_call_operand.vmem [shape: f32[8,49,32], index: 3, kind: output, shape index: {}]  }
   0x1   :  { %3581 = vmatprep.subr.bf16.mxu0 %v5666_v0  ;;  %3587 = vmatprep.subr.bf16.mxu1 %v5666_v0  ;;  %v21_v1 = vld [vmem:[%s5662_s1] sm:$0xff]  ;;  %v22_v2 = vld [vmem:[%s5662_s1 + $0x8] sm:$0xff]  ;;  %v23_v6 = vld [vmem:[%s5662_s1 + $0x10] sm:$0xff]  ;;  %vm1240_vm2 = vcmask 1040384   ;;  %vm1218_vm3 = vcmask 400384   ;;  %vm1350_vm4 = vcmask 253952  }
   0x2   :  { %v2588_v3 = vld [vmem:[%s5662_s1 + $0x20] sm:$0xff]  ;;  %v3582_v4 = vpack.c.bf16 %v22_v2, %v21_v1  ;;  %v2589_v5 = vld [vmem:[%s5662_s1 + $0x28] sm:$0xff]  ;;  %v24_v7 = vld [vmem:[%s5662_s1 + $0x18] sm:$0xff]  ;;  %3077 = vmatprep.mubr.msk.f32.mxu0 %vm3873_vm0, %v5668_v8  ;;  %3106 = vmatprep.mubr.msk.f32.mxu1 %vm3873_vm0, %v5668_v8 }
   0x3   :  { %v3588_v9 = vpack.c.bf16 %v2589_v5, %v2588_v3  ;;  %v2590_v10 = vld [vmem:[%s5662_s1 + $0x30] sm:$0xff]  ;;  %v2591_v11 = vld [vmem:[%s5662_s1 + $0x38] sm:$0xff]  ;;  %v3585_v12 = vpack.c.bf16 %v24_v7, %v23_v6  ;;  %v2606_v14 = vld [vmem:[%s5662_s1 + $0x40] sm:$0xff] }
   0x4   :  { %3583 = vmatpush3.bf16.msra.mxu0 %v3582_v4  ;;  %v3591_v13 = vpack.c.bf16 %v2591_v11, %v2590_v10  ;;  %v2607_v15 = vld [vmem:[%s5662_s1 + $0x48] sm:$0xff]  ;;  %v14_v16 = vld [vmem:[%s5663_s0] sm:$0xff]  ;;  %v2581_v18 = vld [vmem:[%s5663_s0 + $0x38] sm:$0xff] }
   0x5   :  { %3589 = vmatpush3.bf16.msra.mxu1 %v3588_v9  ;;  %3584 = vmatprep.subr.bf16.mxu0 %v5666_v0  ;;  %v3594_v17 = vpack.c.bf16 %v2607_v15, %v2606_v14  ;;  %v2624_v19 = vld [vmem:[%s5662_s1 + $0x60] sm:$0xff]  ;;  %v2625_v20 = vld [vmem:[%s5662_s1 + $0x68] sm:$0xff]  ;;  %v2608_v21 = vld [vmem:[%s5662_s1 + $0x50] sm:$0xff] }
   0x6   :  { %3590 = vmatprep.subr.bf16.mxu1 %v5666_v0  ;;  %v2609_v22 = vld [vmem:[%s5662_s1 + $0x58] sm:$0xff]  ;;  %v3600_v23 = vpack.c.bf16 %v2625_v20, %v2624_v19  ;;  %v2626_v24 = vld [vmem:[%s5662_s1 + $0x70] sm:$0xff]  ;;  %v15_v26 = vld [vmem:[%s5663_s0 + $0x8] sm:$0xff] }
   0x7   :  { %v2627_v25 = vld [vmem:[%s5662_s1 + $0x78] sm:$0xff]  ;;  %v2582_v27 = vld [vmem:[%s5663_s0 + $0x40] sm:$0xff]  ;;  %v3597_v28 = vpack.c.bf16 %v2609_v22, %v2608_v21  ;;  %v16_v30 = vld [vmem:[%s5663_s0 + $0x10] sm:$0xff] }
   0x8   :  { %3586 = vmatpush3.bf16.msra.mxu0 %v3585_v12  ;;  %v3603_v29 = vpack.c.bf16 %v2627_v25, %v2626_v24  ;;  %v2583_v31 = vld [vmem:[%s5663_s0 + $0x48] sm:$0xff]  ;;  %v17_v32 = vld [vmem:[%s5663_s0 + $0x18] sm:$0xff]  ;;  %v2584_v33 = vld [vmem:[%s5663_s0 + $0x50] sm:$0xff] }
   0x9   :  { %3592 = vmatpush3.bf16.msra.mxu1 %v3591_v13  ;;  %3593 = vmatprep.subr.bf16.mxu0 %v5666_v0  ;;  %v18_v34 = vld [vmem:[%s5663_s0 + $0x20] sm:$0xff]  ;;  %v2585_v35 = vld [vmem:[%s5663_s0 + $0x58] sm:$0xff]  ;;  %v19_v36 = vld [vmem:[%s5663_s0 + $0x28] sm:$0xff] }
   0xa   :  { %3599 = vmatprep.subr.bf16.mxu1 %v5666_v0  ;;  %v2586_v37 = vld [vmem:[%s5663_s0 + $0x60] sm:$0xff]  ;;  %v20_v38 = vld [vmem:[%s5663_s0 + $0x30] sm:$0x1]  ;;  %v2587_v39 = vld [vmem:[%s5663_s0 + $0x68] sm:$0x1] }
   0xb   :  { %3078 = vmatmul.mubr.msk.f32.vlgmr.msra.gmra.mrb[0].mxu0 %vm25_vm1, %v14_v16  ;;  %v2642_v40 = vld [vmem:[%s5662_s1 + $0x80] sm:$0xff]  ;;  %v2643_v41 = vld [vmem:[%s5662_s1 + $0x88] sm:$0xff]  ;;  %v2599_v44 = vld [vmem:[%s5663_s0 + $0x70] sm:$0xff] }
   0xc   :  { %3107 = vmatmul.mubr.msk.f32.vlgmr.msra.gmra.mrb[0].mxu1 %vm25_vm1, %v2581_v18  ;;  %3595 = vmatpush3.bf16.msra.mxu0 %v3594_v17  ;;  %v2660_v42 = vld [vmem:[%s5662_s1 + $0xa0] sm:$0xff]  ;;  %v2661_v43 = vld [vmem:[%s5662_s1 + $0xa8] sm:$0xff]  ;;  %v3606_v45 = vpack.c.bf16 %v2643_v41, %v2642_v40  ;;  %v2644_v47 = vld [vmem:[%s5662_s1 + $0x90] sm:$0xff] }
   0xd   :  { %3080 = vmatprep.mubr.msk.f32.mxu0 %vm3873_vm0, %v5668_v8  ;;  %3109 = vmatprep.mubr.msk.f32.mxu1 %vm3873_vm0, %v5668_v8  ;;  %v2617_v46 = vld [vmem:[%s5663_s0 + $0xa8] sm:$0xff]  ;;  %v2645_v48 = vld [vmem:[%s5662_s1 + $0x98] sm:$0xff]  ;;  %v3612_v49 = vpack.c.bf16 %v2661_v43, %v2660_v42  ;;  %v2662_v50 = vld [vmem:[%s5662_s1 + $0xb0] sm:$0xff] }
   0xe   :  { %3596 = vmatprep.subr.bf16.mxu0 %v5666_v0  ;;  %3601 = vmatpush3.bf16.msra.mxu1 %v3600_v23  ;;  %v2663_v51 = vld [vmem:[%s5662_s1 + $0xb8] sm:$0xff]  ;;  %v2618_v53 = vld [vmem:[%s5663_s0 + $0xb0] sm:$0xff]  ;;  %v3609_v54 = vpack.c.bf16 %v2645_v48, %v2644_v47  ;;  %v2601_v56 = vld [vmem:[%s5663_s0 + $0x80] sm:$0xff] }
   0xf   :  { %3081 = vmatmul.mubr.msk.f32.gmra.mrb[2].mxu0 %vm25_vm1, %v15_v26  ;;  %3602 = vmatprep.subr.bf16.mxu1 %v5666_v0  ;;  %v2600_v52 = vld [vmem:[%s5663_s0 + $0x78] sm:$0xff]  ;;  %v3615_v55 = vpack.c.bf16 %v2663_v51, %v2662_v50  ;;  %v2602_v58 = vld [vmem:[%s5663_s0 + $0x88] sm:$0xff]  ;;  %v2620_v59 = vld [vmem:[%s5663_s0 + $0xc0] sm:$0xff] }
  0x10   :  { %3110 = vmatmul.mubr.msk.f32.gmra.mrb[2].mxu1 %vm25_vm1, %v2582_v27  ;;  %3083 = vmatprep.mubr.msk.f32.mxu0 %vm3873_vm0, %v5668_v8  ;;  %v2619_v57 = vld [vmem:[%s5663_s0 + $0xb8] sm:$0xff]  ;;  %v2603_v60 = vld [vmem:[%s5663_s0 + $0x90] sm:$0xff]  ;;  %v2621_v61 = vld [vmem:[%s5663_s0 + $0xc8] sm:$0xff] }
  0x11   :  { %3112 = vmatprep.mubr.msk.f32.mxu1 %vm3873_vm0, %v5668_v8  ;;  %3598 = vmatpush3.bf16.msra.mxu0 %v3597_v28  ;;  %v2604_v62 = vld [vmem:[%s5663_s0 + $0x98] sm:$0xff]  ;;  %v2622_v63 = vld [vmem:[%s5663_s0 + $0xd0] sm:$0xff]  ;;  %v2605_v1 = vld [vmem:[%s5663_s0 + $0xa0] sm:$0x1] }
  0x12   :  { %3604 = vmatpush3.bf16.msra.mxu1 %v3603_v29  ;;  %3605 = vmatprep.subr.bf16.mxu0 %v5666_v0  ;;  %v2623_v2 = vld [vmem:[%s5663_s0 + $0xd8] sm:$0x1]  ;;  %v2678_v3 = vld [vmem:[%s5662_s1 + $0xc0] sm:$0xff]  ;;  %v2679_v4 = vld [vmem:[%s5662_s1 + $0xc8] sm:$0xff] }
  0x13   :  { %3084 = vmatmul.mubr.msk.f32.gmra.mrb[4].mxu0 %vm25_vm1, %v16_v30  ;;  %3611 = vmatprep.subr.bf16.mxu1 %v5666_v0  ;;  %v2696_v5 = vld [vmem:[%s5662_s1 + $0xe0] sm:$0xff]  ;;  %v2697_v6 = vld [vmem:[%s5662_s1 + $0xe8] sm:$0xff]  ;;  %v2653_v9 = vld [vmem:[%s5663_s0 + $0x118] sm:$0xff]  ;;  %v3618_v10 = vpack.c.bf16 %v2679_v4, %v2678_v3 }
  0x14   :  { %3113 = vmatmul.mubr.msk.f32.gmra.mrb[4].mxu1 %vm25_vm1, %v2583_v31  ;;  %3086 = vmatprep.mubr.msk.f32.mxu0 %vm3873_vm0, %v5668_v8  ;;  %v2635_v7 = vld [vmem:[%s5663_s0 + $0xe0] sm:$0xff]  ;;  %v3624_v11 = vpack.c.bf16 %v2697_v6, %v2696_v5  ;;  %v2680_v12 = vld [vmem:[%s5662_s1 + $0xd0] sm:$0xff]  ;;  %v2681_v13 = vld [vmem:[%s5662_s1 + $0xd8] sm:$0xff] }
  0x15   :  { %3115 = vmatprep.mubr.msk.f32.mxu1 %vm3873_vm0, %v5668_v8  ;;  %v2698_v14 = vld [vmem:[%s5662_s1 + $0xf0] sm:$0xff]  ;;  %v2699_v15 = vld [vmem:[%s5662_s1 + $0xf8] sm:$0xff]  ;;  %v2636_v16 = vld [vmem:[%s5663_s0 + $0xe8] sm:$0xff]  ;;  %v3621_v18 = vpack.c.bf16 %v2681_v13, %v2680_v12 }
  0x16   :  { %v2654_v17 = vld [vmem:[%s5663_s0 + $0x120] sm:$0xff]  ;;  %v3627_v19 = vpack.c.bf16 %v2699_v15, %v2698_v14  ;;  %v2637_v20 = vld [vmem:[%s5663_s0 + $0xf0] sm:$0xff]  ;;  %v2655_v21 = vld [vmem:[%s5663_s0 + $0x128] sm:$0xff] }
  0x17   :  { %3087 = vmatmul.mubr.msk.f32.gmra.mrb[6].mxu0 %vm25_vm1, %v17_v32  ;;  %v2638_v22 = vld [vmem:[%s5663_s0 + $0xf8] sm:$0xff]  ;;  %v2656_v23 = vld [vmem:[%s5663_s0 + $0x130] sm:$0xff]  ;;  %v2639_v24 = vld [vmem:[%s5663_s0 + $0x100] sm:$0xff] }
  0x18   :  { %3116 = vmatmul.mubr.msk.f32.gmra.mrb[6].mxu1 %vm25_vm1, %v2584_v33  ;;  %3089 = vmatprep.mubr.msk.f32.mxu0 %vm3873_vm0, %v5668_v8  ;;  %v2657_v25 = vld [vmem:[%s5663_s0 + $0x138] sm:$0xff]  ;;  %v2640_v26 = vld [vmem:[%s5663_s0 + $0x108] sm:$0xff]  ;;  %v2658_v27 = vld [vmem:[%s5663_s0 + $0x140] sm:$0xff] }
  0x19   :  { %3118 = vmatprep.mubr.msk.f32.mxu1 %vm3873_vm0, %v5668_v8  ;;  %v2641_v28 = vld [vmem:[%s5663_s0 + $0x110] sm:$0x1]  ;;  %v2659_v29 = vld [vmem:[%s5663_s0 + $0x148] sm:$0x1]  ;;  %v2672_v32 = vld [vmem:[%s5663_s0 + $0x158] sm:$0xff] }
  0x1a   :  { %v2671_v30 = vld [vmem:[%s5663_s0 + $0x150] sm:$0xff]  ;;  %v2689_v31 = vld [vmem:[%s5663_s0 + $0x188] sm:$0xff]  ;;  %v2676_v40 = vld [vmem:[%s5663_s0 + $0x178] sm:$0xff] }
  0x1b   :  { %3090 = vmatmul.mubr.msk.f32.gmra.mrb[8].mxu0 %vm25_vm1, %v18_v34  ;;  %v2690_v33 = vld [vmem:[%s5663_s0 + $0x190] sm:$0xff]  ;;  %v2673_v34 = vld [vmem:[%s5663_s0 + $0x160] sm:$0xff]  ;;  %v2695_v43 = vld [vmem:[%s5663_s0 + $0x1b8] sm:$0x1] }
  0x1c   :  { %3119 = vmatmul.mubr.msk.f32.gmra.mrb[8].mxu1 %vm25_vm1, %v2585_v35  ;;  %3092 = vmatprep.mubr.msk.f32.mxu0 %vm3873_vm0, %v5668_v8  ;;  %v2691_v35 = vld [vmem:[%s5663_s0 + $0x198] sm:$0xff]  ;;  %v2694_v41 = vld [vmem:[%s5663_s0 + $0x1b0] sm:$0xff]  ;;  %v2677_v42 = vld [vmem:[%s5663_s0 + $0x180] sm:$0x1] }
  0x1d   :  { %3121 = vmatprep.mubr.msk.f32.mxu1 %vm3873_vm0, %v5668_v8  ;;  %v2716_v48 = vld [vmem:[%s5664_s2 + $0xe8] sm:$0xff]  ;;  %v1213_v50 = vld [vmem:[%s5664_s2 + $0x10] sm:$0xff]  ;;  %v1214_v51 = vld [vmem:[%s5664_s2 + $0x18] sm:$0xff] }
  0x1f   :  { %3093 = vmatmul.mubr.msk.f32.gmra.mrb[10].mxu0 %vm25_vm1, %v19_v36  ;;  %v2674_v36 = vld [vmem:[%s5663_s0 + $0x168] sm:$0xff] }
  0x20   :  { %3122 = vmatmul.mubr.msk.f32.gmra.mrb[10].mxu1 %vm25_vm1, %v2586_v37  ;;  %3095 = vmatprep.mubr.msk.f32.mxu0 %vm3873_vm0, %v5668_v8  ;;  %v2692_v37 = vld [vmem:[%s5663_s0 + $0x1a0] sm:$0xff] }
  0x21   :  { %3124 = vmatprep.mubr.msk.f32.mxu1 %vm3873_vm0, %v5668_v8 }
  0x23   :  { %3096 = vmatmul.mubr.msk.f32.gmra.mrb[12].mxu0 %vm25_vm1, %v20_v38  ;;  %v2675_v38 = vld [vmem:[%s5663_s0 + $0x170] sm:$0xff] }
  0x24   :  { %3125 = vmatmul.mubr.msk.f32.gmra.mrb[12].mxu1 %vm25_vm1, %v2587_v39  ;;  %3135 = vmatprep.mubr.msk.f32.mxu0 %vm3873_vm0, %v5668_v8  ;;  %v2693_v39 = vld [vmem:[%s5663_s0 + $0x1a8] sm:$0xff] }
  0x25   :  { %3164 = vmatprep.mubr.msk.f32.mxu1 %vm3873_vm0, %v5668_v8 }
  0x27   :  { %3136 = vmatmul.mubr.msk.f32.vlgmr.msra.gmra.mrb[14].mxu0 %vm25_vm1, %v2599_v44  ;;  %v1211_v44 = vld [vmem:[%s5664_s2] sm:$0xff] }
  0x28   :  { %3165 = vmatmul.mubr.msk.f32.vlgmr.msra.gmra.mrb[14].mxu1 %vm25_vm1, %v2617_v46  ;;  %3607 = vmatpush3.bf16.msra.mxu0 %v3606_v45  ;;  %v1212_v45 = vld [vmem:[%s5664_s2 + $0x8] sm:$0xff]  ;;  %v2715_v46 = vld [vmem:[%s5664_s2 + $0xe0] sm:$0xff] }
  0x29   :  { %3138 = vmatprep.mubr.msk.f32.mxu0 %vm3873_vm0, %v5668_v8  ;;  %3167 = vmatprep.mubr.msk.f32.mxu1 %vm3873_vm0, %v5668_v8  ;;  %v3630_v47 = vpack.c.bf16 %v1212_v45, %v1211_v44 }
  0x2a   :  { %3608 = vmatprep.subr.bf16.mxu0 %v5666_v0  ;;  %3613 = vmatpush3.bf16.msra.mxu1 %v3612_v49  ;;  %v3639_v49 = vpack.c.bf16 %v2716_v48, %v2715_v46 }
  0x2b   :  { %3139 = vmatmul.mubr.msk.f32.gmra.mrb[16].mxu0 %vm25_vm1, %v2600_v52  ;;  %3614 = vmatprep.subr.bf16.mxu1 %v5666_v0  ;;  %v2717_v52 = vld [vmem:[%s5664_s2 + $0xf0] sm:$0xff] }
  0x2c   :  { %3168 = vmatmul.mubr.msk.f32.gmra.mrb[16].mxu1 %vm25_vm1, %v2618_v53  ;;  %3141 = vmatprep.mubr.msk.f32.mxu0 %vm3873_vm0, %v5668_v8  ;;  %v3633_v53 = vpack.c.bf16 %v1214_v51, %v1213_v50 }
  0x2d   :  { %3170 = vmatprep.mubr.msk.f32.mxu1 %vm3873_vm0, %v5668_v8  ;;  %3610 = vmatpush3.bf16.msra.mxu0 %v3609_v54  ;;  %v2718_v54 = vld [vmem:[%s5664_s2 + $0xf8] sm:$0xff] }
  0x2e   :  { %3616 = vmatpush3.bf16.msra.mxu1 %v3615_v55  ;;  %3617 = vmatprep.subr.bf16.mxu0 %v5666_v0  ;;  %v3642_v55 = vpack.c.bf16 %v2718_v54, %v2717_v52 }
  0x2f   :  { %3142 = vmatmul.mubr.msk.f32.gmra.mrb[18].mxu0 %vm25_vm1, %v2601_v56  ;;  %3623 = vmatprep.subr.bf16.mxu1 %v5666_v0  ;;  %v1215_v56 = vld [vmem:[%s5664_s2 + $0x20] sm:$0xff] }
  0x30   :  { %3171 = vmatmul.mubr.msk.f32.gmra.mrb[18].mxu1 %vm25_vm1, %v2619_v57  ;;  %3144 = vmatprep.mubr.msk.f32.mxu0 %vm3873_vm0, %v5668_v8  ;;  %v1216_v57 = vld [vmem:[%s5664_s2 + $0x28] sm:$0xff] }
  0x31   :  { %3173 = vmatprep.mubr.msk.f32.mxu1 %vm3873_vm0, %v5668_v8 }
  0x33   :  { %3145 = vmatmul.mubr.msk.f32.gmra.mrb[20].mxu0 %vm25_vm1, %v2602_v58  ;;  %v2719_v58 = vld [vmem:[%s5664_s2 + $0x100] sm:$0xff] }
  0x34   :  { %3174 = vmatmul.mubr.msk.f32.gmra.mrb[20].mxu1 %vm25_vm1, %v2620_v59  ;;  %3147 = vmatprep.mubr.msk.f32.mxu0 %vm3873_vm0, %v5668_v8  ;;  %v3636_v59 = vpack.c.bf16 %v1216_v57, %v1215_v56  ;;  %v4434_v57 = vld [vmem:[%s5664_s2 + $0x38] sm:$0xff] }
  0x35   :  { %3176 = vmatprep.mubr.msk.f32.mxu1 %vm3873_vm0, %v5668_v8 }
  0x37   :  { %3148 = vmatmul.mubr.msk.f32.gmra.mrb[22].mxu0 %vm25_vm1, %v2603_v60  ;;  %v2720_v60 = vld [vmem:[%s5664_s2 + $0x108] sm:$0xff] }
  0x38   :  { %3177 = vmatmul.mubr.msk.f32.gmra.mrb[22].mxu1 %vm25_vm1, %v2621_v61  ;;  %3150 = vmatprep.mubr.msk.f32.mxu0 %vm3873_vm0, %v5668_v8  ;;  %v3645_v61 = vpack.c.bf16 %v2720_v60, %v2719_v58  ;;  %v4439_v58 = vld [vmem:[%s5664_s2 + $0x40] sm:$0xff] }
  0x39   :  { %3179 = vmatprep.mubr.msk.f32.mxu1 %vm3873_vm0, %v5668_v8 }
  0x3b   :  { %3151 = vmatmul.mubr.msk.f32.gmra.mrb[24].mxu0 %vm25_vm1, %v2604_v62  ;;  %v1217_v62 = vld [vmem:[%s5664_s2 + $0x30] sm:$0x1] }
  0x3c   :  { %3180 = vmatmul.mubr.msk.f32.gmra.mrb[24].mxu1 %vm25_vm1, %v2622_v63  ;;  %3153 = vmatprep.mubr.msk.f32.mxu0 %vm3873_vm0, %v5668_v8  ;;  %v2721_v63 = vld [vmem:[%s5664_s2 + $0x110] sm:$0x1] }
  0x3d   :  { %3182 = vmatprep.mubr.msk.f32.mxu1 %vm3873_vm0, %v5668_v8 }
  0x3f   :  { %3154 = vmatmul.mubr.msk.f32.gmra.mrb[26].mxu0 %vm25_vm1, %v2605_v1 }
  0x40   :  { %3183 = vmatmul.mubr.msk.f32.gmra.mrb[26].mxu1 %vm25_vm1, %v2623_v2  ;;  %3193 = vmatprep.mubr.msk.f32.mxu0 %vm3873_vm0, %v5668_v8 }
  0x41   :  { %3222 = vmatprep.mubr.msk.f32.mxu1 %vm3873_vm0, %v5668_v8 }
  0x43   :  { %3194 = vmatmul.mubr.msk.f32.vlgmr.msra.gmra.mrb[28].mxu0 %vm25_vm1, %v2635_v7 }
  0x44   :  { %3223 = vmatmul.mubr.msk.f32.vlgmr.msra.gmra.mrb[28].mxu1 %vm25_vm1, %v2653_v9  ;;  %3196 = vmatprep.mubr.msk.f32.mxu0 %vm3873_vm0, %v5668_v8 }
  0x45   :  { %3225 = vmatprep.mubr.msk.f32.mxu1 %vm3873_vm0, %v5668_v8  ;;  %3619 = vmatpush3.bf16.msra.mxu0 %v3618_v10 }
  0x46   :  { %3625 = vmatpush3.bf16.msra.mxu1 %v3624_v11  ;;  %3620 = vmatprep.subr.bf16.mxu0 %v5666_v0 }
  0x47   :  { %3197 = vmatmul.mubr.msk.f32.gmra.mrb[30].mxu0 %vm25_vm1, %v2636_v16  ;;  %3626 = vmatprep.subr.bf16.mxu1 %v5666_v0 }
  0x48   :  { %3226 = vmatmul.mubr.msk.f32.gmra.mrb[30].mxu1 %vm25_vm1, %v2654_v17  ;;  %3199 = vmatprep.mubr.msk.f32.mxu0 %vm3873_vm0, %v5668_v8 }
  0x49   :  { %3228 = vmatprep.mubr.msk.f32.mxu1 %vm3873_vm0, %v5668_v8  ;;  %3622 = vmatpush3.bf16.msra.mxu0 %v3621_v18 }
  0x4a   :  { %3628 = vmatpush3.bf16.msra.mxu1 %v3627_v19  ;;  %3629 = vmatprep.subr.bf16.mxu0 %v5666_v0 }
  0x4b   :  { %3200 = vmatmul.mubr.msk.f32.gmra.mrb[32].mxu0 %vm25_vm1, %v2637_v20  ;;  %3638 = vmatprep.subr.bf16.mxu1 %v5666_v0 }
  0x4c   :  { %3229 = vmatmul.mubr.msk.f32.gmra.mrb[32].mxu1 %vm25_vm1, %v2655_v21  ;;  %3202 = vmatprep.mubr.msk.f32.mxu0 %vm3873_vm0, %v5668_v8 }
  0x4d   :  { %3231 = vmatprep.mubr.msk.f32.mxu1 %vm3873_vm0, %v5668_v8 }
  0x4f   :  { %3203 = vmatmul.mubr.msk.f32.gmra.mrb[34].mxu0 %vm25_vm1, %v2638_v22 }
  0x50   :  { %3232 = vmatmul.mubr.msk.f32.gmra.mrb[34].mxu1 %vm25_vm1, %v2656_v23  ;;  %3205 = vmatprep.mubr.msk.f32.mxu0 %vm3873_vm0, %v5668_v8 }
  0x51   :  { %3234 = vmatprep.mubr.msk.f32.mxu1 %vm3873_vm0, %v5668_v8 }
  0x53   :  { %3206 = vmatmul.mubr.msk.f32.gmra.mrb[36].mxu0 %vm25_vm1, %v2639_v24 }
  0x54   :  { %3235 = vmatmul.mubr.msk.f32.gmra.mrb[36].mxu1 %vm25_vm1, %v2657_v25  ;;  %3208 = vmatprep.mubr.msk.f32.mxu0 %vm3873_vm0, %v5668_v8 }
  0x55   :  { %3237 = vmatprep.mubr.msk.f32.mxu1 %vm3873_vm0, %v5668_v8 }
  0x57   :  { %3209 = vmatmul.mubr.msk.f32.gmra.mrb[38].mxu0 %vm25_vm1, %v2640_v26 }
  0x58   :  { %3238 = vmatmul.mubr.msk.f32.gmra.mrb[38].mxu1 %vm25_vm1, %v2658_v27  ;;  %3211 = vmatprep.mubr.msk.f32.mxu0 %vm3873_vm0, %v5668_v8 }
  0x59   :  { %3240 = vmatprep.mubr.msk.f32.mxu1 %vm3873_vm0, %v5668_v8 }
  0x5b   :  { %3212 = vmatmul.mubr.msk.f32.gmra.mrb[40].mxu0 %vm25_vm1, %v2641_v28 }
  0x5c   :  { %3241 = vmatmul.mubr.msk.f32.gmra.mrb[40].mxu1 %vm25_vm1, %v2659_v29  ;;  %3251 = vmatprep.mubr.msk.f32.mxu0 %vm3873_vm0, %v5668_v8 }
  0x5d   :  { %3280 = vmatprep.mubr.msk.f32.mxu1 %vm3873_vm0, %v5668_v8 }
  0x5f   :  { %3252 = vmatmul.mubr.msk.f32.vlgmr.msra.gmra.mrb[42].mxu0 %vm25_vm1, %v2671_v30 }
  0x60   :  { %3281 = vmatmul.mubr.msk.f32.vlgmr.msra.gmra.mrb[42].mxu1 %vm25_vm1, %v2689_v31  ;;  %3254 = vmatprep.mubr.msk.f32.mxu0 %vm3873_vm0, %v5668_v8 }
  0x61   :  { %3283 = vmatprep.mubr.msk.f32.mxu1 %vm3873_vm0, %v5668_v8  ;;  %3631 = vmatpush3.bf16.msra.mxu0 %v3630_v47 }
  0x62   :  { %3640 = vmatpush3.bf16.msra.mxu1 %v3639_v49  ;;  %3632 = vmatprep.subr.bf16.mxu0 %v5666_v0 }
  0x63   :  { %3255 = vmatmul.mubr.msk.f32.gmra.mrb[44].mxu0 %vm25_vm1, %v2672_v32  ;;  %3641 = vmatprep.subr.bf16.mxu1 %v5666_v0 }
  0x64   :  { %3284 = vmatmul.mubr.msk.f32.gmra.mrb[44].mxu1 %vm25_vm1, %v2690_v33  ;;  %3257 = vmatprep.mubr.msk.f32.mxu0 %vm3873_vm0, %v5668_v8 }
  0x65   :  { %3286 = vmatprep.mubr.msk.f32.mxu1 %vm3873_vm0, %v5668_v8  ;;  %3634 = vmatpush3.bf16.msra.mxu0 %v3633_v53 }
  0x66   :  { %3643 = vmatpush3.bf16.msra.mxu1 %v3642_v55  ;;  %3635 = vmatprep.subr.bf16.mxu0 %v5666_v0 }
  0x67   :  { %3258 = vmatmul.mubr.msk.f32.gmra.mrb[46].mxu0 %vm25_vm1, %v2673_v34  ;;  %3644 = vmatprep.subr.bf16.mxu1 %v5666_v0 }
  0x68   :  { %3287 = vmatmul.mubr.msk.f32.gmra.mrb[46].mxu1 %vm25_vm1, %v2691_v35  ;;  %3260 = vmatprep.mubr.msk.f32.mxu0 %vm3873_vm0, %v5668_v8 }
  0x69   :  { %3289 = vmatprep.mubr.msk.f32.mxu1 %vm3873_vm0, %v5668_v8  ;;  %3637 = vmatpush3.bf16.msra.mxu0 %v3636_v59 }
  0x6a   :  { %3646 = vmatpush3.bf16.msra.mxu1 %v3645_v61  ;;  %3313 = vmatprep.subr.mxu0 %v5668_v8 }
  0x6b   :  { %3261 = vmatmul.mubr.msk.f32.gmra.mrb[48].mxu0 %vm25_vm1, %v2674_v36  ;;  %3348 = vmatprep.subr.mxu1 %v5668_v8 }
  0x6c   :  { %3290 = vmatmul.mubr.msk.f32.gmra.mrb[48].mxu1 %vm25_vm1, %v2692_v37  ;;  %3263 = vmatprep.mubr.msk.f32.mxu0 %vm3873_vm0, %v5668_v8 }
  0x6d   :  { %3292 = vmatprep.mubr.msk.f32.mxu1 %vm3873_vm0, %v5668_v8  ;;  %3314 = vmatpush3.msk.msra.mxu0 %vm1240_vm2, %v1217_v62  ;;  %v4450_v62 = vld [vmem:[%s5664_s2 + $0x118] sm:$0xff] }
  0x6e   :  { %3349 = vmatpush3.msk.msra.mxu1 %vm1240_vm2, %v2721_v63  ;;  %3647 = vmatprep.subr.bf16.mxu0 %v5666_v0  ;;  %v4455_v63 = vld [vmem:[%s5664_s2 + $0x120] sm:$0xff] }
  0x6f   :  { %3264 = vmatmul.mubr.msk.f32.gmra.mrb[50].mxu0 %vm25_vm1, %v2675_v38  ;;  %3656 = vmatprep.subr.bf16.mxu1 %v5666_v0 }
  0x70   :  { %3293 = vmatmul.mubr.msk.f32.gmra.mrb[50].mxu1 %vm25_vm1, %v2693_v39  ;;  %3266 = vmatprep.mubr.msk.f32.mxu0 %vm3873_vm0, %v5668_v8 }
  0x71   :  { %3295 = vmatprep.mubr.msk.f32.mxu1 %vm3873_vm0, %v5668_v8 }
  0x73   :  { %3267 = vmatmul.mubr.msk.f32.gmra.mrb[52].mxu0 %vm25_vm1, %v2676_v40 }
  0x74   :  { %3296 = vmatmul.mubr.msk.f32.gmra.mrb[52].mxu1 %vm25_vm1, %v2694_v41  ;;  %3269 = vmatprep.mubr.msk.f32.mxu0 %vm3873_vm0, %v5668_v8 }
  0x75   :  { %3298 = vmatprep.mubr.msk.f32.mxu1 %vm3873_vm0, %v5668_v8 }
  0x77   :  { %3270 = vmatmul.mubr.msk.f32.gmra.mrb[54].mxu0 %vm25_vm1, %v2677_v42 }
  0x78   :  { %3299 = vmatmul.mubr.msk.f32.gmra.mrb[54].mxu1 %vm25_vm1, %v2695_v43  ;;  %3315 = vmatprep.mubr.msk.f32.mxu0 %vm3873_vm0, %v5668_v8 }
  0x79   :  { %3350 = vmatprep.mubr.msk.f32.mxu1 %vm3873_vm0, %v5668_v8 }
  0xde   :  { %v113_v1 = vpop.f32.mrb[0].mxu0 }
  0xdf   :  { %v3079_v2 = vpop.f32.mrb[1].mxu0  ;;  %v254_v3 = vpop.f32.mrb[0].mxu1  ;;  %v4425_v54 = vmul.f32 0.17677669, %v113_v1  ;;  %v4460_v1 = vld [vmem:[%s5664_s2 + $0x48] sm:$0xff] }
  0xe0   :  { %v3108_v4 = vpop.f32.mrb[1].mxu1  ;;  %v4429_v56 = vmul.f32 0.17677669, %v254_v3  ;;  %v4465_v2 = vld [vmem:[%s5664_s2 + $0x50] sm:$0xff]  ;;  %v4470_v3 = vld [vmem:[%s5664_s2 + $0x128] sm:$0xff] }
  0xe1   :  { %v4475_v4 = vld [vmem:[%s5664_s2 + $0x130] sm:$0xff] }
  0xe2   :  { %v118_v5 = vpop.f32.mrb[2].mxu0 }
  0xe3   :  { %v3082_v6 = vpop.f32.mrb[3].mxu0  ;;  %v259_v7 = vpop.f32.mrb[2].mxu1  ;;  %v4427_v55 = vmul.f32 0.17677669, %v118_v5 }
  0xe4   :  { %v3111_v9 = vpop.f32.mrb[3].mxu1  ;;  %v4443_v60 = vmul.f32 0.17677669, %v259_v7 }
  0xe6   :  { %v123_v10 = vpop.f32.mrb[4].mxu0 }
  0xe7   :  { %v3085_v11 = vpop.f32.mrb[5].mxu0  ;;  %v264_v12 = vpop.f32.mrb[4].mxu1  ;;  %v4441_v59 = vmul.f32 0.17677669, %v123_v10  ;;  %v4486_v10 = vld [vmem:[%s5664_s2 + $0x58] sm:$0xff] }
  0xe8   :  { %v3114_v13 = vpop.f32.mrb[5].mxu1  ;;  %v4479_v6 = vmul.f32 0.17677669, %v264_v12  ;;  %v4491_v11 = vld [vmem:[%s5664_s2 + $0x60] sm:$0xff] }
  0xe9   :  { %v4496_v13 = vld [vmem:[%s5664_s2 + $0x138] sm:$0xff] }
  0xea   :  { %v128_v14 = vpop.f32.mrb[6].mxu0 }
  0xeb   :  { %v3088_v15 = vpop.f32.mrb[7].mxu0  ;;  %v269_v16 = vpop.f32.mrb[6].mxu1  ;;  %v4477_v5 = vmul.f32 0.17677669, %v128_v14 }
  0xec   :  { %v3117_v17 = vpop.f32.mrb[7].mxu1  ;;  %v4500_v14 = vmul.f32 0.17677669, %v269_v16 }
  0xed   :  { %v4505_v17 = vld [vmem:[%s5664_s2 + $0x140] sm:$0xff] }
  0xee   :  { %v133_v18 = vpop.f32.mrb[8].mxu0 }
  0xef   :  { %v3091_v19 = vpop.f32.mrb[9].mxu0  ;;  %v274_v20 = vpop.f32.mrb[8].mxu1  ;;  %v4498_v12 = vmul.f32 0.17677669, %v133_v18 }
  0xf0   :  { %v3120_v21 = vpop.f32.mrb[9].mxu1 }
  0xf1   :  { %v4509_v21 = vmul.f32 0.17677669, %v274_v20 }
  0xf2   :  { %v138_v22 = vpop.f32.mrb[10].mxu0 }
  0xf3   :  { %v3094_v23 = vpop.f32.mrb[11].mxu0  ;;  %v279_v24 = vpop.f32.mrb[10].mxu1  ;;  %v4507_v19 = vmul.f32 0.17677669, %v138_v22 }
  0xf4   :  { %v3123_v25 = vpop.f32.mrb[11].mxu1  ;;  %v4511_v23 = vmul.f32 0.17677669, %v279_v24  ;;  %v4528_v24 = vld [vmem:[%s5664_s2 + $0x70] sm:$0xff] }
  0xf5   :  { %5678 = vst [vmem:[#allocation2_spill] sm:$0xff] %v4528_v24 }
  0xf6   :  { %v143_v26 = vpop.f32.mrb[12].mxu0 }
  0xf7   :  { %v3097_v27 = vpop.f32.mrb[13].mxu0  ;;  %v284_v28 = vpop.f32.mrb[12].mxu1  ;;  %v4513_v25 = vmul.f32 0.17677669, %v143_v26  ;;  %v4533_v26 = vld [vmem:[%s5664_s2 + $0x78] sm:$0xff] }
  0xf8   :  { %v3126_v29 = vpop.f32.mrb[13].mxu1  ;;  %v4515_v27 = vmul.f32 0.17677669, %v284_v28  ;;  %5679 = vst [vmem:[#allocation3_spill] sm:$0xff] %v4533_v26 }
  0xfa   :  { %v4401_v30 = vpop.f32.mrb[14].mxu0 }
  0xfb   :  { %v3137_v31 = vpop.f32.mrb[15].mxu0  ;;  %v4403_v32 = vpop.f32.mrb[14].mxu1  ;;  %v4536_v28 = vmul.f32 0.17677669, %v4401_v30 }
  0xfc   :  { %v3166_v33 = vpop.f32.mrb[15].mxu1 }
  0xfe   :  { %v4405_v34 = vpop.f32.mrb[16].mxu0 }
  0xff   :  { %v3140_v35 = vpop.f32.mrb[17].mxu0  ;;  %v4407_v36 = vpop.f32.mrb[16].mxu1 }
 0x100   :  { %v3169_v37 = vpop.f32.mrb[17].mxu1 }
 0x102   :  { %v4409_v38 = vpop.f32.mrb[18].mxu0 }
 0x103   :  { %v3143_v39 = vpop.f32.mrb[19].mxu0  ;;  %v4411_v40 = vpop.f32.mrb[18].mxu1 }
 0x104   :  { %v3172_v41 = vpop.f32.mrb[19].mxu1 }
 0x106   :  { %v4413_v42 = vpop.f32.mrb[20].mxu0 }
 0x107   :  { %v3146_v43 = vpop.f32.mrb[21].mxu0  ;;  %v4415_v44 = vpop.f32.mrb[20].mxu1 }
 0x108   :  { %v3175_v45 = vpop.f32.mrb[21].mxu1  ;;  %v4576_v43 = vmul.f32 0.17677669, %v4415_v44 }
 0x109   :  { %v4543_v45 = vmul.f32 0.17677669, %v4405_v34 }
 0x10a   :  { %v4417_v46 = vpop.f32.mrb[22].mxu0 }
 0x10b   :  { %v3149_v47 = vpop.f32.mrb[23].mxu0  ;;  %v4419_v48 = vpop.f32.mrb[22].mxu1  ;;  %v4580_v0 = vmul.f32 0.17677669, %v4417_v46 }
 0x10c   :  { %v3178_v49 = vpop.f32.mrb[23].mxu1  ;;  %v4546_v47 = vmul.f32 0.17677669, %v4403_v32 }
 0x10d   :  { %v4549_v49 = vmul.f32 0.17677669, %v4407_v36 }
 0x10e   :  { %v4421_v50 = vpop.f32.mrb[24].mxu0 }
 0x10f   :  { %v3152_v51 = vpop.f32.mrb[25].mxu0  ;;  %v4423_v52 = vpop.f32.mrb[24].mxu1 }
 0x110   :  { %v3181_v53 = vpop.f32.mrb[25].mxu1  ;;  %v4555_v51 = vld [vmem:[%s5664_s2 + $0x150] sm:$0xff] }
 0x111   :  { %5680 = vst [vmem:[#allocation4_spill] sm:$0xff] %v4555_v51  ;;  %v4558_v53 = vmul.f32 0.17677669, %v4409_v38 }
 0x112   :  { %v4445_v61 = vpop.f32.mrb[26].mxu0 }
 0x113   :  { %v3155_v7 = vpop.f32.mrb[27].mxu0  ;;  %v4481_v9 = vpop.f32.mrb[26].mxu1 }
 0x114   :  { %v3184_v15 = vpop.f32.mrb[27].mxu1  ;;  %v4561_v7 = vmul.f32 0.17677669, %v4411_v40 }
 0x115   :  { %v4569_v15 = vld [vmem:[%s5664_s2 + $0x158] sm:$0xff] }
 0x116   :  { %v677_v18 = vpop.f32.mrb[28].mxu0  ;;  %5681 = vst [vmem:[#allocation5_spill] sm:$0xff] %v4569_v15 }
 0x117   :  { %v711_v29 = vmul.f32 0.17677669, %v677_v18  ;;  %v818_v31 = vpop.f32.mrb[28].mxu1  ;;  %v3195_v33 = vpop.f32.mrb[29].mxu0  ;;  %v4572_v18 = vmul.f32 0.17677669, %v4413_v42 }
 0x118   :  { %v852_v37 = vmul.f32 0.17677669, %v818_v31  ;;  %v3224_v39 = vpop.f32.mrb[29].mxu1 }
 0x119   :  { %v1141_v30 = vmax.f32 %v4425_v54, %v711_v29 }
 0x11a   :  { %v1499_v34 = vmax.f32 %v4429_v56, %v852_v37  ;;  %v682_v32 = vpop.f32.mrb[30].mxu0 }
 0x11b   :  { %v1148_v38 = vsub.f32 %v4425_v54, %v1141_v30  ;;  %v1169_v31 = vsub.f32 %v711_v29, %v1141_v30  ;;  %v712_v33 = vmul.f32 0.17677669, %v682_v32  ;;  %v823_v40 = vpop.f32.mrb[30].mxu1  ;;  %v3198_v39 = vpop.f32.mrb[31].mxu0 }
 0x11c   :  { %v1506_v41 = vsub.f32 %v4429_v56, %v1499_v34  ;;  %v1527_v36 = vsub.f32 %v852_v37, %v1499_v34  ;;  %v853_v22 = vmul.f32 0.17677669, %v823_v40  ;;  %v3227_v20 = vpop.f32.mrb[31].mxu1 }
 0x11d   :  { %v1155_v8 = vmul.f32 1.442695, %v1148_v38  ;;  %v1176_v42 = vmul.f32 1.442695, %v1169_v31  ;;  %v1142_v35 = vmax.f32 %v4427_v55, %v712_v33 }
 0x11e   :  { %v1513_v54 = vmul.f32 1.442695, %v1506_v41  ;;  %v1534_v29 = vmul.f32 1.442695, %v1527_v36  ;;  %v1500_v30 = vmax.f32 %v4443_v60, %v853_v22  ;;  %v687_v32 = vpop.f32.mrb[32].mxu0 }
 0x11f   :  { %3704 = vpow2.f32 %v1155_v8  ;;  %v1149_v56 = vsub.f32 %v4427_v55, %v1142_v35  ;;  %v1170_v37 = vsub.f32 %v712_v33, %v1142_v35  ;;  %v713_v20 = vmul.f32 0.17677669, %v687_v32  ;;  %v828_v34 = vpop.f32.mrb[32].mxu1  ;;  %v3201_v46 = vpop.f32.mrb[33].mxu0 }
 0x120   :  { %3706 = vpow2.f32 %v1176_v42  ;;  %v1507_v38 = vsub.f32 %v4443_v60, %v1500_v30  ;;  %v1528_v31 = vsub.f32 %v853_v22, %v1500_v30  ;;  %v854_v40 = vmul.f32 0.17677669, %v828_v34  ;;  %v3230_v41 = vpop.f32.mrb[33].mxu1 }
 0x121   :  { %3708 = vpow2.f32 %v1513_v54  ;;  %v1157_v36 = vmul.f32 1.442695, %v1149_v56  ;;  %v1178_v39 = vmul.f32 1.442695, %v1170_v37  ;;  %v1143_v16 = vmax.f32 %v4441_v59, %v713_v20 }
 0x122   :  { %3710 = vpow2.f32 %v1534_v29  ;;  %v1515_v44 = vmul.f32 1.442695, %v1507_v38  ;;  %v1536_v8 = vmul.f32 1.442695, %v1528_v31  ;;  %v1501_v55 = vmax.f32 %v4479_v6, %v854_v40  ;;  %v692_v35 = vpop.f32.mrb[34].mxu0 }
 0x123   :  { %3712 = vpow2.f32 %v1157_v36  ;;  %v1150_v33 = vsub.f32 %v4441_v59, %v1143_v16  ;;  %v1171_v42 = vsub.f32 %v713_v20, %v1143_v16  ;;  %v714_v32 = vmul.f32 0.17677669, %v692_v35  ;;  %v833_v60 = vpop.f32.mrb[34].mxu1  ;;  %v3204_v22 = vpop.f32.mrb[35].mxu0 }
 0x124   :  { %3714 = vpow2.f32 %v1178_v39  ;;  %v1508_v54 = vsub.f32 %v4479_v6, %v1501_v55  ;;  %v1529_v30 = vsub.f32 %v854_v40, %v1501_v55  ;;  %v855_v56 = vmul.f32 0.17677669, %v833_v60  ;;  %v3233_v37 = vpop.f32.mrb[35].mxu1 }
 0x125   :  { %3716 = vpow2.f32 %v1515_v44  ;;  %v1159_v29 = vmul.f32 1.442695, %v1150_v33  ;;  %v1180_v34 = vmul.f32 1.442695, %v1171_v42  ;;  %v1144_v46 = vmax.f32 %v4477_v5, %v714_v32 }
 0x126   :  { %3718 = vpow2.f32 %v1536_v8  ;;  %v1517_v38 = vmul.f32 1.442695, %v1508_v54  ;;  %v1538_v31 = vmul.f32 1.442695, %v1529_v30  ;;  %v1502_v59 = vmax.f32 %v4500_v14, %v855_v56  ;;  %v697_v16 = vpop.f32.mrb[36].mxu0 }
 0x127   :  { %3720 = vpow2.f32 %v1159_v29  ;;  %v1151_v20 = vsub.f32 %v4477_v5, %v1144_v46  ;;  %v1172_v41 = vsub.f32 %v714_v32, %v1144_v46  ;;  %v715_v36 = vmul.f32 0.17677669, %v697_v16  ;;  %v838_v6 = vpop.f32.mrb[36].mxu1  ;;  %v3207_v40 = vpop.f32.mrb[37].mxu0 }
 0x128   :  { %3722 = vpow2.f32 %v1180_v34  ;;  %v1509_v44 = vsub.f32 %v4500_v14, %v1502_v59  ;;  %v1530_v39 = vsub.f32 %v855_v56, %v1502_v59  ;;  %v856_v55 = vmul.f32 0.17677669, %v838_v6  ;;  %v3236_v35 = vpop.f32.mrb[37].mxu1 }
 0x129   :  { %v4596_v33 = vpop.eup %3704  ;;  %3724 = vpow2.f32 %v1517_v38  ;;  %v1161_v8 = vmul.f32 1.442695, %v1151_v20  ;;  %v1182_v42 = vmul.f32 1.442695, %v1172_v41  ;;  %v1145_v60 = vmax.f32 %v4498_v12, %v715_v36 }
 0x12a   :  { %v4599_v22 = vpop.eup %3706  ;;  %3726 = vpow2.f32 %v1538_v31  ;;  %v1519_v5 = vmul.f32 1.442695, %v1509_v44  ;;  %v1540_v32 = vmul.f32 1.442695, %v1530_v39  ;;  %v1503_v54 = vmax.f32 %v4509_v21, %v856_v55  ;;  %v702_v30 = vpop.f32.mrb[38].mxu0 }
 0x12b   :  { %v4602_v37 = vpop.eup %3708  ;;  %v1190_v14 = vadd.f32 %v4599_v22, %v4596_v33  ;;  %3728 = vpow2.f32 %v1161_v8  ;;  %v1152_v56 = vsub.f32 %v4498_v12, %v1145_v60  ;;  %v1173_v29 = vsub.f32 %v715_v36, %v1145_v60  ;;  %v843_v34 = vpop.f32.mrb[38].mxu1 }
 0x12c   :  { %v3210_v46 = vpop.f32.mrb[39].mxu0  ;;  %v4607_v38 = vpop.eup %3710  ;;  %3730 = vpow2.f32 %v1182_v42  ;;  %v1510_v31 = vsub.f32 %v4509_v21, %v1503_v54  ;;  %v1531_v59 = vsub.f32 %v856_v55, %v1503_v54  ;;  %v716_v16 = vmul.f32 0.17677669, %v702_v30 }
 0x12d   :  { %v3239_v20 = vpop.f32.mrb[39].mxu1  ;;  %v4610_v41 = vpop.eup %3712  ;;  %v4613_v6 = vmul.f32 0.17677669, %v4421_v50  ;;  %v4616_v40 = vmul.f32 0.17677669, %v4419_v48  ;;  %3732 = vrcp.f32 %v1190_v14  ;;  %v1548_v12 = vadd.f32 %v4607_v38, %v4602_v37 }
 0x12e   :  { %v4620_v36 = vpop.eup %3714  ;;  %3734 = vpow2.f32 %v1519_v5  ;;  %v1163_v44 = vmul.f32 1.442695, %v1152_v56  ;;  %v1184_v21 = vmul.f32 1.442695, %v1173_v29  ;;  %v1146_v39 = vmax.f32 %v4507_v19, %v716_v16  ;;  %v707_v55 = vpop.f32.mrb[40].mxu0 }
 0x12f   :  { %v4623_v35 = vpop.eup %3716  ;;  %3736 = vrcp.f32 %v1548_v12  ;;  %v1191_v50 = vadd.f32 %v4620_v36, %v4610_v41  ;;  %v857_v48 = vmul.f32 0.17677669, %v843_v34  ;;  %v717_v8 = vmul.f32 0.17677669, %v707_v55  ;;  %v848_v42 = vpop.f32.mrb[40].mxu1 }
 0x130   :  { %5682 = vst [vmem:[#allocation6_spill] sm:$0xff] %v4623_v35  ;;  %v3213_v60 = vpop.f32.mrb[41].mxu0  ;;  %v4627_v54 = vpop.eup %3718  ;;  %3738 = vpow2.f32 %v1540_v32  ;;  %v1153_v5 = vsub.f32 %v4507_v19, %v1146_v39  ;;  %v1174_v30 = vsub.f32 %v716_v16, %v1146_v39  ;;  %v4630_v14 = vmul.f32 0.17677669, %v848_v42 }
 0x131   :  { %5683 = vst [vmem:[#allocation7_spill] sm:$0xff] %v4627_v54  ;;  %v3242_v56 = vpop.f32.mrb[41].mxu1  ;;  %v4632_v29 = vpop.eup %3720  ;;  %3740 = vrcp.f32 %v1191_v50  ;;  %v1549_v46 = vadd.f32 %v4627_v54, %v4623_v35  ;;  %v1504_v34 = vmax.f32 %v4511_v23, %v857_v48  ;;  %v1147_v20 = vmax.f32 %v4513_v25, %v717_v8 }
 0x132   :  { %v4638_v12 = vpop.eup %3722  ;;  %3742 = vpow2.f32 %v1163_v44  ;;  %v1521_v32 = vmul.f32 1.442695, %v1510_v31  ;;  %v1542_v55 = vmul.f32 1.442695, %v1531_v59  ;;  %v4642_v19 = vmax.f32 %v4515_v27, %v4630_v14  ;;  %v959_v16 = vpop.f32.mrb[42].mxu0 }
 0x133   :  { %v4644_v39 = vpop.eup %3724  ;;  %3744 = vrcp.f32 %v1549_v46  ;;  %v1192_v50 = vadd.f32 %v4638_v12, %v4632_v29  ;;  %v1511_v42 = vsub.f32 %v4511_v23, %v1504_v34  ;;  %v1532_v60 = vsub.f32 %v857_v48, %v1504_v34  ;;  %v1100_v56 = vpop.f32.mrb[42].mxu1 }
 0x134   :  { %5684 = vst [vmem:[#allocation8_spill] sm:$0xff] %v4644_v39  ;;  %v3253_v51 = vpop.f32.mrb[43].mxu0  ;;  %v4649_v15 = vpop.eup %3726  ;;  %3746 = vpow2.f32 %v1184_v21  ;;  %v1154_v31 = vsub.f32 %v4513_v25, %v1147_v20  ;;  %v1175_v59 = vsub.f32 %v717_v8, %v1147_v20  ;;  %v1165_v23 = vmul.f32 1.442695, %v1153_v5 }
 0x135   :  { %5685 = vst [vmem:[#allocation9_spill] sm:$0xff] %v4649_v15  ;;  %v3282_v24 = vpop.f32.mrb[43].mxu1  ;;  %v4654_v26 = vpop.eup %3728  ;;  %3748 = vrcp.f32 %v1192_v50  ;;  %v1550_v46 = vadd.f32 %v4649_v15, %v4644_v39  ;;  %v1186_v48 = vmul.f32 1.442695, %v1174_v30  ;;  %v1523_v51 = vmul.f32 1.442695, %v1511_v42 }
 0x136   :  { %v4658_v34 = vpop.eup %3730  ;;  %3750 = vpow2.f32 %v1521_v32  ;;  %v1544_v21 = vmul.f32 1.442695, %v1532_v60  ;;  %v1167_v54 = vmul.f32 1.442695, %v1154_v31  ;;  %v1533_v24 = vsub.f32 %v4630_v14, %v4642_v19  ;;  %v964_v50 = vpop.f32.mrb[44].mxu0 }
 0x137   :  { %v3733_v25 = vpop.eup %3732  ;;  %3752 = vrcp.f32 %v1550_v46  ;;  %v1193_v8 = vadd.f32 %v4658_v34, %v4654_v26  ;;  %v4664_v20 = vmul.f32 0.17677669, %v959_v16  ;;  %v1105_v44 = vpop.f32.mrb[44].mxu1  ;;  %v4670_v42 = vmul.f32 0.17677669, %v1100_v56 }
 0x138   :  { %v4666_v5 = vpop.eup %3734  ;;  %v1198_v30 = vmul.f32 %v3733_v25, %v4596_v33  ;;  %v1352_v32 = vmul.f32 %v3733_v25, %v4599_v22  ;;  %3754 = vpow2.f32 %v1542_v55  ;;  %v3256_v60 = vpop.f32.mrb[45].mxu0  ;;  %v1188_v15 = vmul.f32 1.442695, %v1175_v59 }
 0x139   :  { %v3285_v31 = vpop.f32.mrb[45].mxu1  ;;  %v3737_v46 = vpop.eup %3736  ;;  %3756 = vrcp.f32 %v1193_v8  ;;  %v1856_v14 = vmax.f32 %v4536_v28, %v4664_v20  ;;  %v4674_v16 = vmul.f32 0.17677669, %v964_v50  ;;  %v4686_v22 = vmax.f32 %v4546_v47, %v4670_v42 }
 0x13a   :  { %v4676_v39 = vpop.eup %3738  ;;  %v4679_v35 = vmul.f32 %v3737_v46, %v4602_v37  ;;  %v4682_v33 = vmul.f32 %v3737_v46, %v4607_v38  ;;  %3758 = vpow2.f32 %v1165_v23  ;;  %3316 = vmatmul.mubr.msk.f32.vlgmr.msra.gmra.mrb[56].mxu0 %vm1218_vm3, %v1198_v30  ;;  %3351 = vmatmul.mubr.msk.f32.vlgmr.msra.gmra.mrb[56].mxu1 %vm1218_vm3, %v1352_v32  ;;  %v969_v55 = vpop.f32.mrb[46].mxu0  ;;  %v5686_v25 = vpack.c.bf16 %v4439_v58, %v4434_v57 }
 0x13b   :  { %v4690_v56 = vpop.eup %3740  ;;  %v1551_v59 = vadd.f32 %v4676_v39, %v4666_v5  ;;  %3760 = vpow2.f32 %v1186_v48  ;;  %v1863_v37 = vsub.f32 %v4536_v28, %v1856_v14  ;;  %v1884_v38 = vsub.f32 %v4664_v20, %v1856_v14  ;;  %v1110_v23 = vpop.f32.mrb[46].mxu1 }
 0x13c   :  { %3649 = vmatpush3.bf16.msra.mxu0 %v5686_v25  ;;  %v5687_v8 = vpack.c.bf16 %v4455_v63, %v4450_v62  ;;  %v3259_v50 = vpop.f32.mrb[47].mxu0  ;;  %v4702_v30 = vpop.eup %3742  ;;  %3762 = vpow2.f32 %v1523_v51  ;;  %v2220_v48 = vsub.f32 %v4546_v47, %v4686_v22  ;;  %v2241_v28 = vsub.f32 %v4670_v42, %v4686_v22 }
 0x13d   :  { %v4710_v20 = vmax.f32 %v4543_v45, %v4674_v16  ;;  %v5688_v57 = vmov 0.0   ;;  %v3288_v58 = vpop.f32.mrb[47].mxu1  ;;  %v4716_v62 = vpop.eup %3744  ;;  %v4719_v63 = vmul.f32 0.17677669, %v4445_v61  ;;  %v4722_v47 = vmul.f32 0.17677669, %v4423_v52 }
 0x13e   :  { %3658 = vmatpush3.bf16.msra.mxu1 %v5687_v8  ;;  %3318 = vmatprep.mubr.msk.f32.mxu0 %vm3873_vm0, %v5688_v57  ;;  %3764 = vrcp.f32 %v1551_v59  ;;  %v4724_v51 = vmul.f32 0.17677669, %v1105_v44  ;;  %v5689_v32 = vmov 0.0|0.0   ;;  %v4728_v42 = vpop.eup %3746  ;;  %v5690_v60 = vsub.f32 %v4515_v27, %v4642_v19  ;;  %v974_v52 = vpop.f32.mrb[48].mxu0 }
 0x13f   :  { %3353 = vmatprep.mubr.msk.f32.mxu1 %vm3873_vm0, %v5688_v57  ;;  %3650 = vmatprep.subr.bf16.mxu0 %v5689_v32  ;;  %3766 = vpow2.f32 %v1544_v21  ;;  %v1546_v46 = vmul.f32 1.442695, %v1533_v24  ;;  %v1864_v61 = vsub.f32 %v4543_v45, %v4710_v20  ;;  %v4735_v14 = vpop.eup %3748  ;;  %v1194_v44 = vadd.f32 %v4728_v42, %v4702_v30  ;;  %v4745_v27 = vpop.f32.mrb[48].mxu1 }
 0x140   :  { %3659 = vmatprep.subr.bf16.mxu1 %v5689_v32  ;;  %v1525_v31 = vmul.f32 1.442695, %v5690_v60  ;;  %3768 = vpow2.f32 %v1167_v54  ;;  %v1885_v22 = vsub.f32 %v4674_v16, %v4710_v20  ;;  %v4743_v21 = vmax.f32 %v4549_v49, %v4724_v51  ;;  %v3262_v19 = vpop.f32.mrb[49].mxu0  ;;  %v4753_v59 = vpop.eup %3750 }
 0x141   :  { %v5691_v45 = vpack.c.bf16 %v4465_v2, %v4460_v1  ;;  %v5692_v24 = vpack.c.bf16 %v4475_v4, %v4470_v3  ;;  %3770 = vpow2.f32 %v1188_v15  ;;  %v1870_v54 = vmul.f32 1.442695, %v1863_v37  ;;  %v4761_v8 = vpop.eup %3752  ;;  %v3291_v4 = vpop.f32.mrb[49].mxu1 }
 0x142   :  { %v4755_v16 = vmul.f32 0.17677669, %v969_v55  ;;  %v4757_v25 = vmul.f32 0.17677669, %v1110_v23  ;;  %3772 = vrcp.f32 %v1194_v44  ;;  %v1891_v1 = vmul.f32 1.442695, %v1884_v38  ;;  %v4767_v15 = vpop.eup %3754 }
 0x143   :  { %3652 = vmatpush3.bf16.msra.mxu0 %v5691_v45  ;;  %3661 = vmatpush3.bf16.msra.mxu1 %v5692_v24  ;;  %v2221_v2 = vsub.f32 %v4549_v49, %v4743_v21  ;;  %v2242_v3 = vsub.f32 %v4724_v51, %v4743_v21  ;;  %3774 = vpow2.f32 %v1525_v31  ;;  %v1200_v38 = vmul.f32 %v4690_v56, %v4610_v41  ;;  %v979_v23 = vpop.f32.mrb[50].mxu0  ;;  %v4779_v49 = vpop.eup %3756  ;;  %v2765_v24 = vld [vmem:[%s5664_s2 + $0x148] sm:$0x1] }
 0x144   :  { %3653 = vmatprep.subr.bf16.mxu0 %v5689_v32  ;;  %3662 = vmatprep.subr.bf16.mxu1 %v5689_v32  ;;  %v4771_v55 = vmax.f32 %v4558_v53, %v4755_v16  ;;  %v4775_v37 = vmax.f32 %v4561_v7, %v4757_v25  ;;  %v1552_v50 = vadd.f32 %v4767_v15, %v4753_v59  ;;  %3776 = vpow2.f32 %v1546_v46  ;;  %v1120_v60 = vpop.f32.mrb[50].mxu1  ;;  %v3265_v31 = vpop.f32.mrb[51].mxu0 }
 0x145   :  { %v2227_v20 = vmul.f32 1.442695, %v2220_v48  ;;  %v2248_v58 = vmul.f32 1.442695, %v2241_v28  ;;  %v5693_v44 = vpack.c.bf16 %v4491_v11, %v4486_v10  ;;  %v5694_v19 = vpack.c.bf16 %v4505_v17, %v4496_v13  ;;  %v4789_v41 = vpop.eup %3758  ;;  %3319 = vmatmul.mubr.msk.f32.gmra.mrb[58].mxu0 %vm1218_vm3, %v1200_v38  ;;  %v3294_v10 = vpop.f32.mrb[51].mxu1 }
 0x146   :  { %3778 = vpow2.f32 %v1870_v54  ;;  %v1865_v45 = vsub.f32 %v4558_v53, %v4771_v55  ;;  %v1886_v48 = vsub.f32 %v4755_v16, %v4771_v55  ;;  %v2222_v28 = vsub.f32 %v4561_v7, %v4775_v37  ;;  %v2743_v11 = vld [vmem:[%s5664_s2 + $0x68] sm:$0x1]  ;;  %v4802_v13 = vpop.eup %3760  ;;  %3321 = vmatprep.mubr.msk.f32.mxu0 %vm3873_vm0, %v5688_v57 }
 0x147   :  { %3655 = vmatpush3.bf16.msra.mxu0 %v5693_v44  ;;  %3664 = vmatpush3.bf16.msra.mxu1 %v5694_v19  ;;  %3780 = vrcp.f32 %v1552_v50  ;;  %v2243_v17 = vsub.f32 %v4757_v25, %v4775_v37  ;;  %v1353_v53 = vmul.f32 %v4690_v56, %v4620_v36  ;;  %v4808_v46 = vmul.f32 0.17677669, %v974_v52  ;;  %v4816_v54 = vpop.eup %3762  ;;  %v4823_v56 = vpop.f32.mrb[52].mxu0 }
 0x148   :  { %3383 = vmatprep.subr.mxu0 %v5688_v57  ;;  %3418 = vmatprep.subr.mxu1 %v5688_v57  ;;  %v4819_v4 = vmul.f32 0.17677669, %v4481_v9  ;;  %v1195_v38 = vadd.f32 %v4802_v13, %v4789_v41  ;;  %3782 = vpow2.f32 %v1891_v1  ;;  %v1872_v36 = vmul.f32 1.442695, %v1864_v61  ;;  %v4825_v52 = vpop.eup %3764  ;;  %v1125_v9 = vpop.f32.mrb[52].mxu1 }
 0x149   :  { %3784 = vpow2.f32 %v2227_v20  ;;  %v1893_v50 = vmul.f32 1.442695, %v1885_v22  ;;  %v2229_v31 = vmul.f32 1.442695, %v2221_v2  ;;  %3354 = vmatmul.mubr.msk.f32.gmra.mrb[58].mxu1 %vm1218_vm3, %v1353_v53  ;;  %v4830_v44 = vmax.f32 %v4572_v18, %v4808_v46  ;;  %v3268_v19 = vpop.f32.mrb[53].mxu0  ;;  %v4833_v10 = vpop.eup %3766 }
 0x14a   :  { %3786 = vrcp.f32 %v1195_v38  ;;  %v4836_v61 = vmul.f32 0.17677669, %v4745_v27  ;;  %3356 = vmatprep.mubr.msk.f32.mxu1 %vm3873_vm0, %v5688_v57  ;;  %v1202_v22 = vmul.f32 %v4735_v14, %v4632_v29  ;;  %v1354_v1 = vmul.f32 %v4735_v14, %v4638_v12  ;;  %v3297_v2 = vpop.f32.mrb[53].mxu1  ;;  %v4845_v20 = vpop.eup %3768 }
 0x14b   :  { %3384 = vmatpush3.msk.msra.mxu0 %vm1240_vm2, %v2743_v11  ;;  %3419 = vmatpush3.msk.msra.mxu1 %vm1240_vm2, %v2765_v24  ;;  %v1553_v11 = vadd.f32 %v4833_v10, %v4816_v54  ;;  %3788 = vpow2.f32 %v2248_v58  ;;  %v1866_v27 = vsub.f32 %v4572_v18, %v4830_v44  ;;  %v1887_v53 = vsub.f32 %v4808_v46, %v4830_v44  ;;  %v4855_v29 = vpop.eup %3770  ;;  %v4866_v18 = vpop.f32.mrb[54].mxu0 }
 0x14c   :  { %3665 = vmatprep.subr.bf16.mxu0 %v5689_v32  ;;  %3674 = vmatprep.subr.bf16.mxu1 %v5689_v32  ;;  %3790 = vpow2.f32 %v1872_v36  ;;  %v4859_v12 = vmax.f32 %v4576_v43, %v4836_v61  ;;  %v4862_v14 = vmul.f32 0.17677669, %v979_v23  ;;  %v4864_v58 = vmul.f32 0.17677669, %v1120_v60  ;;  %v3773_v46 = vpop.eup %3772  ;;  %v4876_v23 = vpop.f32.mrb[54].mxu1 }
 0x14d   :  { %3322 = vmatmul.mubr.msk.f32.gmra.mrb[60].mxu0 %vm1218_vm3, %v1202_v22  ;;  %3792 = vrcp.f32 %v1553_v11  ;;  %v1196_v24 = vadd.f32 %v4855_v29, %v4845_v20  ;;  %v2250_v38 = vmul.f32 1.442695, %v2242_v3  ;;  %v1874_v36 = vmul.f32 1.442695, %v1865_v45  ;;  %3357 = vmatmul.mubr.msk.f32.gmra.mrb[60].mxu1 %vm1218_vm3, %v1354_v1  ;;  %v3271_v60 = vpop.f32.mrb[55].mxu0  ;;  %v4878_v44 = vpop.eup %3774 }
 0x14e   :  { %3324 = vmatprep.mubr.msk.f32.mxu0 %vm3873_vm0, %v5688_v57  ;;  %3794 = vpow2.f32 %v1893_v50  ;;  %v2223_v19 = vsub.f32 %v4576_v43, %v4859_v12  ;;  %v2244_v22 = vsub.f32 %v4836_v61, %v4859_v12  ;;  %v4886_v51 = vmax.f32 %v4580_v0, %v4862_v14  ;;  %3359 = vmatprep.mubr.msk.f32.mxu1 %vm3873_vm0, %v5688_v57  ;;  %v3300_v21 = vpop.f32.mrb[55].mxu1  ;;  %v4890_v3 = vpop.eup %3776 }
 0x14f   :  { %3796 = vrcp.f32 %v1196_v24  ;;  %v4894_v45 = vmax.f32 %v4616_v40, %v4864_v58  ;;  %v1204_v43 = vmul.f32 %v4779_v49, %v4654_v26  ;;  %v1355_v50 = vmul.f32 %v4779_v49, %v4658_v34 }
 0x150   :  { %v4900_v61 = vpop.eup %3778  ;;  %v1554_v1 = vadd.f32 %v4890_v3, %v4878_v44  ;;  %3798 = vpow2.f32 %v2229_v31  ;;  %v1895_v2 = vmul.f32 1.442695, %v1886_v48  ;;  %v2231_v11 = vmul.f32 1.442695, %v2222_v28 }
 0x151   :  { %v4910_v12 = vpop.eup %3780  ;;  %3800 = vpow2.f32 %v2250_v38  ;;  %v1867_v26 = vsub.f32 %v4580_v0, %v4886_v51  ;;  %v1888_v34 = vsub.f32 %v4862_v14, %v4886_v51  ;;  %v2224_v49 = vsub.f32 %v4616_v40, %v4894_v45  ;;  %3325 = vmatmul.mubr.msk.f32.gmra.mrb[62].mxu0 %vm1218_vm3, %v1204_v43  ;;  %3360 = vmatmul.mubr.msk.f32.gmra.mrb[62].mxu1 %vm1218_vm3, %v1355_v50 }
 0x152   :  { %v4920_v16 = vpop.eup %3782  ;;  %3802 = vrcp.f32 %v1554_v1  ;;  %v2245_v7 = vsub.f32 %v4864_v58, %v4894_v45  ;;  %v4925_v55 = vmul.f32 0.17677669, %v4823_v56  ;;  %v4927_v0 = vmul.f32 0.17677669, %v1125_v9  ;;  %3327 = vmatprep.mubr.msk.f32.mxu0 %vm3873_vm0, %v5688_v57  ;;  %3362 = vmatprep.mubr.msk.f32.mxu1 %vm3873_vm0, %v5688_v57 }
 0x153   :  { %v4933_v40 = vpop.eup %3784  ;;  %v1905_v48 = vadd.f32 %v4920_v16, %v4900_v61  ;;  %3804 = vpow2.f32 %v1874_v36  ;;  %v2252_v28 = vmul.f32 1.442695, %v2243_v17  ;;  %v1876_v56 = vmul.f32 1.442695, %v1866_v27 }
 0x154   :  { %v3787_v31 = vpop.eup %3786  ;;  %3806 = vpow2.f32 %v1895_v2  ;;  %v1897_v9 = vmul.f32 1.442695, %v1887_v53  ;;  %v2233_v14 = vmul.f32 1.442695, %v2223_v19  ;;  %v1861_v24 = vmax.f32 %v4613_v6, %v4925_v55 }
 0x155   :  { %v4942_v38 = vpop.eup %3788  ;;  %3808 = vrcp.f32 %v1905_v48  ;;  %v4946_v60 = vmax.f32 %v4722_v47, %v4927_v0  ;;  %v1206_v36 = vmul.f32 %v3773_v46, %v4702_v30  ;;  %v1356_v25 = vmul.f32 %v3773_v46, %v4728_v42 }
 0x156   :  { %v4950_v37 = vpop.eup %3790  ;;  %v2262_v17 = vadd.f32 %v4942_v38, %v4933_v40  ;;  %3810 = vpow2.f32 %v2231_v11  ;;  %v1868_v27 = vsub.f32 %v4613_v6, %v1861_v24  ;;  %v1889_v53 = vsub.f32 %v4925_v55, %v1861_v24 }
 0x157   :  { %v4956_v19 = vpop.eup %3792  ;;  %3812 = vpow2.f32 %v2252_v28  ;;  %v2225_v51 = vsub.f32 %v4722_v47, %v4946_v60  ;;  %v2246_v30 = vsub.f32 %v4927_v0, %v4946_v60  ;;  %3328 = vmatmul.mubr.msk.f32.gmra.mrb[64].mxu0 %vm1218_vm3, %v1206_v36  ;;  %3363 = vmatmul.mubr.msk.f32.gmra.mrb[64].mxu1 %vm1218_vm3, %v1356_v25  ;;  %v4965_v42 = vmul.f32 0.17677669, %v4866_v18  ;;  %v5696_v25 = vld [vmem:[#allocation7_spill] sm:$0xff] }
 0x158   :  { %v4967_v46 = vpop.eup %3794  ;;  %3814 = vrcp.f32 %v2262_v17  ;;  %v2254_v6 = vmul.f32 1.442695, %v2244_v22  ;;  %v1878_v21 = vmul.f32 1.442695, %v1867_v26  ;;  %v4970_v43 = vmul.f32 0.17677669, %v4876_v23  ;;  %3330 = vmatprep.mubr.msk.f32.mxu0 %vm3873_vm0, %v5688_v57  ;;  %3365 = vmatprep.mubr.msk.f32.mxu1 %vm3873_vm0, %v5688_v57 }
 0x159   :  { %v3797_v47 = vpop.eup %3796  ;;  %v1906_v50 = vadd.f32 %v4967_v46, %v4950_v37  ;;  %3816 = vpow2.f32 %v1876_v56  ;;  %v1899_v18 = vmul.f32 1.442695, %v1888_v34  ;;  %v2235_v1 = vmul.f32 1.442695, %v2224_v49 }
 0x15a   :  { %v4978_v2 = vpop.eup %3798  ;;  %3818 = vpow2.f32 %v1897_v9  ;;  %v4982_v23 = vmax.f32 %v4719_v63, %v4965_v42  ;;  %v4986_v22 = vmax.f32 %v4819_v4, %v4970_v43  ;;  %v1208_v11 = vmul.f32 %v3787_v31, %v4789_v41 }
 0x15b   :  { %v4989_v26 = vpop.eup %3800  ;;  %3820 = vrcp.f32 %v1906_v50  ;;  %v1357_v55 = vmul.f32 %v3787_v31, %v4802_v13  ;;  %v1210_v34 = vmul.f32 %v3797_v47, %v4845_v20  ;;  %v1358_v49 = vmul.f32 %v3797_v47, %v4855_v29  ;;  %v5695_v29 = vld [vmem:[#allocation6_spill] sm:$0xff] }
 0x15c   :  { %v3803_v48 = vpop.eup %3802  ;;  %v2263_v28 = vadd.f32 %v4989_v26, %v4978_v2  ;;  %3822 = vpow2.f32 %v2233_v14  ;;  %v1869_v56 = vsub.f32 %v4719_v63, %v4982_v23  ;;  %v1890_v41 = vsub.f32 %v4965_v42, %v4982_v23  ;;  %3331 = vmatmul.mubr.msk.f32.gmra.mrb[66].mxu0 %vm1218_vm3, %v1208_v11 }
 0x15d   :  { %v5001_v9 = vpop.eup %3804  ;;  %3824 = vpow2.f32 %v2254_v6  ;;  %v2226_v13 = vsub.f32 %v4819_v4, %v4986_v22  ;;  %v2247_v20 = vsub.f32 %v4970_v43, %v4986_v22  ;;  %3366 = vmatmul.mubr.msk.f32.gmra.mrb[66].mxu1 %vm1218_vm3, %v1357_v55  ;;  %3333 = vmatprep.mubr.msk.f32.mxu0 %vm3873_vm0, %v5688_v57  ;;  %v5012_v31 = vmul.f32 %v4716_v62, %v5695_v29 }
 0x15e   :  { %v5014_v14 = vpop.eup %3806  ;;  %3826 = vrcp.f32 %v2263_v28  ;;  %v2256_v24 = vmul.f32 1.442695, %v2245_v7  ;;  %v1880_v36 = vmul.f32 1.442695, %v1868_v27  ;;  %3368 = vmatprep.mubr.msk.f32.mxu1 %vm3873_vm0, %v5688_v57  ;;  %v5023_v17 = vmul.f32 %v4716_v62, %v5696_v25  ;;  %v5697_v62 = vld [vmem:[#allocation8_spill] sm:$0xff] }
 0x15f   :  { %v3809_v6 = vpop.eup %3808  ;;  %v1907_v47 = vadd.f32 %v5014_v14, %v5001_v9  ;;  %3828 = vpow2.f32 %v1878_v21  ;;  %v1901_v50 = vmul.f32 1.442695, %v1889_v53  ;;  %v2237_v11 = vmul.f32 1.442695, %v2225_v51 }
 0x160   :  { %v5027_v55 = vpop.eup %3810  ;;  %v5030_v58 = vmul.f32 %v3809_v6, %v4900_v61  ;;  %v5033_v45 = vmul.f32 %v3809_v6, %v4920_v16  ;;  %3830 = vpow2.f32 %v1899_v18  ;;  %3334 = vmatmul.mubr.msk.f32.gmra.mrb[68].mxu0 %vm1218_vm3, %v1210_v34  ;;  %v5038_v7 = vmul.f32 %v4761_v8, %v5697_v62  ;;  %v5698_v61 = vld [vmem:[#allocation9_spill] sm:$0xff] }
 0x161   :  { %v5040_v27 = vpop.eup %3812  ;;  %3832 = vrcp.f32 %v1907_v47  ;;  %3369 = vmatmul.mubr.msk.f32.gmra.mrb[68].mxu1 %vm1218_vm3, %v1358_v49  ;;  %3385 = vmatprep.mubr.msk.f32.mxu0 %vm3873_vm0, %v5688_v57  ;;  %v5047_v53 = vmul.f32 %v4761_v8, %v5698_v61  ;;  %v5051_v16 = vmul.f32 %v4825_v52, %v4666_v5  ;;  %v5055_v51 = vmul.f32 %v4825_v52, %v4676_v39  ;;  %v2808_v61 = vld [vmem:[%s5664_s2 + $0x178] sm:$0xff] }
 0x162   :  { %v3815_v21 = vpop.eup %3814  ;;  %v2264_v18 = vadd.f32 %v5040_v27, %v5027_v55  ;;  %3834 = vpow2.f32 %v2235_v1  ;;  %3420 = vmatprep.mubr.msk.f32.mxu1 %vm3873_vm0, %v5688_v57  ;;  %v5063_v8 = vmul.f32 %v4910_v12, %v4753_v59  ;;  %v5067_v5 = vmul.f32 %v4910_v12, %v4767_v15  ;;  %v2783_v1 = vld [vmem:[%s5664_s2 + $0x80] sm:$0xff]  ;;  %v2784_v59 = vld [vmem:[%s5664_s2 + $0x88] sm:$0xff] }
 0x163   :  { %v5069_v34 = vpop.eup %3816  ;;  %v5072_v39 = vmul.f32 %v3815_v21, %v4933_v40  ;;  %v5075_v52 = vmul.f32 %v3815_v21, %v4942_v38  ;;  %3836 = vpow2.f32 %v2256_v24  ;;  %v5085_v15 = vmul.f32 %v4956_v19, %v4816_v54  ;;  %v2805_v40 = vld [vmem:[%s5664_s2 + $0x160] sm:$0xff]  ;;  %v2806_v38 = vld [vmem:[%s5664_s2 + $0x168] sm:$0xff] }
 0x164   :  { %v5087_v12 = vpop.eup %3818  ;;  %3838 = vrcp.f32 %v2264_v18  ;;  %3386 = vmatmul.mubr.msk.f32.vlgmr.msra.gmra.mrb[70].mxu0 %vm1218_vm3, %v4679_v35  ;;  %v5099_v49 = vmul.f32 %v4956_v19, %v4833_v10  ;;  %v5102_v54 = vmul.f32 %v3803_v48, %v4878_v44  ;;  %v5105_v28 = vmul.f32 %v3803_v48, %v4890_v3  ;;  %v5699_v10 = vld [vmem:[#allocation3_spill] sm:$0xff]  ;;  %v5700_v19 = vld [vmem:[#allocation2_spill] sm:$0xff]  ;;  %v5702_v3 = vld [vmem:[#allocation5_spill] sm:$0xff] }
 0x165   :  { %v3821_v29 = vpop.eup %3820  ;;  %v1908_v35 = vadd.f32 %v5087_v12, %v5069_v34  ;;  %3840 = vpow2.f32 %v1880_v36  ;;  %v2258_v24 = vmul.f32 1.442695, %v2246_v30  ;;  %3421 = vmatmul.mubr.msk.f32.vlgmr.msra.gmra.mrb[70].mxu1 %vm1218_vm3, %v4682_v33  ;;  %v5701_v25 = vpack.c.bf16 %v5699_v10, %v5700_v19  ;;  %v5703_v48 = vld [vmem:[#allocation4_spill] sm:$0xff]  ;;  %3388 = vmatprep.mubr.msk.f32.mxu0 %vm3873_vm0, %v5688_v57 }
 0x166   :  { %v5117_v44 = vpop.eup %3822  ;;  %3842 = vpow2.f32 %v1901_v50  ;;  %v5704_v6 = vpack.c.bf16 %v5702_v3, %v5703_v48  ;;  %v3669_v36 = vpack.c.bf16 %v2784_v59, %v2783_v1  ;;  %v5125_v0 = vmul.f32 %v3821_v29, %v4950_v37  ;;  %3423 = vmatprep.mubr.msk.f32.mxu1 %vm3873_vm0, %v5688_v57  ;;  %v2785_v37 = vld [vmem:[%s5664_s2 + $0x90] sm:$0xff] }
 0x167   :  { %3667 = vmatpush3.bf16.msra.mxu0 %v5701_v25  ;;  %v5128_v33 = vmul.f32 %v3821_v29, %v4967_v46  ;;  %v5130_v60 = vpop.eup %3824  ;;  %3844 = vrcp.f32 %v1908_v35  ;;  %v1882_v30 = vmul.f32 1.442695, %v1869_v56  ;;  %v3678_v47 = vpack.c.bf16 %v2806_v38, %v2805_v40  ;;  %v2786_v46 = vld [vmem:[%s5664_s2 + $0x98] sm:$0xff]  ;;  %v2807_v56 = vld [vmem:[%s5664_s2 + $0x170] sm:$0xff]  ;;  %v2809_v40 = vld [vmem:[%s5664_s2 + $0x180] sm:$0x1] }
 0x168   :  { %3676 = vmatpush3.bf16.msra.mxu1 %v5704_v6  ;;  %3668 = vmatprep.subr.bf16.mxu0 %v5689_v32  ;;  %v3827_v50 = vpop.eup %3826  ;;  %v2265_v62 = vadd.f32 %v5130_v60, %v5117_v44  ;;  %3846 = vpow2.f32 %v2237_v11  ;;  %v1903_v63 = vmul.f32 1.442695, %v1890_v41  ;;  %v3681_v18 = vpack.c.bf16 %v2808_v61, %v2807_v56  ;;  %v2827_v61 = vld [vmem:[%s5664_s2 + $0xb8] sm:$0xff] }
 0x169   :  { %3389 = vmatmul.mubr.msk.f32.gmra.mrb[72].mxu0 %vm1218_vm3, %v5012_v31  ;;  %3677 = vmatprep.subr.bf16.mxu1 %v5689_v32  ;;  %v5158_v21 = vpop.eup %3828  ;;  %3848 = vpow2.f32 %v2258_v24  ;;  %v5165_v42 = vmul.f32 %v3827_v50, %v4978_v2  ;;  %v5168_v23 = vmul.f32 %v3827_v50, %v4989_v26  ;;  %v2239_v31 = vmul.f32 1.442695, %v2226_v13 }
 0x16a   :  { %3424 = vmatmul.mubr.msk.f32.gmra.mrb[72].mxu1 %vm1218_vm3, %v5023_v17  ;;  %3391 = vmatprep.mubr.msk.f32.mxu0 %vm3873_vm0, %v5688_v57  ;;  %v5170_v41 = vpop.eup %3830  ;;  %3850 = vrcp.f32 %v2265_v62  ;;  %v3672_v17 = vpack.c.bf16 %v2786_v46, %v2785_v37  ;;  %v2260_v26 = vmul.f32 1.442695, %v2247_v20 }
 0x16b   :  { %3426 = vmatprep.mubr.msk.f32.mxu1 %vm3873_vm0, %v5688_v57  ;;  %3670 = vmatpush3.bf16.msra.mxu0 %v3669_v36  ;;  %v3833_v11 = vpop.eup %3832  ;;  %v1909_v2 = vadd.f32 %v5170_v41, %v5158_v21  ;;  %3852 = vpow2.f32 %v1882_v30  ;;  %v2848_v30 = vld [vmem:[%s5664_s2 + $0x190] sm:$0xff] }
 0x16c   :  { %3679 = vmatpush3.bf16.msra.mxu1 %v3678_v47  ;;  %3671 = vmatprep.subr.bf16.mxu0 %v5689_v32  ;;  %v5183_v4 = vpop.eup %3834  ;;  %3854 = vpow2.f32 %v1903_v63  ;;  %v5189_v13 = vmul.f32 %v3833_v11, %v5001_v9  ;;  %v5192_v1 = vmul.f32 %v3833_v11, %v5014_v14  ;;  %v2787_v14 = vld [vmem:[%s5664_s2 + $0xa0] sm:$0x1] }
 0x16d   :  { %3392 = vmatmul.mubr.msk.f32.gmra.mrb[74].mxu0 %vm1218_vm3, %v5038_v7  ;;  %3680 = vmatprep.subr.bf16.mxu1 %v5689_v32  ;;  %v5194_v43 = vpop.eup %3836  ;;  %3856 = vrcp.f32 %v1909_v2 }
 0x16e   :  { %3427 = vmatmul.mubr.msk.f32.gmra.mrb[74].mxu1 %vm1218_vm3, %v5047_v53  ;;  %3394 = vmatprep.mubr.msk.f32.mxu0 %vm3873_vm0, %v5688_v57  ;;  %v3839_v22 = vpop.eup %3838  ;;  %v2266_v20 = vadd.f32 %v5194_v43, %v5183_v4  ;;  %3858 = vpow2.f32 %v2239_v31 }
 0x16f   :  { %3429 = vmatprep.mubr.msk.f32.mxu1 %vm3873_vm0, %v5688_v57  ;;  %3673 = vmatpush3.bf16.msra.mxu0 %v3672_v17  ;;  %v5204_v9 = vpop.eup %3840  ;;  %3860 = vpow2.f32 %v2260_v26  ;;  %v5211_v7 = vmul.f32 %v3839_v22, %v5027_v55  ;;  %v5214_v53 = vmul.f32 %v3839_v22, %v5040_v27  ;;  %v2830_v26 = vld [vmem:[%s5664_s2 + $0xd0] sm:$0xff] }
 0x170   :  { %3682 = vmatpush3.bf16.msra.mxu1 %v3681_v18  ;;  %3453 = vmatprep.subr.mxu0 %v5688_v57  ;;  %v3843_v59 = vpop.eup %3842  ;;  %3862 = vrcp.f32 %v2266_v20  ;;  %v2851_v18 = vld [vmem:[%s5664_s2 + $0x1a8] sm:$0xff] }
 0x171   :  { %3395 = vmatmul.mubr.msk.f32.gmra.mrb[76].mxu0 %vm1218_vm3, %v5051_v16  ;;  %3488 = vmatprep.subr.mxu1 %v5688_v57  ;;  %v3845_v38 = vpop.eup %3844  ;;  %v1910_v29 = vadd.f32 %v3843_v59, %v5204_v9 }
 0x172   :  { %3430 = vmatmul.mubr.msk.f32.gmra.mrb[76].mxu1 %vm1218_vm3, %v5055_v51  ;;  %3397 = vmatprep.mubr.msk.f32.mxu0 %vm3873_vm0, %v5688_v57  ;;  %v3847_v55 = vpop.eup %3846  ;;  %v5231_v27 = vmul.f32 %v3845_v38, %v5069_v34  ;;  %v5234_v16 = vmul.f32 %v3845_v38, %v5087_v12 }
 0x173   :  { %3432 = vmatprep.mubr.msk.f32.mxu1 %vm3873_vm0, %v5688_v57  ;;  %3454 = vmatpush3.msk.msra.mxu0 %vm1240_vm2, %v2787_v14  ;;  %v3849_v35 = vpop.eup %3848  ;;  %3864 = vrcp.f32 %v1910_v29 }
 0x174   :  { %3489 = vmatpush3.msk.msra.mxu1 %vm1240_vm2, %v2809_v40  ;;  %3683 = vmatprep.subr.bf16.mxu0 %v5689_v32  ;;  %v3851_v51 = vpop.eup %3850  ;;  %v2267_v24 = vadd.f32 %v3849_v35, %v3847_v55 }
 0x175   :  { %3398 = vmatmul.mubr.msk.f32.gmra.mrb[78].mxu0 %vm1218_vm3, %v5063_v8  ;;  %3692 = vmatprep.subr.bf16.mxu1 %v5689_v32  ;;  %v3853_v10 = vpop.eup %3852  ;;  %v5246_v34 = vmul.f32 %v3851_v51, %v5117_v44  ;;  %v5249_v12 = vmul.f32 %v3851_v51, %v5130_v60  ;;  %v2826_v60 = vld [vmem:[%s5664_s2 + $0xb0] sm:$0xff] }
 0x176   :  { %3433 = vmatmul.mubr.msk.f32.gmra.mrb[78].mxu1 %vm1218_vm3, %v5067_v5  ;;  %3400 = vmatprep.mubr.msk.f32.mxu0 %vm3873_vm0, %v5688_v57  ;;  %v3855_v19 = vpop.eup %3854  ;;  %3866 = vrcp.f32 %v2267_v24 }
 0x177   :  { %3435 = vmatprep.mubr.msk.f32.mxu1 %vm3873_vm0, %v5688_v57  ;;  %v3857_v8 = vpop.eup %3856  ;;  %v1911_v25 = vadd.f32 %v3855_v19, %v3853_v10 }
 0x178   :  { %v3859_v3 = vpop.eup %3858  ;;  %v5256_v5 = vmul.f32 %v3857_v8, %v5158_v21  ;;  %v5259_v44 = vmul.f32 %v3857_v8, %v5170_v41  ;;  %v2849_v21 = vld [vmem:[%s5664_s2 + $0x198] sm:$0xff]  ;;  %v2850_v41 = vld [vmem:[%s5664_s2 + $0x1a0] sm:$0xff] }
 0x179   :  { %3401 = vmatmul.mubr.msk.f32.gmra.mrb[80].mxu0 %vm1218_vm3, %v5085_v15  ;;  %v3861_v48 = vpop.eup %3860  ;;  %3868 = vrcp.f32 %v1911_v25  ;;  %v2825_v15 = vld [vmem:[%s5664_s2 + $0xa8] sm:$0xff]  ;;  %v3696_v2 = vpack.c.bf16 %v2850_v41, %v2849_v21 }
 0x17a   :  { %3436 = vmatmul.mubr.msk.f32.gmra.mrb[80].mxu1 %vm1218_vm3, %v5099_v49  ;;  %3403 = vmatprep.mubr.msk.f32.mxu0 %vm3873_vm0, %v5688_v57  ;;  %v3863_v6 = vpop.eup %3862  ;;  %v2268_v36 = vadd.f32 %v3861_v48, %v3859_v3  ;;  %v2847_v49 = vld [vmem:[%s5664_s2 + $0x188] sm:$0xff]  ;;  %v3684_v50 = vpack.c.bf16 %v2826_v60, %v2825_v15 }
 0x17b   :  { %3438 = vmatprep.mubr.msk.f32.mxu1 %vm3873_vm0, %v5688_v57  ;;  %v5280_v47 = vmul.f32 %v3863_v6, %v5183_v4  ;;  %v5283_v37 = vmul.f32 %v3863_v6, %v5194_v43  ;;  %v3693_v62 = vpack.c.bf16 %v2848_v30, %v2847_v49  ;;  %v2852_v4 = vld [vmem:[%s5664_s2 + $0x1b0] sm:$0xff] }
 0x17c   :  { %3870 = vrcp.f32 %v2268_v36 }
 0x17d   :  { %3404 = vmatmul.mubr.msk.f32.gmra.mrb[82].mxu0 %vm1218_vm3, %v5102_v54  ;;  %v3865_v46 = vpop.eup %3864  ;;  %v2828_v54 = vld [vmem:[%s5664_s2 + $0xc0] sm:$0xff] }
 0x17e   :  { %3439 = vmatmul.mubr.msk.f32.gmra.mrb[82].mxu1 %vm1218_vm3, %v5105_v28  ;;  %3455 = vmatprep.mubr.msk.f32.mxu0 %vm3873_vm0, %v5688_v57  ;;  %v1923_v63 = vmul.f32 %v3865_v46, %v5204_v9  ;;  %v2071_v56 = vmul.f32 %v3865_v46, %v3843_v59  ;;  %v3699_v9 = vpack.c.bf16 %v2852_v4, %v2851_v18 }
 0x17f   :  { %3490 = vmatprep.mubr.msk.f32.mxu1 %vm3873_vm0, %v5688_v57 }
 0x180   :  { %v3867_v28 = vpop.eup %3866 }
 0x181   :  { %3456 = vmatmul.mubr.msk.f32.vlgmr.msra.gmra.mrb[84].mxu0 %vm1218_vm3, %v5030_v58  ;;  %v5310_v31 = vmul.f32 %v3867_v28, %v3847_v55  ;;  %v5312_v17 = vmul.f32 %v3867_v28, %v3849_v35  ;;  %v3687_v58 = vpack.c.bf16 %v2828_v54, %v2827_v61 }
 0x182   :  { %3491 = vmatmul.mubr.msk.f32.vlgmr.msra.gmra.mrb[84].mxu1 %vm1218_vm3, %v5033_v45  ;;  %3685 = vmatpush3.bf16.msra.mxu0 %v3684_v50  ;;  %v2829_v45 = vld [vmem:[%s5664_s2 + $0xc8] sm:$0xff] }
 0x183   :  { %3694 = vmatpush3.bf16.msra.mxu1 %v3693_v62  ;;  %3458 = vmatprep.mubr.msk.f32.mxu0 %vm3873_vm0, %v5688_v57  ;;  %v3869_v11 = vpop.eup %3868 }
 0x184   :  { %3493 = vmatprep.mubr.msk.f32.mxu1 %vm3873_vm0, %v5688_v57  ;;  %3686 = vmatprep.subr.bf16.mxu0 %v5689_v32  ;;  %v1925_v43 = vmul.f32 %v3869_v11, %v3853_v10  ;;  %v2072_v22 = vmul.f32 %v3869_v11, %v3855_v19 }
 0x185   :  { %3459 = vmatmul.mubr.msk.f32.gmra.mrb[86].mxu0 %vm1218_vm3, %v5125_v0  ;;  %3695 = vmatprep.subr.bf16.mxu1 %v5689_v32  ;;  %v3690_v0 = vpack.c.bf16 %v2830_v26, %v2829_v45 }
 0x186   :  { %3494 = vmatmul.mubr.msk.f32.gmra.mrb[86].mxu1 %vm1218_vm3, %v5128_v33  ;;  %3461 = vmatprep.mubr.msk.f32.mxu0 %vm3873_vm0, %v5688_v57  ;;  %v3871_v20 = vpop.eup %3870  ;;  %v2831_v33 = vld [vmem:[%s5664_s2 + $0xd8] sm:$0x1] }
 0x187   :  { %3496 = vmatprep.mubr.msk.f32.mxu1 %vm3873_vm0, %v5688_v57  ;;  %3688 = vmatpush3.bf16.msra.mxu0 %v3687_v58  ;;  %v2282_v14 = vmul.f32 %v3871_v20, %v3859_v3  ;;  %v2429_v59 = vmul.f32 %v3871_v20, %v3861_v48 }
 0x188   :  { %3697 = vmatpush3.bf16.msra.mxu1 %v3696_v2  ;;  %3689 = vmatprep.subr.bf16.mxu0 %v5689_v32 }
 0x189   :  { %3462 = vmatmul.mubr.msk.f32.gmra.mrb[88].mxu0 %vm1218_vm3, %v5189_v13  ;;  %3698 = vmatprep.subr.bf16.mxu1 %v5689_v32  ;;  %v2853_v32 = vld [vmem:[%s5664_s2 + $0x1b8] sm:$0x1] }
 0x18a   :  { %3497 = vmatmul.mubr.msk.f32.gmra.mrb[88].mxu1 %vm1218_vm3, %v5192_v1  ;;  %3464 = vmatprep.mubr.msk.f32.mxu0 %vm3873_vm0, %v5688_v57 }
 0x18b   :  { %3499 = vmatprep.mubr.msk.f32.mxu1 %vm3873_vm0, %v5688_v57  ;;  %3691 = vmatpush3.bf16.msra.mxu0 %v3690_v0 }
 0x18c   :  { %3700 = vmatpush3.bf16.msra.mxu1 %v3699_v9  ;;  %3523 = vmatprep.subr.mxu0 %v5688_v57 }
 0x18d   :  { %3465 = vmatmul.mubr.msk.f32.gmra.mrb[90].mxu0 %vm1218_vm3, %v5231_v27  ;;  %3558 = vmatprep.subr.mxu1 %v5688_v57 }
 0x18e   :  { %3500 = vmatmul.mubr.msk.f32.gmra.mrb[90].mxu1 %vm1218_vm3, %v5234_v16  ;;  %3467 = vmatprep.mubr.msk.f32.mxu0 %vm3873_vm0, %v5688_v57 }
 0x18f   :  { %3502 = vmatprep.mubr.msk.f32.mxu1 %vm3873_vm0, %v5688_v57  ;;  %3524 = vmatpush3.msk.msra.mxu0 %vm1240_vm2, %v2831_v33 }
 0x190   :  { %3559 = vmatpush3.msk.msra.mxu1 %vm1240_vm2, %v2853_v32 }
 0x191   :  { %3468 = vmatmul.mubr.msk.f32.gmra.mrb[92].mxu0 %vm1218_vm3, %v5256_v5 }
 0x192   :  { %3503 = vmatmul.mubr.msk.f32.gmra.mrb[92].mxu1 %vm1218_vm3, %v5259_v44  ;;  %3470 = vmatprep.mubr.msk.f32.mxu0 %vm3873_vm0, %v5688_v57 }
 0x193   :  { %3505 = vmatprep.mubr.msk.f32.mxu1 %vm3873_vm0, %v5688_v57 }
 0x195   :  { %3471 = vmatmul.mubr.msk.f32.gmra.mrb[94].mxu0 %vm1218_vm3, %v1923_v63 }
 0x196   :  { %3506 = vmatmul.mubr.msk.f32.gmra.mrb[94].mxu1 %vm1218_vm3, %v2071_v56  ;;  %3473 = vmatprep.mubr.msk.f32.mxu0 %vm3873_vm0, %v5688_v57 }
 0x197   :  { %3508 = vmatprep.mubr.msk.f32.mxu1 %vm3873_vm0, %v5688_v57 }
 0x199   :  { %3474 = vmatmul.mubr.msk.f32.gmra.mrb[96].mxu0 %vm1218_vm3, %v1925_v43 }
 0x19a   :  { %3509 = vmatmul.mubr.msk.f32.gmra.mrb[96].mxu1 %vm1218_vm3, %v2072_v22  ;;  %3525 = vmatprep.mubr.msk.f32.mxu0 %vm3873_vm0, %v5688_v57 }
 0x19b   :  { %3560 = vmatprep.mubr.msk.f32.mxu1 %vm3873_vm0, %v5688_v57 }
 0x19d   :  { %3526 = vmatmul.mubr.msk.f32.vlgmr.msra.gmra.mrb[98].mxu0 %vm1218_vm3, %v5072_v39 }
 0x19e   :  { %3561 = vmatmul.mubr.msk.f32.vlgmr.msra.gmra.mrb[98].mxu1 %vm1218_vm3, %v5075_v52  ;;  %3528 = vmatprep.mubr.msk.f32.mxu0 %vm3873_vm0, %v5688_v57 }
 0x19f   :  { %3563 = vmatprep.mubr.msk.f32.mxu1 %vm3873_vm0, %v5688_v57 }
 0x1a1   :  { %3529 = vmatmul.mubr.msk.f32.gmra.mrb[100].mxu0 %vm1218_vm3, %v5165_v42 }
 0x1a2   :  { %3564 = vmatmul.mubr.msk.f32.gmra.mrb[100].mxu1 %vm1218_vm3, %v5168_v23  ;;  %3531 = vmatprep.mubr.msk.f32.mxu0 %vm3873_vm0, %v5688_v57 }
 0x1a3   :  { %3566 = vmatprep.mubr.msk.f32.mxu1 %vm3873_vm0, %v5688_v57 }
 0x1a5   :  { %3532 = vmatmul.mubr.msk.f32.gmra.mrb[102].mxu0 %vm1218_vm3, %v5211_v7 }
 0x1a6   :  { %3567 = vmatmul.mubr.msk.f32.gmra.mrb[102].mxu1 %vm1218_vm3, %v5214_v53  ;;  %3534 = vmatprep.mubr.msk.f32.mxu0 %vm3873_vm0, %v5688_v57 }
 0x1a7   :  { %3569 = vmatprep.mubr.msk.f32.mxu1 %vm3873_vm0, %v5688_v57 }
 0x1a9   :  { %3535 = vmatmul.mubr.msk.f32.gmra.mrb[104].mxu0 %vm1218_vm3, %v5246_v34 }
 0x1aa   :  { %3570 = vmatmul.mubr.msk.f32.gmra.mrb[104].mxu1 %vm1218_vm3, %v5249_v12  ;;  %3537 = vmatprep.mubr.msk.f32.mxu0 %vm3873_vm0, %v5688_v57 }
 0x1ab   :  { %3572 = vmatprep.mubr.msk.f32.mxu1 %vm3873_vm0, %v5688_v57 }
 0x1ad   :  { %3538 = vmatmul.mubr.msk.f32.gmra.mrb[106].mxu0 %vm1218_vm3, %v5280_v47 }
 0x1ae   :  { %3573 = vmatmul.mubr.msk.f32.gmra.mrb[106].mxu1 %vm1218_vm3, %v5283_v37  ;;  %3540 = vmatprep.mubr.msk.f32.mxu0 %vm3873_vm0, %v5688_v57 }
 0x1af   :  { %3575 = vmatprep.mubr.msk.f32.mxu1 %vm3873_vm0, %v5688_v57 }
 0x1b1   :  { %3541 = vmatmul.mubr.msk.f32.gmra.mrb[108].mxu0 %vm1218_vm3, %v5310_v31 }
 0x1b2   :  { %3576 = vmatmul.mubr.msk.f32.gmra.mrb[108].mxu1 %vm1218_vm3, %v5312_v17  ;;  %3543 = vmatprep.mubr.msk.f32.mxu0 %vm3873_vm0, %v5688_v57 }
 0x1b3   :  { %3578 = vmatprep.mubr.msk.f32.mxu1 %vm3873_vm0, %v5688_v57 }
 0x1b5   :  { %3544 = vmatmul.mubr.msk.f32.gmra.mrb[110].mxu0 %vm1218_vm3, %v2282_v14 }
 0x1b6   :  { %3579 = vmatmul.mubr.msk.f32.gmra.mrb[110].mxu1 %vm1218_vm3, %v2429_v59 }
 0x20d   :  { %v1310_v39 = vpop.f32.mrb[56].mxu0  ;;  %v1457_v52 = vpop.f32.mrb[56].mxu1 }
 0x20e   :  { %1344 = vst.msk [vmem:[%s5665_s3] sm:$0xff] %vm25_vm1, %v1310_v39  ;;  %2730 = vst.msk [vmem:[%s5665_s3 + $0xe0] sm:$0xff] %vm25_vm1, %v1457_v52  ;;  %v3317_v42 = vpop.f32.mrb[57].mxu0  ;;  %v3352_v23 = vpop.f32.mrb[57].mxu1 }
 0x218   :  { %v1315_v13 = vpop.f32.mrb[58].mxu0 }
 0x219   :  { %1345 = vst.msk [vmem:[%s5665_s3 + $0x8] sm:$0xff] %vm25_vm1, %v1315_v13  ;;  %v3320_v57 = vpop.f32.mrb[59].mxu0 }
 0x21c   :  { %v1462_v1 = vpop.f32.mrb[58].mxu1 }
 0x21d   :  { %2731 = vst.msk [vmem:[%s5665_s3 + $0xe8] sm:$0xff] %vm25_vm1, %v1462_v1  ;;  %v3355_v7 = vpop.f32.mrb[59].mxu1 }
 0x220   :  { %v1320_v53 = vpop.f32.mrb[60].mxu0  ;;  %v1467_v40 = vpop.f32.mrb[60].mxu1 }
 0x221   :  { %1346 = vst.msk [vmem:[%s5665_s3 + $0x10] sm:$0xff] %vm25_vm1, %v1320_v53  ;;  %v3323_v38 = vpop.f32.mrb[61].mxu0  ;;  %2732 = vst.msk [vmem:[%s5665_s3 + $0xf0] sm:$0xff] %vm25_vm1, %v1467_v40  ;;  %v3358_v29 = vpop.f32.mrb[61].mxu1 }
 0x224   :  { %v1325_v55 = vpop.f32.mrb[62].mxu0  ;;  %v1472_v27 = vpop.f32.mrb[62].mxu1 }
 0x225   :  { %1347 = vst.msk [vmem:[%s5665_s3 + $0x18] sm:$0xff] %vm25_vm1, %v1325_v55  ;;  %2733 = vst.msk [vmem:[%s5665_s3 + $0xf8] sm:$0xff] %vm25_vm1, %v1472_v27  ;;  %v3326_v16 = vpop.f32.mrb[63].mxu0  ;;  %v3361_v35 = vpop.f32.mrb[63].mxu1 }
 0x22a   :  { %v1330_v51 = vpop.f32.mrb[64].mxu0  ;;  %v1477_v24 = vpop.f32.mrb[64].mxu1 }
 0x22b   :  { %1348 = vst.msk [vmem:[%s5665_s3 + $0x20] sm:$0xff] %vm25_vm1, %v1330_v51  ;;  %2734 = vst.msk [vmem:[%s5665_s3 + $0x100] sm:$0xff] %vm25_vm1, %v1477_v24  ;;  %v3329_v10 = vpop.f32.mrb[65].mxu0  ;;  %v3364_v34 = vpop.f32.mrb[65].mxu1 }
 0x22f   :  { %v1335_v12 = vpop.f32.mrb[66].mxu0 }
 0x230   :  { %1349 = vst.msk [vmem:[%s5665_s3 + $0x28] sm:$0xff] %vm25_vm1, %v1335_v12  ;;  %v1482_v19 = vpop.f32.mrb[66].mxu1  ;;  %v3332_v8 = vpop.f32.mrb[67].mxu0 }
 0x231   :  { %2735 = vst.msk [vmem:[%s5665_s3 + $0x108] sm:$0xff] %vm25_vm1, %v1482_v19  ;;  %v3367_v25 = vpop.f32.mrb[67].mxu1 }
 0x233   :  { %v1340_v3 = vpop.f32.mrb[68].mxu0 }
 0x234   :  { %1351 = vst.msk [vmem:[%s5665_s3 + $0x30] sm:$0x1] %vm1350_vm4, %v1340_v3  ;;  %v1487_v5 = vpop.f32.mrb[68].mxu1  ;;  %v3335_v44 = vpop.f32.mrb[69].mxu0 }
 0x235   :  { %2736 = vst.msk [vmem:[%s5665_s3 + $0x110] sm:$0x1] %vm1350_vm4, %v1487_v5  ;;  %v3370_v48 = vpop.f32.mrb[69].mxu1 }
 0x237   :  { %v1667_v6 = vpop.f32.mrb[70].mxu0 }
 0x238   :  { %2752 = vst.msk [vmem:[%s5665_s3 + $0x38] sm:$0xff] %vm25_vm1, %v1667_v6  ;;  %v1814_v36 = vpop.f32.mrb[70].mxu1  ;;  %v3387_v15 = vpop.f32.mrb[71].mxu0 }
 0x239   :  { %2774 = vst.msk [vmem:[%s5665_s3 + $0x118] sm:$0xff] %vm25_vm1, %v1814_v36  ;;  %v3422_v60 = vpop.f32.mrb[71].mxu1 }
 0x23c   :  { %v1672_v49 = vpop.f32.mrb[72].mxu0 }
 0x23d   :  { %2753 = vst.msk [vmem:[%s5665_s3 + $0x40] sm:$0xff] %vm25_vm1, %v1672_v49  ;;  %v1819_v30 = vpop.f32.mrb[72].mxu1  ;;  %v3390_v47 = vpop.f32.mrb[73].mxu0 }
 0x23e   :  { %2775 = vst.msk [vmem:[%s5665_s3 + $0x120] sm:$0xff] %vm25_vm1, %v1819_v30  ;;  %v3425_v37 = vpop.f32.mrb[73].mxu1 }
 0x240   :  { %v1677_v46 = vpop.f32.mrb[74].mxu0 }
 0x241   :  { %2754 = vst.msk [vmem:[%s5665_s3 + $0x48] sm:$0xff] %vm25_vm1, %v1677_v46  ;;  %v1824_v50 = vpop.f32.mrb[74].mxu1  ;;  %v3393_v62 = vpop.f32.mrb[75].mxu0 }
 0x242   :  { %2776 = vst.msk [vmem:[%s5665_s3 + $0x128] sm:$0xff] %vm25_vm1, %v1824_v50  ;;  %v3428_v63 = vpop.f32.mrb[75].mxu1 }
 0x244   :  { %v1682_v56 = vpop.f32.mrb[76].mxu0 }
 0x245   :  { %2755 = vst.msk [vmem:[%s5665_s3 + $0x50] sm:$0xff] %vm25_vm1, %v1682_v56  ;;  %v1829_v61 = vpop.f32.mrb[76].mxu1  ;;  %v3396_v54 = vpop.f32.mrb[77].mxu0 }
 0x246   :  { %2777 = vst.msk [vmem:[%s5665_s3 + $0x130] sm:$0xff] %vm25_vm1, %v1829_v61  ;;  %v3431_v28 = vpop.f32.mrb[77].mxu1 }
 0x248   :  { %v1687_v21 = vpop.f32.mrb[78].mxu0 }
 0x249   :  { %2756 = vst.msk [vmem:[%s5665_s3 + $0x58] sm:$0xff] %vm25_vm1, %v1687_v21  ;;  %v1834_v41 = vpop.f32.mrb[78].mxu1  ;;  %v3399_v31 = vpop.f32.mrb[79].mxu0 }
 0x24a   :  { %2778 = vst.msk [vmem:[%s5665_s3 + $0x138] sm:$0xff] %vm25_vm1, %v1834_v41  ;;  %v3434_v17 = vpop.f32.mrb[79].mxu1 }
 0x24c   :  { %v1692_v58 = vpop.f32.mrb[80].mxu0 }
 0x24d   :  { %2757 = vst.msk [vmem:[%s5665_s3 + $0x60] sm:$0xff] %vm25_vm1, %v1692_v58  ;;  %v1839_v11 = vpop.f32.mrb[80].mxu1  ;;  %v3402_v2 = vpop.f32.mrb[81].mxu0 }
 0x24e   :  { %2779 = vst.msk [vmem:[%s5665_s3 + $0x140] sm:$0xff] %vm25_vm1, %v1839_v11  ;;  %v3437_v45 = vpop.f32.mrb[81].mxu1 }
 0x250   :  { %v1697_v26 = vpop.f32.mrb[82].mxu0 }
 0x251   :  { %2758 = vst.msk [vmem:[%s5665_s3 + $0x68] sm:$0x1] %vm1350_vm4, %v1697_v26  ;;  %v1844_v18 = vpop.f32.mrb[82].mxu1  ;;  %v3405_v4 = vpop.f32.mrb[83].mxu0 }
 0x252   :  { %2780 = vst.msk [vmem:[%s5665_s3 + $0x148] sm:$0x1] %vm1350_vm4, %v1844_v18  ;;  %v3440_v43 = vpop.f32.mrb[83].mxu1 }
 0x254   :  { %v2024_v22 = vpop.f32.mrb[84].mxu0 }
 0x255   :  { %2796 = vst.msk [vmem:[%s5665_s3 + $0x70] sm:$0xff] %vm25_vm1, %v2024_v22  ;;  %v2171_v20 = vpop.f32.mrb[84].mxu1  ;;  %v3457_v0 = vpop.f32.mrb[85].mxu0 }
 0x256   :  { %2818 = vst.msk [vmem:[%s5665_s3 + $0x150] sm:$0xff] %vm25_vm1, %v2171_v20  ;;  %v3492_v9 = vpop.f32.mrb[85].mxu1 }
 0x258   :  { %v2029_v14 = vpop.f32.mrb[86].mxu0 }
 0x259   :  { %2797 = vst.msk [vmem:[%s5665_s3 + $0x78] sm:$0xff] %vm25_vm1, %v2029_v14  ;;  %v2176_v59 = vpop.f32.mrb[86].mxu1  ;;  %v3460_v33 = vpop.f32.mrb[87].mxu0 }
 0x25a   :  { %2819 = vst.msk [vmem:[%s5665_s3 + $0x158] sm:$0xff] %vm25_vm1, %v2176_v59  ;;  %v3495_v32 = vpop.f32.mrb[87].mxu1 }
 0x25c   :  { %v2034_v39 = vpop.f32.mrb[88].mxu0 }
 0x25d   :  { %2798 = vst.msk [vmem:[%s5665_s3 + $0x80] sm:$0xff] %vm25_vm1, %v2034_v39  ;;  %v2181_v52 = vpop.f32.mrb[88].mxu1  ;;  %v3463_v42 = vpop.f32.mrb[89].mxu0 }
 0x25e   :  { %2820 = vst.msk [vmem:[%s5665_s3 + $0x160] sm:$0xff] %vm25_vm1, %v2181_v52  ;;  %v3498_v23 = vpop.f32.mrb[89].mxu1 }
 0x260   :  { %v2039_v13 = vpop.f32.mrb[90].mxu0 }
 0x261   :  { %2799 = vst.msk [vmem:[%s5665_s3 + $0x88] sm:$0xff] %vm25_vm1, %v2039_v13  ;;  %v2186_v57 = vpop.f32.mrb[90].mxu1  ;;  %v3466_v1 = vpop.f32.mrb[91].mxu0 }
 0x262   :  { %2821 = vst.msk [vmem:[%s5665_s3 + $0x168] sm:$0xff] %vm25_vm1, %v2186_v57  ;;  %v3501_v7 = vpop.f32.mrb[91].mxu1 }
 0x264   :  { %v2044_v53 = vpop.f32.mrb[92].mxu0 }
 0x265   :  { %2800 = vst.msk [vmem:[%s5665_s3 + $0x90] sm:$0xff] %vm25_vm1, %v2044_v53  ;;  %v2191_v40 = vpop.f32.mrb[92].mxu1  ;;  %v3469_v38 = vpop.f32.mrb[93].mxu0 }
 0x266   :  { %2822 = vst.msk [vmem:[%s5665_s3 + $0x170] sm:$0xff] %vm25_vm1, %v2191_v40  ;;  %v3504_v29 = vpop.f32.mrb[93].mxu1 }
 0x268   :  { %v2049_v55 = vpop.f32.mrb[94].mxu0 }
 0x269   :  { %2801 = vst.msk [vmem:[%s5665_s3 + $0x98] sm:$0xff] %vm25_vm1, %v2049_v55  ;;  %v2196_v27 = vpop.f32.mrb[94].mxu1  ;;  %v3472_v16 = vpop.f32.mrb[95].mxu0 }
 0x26a   :  { %2823 = vst.msk [vmem:[%s5665_s3 + $0x178] sm:$0xff] %vm25_vm1, %v2196_v27  ;;  %v3507_v35 = vpop.f32.mrb[95].mxu1 }
 0x26c   :  { %v2054_v51 = vpop.f32.mrb[96].mxu0 }
 0x26d   :  { %2802 = vst.msk [vmem:[%s5665_s3 + $0xa0] sm:$0x1] %vm1350_vm4, %v2054_v51  ;;  %v2201_v24 = vpop.f32.mrb[96].mxu1  ;;  %v3475_v10 = vpop.f32.mrb[97].mxu0 }
 0x26e   :  { %2824 = vst.msk [vmem:[%s5665_s3 + $0x180] sm:$0x1] %vm1350_vm4, %v2201_v24  ;;  %v3510_v34 = vpop.f32.mrb[97].mxu1 }
 0x270   :  { %v2381_v12 = vpop.f32.mrb[98].mxu0 }
 0x271   :  { %2840 = vst.msk [vmem:[%s5665_s3 + $0xa8] sm:$0xff] %vm25_vm1, %v2381_v12  ;;  %v2528_v19 = vpop.f32.mrb[98].mxu1  ;;  %v3527_v8 = vpop.f32.mrb[99].mxu0 }
 0x272   :  { %2862 = vst.msk [vmem:[%s5665_s3 + $0x188] sm:$0xff] %vm25_vm1, %v2528_v19  ;;  %v3562_v25 = vpop.f32.mrb[99].mxu1 }
 0x274   :  { %v2386_v3 = vpop.f32.mrb[100].mxu0 }
 0x275   :  { %2841 = vst.msk [vmem:[%s5665_s3 + $0xb0] sm:$0xff] %vm25_vm1, %v2386_v3  ;;  %v2533_v5 = vpop.f32.mrb[100].mxu1  ;;  %v3530_v44 = vpop.f32.mrb[101].mxu0 }
 0x276   :  { %2863 = vst.msk [vmem:[%s5665_s3 + $0x190] sm:$0xff] %vm25_vm1, %v2533_v5  ;;  %v3565_v48 = vpop.f32.mrb[101].mxu1 }
 0x278   :  { %v2391_v6 = vpop.f32.mrb[102].mxu0 }
 0x279   :  { %2842 = vst.msk [vmem:[%s5665_s3 + $0xb8] sm:$0xff] %vm25_vm1, %v2391_v6  ;;  %v2538_v36 = vpop.f32.mrb[102].mxu1  ;;  %v3533_v15 = vpop.f32.mrb[103].mxu0 }
 0x27a   :  { %2864 = vst.msk [vmem:[%s5665_s3 + $0x198] sm:$0xff] %vm25_vm1, %v2538_v36  ;;  %v3568_v60 = vpop.f32.mrb[103].mxu1 }
 0x27c   :  { %v2396_v49 = vpop.f32.mrb[104].mxu0 }
 0x27d   :  { %2843 = vst.msk [vmem:[%s5665_s3 + $0xc0] sm:$0xff] %vm25_vm1, %v2396_v49  ;;  %v2543_v30 = vpop.f32.mrb[104].mxu1  ;;  %v3536_v47 = vpop.f32.mrb[105].mxu0 }
 0x27e   :  { %2865 = vst.msk [vmem:[%s5665_s3 + $0x1a0] sm:$0xff] %vm25_vm1, %v2543_v30  ;;  %v3571_v37 = vpop.f32.mrb[105].mxu1 }
 0x280   :  { %v2401_v46 = vpop.f32.mrb[106].mxu0 }
 0x281   :  { %2844 = vst.msk [vmem:[%s5665_s3 + $0xc8] sm:$0xff] %vm25_vm1, %v2401_v46  ;;  %v2548_v50 = vpop.f32.mrb[106].mxu1  ;;  %v3539_v62 = vpop.f32.mrb[107].mxu0 }
 0x282   :  { %2866 = vst.msk [vmem:[%s5665_s3 + $0x1a8] sm:$0xff] %vm25_vm1, %v2548_v50  ;;  %v3574_v63 = vpop.f32.mrb[107].mxu1 }
 0x284   :  { %v2406_v56 = vpop.f32.mrb[108].mxu0 }
 0x285   :  { %2845 = vst.msk [vmem:[%s5665_s3 + $0xd0] sm:$0xff] %vm25_vm1, %v2406_v56  ;;  %v2553_v61 = vpop.f32.mrb[108].mxu1  ;;  %v3542_v54 = vpop.f32.mrb[109].mxu0 }
 0x286   :  { %2867 = vst.msk [vmem:[%s5665_s3 + $0x1b0] sm:$0xff] %vm25_vm1, %v2553_v61  ;;  %v3577_v28 = vpop.f32.mrb[109].mxu1 }
 0x288   :  { %v2411_v21 = vpop.f32.mrb[110].mxu0 }
 0x289   :  { %2846 = vst.msk [vmem:[%s5665_s3 + $0xd8] sm:$0x1] %vm1350_vm4, %v2411_v21  ;;  %v2558_v41 = vpop.f32.mrb[110].mxu1  ;;  %v3545_v31 = vpop.f32.mrb[111].mxu0 }
 0x28a   :  { %2868 = vst.msk [vmem:[%s5665_s3 + $0x1b8] sm:$0x1] %vm1350_vm4, %v2558_v41  ;;  %v3580_v17 = vpop.f32.mrb[111].mxu1 }

// kernel: val_attention_forward.5
= control target key start
LH: loop header
LB: loop body
LE: loop exit
PB: predicated region body
PF: predicated region fallthrough
CT: control target
= control target key end

     0   :  { %s4466_s0 = inlined_call_operand.vmem [shape: f32[98,128], index: 0, kind: input, shape index: {}]   ;;  %s4467_s1 = inlined_call_operand.vmem [shape: f32[98,128], index: 1, kind: input, shape index: {}]   ;;  %s4468_s2 = inlined_call_operand.vmem [shape: f32[2,128], index: 2, kind: input, shape index: {}]   ;;  %s4469_s3 = inlined_call_operand.vmem [shape: f32[128,128], index: 3, kind: input, shape index: {}]   ;;  %s4470_s4 = inlined_call_operand.vmem [shape: f32[1,128], index: 4, kind: input, shape index: {}]   ;;  %s4471_s5 = inlined_call_operand.vmem [shape: f32[128,32], index: 5, kind: input, shape index: {}]   ;;  %s4472_s6 = inlined_call_operand.vmem [shape: f32[1,32], index: 6, kind: input, shape index: {}]   ;;  %s4473_s7 = inlined_call_operand.<no memory space> [shape: f32[1,1], index: 7, kind: input, shape index: {}]   ;;  %s4474_s8 = inlined_call_operand.hbm [shape: f32[2,32], index: 8, kind: output, shape index: {}]  }
   0x1   :  { %v13_v0 = vstv %s4473_s7 }
   0x2   :  { %14 = vst [vmem:[#allocation2] sm:$0x1] %v13_v0 }
   0x3   :  { %v45_v1 = vld [vmem:[%s4469_s3] sm:$0xff]  ;;  %v46_v2 = vld [vmem:[%s4469_s3 + $0x8] sm:$0xff]  ;;  %v47_v3 = vld [vmem:[%s4469_s3 + $0x10] sm:$0xff]  ;;  %v4475_v4 = vmov 0.0|0.0   ;;  %vm3556_vm0 = vmmov 0   ;;  %v3557_v7 = vmov 0.0  }
   0x4   :  { %3454 = vmatprep.subr.bf16.mxu0 %v4475_v4  ;;  %v3455_v5 = vpack.c.bf16 %v46_v2, %v45_v1  ;;  %v48_v6 = vld [vmem:[%s4469_s3 + $0x18] sm:$0xff]  ;;  %3380 = vmatprep.mubr.msk.f32.mxu0 %vm3556_vm0, %v3557_v7  ;;  %v3558_v8 = vmov 0   ;;  %v49_v10 = vld [vmem:[%s4469_s3 + $0x20] sm:$0xff]  ;;  %v50_v11 = vld [vmem:[%s4469_s3 + $0x28] sm:$0xff] }
   0x5   :  { %3508 = vset.pattern.permute.xlu0 %v3558_v8  ;;  %3478 = vmatprep.subr.bf16.mxu1 %v4475_v4  ;;  %v3458_v9 = vpack.c.bf16 %v48_v6, %v47_v3  ;;  %v3461_v12 = vpack.c.bf16 %v50_v11, %v49_v10  ;;  %v51_v13 = vld [vmem:[%s4469_s3 + $0x30] sm:$0xff]  ;;  %v52_v14 = vld [vmem:[%s4469_s3 + $0x38] sm:$0xff] }
   0x6   :  { %3456 = vmatpush3.bf16.msra.mxu0 %v3455_v5  ;;  %3451 = vmatprep.mubr.msk.f32.mxu1 %vm3556_vm0, %v3557_v7 }
   0x7   :  { %3457 = vmatprep.subr.bf16.mxu0 %v4475_v4 }
   0x9   :  { %v3300_v15 = vld [vmem:[#allocation2] ss:$0 sm:$0xff] }
   0xa   :  { %3459 = vmatpush3.bf16.msra.mxu0 %v3458_v9  ;;  %2240 = vperm.xlu0 %3508, %v3300_v15  }
   0xb   :  { %3460 = vmatprep.subr.bf16.mxu0 %v4475_v4 }
   0xc   :  { %15 = vsyncpa [#allocation4], 0  ;;  %v3464_v16 = vpack.c.bf16 %v52_v14, %v51_v13  ;;  %v53_v17 = vld [vmem:[%s4469_s3 + $0x40] sm:$0xff]  ;;  %v54_v18 = vld [vmem:[%s4469_s3 + $0x48] sm:$0xff]  ;;  %v3559_v42 = vmov 1966171168   ;;  %v215_v44 = vlaneseq }
   0xd   :  { %v3467_v19 = vpack.c.bf16 %v54_v18, %v53_v17  ;;  %v55_v20 = vld [vmem:[%s4469_s3 + $0x50] sm:$0xff]  ;;  %v56_v21 = vld [vmem:[%s4469_s3 + $0x58] sm:$0xff]  ;;  %v57_v23 = vld [vmem:[%s4469_s3 + $0x60] sm:$0xff]  ;;  %v213_v43 = vunpack.c.l.s4 %v3559_v42  ;;  %vm3130_vm1 = vcmask 1040384   ;;  %vm3190_vm2 = vcmask 1041409   ;;  %s3560_s22 = smov [#allocation3]  }
   0xe   :  { %3462 = vmatpush3.bf16.msra.mxu0 %v3461_v12  ;;  %v3470_v22 = vpack.c.bf16 %v56_v21, %v55_v20  ;;  %v58_v24 = vld [vmem:[%s4469_s3 + $0x68] sm:$0xff]  ;;  %v59_v26 = vld [vmem:[%s4469_s3 + $0x70] sm:$0xff]  ;;  %v60_v27 = vld [vmem:[%s4469_s3 + $0x78] sm:$0xff]  ;;  %v3733_v46 = vshrl.u32 %v215_v44, 7  ;;  %vm3264_vm3 = vcmask 254976   ;;  %s3277_s23 = sshll.u32 %s3560_s22, 4  ;;  %s3278_s23 = int_to_ptr.vmem [resolvable:$true] %s3277_s23 }
   0xf   :  { %3463 = vmatprep.subr.bf16.mxu0 %v4475_v4  ;;  %v3473_v25 = vpack.c.bf16 %v58_v24, %v57_v23  ;;  %v3476_v28 = vpack.c.bf16 %v60_v27, %v59_v26  ;;  %v32_v29 = vld [vmem:[%s4466_s0] sm:$0xff]  ;;  %v33_v30 = vld [vmem:[%s4466_s0 + $0x8] sm:$0xff]  ;;  %v34_v31 = vld [vmem:[%s4466_s0 + $0x10] sm:$0xff]  ;;  %v214_v45 = vunpack.c.0.s8 %v213_v43  ;;  %s3531_s24 = scalar_lea.vmem %s3278_s23, 32  ;;  %p3536_p1 = scmp.lt.s32.totalorder %s3278_s23, %s3278_s23 }
  0x10   :  { %v35_v32 = vld [vmem:[%s4466_s0 + $0x18] sm:$0xff]  ;;  %v36_v33 = vld [vmem:[%s4466_s0 + $0x20] sm:$0xff]  ;;  %v37_v34 = vld [vmem:[%s4466_s0 + $0x28] sm:$0xff]  ;;  %p3532_p0 = scmp.ne.s32.totalorder %s3278_s23, %s3531_s24  ;;  %p3537_p2 = scmp.lt.s32.totalorder %s3531_s24, %s3531_s24 }
  0x11   :  { %v38_v35 = vld [vmem:[%s4466_s0 + $0x30] sm:$0xff]  ;;  %v39_v36 = vld [vmem:[%s4466_s0 + $0x38] sm:$0xff]  ;;  %v40_v37 = vld [vmem:[%s4466_s0 + $0x40] sm:$0xff]  ;;  %v3739_v48 = vsub.s32 %v214_v45, %v3733_v46 }
  0x12   :  { %3465 = vmatpush3.bf16.msra.mxu0 %v3464_v16  ;;  %v41_v38 = vld [vmem:[%s4466_s0 + $0x48] sm:$0xff]  ;;  %v42_v39 = vld [vmem:[%s4466_s0 + $0x50] sm:$0xff]  ;;  %v43_v40 = vld [vmem:[%s4466_s0 + $0x58] sm:$0xff]  ;;  %p3538_p3 = por %p3537_p2, %p3536_p1 }
  0x13   :  { %3466 = vmatprep.subr.bf16.mxu0 %v4475_v4  ;;  %v44_v41 = vld [vmem:[%s4466_s0 + $0x60] sm:$0x3]  ;;  %v944_v51 = vld [vmem:[%s4467_s1 + $0x8] sm:$0xff]  ;;  %v945_v52 = vld [vmem:[%s4467_s1 + $0x10] sm:$0xff] }
  0x14   :  { %v943_v47 = vld [vmem:[%s4467_s1] sm:$0xff]  ;;  %v1018_v55 = vcombine.high %v944_v51, %v944_v51  ;;  %v946_v56 = vld [vmem:[%s4467_s1 + $0x18] sm:$0xff]  ;;  %v1067_v57 = vcombine.high %v945_v52, %v945_v52  ;;  %v1025_v59 = vrot.slane %v944_v51, %v3739_v48  ;;  %v1074_v0 = vrot.slane %v945_v52, %v3739_v48  ;;  %p3539_p4 = pnand %p3538_p3, %p3532_p0 }
  0x15   :  { %v969_v49 = vcombine.high %v943_v47, %v943_v47  ;;  %v976_v50 = vrot.slane %v943_v47, %v3739_v48  ;;  %v1116_v60 = vcombine.high %v946_v56, %v946_v56  ;;  %v1123_v5 = vrot.slane %v946_v56, %v3739_v48  ;;  %v947_v13 = vld [vmem:[%s4467_s1 + $0x20] sm:$0xff] }
  0x16   :  { %3468 = vmatpush3.bf16.msra.mxu0 %v3467_v19  ;;  %v1032_v63 = vrot.slane %v1018_v55, %v3739_v48  ;;  %v1081_v1 = vrot.slane %v1067_v57, %v3739_v48  ;;  %v1033_v6 = vcombine.high %v1025_v59, %v1025_v59  ;;  %v1082_v11 = vcombine.high %v1074_v0, %v1074_v0 }
  0x17   :  { %3469 = vmatprep.subr.bf16.mxu0 %v4475_v4  ;;  %v983_v53 = vrot.slane %v969_v49, %v3739_v48  ;;  %v984_v54 = vcombine.high %v976_v50, %v976_v50  ;;  %v992_v61 = vrot.slane %v976_v50, %v3739_v48  ;;  %v1131_v16 = vcombine.high %v1123_v5, %v1123_v5 }
  0x18   :  { %v1034_v8 = vcombine.high %v1032_v63, %v1032_v63  ;;  %v1083_v12 = vcombine.high %v1081_v1, %v1081_v1  ;;  %v1041_v17 = vrot.slane %v1025_v59, %v3739_v48  ;;  %v1048_v18 = vrot.slane %v1032_v63, %v3739_v48 }
  0x19   :  { %v985_v58 = vcombine.high %v983_v53, %v983_v53  ;;  %v1006_v62 = vrot.slane %v984_v54, %v3739_v48  ;;  %v999_v2 = vrot.slane %v983_v53, %v3739_v48  ;;  %v1055_v19 = vrot.slane %v1033_v6, %v3739_v48 }
  0x1a   :  { %3471 = vmatpush3.bf16.msra.mxu0 %v3470_v22  ;;  %v1062_v21 = vrot.slane %v1034_v8, %v3739_v48  ;;  %v1165_v24 = vcombine.high %v947_v13, %v947_v13  ;;  %v1097_v26 = vrot.slane %v1081_v1, %v3739_v48  ;;  %v1104_v27 = vrot.slane %v1082_v11, %v3739_v48 }
  0x1b   :  { %3472 = vmatprep.subr.bf16.mxu0 %v4475_v4  ;;  %v1013_v3 = vrot.slane %v985_v58, %v3739_v48  ;;  %v1589_v9 = vcombine.low %v992_v61, %v1006_v62  ;;  %v3288_v10 = vcombine.high %v992_v61, %v1006_v62 }
  0x1d   :  { %v1591_v14 = vcombine.low %v999_v2, %v1013_v3  ;;  %v3289_v15 = vcombine.high %v999_v2, %v1013_v3  ;;  %v1599_v22 = vrot.slane %v1589_v9, %v3739_v48  ;;  %v1606_v23 = vrot.slane %v3288_v10, %v3739_v48 }
  0x1e   :  { %3474 = vmatpush3.bf16.msra.mxu0 %v3473_v25  ;;  %v1090_v25 = vrot.slane %v1074_v0, %v3739_v48  ;;  %v3797_v0 = vld.sshfl [vmem:[%s4468_s2] sm:$0x11 pattern:$0x75316420]  ;;  %v1581_v10 = vsub.s32 0, %v3733_v46 }
  0x1f   :  { %3475 = vmatprep.subr.bf16.mxu0 %v4475_v4  ;;  %v1621_v42 = vcombine.low %v1599_v22, %v1606_v23 }
  0x20   :  { %v1687_v43 = vcombine.low %v1090_v25, %v1104_v27  ;;  %v3292_v44 = vcombine.high %v1090_v25, %v1104_v27 }
  0x22   :  { %3477 = vmatpush3.bf16.msra.mxu0 %v3476_v28  ;;  %v1111_v28 = vrot.slane %v1083_v12, %v3739_v48  ;;  %v1704_v61 = vrot.slane %v3292_v44, %v3739_v48 }
  0x24   :  { %v1689_v45 = vcombine.low %v1097_v26, %v1111_v28  ;;  %v3293_v47 = vcombine.high %v1097_v26, %v1111_v28 }
  0x25   :  { %3381 = vmatmul.mubr.f32.vlgmr.msra.gmra.mrb[0].mxu0 %v32_v29  ;;  %v1613_v29 = vrot.slane %v1591_v14, %v3739_v48  ;;  %v949_v14 = vld [vmem:[%s4467_s1 + $0x30] sm:$0xff] }
  0x26   :  { %3383 = vmatprep.mubr.msk.f32.mxu0 %vm3556_vm0, %v3557_v7  ;;  %v1711_v62 = vrot.slane %v1689_v45, %v3739_v48  ;;  %v1718_v1 = vrot.slane %v3293_v47, %v3739_v48  ;;  %v1263_v26 = vcombine.high %v949_v14, %v949_v14 }
  0x29   :  { %3384 = vmatmul.mubr.f32.gmra.mrb[2].mxu0 %v33_v30  ;;  %v1620_v30 = vrot.slane %v3289_v15, %v3739_v48  ;;  %v935_v15 = vrot.slane %v3797_v0, %v3739_v48 }
  0x2a   :  { %3386 = vmatprep.mubr.msk.f32.mxu0 %vm3556_vm0, %v3557_v7 }
  0x2b   :  { %v1622_v11 = vcombine.low %v1613_v29, %v1620_v30 }
  0x2d   :  { %3387 = vmatmul.mubr.f32.gmra.mrb[4].mxu0 %v34_v31  ;;  %v1139_v31 = vrot.slane %v1123_v5, %v3739_v48  ;;  %v1636_v27 = vrot.slane %v1622_v11, %v3739_v48 }
  0x2e   :  { %3389 = vmatprep.mubr.msk.f32.mxu0 %vm3556_vm0, %v3557_v7 }
  0x31   :  { %3390 = vmatmul.mubr.f32.gmra.mrb[6].mxu0 %v35_v32  ;;  %v1153_v32 = vrot.slane %v1131_v16, %v3739_v48 }
  0x32   :  { %3392 = vmatprep.mubr.msk.f32.mxu0 %vm3556_vm0, %v3557_v7 }
  0x33   :  { %v1736_v49 = vcombine.low %v1139_v31, %v1153_v32  ;;  %v3294_v50 = vcombine.high %v1139_v31, %v1153_v32 }
  0x35   :  { %3393 = vmatmul.mubr.f32.gmra.mrb[8].mxu0 %v36_v33  ;;  %v1638_v33 = vcombine.low %v1041_v17, %v1055_v19  ;;  %v1746_v2 = vrot.slane %v1736_v49, %v3739_v48  ;;  %v1753_v3 = vrot.slane %v3294_v50, %v3739_v48  ;;  %v1270_v49 = vrot.slane %v949_v14, %v3739_v48 }
  0x36   :  { %3395 = vmatprep.mubr.msk.f32.mxu0 %vm3556_vm0, %v3557_v7  ;;  %v3838_v50 = vrot.slane %v935_v15, %v1581_v10 }
  0x37   :  { %v1648_v52 = vrot.slane %v1638_v33, %v3739_v48  ;;  %v1768_v23 = vcombine.low %v1746_v2, %v1753_v3 }
  0x39   :  { %3396 = vmatmul.mubr.f32.gmra.mrb[10].mxu0 %v37_v34 }
  0x3a   :  { %3398 = vmatprep.mubr.msk.f32.mxu0 %vm3556_vm0, %v3557_v7 }
  0x3d   :  { %3399 = vmatmul.mubr.f32.gmra.mrb[12].mxu0 %v38_v35 }
  0x3e   :  { %3401 = vmatprep.mubr.msk.f32.mxu0 %vm3556_vm0, %v3557_v7 }
  0x41   :  { %3402 = vmatmul.mubr.f32.gmra.mrb[14].mxu0 %v39_v36  ;;  %v1172_v36 = vrot.slane %v947_v13, %v3739_v48 }
  0x42   :  { %3404 = vmatprep.mubr.msk.f32.mxu0 %vm3556_vm0, %v3557_v7 }
  0x43   :  { %v1180_v55 = vcombine.high %v1172_v36, %v1172_v36  ;;  %v1188_v8 = vrot.slane %v1172_v36, %v3739_v48 }
  0x45   :  { %3405 = vmatmul.mubr.f32.gmra.mrb[16].mxu0 %v40_v37  ;;  %v948_v37 = vld [vmem:[%s4467_s1 + $0x28] sm:$0xff]  ;;  %v1202_v9 = vrot.slane %v1180_v55, %v3739_v48 }
  0x46   :  { %3407 = vmatprep.mubr.msk.f32.mxu0 %vm3556_vm0, %v3557_v7  ;;  %v1214_v51 = vcombine.high %v948_v37, %v948_v37  ;;  %v1221_v63 = vrot.slane %v948_v37, %v3739_v48 }
  0x47   :  { %v1785_v25 = vcombine.low %v1188_v8, %v1202_v9  ;;  %v3296_v28 = vcombine.high %v1188_v8, %v1202_v9 }
  0x48   :  { %v1228_v5 = vrot.slane %v1214_v51, %v3739_v48  ;;  %v1237_v33 = vrot.slane %v1221_v63, %v3739_v48 }
  0x49   :  { %3408 = vmatmul.mubr.f32.gmra.mrb[18].mxu0 %v41_v38  ;;  %v3290_v38 = vcombine.high %v1041_v17, %v1055_v19  ;;  %v1629_v19 = vrot.slane %v1621_v42, %v3739_v48  ;;  %v1277_v42 = vrot.slane %v1263_v26, %v3739_v48  ;;  %v1802_v44 = vrot.slane %v3296_v28, %v3739_v48 }
  0x4a   :  { %3410 = vmatprep.mubr.msk.f32.mxu0 %vm3556_vm0, %v3557_v7  ;;  %v1230_v22 = vcombine.high %v1228_v5, %v1228_v5  ;;  %v1244_v37 = vrot.slane %v1228_v5, %v3739_v48 }
  0x4b   :  { %v1655_v56 = vrot.slane %v3290_v38, %v3739_v48  ;;  %v1293_v14 = vrot.slane %v1277_v42, %v3739_v48 }
  0x4c   :  { %v1258_v38 = vrot.slane %v1230_v22, %v3739_v48 }
  0x4d   :  { %3411 = vmatmul.mubr.f32.gmra.mrb[20].mxu0 %v42_v39  ;;  %v1640_v39 = vcombine.low %v1048_v18, %v1062_v21  ;;  %v1670_v16 = vcombine.low %v1648_v52, %v1655_v56  ;;  %v1278_v56 = vcombine.high %v1270_v49, %v1270_v49 }
  0x4e   :  { %3413 = vmatprep.mubr.msk.f32.mxu0 %vm3556_vm0, %v3557_v7  ;;  %v3299_v55 = vcombine.high %v1244_v37, %v1258_v38 }
  0x4f   :  { %v1662_v57 = vrot.slane %v1640_v39, %v3739_v48  ;;  %v1678_v31 = vrot.slane %v1670_v16, %v3739_v48  ;;  %v1776_v39 = vrot.slane %v1768_v23, %v3739_v48  ;;  %v1300_v11 = vrot.slane %v1278_v56, %v3739_v48 }
  0x50   :  { %v1865_v9 = vrot.slane %v3299_v55, %v3739_v48 }
  0x51   :  { %3414 = vmatmul.mubr.f32.gmra.mrb[22].mxu0 %v43_v40  ;;  %v3291_v40 = vcombine.high %v1048_v18, %v1062_v21  ;;  %v1229_v18 = vcombine.high %v1221_v63, %v1221_v63  ;;  %v1720_v21 = vcombine.low %v1711_v62, %v1718_v1 }
  0x52   :  { %3416 = vmatprep.mubr.msk.f32.mxu0 %vm3556_vm0, %v3557_v7  ;;  %v1130_v7 = vrot.slane %v1116_v60, %v3739_v48  ;;  %v1697_v60 = vrot.slane %v1687_v43, %v3739_v48  ;;  %v950_v43 = vld [vmem:[%s4467_s1 + $0x38] sm:$0xff] }
  0x53   :  { %v1669_v58 = vrot.slane %v3291_v40, %v3739_v48  ;;  %v1734_v36 = vrot.slane %v1720_v21, %v3739_v48 }
  0x54   :  { %v1132_v20 = vcombine.high %v1130_v7, %v1130_v7  ;;  %v1146_v34 = vrot.slane %v1130_v7, %v3739_v48 }
  0x55   :  { %3417 = vmatmul.mubr.f32.gmra.mrb[24].mxu0 %v44_v41  ;;  %v1179_v41 = vrot.slane %v1165_v24, %v3739_v48  ;;  %v1671_v17 = vcombine.low %v1662_v57, %v1669_v58  ;;  %v1312_v57 = vcombine.high %v950_v43, %v950_v43  ;;  %v1637_v58 = vcombine.low %v1629_v19, %v1636_v27 }
  0x56   :  { %v1160_v35 = vrot.slane %v1132_v20, %v3739_v48  ;;  %v1719_v20 = vcombine.low %v1697_v60, %v1704_v61  ;;  %v1279_v61 = vcombine.high %v1277_v42, %v1277_v42  ;;  %v1310_v27 = vcombine.high %v1300_v11, %v1300_v11 }
  0x57   :  { %v1181_v59 = vcombine.high %v1179_v41, %v1179_v41  ;;  %v1195_v12 = vrot.slane %v1179_v41, %v3739_v48  ;;  %v1685_v32 = vrot.slane %v1671_v17, %v3739_v48  ;;  %v1795_v41 = vrot.slane %v1785_v25, %v3739_v48 }
  0x58   :  { %v1738_v53 = vcombine.low %v1146_v34, %v1160_v35  ;;  %v3295_v54 = vcombine.high %v1146_v34, %v1160_v35  ;;  %v1251_v34 = vrot.slane %v1229_v18, %v3739_v48  ;;  %v1727_v35 = vrot.slane %v1719_v20, %v3739_v48 }
  0x59   :  { %v1209_v13 = vrot.slane %v1181_v59, %v3739_v48  ;;  %v1686_v59 = vcombine.low %v1678_v31, %v1685_v32  ;;  %v1817_v63 = vcombine.low %v1795_v41, %v1802_v44  ;;  %v1307_v15 = vrot.slane %v1279_v61, %v3739_v48 }
  0x5a   :  { %v1760_v6 = vrot.slane %v1738_v53, %v3739_v48  ;;  %v1767_v7 = vrot.slane %v3295_v54, %v3739_v48  ;;  %v1834_v51 = vcombine.low %v1237_v33, %v1251_v34  ;;  %v3298_v52 = vcombine.high %v1237_v33, %v1251_v34  ;;  %v951_v53 = vld [vmem:[%s4467_s1 + $0x40] sm:$0xff] }
  0x5b   :  { %v1787_v29 = vcombine.low %v1195_v12, %v1209_v13  ;;  %v3297_v30 = vcombine.high %v1195_v12, %v1209_v13  ;;  %v1836_v54 = vcombine.low %v1244_v37, %v1258_v38  ;;  %v1735_v60 = vcombine.low %v1727_v35, %v1734_v36 }
  0x5c   :  { %v1769_v24 = vcombine.low %v1760_v6, %v1767_v7  ;;  %v1361_v2 = vcombine.high %v951_v53, %v951_v53  ;;  %v1844_v3 = vrot.slane %v1834_v51, %v3739_v48  ;;  %v1851_v5 = vrot.slane %v3298_v52, %v3739_v48 }
  0x5d   :  { %v1809_v45 = vrot.slane %v1787_v29, %v3739_v48  ;;  %v1816_v47 = vrot.slane %v3297_v30, %v3739_v48  ;;  %v3846_v6 = vrot.slane %v1270_v49, %v3739_v48  ;;  %v1319_v7 = vrot.slane %v950_v43, %v3739_v48  ;;  %v952_v29 = vld [vmem:[%s4467_s1 + $0x48] sm:$0xff] }
  0x5e   :  { %v1783_v40 = vrot.slane %v1769_v24, %v3739_v48  ;;  %v1858_v8 = vrot.slane %v1836_v54, %v3739_v48  ;;  %v1326_v12 = vrot.slane %v1312_v57, %v3739_v48  ;;  %v3854_v13 = vmul.f32 %v1637_v58, %v3838_v50 }
  0x5f   :  { %v1818_v1 = vcombine.low %v1809_v45, %v1816_v47  ;;  %v1308_v16 = vcombine.high %v3846_v6, %v3846_v6  ;;  %v3861_v17 = vrot.slane %v1817_v63, %v3739_v48  ;;  %v1368_v19 = vrot.slane %v951_v53, %v3739_v48 }
  0x60   :  { %v1784_v62 = vcombine.low %v1776_v39, %v1783_v40  ;;  %v1375_v20 = vrot.slane %v1361_v2, %v3739_v48  ;;  %v3869_v21 = vmul.f32 %v1686_v59, %v3838_v50  ;;  %v3872_v22 = vmul.f32 %v1735_v60, %v3838_v50 }
  0x61   :  { %v3864_v18 = vrot.slane %v1818_v1, %v3739_v48  ;;  %v1866_v23 = vcombine.low %v1844_v3, %v1851_v5  ;;  %v1327_v24 = vcombine.high %v1319_v7, %v1319_v7  ;;  %v1867_v26 = vcombine.low %v1858_v8, %v1865_v9  ;;  %v953_v3 = vld [vmem:[%s4467_s1 + $0x50] sm:$0xff] }
  0x62   :  { %v3875_v25 = vmul.f32 %v1784_v62, %v3838_v50  ;;  %v1328_v28 = vcombine.high %v1326_v12, %v1326_v12  ;;  %v1309_v30 = vcombine.high %v1293_v14, %v1293_v14  ;;  %v1897_v31 = vcombine.low %v1300_v11, %v1308_v16 }
  0x63   :  { %v1311_v32 = vcombine.high %v1307_v15, %v1307_v15  ;;  %v1335_v33 = vrot.slane %v1319_v7, %v3739_v48  ;;  %v1833_v34 = vcombine.low %v3861_v17, %v3864_v18  ;;  %v1889_v35 = vrot.slane %v3846_v6, %v3739_v48  ;;  %v3287_v6 = vld.sshfl [vmem:[%s4467_s1 + $0x60] sm:$0x11 pattern:$0x75316420] }
  0x64   :  { %v1376_v36 = vcombine.high %v1368_v19, %v1368_v19  ;;  %v1377_v37 = vcombine.high %v1375_v20, %v1375_v20  ;;  %v3886_v38 = vrot.slane %v1866_v23, %v3739_v48  ;;  %v1349_v39 = vrot.slane %v1327_v24, %v3739_v48 }
  0x65   :  { %v1417_v40 = vrot.slane %v952_v29, %v3739_v48  ;;  %v1410_v41 = vcombine.high %v952_v29, %v952_v29  ;;  %v3891_v42 = vrot.slane %v1867_v26, %v3739_v48  ;;  %v1898_v43 = vcombine.low %v1310_v27, %v1293_v14 }
  0x66   :  { %v1342_v44 = vrot.slane %v1326_v12, %v3739_v48  ;;  %v1356_v45 = vrot.slane %v1328_v28, %v3739_v48  ;;  %v1907_v47 = vrot.slane %v1897_v31, %v3739_v48  ;;  %v1899_v49 = vcombine.low %v1307_v15, %v1309_v30 }
  0x67   :  { %v1900_v51 = vcombine.low %v1311_v32, %v1335_v33  ;;  %v1424_v52 = vrot.slane %v1410_v41, %v3739_v48  ;;  %v1384_v53 = vrot.slane %v1368_v19, %v3739_v48  ;;  %v1391_v54 = vrot.slane %v1375_v20, %v3739_v48 }
  0x68   :  { %v1398_v55 = vrot.slane %v1376_v36, %v3739_v48  ;;  %v1405_v56 = vrot.slane %v1377_v37, %v3739_v48  ;;  %v1357_v57 = vcombine.high %v1335_v33, %v1335_v33  ;;  %v1359_v58 = vcombine.high %v1349_v39, %v1349_v39 }
  0x69   :  { %v1425_v59 = vcombine.high %v1417_v40, %v1417_v40  ;;  %v1426_v60 = vcombine.high %v1424_v52, %v1424_v52  ;;  %v1914_v61 = vrot.slane %v1898_v43, %v3739_v48  ;;  %v1358_v62 = vcombine.high %v1342_v44, %v1342_v44 }
  0x6a   :  { %v1360_v63 = vcombine.high %v1356_v45, %v1356_v45  ;;  %v1406_v1 = vcombine.high %v1384_v53, %v1384_v53  ;;  %v1433_v2 = vrot.slane %v1417_v40, %v3739_v48  ;;  %v1440_v5 = vrot.slane %v1424_v52, %v3739_v48 }
  0x6b   :  { %v1447_v7 = vrot.slane %v1425_v59, %v3739_v48  ;;  %v1454_v8 = vrot.slane %v1426_v60, %v3739_v48  ;;  %v1407_v9 = vcombine.high %v1391_v54, %v1391_v54  ;;  %v1408_v11 = vcombine.high %v1398_v55, %v1398_v55 }
  0x6c   :  { %v1409_v12 = vcombine.high %v1405_v56, %v1405_v56  ;;  %v1466_v14 = vrot.slane %v953_v3, %v3739_v48  ;;  %v1921_v15 = vrot.slane %v1899_v49, %v3739_v48  ;;  %v1946_v16 = vcombine.low %v1349_v39, %v1357_v57  ;;  %v954_v57 = vld [vmem:[%s4467_s1 + $0x58] sm:$0xff] }
  0x6d   :  { %v1947_v19 = vcombine.low %v1359_v58, %v1342_v44  ;;  %v1455_v20 = vcombine.high %v1433_v2, %v1433_v2  ;;  %v1456_v23 = vcombine.high %v1440_v5, %v1440_v5  ;;  %v1457_v24 = vcombine.high %v1447_v7, %v1447_v7 }
  0x6e   :  { %v1458_v26 = vcombine.high %v1454_v8, %v1454_v8  ;;  %v1482_v27 = vrot.slane %v1466_v14, %v3739_v48  ;;  %v1928_v28 = vrot.slane %v1900_v51, %v3739_v48  ;;  %v1948_v29 = vcombine.low %v1356_v45, %v1358_v62 }
  0x6f   :  { %v1949_v30 = vcombine.low %v1360_v63, %v1384_v53  ;;  %v1995_v31 = vcombine.low %v1398_v55, %v1406_v1  ;;  %v928_v32 = vcombine.high %v3797_v0, %v3797_v0  ;;  %v1996_v33 = vcombine.low %v1408_v11, %v1391_v54 }
  0x70   :  { %v1997_v36 = vcombine.low %v1405_v56, %v1407_v9  ;;  %v1998_v37 = vcombine.low %v1409_v12, %v1433_v2  ;;  %v3915_v40 = vcombine.low %v1907_v47, %v1914_v61  ;;  %v1956_v39 = vrot.slane %v1946_v16, %v3739_v48 }
  0x71   :  { %v1963_v41 = vrot.slane %v1947_v19, %v3739_v48  ;;  %v2044_v43 = vcombine.low %v1447_v7, %v1455_v20  ;;  %v2045_v44 = vcombine.low %v1457_v24, %v1440_v5  ;;  %v2046_v49 = vcombine.low %v1454_v8, %v1456_v23 }
  0x72   :  { %v2047_v52 = vcombine.low %v1458_v26, %v1482_v27  ;;  %v1459_v51 = vcombine.high %v953_v3, %v953_v3  ;;  %v1930_v45 = vcombine.low %v1921_v15, %v1928_v28  ;;  %v1970_v53 = vrot.slane %v1948_v29, %v3739_v48 }
  0x73   :  { %v1977_v55 = vrot.slane %v1949_v30, %v3739_v48  ;;  %v2005_v0 = vrot.slane %v1995_v31, %v3739_v48  ;;  %v2012_v54 = vrot.slane %v1996_v33, %v3739_v48  ;;  %v2019_v47 = vrot.slane %v1997_v36, %v3739_v48 }
  0x74   :  { %v2026_v56 = vrot.slane %v1998_v37, %v3739_v48  ;;  %v1473_v58 = vrot.slane %v1459_v51, %v3739_v48  ;;  %v1978_v59 = vcombine.low %v1956_v39, %v1963_v41  ;;  %v2054_v60 = vrot.slane %v2044_v43, %v3739_v48 }
  0x75   :  { %v1474_v61 = vcombine.high %v1466_v14, %v1466_v14  ;;  %v1508_v62 = vcombine.high %v954_v57, %v954_v57  ;;  %v2061_v63 = vrot.slane %v2045_v44, %v3739_v48  ;;  %v2068_v1 = vrot.slane %v2046_v49, %v3739_v48 }
  0x76   :  { %v2075_v2 = vrot.slane %v2047_v52, %v3739_v48  ;;  %v1475_v3 = vcombine.high %v1473_v58, %v1473_v58  ;;  %v1489_v5 = vrot.slane %v1473_v58, %v3739_v48  ;;  %v1515_v8 = vrot.slane %v954_v57, %v3739_v48  ;;  %v3970_v58 = vld [vmem:[%s4470_s4] ss:$0 sm:$0xff] }
  0x77   :  { %v1496_v7 = vrot.slane %v1474_v61, %v3739_v48  ;;  %v1522_v9 = vrot.slane %v1508_v62, %v3739_v48  ;;  %v1979_v11 = vcombine.low %v1970_v53, %v1977_v55  ;;  %v2027_v12 = vcombine.low %v2005_v0, %v2012_v54 }
  0x78   :  { %v2028_v15 = vcombine.low %v2019_v47, %v2026_v56  ;;  %v1503_v14 = vrot.slane %v1475_v3, %v3739_v48  ;;  %v1504_v16 = vcombine.high %v1482_v27, %v1482_v27  ;;  %v1505_v19 = vcombine.high %v1489_v5, %v1489_v5 }
  0x79   :  { %v1506_v20 = vcombine.high %v1496_v7, %v1496_v7  ;;  %v1531_v23 = vrot.slane %v1515_v8, %v3739_v48  ;;  %v2076_v24 = vcombine.low %v2054_v60, %v2061_v63  ;;  %v2077_v26 = vcombine.low %v2068_v1, %v2075_v2 }
  0x7a   :  { %v1507_v28 = vcombine.high %v1503_v14, %v1503_v14  ;;  %v1523_v29 = vcombine.high %v1515_v8, %v1515_v8  ;;  %v1896_v30 = vrot.slane %v1889_v35, %v3739_v48  ;;  %v2093_v31 = vcombine.low %v1496_v7, %v1504_v16 }
  0x7b   :  { %v2094_v33 = vcombine.low %v1506_v20, %v1489_v5  ;;  %v1524_v36 = vcombine.high %v1522_v9, %v1522_v9  ;;  %v942_v37 = vrot.slane %v928_v32, %v3739_v48  ;;  %v1937_v27 = vrot.slane %v3915_v40, %v3739_v48 }
  0x7c   :  { %v1944_v39 = vrot.slane %v1930_v45, %v3739_v48  ;;  %v1986_v41 = vrot.slane %v1978_v59, %v3739_v48  ;;  %v1993_v43 = vrot.slane %v1979_v11, %v3739_v48  ;;  %v2095_v44 = vcombine.low %v1503_v14, %v1505_v19 }
  0x7d   :  { %v2096_v49 = vcombine.low %v1507_v28, %v1531_v23  ;;  %v1545_v35 = vrot.slane %v1523_v29, %v3739_v48  ;;  %v2035_v52 = vrot.slane %v2027_v12, %v3739_v48  ;;  %v2042_v32 = vrot.slane %v2028_v15, %v3739_v48 }
  0x7e   :  { %v2084_v40 = vrot.slane %v2076_v24, %v3739_v48  ;;  %v2091_v51 = vrot.slane %v2077_v26, %v3739_v48  ;;  %v2103_v45 = vrot.slane %v2093_v31, %v3739_v48  ;;  %v2110_v53 = vrot.slane %v2094_v33, %v3739_v48 }
  0x7f   :  { %v1538_v55 = vrot.slane %v1522_v9, %v3739_v48  ;;  %v1552_v0 = vrot.slane %v1524_v36, %v3739_v48  ;;  %v1882_v54 = vcombine.low %v3886_v38, %v3891_v42  ;;  %v3965_v47 = vrot.slane %v942_v37, %v1581_v10 }
  0x80   :  { %v1945_v56 = vcombine.low %v1937_v27, %v1944_v39  ;;  %v1564_v57 = vcombine.high %v3287_v6, %v3287_v6  ;;  %v2117_v59 = vrot.slane %v2095_v44, %v3739_v48  ;;  %v2124_v60 = vrot.slane %v2096_v49, %v3739_v48 }
  0x81   :  { %v1553_v61 = vcombine.high %v1531_v23, %v1531_v23  ;;  %v1555_v62 = vcombine.high %v1545_v35, %v1545_v35  ;;  %v3978_v46 = vmul.f32 %v1833_v34, %v3838_v50  ;;  %v1994_v10 = vcombine.low %v1986_v41, %v1993_v43 }
  0x82   :  { %v2043_v38 = vcombine.low %v2035_v52, %v2042_v32  ;;  %v2092_v42 = vcombine.low %v2084_v40, %v2091_v51  ;;  %v3980_v1 = vcombine.low %v2103_v45, %v2110_v53  ;;  %v1554_v2 = vcombine.high %v1538_v55, %v1538_v55 }
  0x83   :  { %v1556_v3 = vcombine.high %v1552_v0, %v1552_v0  ;;  %v1571_v5 = vrot.slane %v3287_v6, %v3739_v48  ;;  %v3985_v9 = vmul.f32 %v1882_v54, %v3838_v50  ;;  %v3988_v17 = vmul.f32 %v1896_v30, %v3838_v50 }
  0x84   :  { %v3991_v18 = vmul.f32 %v1945_v56, %v3965_v47  ;;  %v3993_v34 = vcombine.low %v2117_v59, %v2124_v60  ;;  %v3996_v11 = vrot.slane %v1564_v57, %v3739_v48  ;;  %v3998_v12 = vcombine.low %v1545_v35, %v1553_v61 }
  0x85   :  { %v4000_v15 = vcombine.low %v1555_v62, %v1538_v55  ;;  %v4004_v19 = vmul.f32 %v1994_v10, %v3965_v47  ;;  %v4007_v50 = vmul.f32 %v2043_v38, %v3965_v47  ;;  %v4010_v23 = vmul.f32 %v2092_v42, %v3965_v47 }
  0x86   :  { %v4014_v26 = vcombine.low %v1552_v0, %v1554_v2  ;;  %v4016_v28 = vcombine.low %v1556_v3, %v1571_v5 }
  0x89   :  { %v4021_v37 = vpop.permute.xlu0 %2240 }
  0xf8   :  { %v134_v63 = vpop.f32.mrb[0].mxu0 }
  0xf9   :  { %v135_v7 = vadd.f32 %v3970_v58, %v134_v63  ;;  %v3382_v8 = vpop.f32.mrb[1].mxu0 }
  0xfb   :  { %v211_v14 = vcombine.high %v135_v7, %v135_v7  ;;  %v218_v16 = vrot.slane %v135_v7, %v3739_v48 }
  0xfc   :  { %v139_v20 = vpop.f32.mrb[2].mxu0 }
  0xfd   :  { %v225_v29 = vrot.slane %v211_v14, %v3739_v48  ;;  %v226_v30 = vcombine.high %v218_v16, %v218_v16  ;;  %v234_v31 = vrot.slane %v218_v16, %v3739_v48  ;;  %v140_v33 = vadd.f32 %v3970_v58, %v139_v20  ;;  %v3385_v36 = vpop.f32.mrb[3].mxu0 }
  0xff   :  { %v227_v44 = vcombine.high %v225_v29, %v225_v29  ;;  %v241_v49 = vrot.slane %v225_v29, %v3739_v48  ;;  %v248_v6 = vrot.slane %v226_v30, %v3739_v48  ;;  %v256_v35 = vcombine.high %v234_v31, %v234_v31 }
 0x100   :  { %v260_v52 = vcombine.high %v140_v33, %v140_v33  ;;  %v267_v32 = vrot.slane %v140_v33, %v3739_v48  ;;  %v144_v40 = vpop.f32.mrb[4].mxu0  ;;  %v4035_v51 = vmul.f32 %v4021_v37, %v234_v31 }
 0x101   :  { %v255_v53 = vrot.slane %v227_v44, %v3739_v48  ;;  %v257_v55 = vcombine.high %v241_v49, %v241_v49  ;;  %v258_v0 = vcombine.high %v248_v6, %v248_v6  ;;  %v145_v54 = vadd.f32 %v3970_v58, %v144_v40  ;;  %v3388_v56 = vpop.f32.mrb[5].mxu0 }
 0x102   :  { %v274_v57 = vrot.slane %v260_v52, %v3739_v48  ;;  %v275_v59 = vcombine.high %v267_v32, %v267_v32  ;;  %v283_v60 = vrot.slane %v267_v32, %v3739_v48  ;;  %v2244_v61 = vmul.f32 %v4021_v37, %v248_v6 }
 0x103   :  { %v259_v62 = vcombine.high %v255_v53, %v255_v53  ;;  %v309_v10 = vcombine.high %v145_v54, %v145_v54  ;;  %v316_v38 = vrot.slane %v145_v54, %v3739_v48  ;;  %v2245_v42 = vmul.f32 %v4021_v37, %v256_v35 }
 0x104   :  { %v276_v63 = vcombine.high %v274_v57, %v274_v57  ;;  %v290_v2 = vrot.slane %v274_v57, %v3739_v48  ;;  %v297_v3 = vrot.slane %v275_v59, %v3739_v48  ;;  %v305_v5 = vcombine.high %v283_v60, %v283_v60  ;;  %v4048_v7 = vpop.f32.mrb[6].mxu0 }
 0x105   :  { %v323_v8 = vrot.slane %v309_v10, %v3739_v48  ;;  %v324_v14 = vcombine.high %v316_v38, %v316_v38  ;;  %v332_v16 = vrot.slane %v316_v38, %v3739_v48  ;;  %v2246_v20 = vmul.f32 %v4021_v37, %v258_v0  ;;  %v3391_v29 = vpop.f32.mrb[7].mxu0 }
 0x106   :  { %v304_v30 = vrot.slane %v276_v63, %v3739_v48  ;;  %v306_v31 = vcombine.high %v290_v2, %v290_v2  ;;  %v307_v33 = vcombine.high %v297_v3, %v297_v3  ;;  %v2247_v36 = vmul.f32 %v4021_v37, %v241_v49 }
 0x107   :  { %v325_v44 = vcombine.high %v323_v8, %v323_v8  ;;  %v339_v6 = vrot.slane %v323_v8, %v3739_v48  ;;  %v346_v35 = vrot.slane %v324_v14, %v3739_v48  ;;  %v354_v52 = vcombine.high %v332_v16, %v332_v16 }
 0x108   :  { %v308_v32 = vcombine.high %v304_v30, %v304_v30  ;;  %v2248_v40 = vmul.f32 %v4021_v37, %v255_v53  ;;  %v2249_v54 = vmul.f32 %v4021_v37, %v257_v55  ;;  %v2250_v0 = vmul.f32 %v4021_v37, %v259_v62  ;;  %v4060_v56 = vpop.f32.mrb[8].mxu0 }
 0x109   :  { %v353_v57 = vrot.slane %v325_v44, %v3739_v48  ;;  %v355_v59 = vcombine.high %v339_v6, %v339_v6  ;;  %v356_v10 = vcombine.high %v346_v35, %v346_v35  ;;  %v2251_v49 = vmul.f32 %v4021_v37, %v283_v60  ;;  %v3394_v38 = vpop.f32.mrb[9].mxu0 }
 0x10a   :  { %v2252_v63 = vmul.f32 %v4021_v37, %v297_v3  ;;  %v2253_v8 = vmul.f32 %v4021_v37, %v305_v5  ;;  %v2254_v14 = vmul.f32 %v4021_v37, %v307_v33  ;;  %v2255_v53 = vmul.f32 %v4021_v37, %v290_v2 }
 0x10b   :  { %v357_v55 = vcombine.high %v353_v57, %v353_v57  ;;  %v2256_v62 = vmul.f32 %v4021_v37, %v304_v30  ;;  %v2257_v29 = vmul.f32 %v4021_v37, %v306_v31  ;;  %v2258_v44 = vmul.f32 %v4021_v37, %v308_v32 }
 0x10c   :  { %v2259_v4 = vmul.f32 %v4021_v37, %v332_v16  ;;  %v2260_v60 = vmul.f32 %v4021_v37, %v346_v35  ;;  %v2261_v38 = vmul.f32 %v4021_v37, %v354_v52  ;;  %v2262_v3 = vmul.f32 %v4021_v37, %v356_v10  ;;  %v159_v5 = vpop.f32.mrb[10].mxu0 }
 0x10d   :  { %v2263_v33 = vmul.f32 %v4021_v37, %v339_v6  ;;  %v2264_v2 = vmul.f32 %v4021_v37, %v353_v57  ;;  %v2265_v45 = vmul.f32 %v4021_v37, %v355_v59  ;;  %v2266_v30 = vmul.f32 %v4021_v37, %v357_v55  ;;  %v3397_v31 = vpop.f32.mrb[11].mxu0 }
 0x10e   :  { %v2439_v32 = vcombine.low %v4035_v51, %v2244_v61  ;;  %v2440_v39 = vcombine.low %v2245_v42, %v2246_v20  ;;  %v2441_v16 = vcombine.low %v2247_v36, %v2248_v40  ;;  %v2442_v41 = vcombine.low %v2249_v54, %v2250_v0 }
 0x10f   :  { %v2488_v35 = vcombine.low %v2251_v49, %v2252_v63  ;;  %v2489_v24 = vcombine.low %v2253_v8, %v2254_v14  ;;  %v2490_v52 = vcombine.low %v2255_v53, %v2256_v62  ;;  %v2491_v27 = vcombine.low %v2257_v29, %v2258_v44 }
 0x110   :  { %v2449_v10 = vrot.slane %v2439_v32, %v3739_v48  ;;  %v2456_v6 = vrot.slane %v2440_v39, %v3739_v48  ;;  %v2463_v57 = vrot.slane %v2441_v16, %v3739_v48  ;;  %v2470_v59 = vrot.slane %v2442_v41, %v3739_v48  ;;  %v164_v43 = vpop.f32.mrb[12].mxu0 }
 0x111   :  { %v2498_v55 = vrot.slane %v2488_v35, %v3739_v48  ;;  %v2505_v51 = vrot.slane %v2489_v24, %v3739_v48  ;;  %v2512_v61 = vrot.slane %v2490_v52, %v3739_v48  ;;  %v2519_v42 = vrot.slane %v2491_v27, %v3739_v48  ;;  %v3400_v20 = vpop.f32.mrb[13].mxu0 }
 0x112   :  { %v2471_v36 = vcombine.low %v2449_v10, %v2456_v6  ;;  %v2472_v40 = vcombine.low %v2463_v57, %v2470_v59  ;;  %v2537_v54 = vcombine.low %v2259_v4, %v2260_v60  ;;  %v2538_v0 = vcombine.low %v2261_v38, %v2262_v3 }
 0x113   :  { %v2520_v49 = vcombine.low %v2498_v55, %v2505_v51  ;;  %v2521_v39 = vcombine.low %v2512_v61, %v2519_v42  ;;  %v2539_v63 = vcombine.low %v2263_v33, %v2264_v2  ;;  %v2540_v8 = vcombine.low %v2265_v45, %v2266_v30 }
 0x114   :  { %v2479_v41 = vrot.slane %v2471_v36, %v3739_v48  ;;  %v2486_v14 = vrot.slane %v2472_v40, %v3739_v48  ;;  %v2547_v53 = vrot.slane %v2537_v54, %v3739_v48  ;;  %v2554_v24 = vrot.slane %v2538_v0, %v3739_v48  ;;  %v4092_v62 = vpop.f32.mrb[14].mxu0 }
 0x115   :  { %v2528_v27 = vrot.slane %v2520_v49, %v3739_v48  ;;  %v2535_v29 = vrot.slane %v2521_v39, %v3739_v48  ;;  %v2561_v4 = vrot.slane %v2539_v63, %v3739_v48  ;;  %v2568_v44 = vrot.slane %v2540_v8, %v3739_v48  ;;  %v3403_v60 = vpop.f32.mrb[15].mxu0 }
 0x116   :  { %v2487_v45 = vcombine.low %v2479_v41, %v2486_v14  ;;  %v2569_v38 = vcombine.low %v2547_v53, %v2554_v24  ;;  %v150_v3 = vadd.f32 %v3970_v58, %v4048_v7  ;;  %v155_v33 = vadd.f32 %v3970_v58, %v4060_v56 }
 0x117   :  { %v2536_v2 = vcombine.low %v2528_v27, %v2535_v29  ;;  %v2570_v30 = vcombine.low %v2561_v4, %v2568_v44  ;;  %v4103_v31 = vadd.f32 %v3970_v58, %v159_v5  ;;  %v4106_v32 = vadd.f32 %v3970_v58, %v164_v43 }
 0x118   :  { %v2577_v16 = vrot.slane %v2569_v38, %v3739_v48  ;;  %v3069_v35 = vadd.f32 %v2487_v45, %v3854_v13  ;;  %v358_v52 = vcombine.high %v150_v3, %v150_v3  ;;  %v365_v10 = vrot.slane %v150_v3, %v3739_v48  ;;  %v4111_v6 = vpop.f32.mrb[16].mxu0 }
 0x119   :  { %v2584_v7 = vrot.slane %v2570_v30, %v3739_v48  ;;  %v3070_v56 = vadd.f32 %v2536_v2, %v3869_v21  ;;  %v407_v57 = vcombine.high %v155_v33, %v155_v33  ;;  %v414_v5 = vrot.slane %v155_v33, %v3739_v48  ;;  %v3406_v59 = vpop.f32.mrb[17].mxu0 }
 0x11a   :  { %v3083_v55 = vmax.f32 %v3069_v35, 1e-06  ;;  %v372_v43 = vrot.slane %v358_v52, %v3739_v48  ;;  %v373_v51 = vcombine.high %v365_v10, %v365_v10  ;;  %v381_v61 = vrot.slane %v365_v10, %v3739_v48 }
 0x11b   :  { %v2585_v13 = vcombine.low %v2577_v16, %v2584_v7  ;;  %v3084_v42 = vmax.f32 %v3070_v56, 1e-06  ;;  %v421_v20 = vrot.slane %v407_v57, %v3739_v48  ;;  %v422_v36 = vcombine.high %v414_v5, %v414_v5 }
 0x11c   :  { %v3097_v40 = vmul.f32 %v3083_v55, %v3083_v55  ;;  %v374_v54 = vcombine.high %v372_v43, %v372_v43  ;;  %v388_v0 = vrot.slane %v372_v43, %v3739_v48  ;;  %v395_v21 = vrot.slane %v373_v51, %v3739_v48  ;;  %v4121_v49 = vpop.f32.mrb[18].mxu0 }
 0x11d   :  { %v3071_v39 = vadd.f32 %v2585_v13, %v3872_v22  ;;  %v3098_v63 = vmul.f32 %v3084_v42, %v3084_v42  ;;  %v403_v8 = vcombine.high %v381_v61, %v381_v61  ;;  %v2267_v41 = vmul.f32 %v4021_v37, %v381_v61  ;;  %v3409_v14 = vpop.f32.mrb[19].mxu0 }
 0x11e   :  { %v3111_v53 = vmul.f32 %v3097_v40, %v3083_v55  ;;  %v402_v24 = vrot.slane %v374_v54, %v3739_v48  ;;  %v404_v27 = vcombine.high %v388_v0, %v388_v0  ;;  %v405_v29 = vcombine.high %v395_v21, %v395_v21 }
 0x11f   :  { %v3085_v4 = vmax.f32 %v3071_v39, 1e-06  ;;  %v3112_v44 = vmul.f32 %v3098_v63, %v3084_v42  ;;  %v2268_v60 = vmul.f32 %v4021_v37, %v395_v21  ;;  %v2269_v45 = vmul.f32 %v4021_v37, %v403_v8 }
 0x120   :  { %v406_v38 = vcombine.high %v402_v24, %v402_v24  ;;  %v2270_v3 = vmul.f32 %v4021_v37, %v405_v29  ;;  %v2271_v22 = vmul.f32 %v4021_v37, %v388_v0  ;;  %v2272_v33 = vmul.f32 %v4021_v37, %v402_v24  ;;  %v4131_v2 = vpop.f32.mrb[20].mxu0 }
 0x121   :  { %v3099_v30 = vmul.f32 %v3085_v4, %v3085_v4  ;;  %v3125_v16 = vadd.f32 %v3112_v44, %v3111_v53  ;;  %v2273_v35 = vmul.f32 %v4021_v37, %v404_v27  ;;  %v2586_v52 = vcombine.low %v2267_v41, %v2268_v60  ;;  %v3412_v10 = vpop.f32.mrb[21].mxu0 }
 0x122   :  { %v2274_v7 = vmul.f32 %v4021_v37, %v406_v38  ;;  %v2587_v56 = vcombine.low %v2269_v45, %v2270_v3  ;;  %v2588_v57 = vcombine.low %v2271_v22, %v2272_v33  ;;  %v423_v59 = vcombine.high %v421_v20, %v421_v20 }
 0x123   :  { %v3113_v55 = vmul.f32 %v3099_v30, %v3085_v4  ;;  %v2596_v43 = vrot.slane %v2586_v52, %v3739_v48  ;;  %v430_v51 = vrot.slane %v414_v5, %v3739_v48  ;;  %v437_v61 = vrot.slane %v421_v20, %v3739_v48 }
 0x124   :  { %v2589_v13 = vcombine.low %v2273_v35, %v2274_v7  ;;  %v2603_v42 = vrot.slane %v2587_v56, %v3739_v48  ;;  %v2610_v40 = vrot.slane %v2588_v57, %v3739_v48  ;;  %v444_v54 = vrot.slane %v422_v36, %v3739_v48  ;;  %v4141_v0 = vpop.f32.mrb[22].mxu0 }
 0x125   :  { %v4143_v21 = vadd.f32 %v3125_v16, %v3113_v55  ;;  %v451_v39 = vrot.slane %v423_v59, %v3739_v48  ;;  %v452_v63 = vcombine.high %v430_v51, %v430_v51  ;;  %v453_v8 = vcombine.high %v437_v61, %v437_v61  ;;  %v3415_v41 = vpop.f32.mrb[23].mxu0 }
 0x126   :  { %v2617_v5 = vrot.slane %v2589_v13, %v3739_v48  ;;  %v2618_v14 = vcombine.low %v2596_v43, %v2603_v42  ;;  %v454_v20 = vcombine.high %v444_v54, %v444_v54  ;;  %v2275_v53 = vmul.f32 %v4021_v37, %v430_v51 }
 0x127   :  { %v455_v24 = vcombine.high %v451_v39, %v451_v39  ;;  %v2276_v27 = vmul.f32 %v4021_v37, %v444_v54  ;;  %v2277_v36 = vmul.f32 %v4021_v37, %v452_v63  ;;  %v2279_v29 = vmul.f32 %v4021_v37, %v437_v61 }
 0x128   :  { %v2619_v4 = vcombine.low %v2610_v40, %v2617_v5  ;;  %v2626_v44 = vrot.slane %v2618_v14, %v3739_v48  ;;  %v2278_v60 = vmul.f32 %v4021_v37, %v454_v20  ;;  %v2280_v45 = vmul.f32 %v4021_v37, %v451_v39  ;;  %v4154_v38 = vpop.f32.mrb[24].mxu0 }
 0x129   :  { %v2281_v3 = vmul.f32 %v4021_v37, %v453_v8  ;;  %v2282_v22 = vmul.f32 %v4021_v37, %v455_v24  ;;  %v2635_v33 = vcombine.low %v2275_v53, %v2276_v27  ;;  %v456_v30 = vcombine.high %v4103_v31, %v4103_v31  ;;  %v3418_v16 = vpop.f32.mrb[25].mxu0 }
 0x12a   :  { %v2633_v35 = vrot.slane %v2619_v4, %v3739_v48  ;;  %v2636_v52 = vcombine.low %v2277_v36, %v2278_v60  ;;  %v2637_v10 = vcombine.low %v2279_v29, %v2280_v45  ;;  %v463_v7 = vrot.slane %v4103_v31, %v3739_v48 }
 0x12b   :  { %v2638_v56 = vcombine.low %v2281_v3, %v2282_v22  ;;  %v2645_v57 = vrot.slane %v2635_v33, %v3739_v48  ;;  %v470_v59 = vrot.slane %v456_v30, %v3739_v48  ;;  %v505_v55 = vcombine.high %v4106_v32, %v4106_v32 }
 0x12c   :  { %v2634_v43 = vcombine.low %v2626_v44, %v2633_v35  ;;  %v2652_v51 = vrot.slane %v2636_v52, %v3739_v48  ;;  %v2659_v61 = vrot.slane %v2637_v10, %v3739_v48  ;;  %v471_v13 = vcombine.high %v463_v7, %v463_v7 }
 0x12d   :  { %v2666_v42 = vrot.slane %v2638_v56, %v3739_v48  ;;  %v472_v40 = vcombine.high %v470_v59, %v470_v59  ;;  %v479_v54 = vrot.slane %v463_v7, %v3739_v48  ;;  %v486_v31 = vrot.slane %v470_v59, %v3739_v48 }
 0x12e   :  { %v3072_v39 = vadd.f32 %v2634_v43, %v3875_v25  ;;  %v2667_v63 = vcombine.low %v2645_v57, %v2652_v51  ;;  %v493_v8 = vrot.slane %v471_v13, %v3739_v48  ;;  %v512_v41 = vrot.slane %v4106_v32, %v3739_v48 }
 0x12f   :  { %v2668_v5 = vcombine.low %v2659_v61, %v2666_v42  ;;  %v500_v14 = vrot.slane %v472_v40, %v3739_v48  ;;  %v501_v20 = vcombine.high %v479_v54, %v479_v54  ;;  %v502_v53 = vcombine.high %v486_v31, %v486_v31 }
 0x130   :  { %v3086_v24 = vmax.f32 %v3072_v39, 1e-06  ;;  %v2675_v27 = vrot.slane %v2667_v63, %v3739_v48  ;;  %v503_v36 = vcombine.high %v493_v8, %v493_v8  ;;  %v2283_v29 = vmul.f32 %v4021_v37, %v479_v54 }
 0x131   :  { %v2682_v4 = vrot.slane %v2668_v5, %v3739_v48  ;;  %v504_v25 = vcombine.high %v500_v14, %v500_v14  ;;  %v2284_v44 = vmul.f32 %v4021_v37, %v493_v8  ;;  %v2285_v60 = vmul.f32 %v4021_v37, %v501_v20 }
 0x132   :  { %v3100_v45 = vmul.f32 %v3086_v24, %v3086_v24  ;;  %v2286_v32 = vmul.f32 %v4021_v37, %v503_v36  ;;  %v2287_v3 = vmul.f32 %v4021_v37, %v486_v31  ;;  %v2288_v22 = vmul.f32 %v4021_v37, %v500_v14 }
 0x133   :  { %v2683_v33 = vcombine.low %v2675_v27, %v2682_v4  ;;  %v2289_v30 = vmul.f32 %v4021_v37, %v502_v53  ;;  %v2290_v16 = vmul.f32 %v4021_v37, %v504_v25  ;;  %v2684_v35 = vcombine.low %v2283_v29, %v2284_v44 }
 0x134   :  { %v3114_v52 = vmul.f32 %v3100_v45, %v3086_v24  ;;  %v2685_v10 = vcombine.low %v2285_v60, %v2286_v32  ;;  %v2686_v7 = vcombine.low %v2287_v3, %v2288_v22  ;;  %v519_v56 = vrot.slane %v505_v55, %v3739_v48 }
 0x135   :  { %v3073_v57 = vadd.f32 %v2683_v33, %v3978_v46  ;;  %v2687_v59 = vcombine.low %v2289_v30, %v2290_v16  ;;  %v520_v43 = vcombine.high %v512_v41, %v512_v41  ;;  %v2173_v51 = vrot.slane %v4016_v28, %v3739_v48 }
 0x136   :  { %v3127_v61 = vadd.f32 %v4143_v21, %v3114_v52  ;;  %v2694_v13 = vrot.slane %v2684_v35, %v3739_v48  ;;  %v2701_v42 = vrot.slane %v2685_v10, %v3739_v48  ;;  %v521_v40 = vcombine.high %v519_v56, %v519_v56 }
 0x137   :  { %v3087_v54 = vmax.f32 %v3073_v57, 1e-06  ;;  %v2708_v31 = vrot.slane %v2686_v7, %v3739_v48  ;;  %v2715_v39 = vrot.slane %v2687_v59, %v3739_v48  ;;  %v528_v55 = vrot.slane %v512_v41, %v3739_v48 }
 0x138   :  { %v2716_v46 = vcombine.low %v2694_v13, %v2701_v42  ;;  %v535_v63 = vrot.slane %v519_v56, %v3739_v48  ;;  %v542_v8 = vrot.slane %v520_v43, %v3739_v48  ;;  %v4477_v28 = vrot.slane %v3996_v11, %v3739_v48 }
 0x139   :  { %v3101_v5 = vmul.f32 %v3087_v54, %v3087_v54  ;;  %v2717_v14 = vcombine.low %v2708_v31, %v2715_v39  ;;  %v549_v20 = vrot.slane %v521_v40, %v3739_v48  ;;  %v550_v53 = vcombine.high %v528_v55, %v528_v55 }
 0x13a   :  { %v4203_v21 = vrot.slane %v4477_v28, %v3739_v48  ;;  %v2724_v24 = vrot.slane %v2716_v46, %v3739_v48  ;;  %v552_v27 = vcombine.high %v542_v8, %v542_v8  ;;  %v2291_v41 = vmul.f32 %v4021_v37, %v528_v55 }
 0x13b   :  { %v170_v36 = vadd.f32 %v3970_v58, %v4092_v62  ;;  %v3115_v29 = vmul.f32 %v3101_v5, %v3087_v54  ;;  %v2731_v4 = vrot.slane %v2717_v14, %v3739_v48  ;;  %v2292_v11 = vmul.f32 %v4021_v37, %v542_v8 }
 0x13c   :  { %v2293_v25 = vmul.f32 %v4021_v37, %v550_v53  ;;  %v551_v44 = vcombine.high %v535_v63, %v535_v63  ;;  %v2294_v60 = vmul.f32 %v4021_v37, %v552_v27  ;;  %v2295_v45 = vmul.f32 %v4021_v37, %v535_v63 }
 0x13d   :  { %v4478_v32 = vrot.slane %v3993_v34, %v3739_v48  ;;  %v4479_v3 = vrot.slane %v3980_v1, %v3739_v48  ;;  %v2732_v62 = vcombine.low %v2724_v24, %v2731_v4  ;;  %v2739_v33 = vrot.slane %v2291_v41, %v3739_v48 }
 0x13e   :  { %v2747_v30 = vcombine.low %v2292_v11, %v2293_v25  ;;  %v3128_v16 = vadd.f32 %v3127_v61, %v3115_v29  ;;  %v2748_v35 = vcombine.low %v2294_v60, %v2295_v45  ;;  %v554_v52 = vcombine.high %v170_v36, %v170_v36 }
 0x13f   :  { %v4221_v22 = vcombine.low %v4479_v3, %v4478_v32  ;;  %v561_v10 = vrot.slane %v170_v36, %v3739_v48  ;;  %v4480_v7 = vrot.slane %v4000_v15, %v3739_v48  ;;  %v4481_v34 = vrot.slane %v3998_v12, %v3739_v48 }
 0x140   :  { %v3074_v1 = vadd.f32 %v2732_v62, %v3985_v9  ;;  %v553_v57 = vcombine.high %v549_v20, %v549_v20  ;;  %v2746_v59 = vrot.slane %v2739_v33, %v3739_v48  ;;  %v4482_v43 = vrot.slane %v4014_v26, %v3739_v48 }
 0x141   :  { %v4231_v56 = vcombine.low %v4481_v34, %v4480_v7  ;;  %v2296_v13 = vmul.f32 %v4021_v37, %v549_v20  ;;  %v568_v42 = vrot.slane %v554_v52, %v3739_v48  ;;  %v569_v15 = vcombine.high %v561_v10, %v561_v10 }
 0x142   :  { %v4238_v61 = vcombine.low %v4482_v43, %v2173_v51  ;;  %v577_v40 = vrot.slane %v561_v10, %v3739_v48  ;;  %v3088_v12 = vmax.f32 %v3074_v1, 1e-06  ;;  %v2297_v54 = vmul.f32 %v4021_v37, %v551_v44 }
 0x143   :  { %v2757_v9 = vrot.slane %v2747_v30, %v3739_v48  ;;  %v3075_v31 = vadd.f32 %v2746_v59, %v3988_v17  ;;  %v2764_v39 = vrot.slane %v2748_v35, %v3739_v48  ;;  %v570_v55 = vcombine.high %v568_v42, %v568_v42 }
 0x144   :  { %v584_v26 = vrot.slane %v568_v42, %v3739_v48  ;;  %v591_v51 = vrot.slane %v569_v15, %v3739_v48  ;;  %v3102_v46 = vmul.f32 %v3088_v12, %v3088_v12  ;;  %v599_v8 = vcombine.high %v577_v40, %v577_v40 }
 0x145   :  { %v3089_v63 = vmax.f32 %v3075_v31, 1e-06  ;;  %v2298_v28 = vmul.f32 %v4021_v37, %v553_v57  ;;  %v598_v5 = vrot.slane %v570_v55, %v3739_v48  ;;  %v175_v53 = vadd.f32 %v3970_v58, %v4111_v6 }
 0x146   :  { %v600_v14 = vcombine.high %v584_v26, %v584_v26  ;;  %v601_v20 = vcombine.high %v591_v51, %v591_v51  ;;  %v3116_v17 = vmul.f32 %v3102_v46, %v3088_v12  ;;  %v2749_v24 = vcombine.low %v2296_v13, %v2297_v54 }
 0x147   :  { %v3103_v27 = vmul.f32 %v3089_v63, %v3089_v63  ;;  %v2299_v41 = vmul.f32 %v4021_v37, %v577_v40  ;;  %v2779_v36 = vcombine.low %v2757_v9, %v2764_v39  ;;  %v2300_v29 = vmul.f32 %v4021_v37, %v591_v51 }
 0x148   :  { %v2301_v4 = vmul.f32 %v4021_v37, %v599_v8  ;;  %v2302_v11 = vmul.f32 %v4021_v37, %v601_v20  ;;  %v3129_v44 = vadd.f32 %v3128_v16, %v3116_v17  ;;  %v2303_v60 = vmul.f32 %v4021_v37, %v584_v26 }
 0x149   :  { %v3117_v25 = vmul.f32 %v3103_v27, %v3089_v63  ;;  %v2750_v45 = vcombine.low %v2298_v28, %v2299_v41  ;;  %v2304_v32 = vmul.f32 %v4021_v37, %v598_v5  ;;  %v2305_v6 = vmul.f32 %v4021_v37, %v600_v14 }
 0x14a   :  { %v603_v3 = vcombine.high %v175_v53, %v175_v53  ;;  %v610_v62 = vrot.slane %v175_v53, %v3739_v48  ;;  %v602_v30 = vcombine.high %v598_v5, %v598_v5  ;;  %v2771_v35 = vrot.slane %v2749_v24, %v3739_v48 }
 0x14b   :  { %v3131_v33 = vsel %vm3130_vm1, %v3117_v25, 0.0  ;;  %v2778_v52 = vrot.slane %v2750_v45, %v3739_v48  ;;  %v2797_v16 = vcombine.low %v2302_v11, %v2303_v60  ;;  %v2182_v34 = vrot.slane %v4231_v56, %v3739_v48 }
 0x14c   :  { %v4264_v10 = vadd.f32 %v3131_v33, %v3129_v44  ;;  %v617_v7 = vrot.slane %v603_v3, %v3739_v48  ;;  %v2787_v1 = vrot.slane %v2779_v36, %v3739_v48  ;;  %v618_v59 = vcombine.high %v610_v62, %v610_v62 }
 0x14d   :  { %v2780_v57 = vcombine.low %v2771_v35, %v2778_v52  ;;  %v626_v43 = vrot.slane %v610_v62, %v3739_v48  ;;  %v2796_v13 = vcombine.low %v2300_v29, %v2301_v4  ;;  %v2798_v42 = vcombine.low %v2304_v32, %v2305_v6 }
 0x14e   :  { %v619_v15 = vcombine.high %v617_v7, %v617_v7  ;;  %v633_v40 = vrot.slane %v617_v7, %v3739_v48  ;;  %v640_v54 = vrot.slane %v618_v59, %v3739_v48  ;;  %v2306_v31 = vmul.f32 %v4021_v37, %v602_v30 }
 0x14f   :  { %v2794_v12 = vrot.slane %v2780_v57, %v3739_v48  ;;  %v648_v9 = vcombine.high %v626_v43, %v626_v43  ;;  %v2813_v56 = vrot.slane %v2797_v16, %v3739_v48  ;;  %v2307_v26 = vmul.f32 %v4021_v37, %v626_v43 }
 0x150   :  { %v647_v39 = vrot.slane %v619_v15, %v3739_v48  ;;  %v649_v55 = vcombine.high %v633_v40, %v633_v40  ;;  %v650_v46 = vcombine.high %v640_v54, %v640_v54  ;;  %v2308_v63 = vmul.f32 %v4021_v37, %v640_v54 }
 0x151   :  { %v2795_v51 = vcombine.low %v2787_v1, %v2794_v12  ;;  %v2309_v8 = vmul.f32 %v4021_v37, %v648_v9  ;;  %v2806_v28 = vrot.slane %v2796_v13, %v3739_v48  ;;  %v2311_v5 = vmul.f32 %v4021_v37, %v633_v40 }
 0x152   :  { %v2312_v14 = vmul.f32 %v4021_v37, %v647_v39  ;;  %v2189_v20 = vrot.slane %v4238_v61, %v3739_v48  ;;  %v2310_v17 = vmul.f32 %v4021_v37, %v650_v46  ;;  %v2313_v24 = vmul.f32 %v4021_v37, %v649_v55 }
 0x153   :  { %v3076_v53 = vadd.f32 %v2795_v51, %v3991_v18  ;;  %v2799_v27 = vcombine.low %v2306_v31, %v2307_v26  ;;  %v2828_v41 = vcombine.low %v2806_v28, %v2813_v56  ;;  %v2820_v36 = vrot.slane %v2798_v42, %v3739_v48 }
 0x154   :  { %v180_v29 = vadd.f32 %v3970_v58, %v4121_v49  ;;  %v4293_v4 = vmul.f32 %v4203_v21, %v3965_v47  ;;  %v651_v11 = vcombine.high %v647_v39, %v647_v39  ;;  %v2845_v25 = vcombine.low %v2308_v63, %v2309_v8 }
 0x155   :  { %v2827_v61 = vrot.slane %v2799_v27, %v3739_v48  ;;  %v2846_v18 = vcombine.low %v2310_v17, %v2311_v5  ;;  %v3090_v44 = vmax.f32 %v3076_v53, 1e-06  ;;  %v4299_v32 = vmul.f32 %v4221_v22, %v3965_v47 }
 0x156   :  { %v652_v60 = vcombine.high %v180_v29, %v180_v29  ;;  %v659_v45 = vrot.slane %v180_v29, %v3739_v48  ;;  %v3133_v6 = vrot.slane %v4264_v10, 4  ;;  %v2847_v3 = vcombine.low %v2312_v14, %v2313_v24 }
 0x157   :  { %v2829_v49 = vcombine.low %v2820_v36, %v2827_v61  ;;  %v4302_v62 = vcombine.low %v2182_v34, %v2189_v20  ;;  %v2862_v21 = vrot.slane %v2846_v18, %v3739_v48  ;;  %v2836_v52 = vrot.slane %v2828_v41, %v3739_v48 }
 0x158   :  { %v666_v33 = vrot.slane %v652_v60, %v3739_v48  ;;  %v667_v30 = vcombine.high %v659_v45, %v659_v45  ;;  %v675_v35 = vrot.slane %v659_v45, %v3739_v48  ;;  %v2855_v22 = vrot.slane %v2845_v25, %v3739_v48 }
 0x159   :  { %v2843_v16 = vrot.slane %v2829_v49, %v3739_v48  ;;  %v2314_v7 = vmul.f32 %v4021_v37, %v651_v11  ;;  %v3104_v1 = vmul.f32 %v3090_v44, %v3090_v44  ;;  %v2869_v42 = vrot.slane %v2847_v3, %v3739_v48 }
 0x15a   :  { %v668_v57 = vcombine.high %v666_v33, %v666_v33  ;;  %v682_v34 = vrot.slane %v666_v33, %v3739_v48  ;;  %v689_v59 = vrot.slane %v667_v30, %v3739_v48  ;;  %v697_v13 = vcombine.high %v675_v35, %v675_v35 }
 0x15b   :  { %v2844_v43 = vcombine.low %v2836_v52, %v2843_v16  ;;  %v185_v15 = vadd.f32 %v3970_v58, %v4131_v2  ;;  %v2877_v40 = vcombine.low %v2855_v22, %v2862_v21  ;;  %v2315_v56 = vmul.f32 %v4021_v37, %v675_v35 }
 0x15c   :  { %v696_v12 = vrot.slane %v668_v57, %v3739_v48  ;;  %v698_v54 = vcombine.high %v682_v34, %v682_v34  ;;  %v699_v9 = vcombine.high %v689_v59, %v689_v59  ;;  %v2316_v39 = vmul.f32 %v4021_v37, %v689_v59 }
 0x15d   :  { %v3077_v31 = vadd.f32 %v2844_v43, %v4004_v19  ;;  %v2317_v55 = vmul.f32 %v4021_v37, %v697_v13  ;;  %v2319_v51 = vmul.f32 %v4021_v37, %v682_v34  ;;  %v3118_v63 = vmul.f32 %v3104_v1, %v3090_v44 }
 0x15e   :  { %v2318_v26 = vmul.f32 %v4021_v37, %v699_v9  ;;  %v2320_v46 = vmul.f32 %v4021_v37, %v696_v12  ;;  %v2321_v2 = vmul.f32 %v4021_v37, %v698_v54  ;;  %v2848_v28 = vcombine.low %v2314_v7, %v2315_v56 }
 0x15f   :  { %v3091_v8 = vmax.f32 %v3077_v31, 1e-06  ;;  %v701_v5 = vcombine.high %v185_v15, %v185_v15  ;;  %v700_v14 = vcombine.high %v696_v12, %v696_v12  ;;  %v2894_v19 = vcombine.low %v2316_v39, %v2317_v55 }
 0x160   :  { %v2895_v20 = vcombine.low %v2318_v26, %v2319_v51  ;;  %v708_v53 = vrot.slane %v185_v15, %v3739_v48  ;;  %v2885_v17 = vrot.slane %v2877_v40, %v3739_v48  ;;  %v2876_v27 = vrot.slane %v2848_v28, %v3739_v48 }
 0x161   :  { %v3105_v24 = vmul.f32 %v3091_v8, %v3091_v8  ;;  %v715_v41 = vrot.slane %v701_v5, %v3739_v48  ;;  %v2896_v36 = vcombine.low %v2320_v46, %v2321_v2  ;;  %v2904_v45 = vrot.slane %v2894_v19, %v3739_v48 }
 0x162   :  { %v2911_v29 = vrot.slane %v2895_v20, %v3739_v48  ;;  %v716_v11 = vcombine.high %v708_v53, %v708_v53  ;;  %v724_v61 = vrot.slane %v708_v53, %v3739_v48  ;;  %v2878_v18 = vcombine.low %v2869_v42, %v2876_v27 }
 0x163   :  { %v3119_v25 = vmul.f32 %v3105_v24, %v3091_v8  ;;  %v717_v44 = vcombine.high %v715_v41, %v715_v41  ;;  %v731_v60 = vrot.slane %v715_v41, %v3739_v48  ;;  %v2322_v21 = vmul.f32 %v4021_v37, %v700_v14 }
 0x164   :  { %v738_v49 = vrot.slane %v716_v11, %v3739_v48  ;;  %v746_v3 = vcombine.high %v724_v61, %v724_v61  ;;  %v2892_v30 = vrot.slane %v2878_v18, %v3739_v48  ;;  %v2323_v22 = vmul.f32 %v4021_v37, %v724_v61 }
 0x165   :  { %v3139_v33 = vadd.f32 %v3119_v25, %v3118_v63  ;;  %v745_v35 = vrot.slane %v717_v44, %v3739_v48  ;;  %v747_v52 = vcombine.high %v731_v60, %v731_v60  ;;  %v2926_v34 = vcombine.low %v2904_v45, %v2911_v29 }
 0x166   :  { %v748_v16 = vcombine.high %v738_v49, %v738_v49  ;;  %v2324_v7 = vmul.f32 %v4021_v37, %v738_v49  ;;  %v2325_v1 = vmul.f32 %v4021_v37, %v746_v3  ;;  %v2893_v57 = vcombine.low %v2885_v17, %v2892_v30 }
 0x167   :  { %v749_v59 = vcombine.high %v745_v35, %v745_v35  ;;  %v2327_v43 = vmul.f32 %v4021_v37, %v731_v60  ;;  %v2328_v42 = vmul.f32 %v4021_v37, %v745_v35  ;;  %v2329_v15 = vmul.f32 %v4021_v37, %v747_v52 }
 0x168   :  { %v2326_v13 = vmul.f32 %v4021_v37, %v748_v16  ;;  %v2897_v40 = vcombine.low %v2322_v21, %v2323_v22  ;;  %v3078_v12 = vadd.f32 %v2893_v57, %v4007_v50  ;;  %v2918_v54 = vrot.slane %v2896_v36, %v3739_v48 }
 0x169   :  { %v2943_v9 = vcombine.low %v2324_v7, %v2325_v1  ;;  %v190_v31 = vadd.f32 %v3970_v58, %v4141_v0  ;;  %v2945_v55 = vcombine.low %v2328_v42, %v2329_v15  ;;  %v195_v26 = vadd.f32 %v3970_v58, %v4154_v38 }
 0x16a   :  { %v2925_v56 = vrot.slane %v2897_v40, %v3739_v48  ;;  %v2944_v39 = vcombine.low %v2326_v13, %v2327_v43  ;;  %v2934_v51 = vrot.slane %v2926_v34, %v3739_v48  ;;  %v3092_v46 = vmax.f32 %v3078_v12, 1e-06  ;;  %v3166_v34 = vld [vmem:[%s4471_s5 + $0x8] sm:$0xff] }
 0x16b   :  { %v750_v2 = vcombine.high %v190_v31, %v190_v31  ;;  %v757_v63 = vrot.slane %v190_v31, %v3739_v48  ;;  %v2953_v8 = vrot.slane %v2943_v9, %v3739_v48  ;;  %v2330_v28 = vmul.f32 %v4021_v37, %v749_v59  ;;  %v3167_v9 = vld [vmem:[%s4471_s5 + $0x10] sm:$0xff]  ;;  %v3168_v31 = vld [vmem:[%s4471_s5 + $0x18] sm:$0xff] }
 0x16c   :  { %v2927_v50 = vcombine.low %v2918_v54, %v2925_v56  ;;  %v805_v0 = vrot.slane %v195_v26, %v3739_v48  ;;  %v3106_v5 = vmul.f32 %v3092_v46, %v3092_v46  ;;  %v2960_v38 = vrot.slane %v2944_v39, %v3739_v48 }
 0x16d   :  { %v764_v14 = vrot.slane %v750_v2, %v3739_v48  ;;  %v765_v19 = vcombine.high %v757_v63, %v757_v63  ;;  %v773_v20 = vrot.slane %v757_v63, %v3739_v48  ;;  %v2967_v53 = vrot.slane %v2945_v55, %v3739_v48 }
 0x16e   :  { %v2941_v58 = vrot.slane %v2927_v50, %v3739_v48  ;;  %v806_v17 = vcombine.high %v805_v0, %v805_v0  ;;  %v3120_v24 = vmul.f32 %v3106_v5, %v3092_v46  ;;  %v813_v25 = vrot.slane %v805_v0, %v3739_v48 }
 0x16f   :  { %v766_v27 = vcombine.high %v764_v14, %v764_v14  ;;  %v780_v41 = vrot.slane %v764_v14, %v3739_v48  ;;  %v787_v36 = vrot.slane %v765_v19, %v3739_v48  ;;  %v795_v11 = vcombine.high %v773_v20, %v773_v20 }
 0x170   :  { %v2942_v29 = vcombine.low %v2934_v51, %v2941_v58  ;;  %v2331_v61 = vmul.f32 %v4021_v37, %v773_v20  ;;  %v3140_v18 = vadd.f32 %v3139_v33, %v3120_v24  ;;  %v820_v57 = vrot.slane %v806_v17, %v3739_v48 }
 0x171   :  { %v794_v44 = vrot.slane %v766_v27, %v3739_v48  ;;  %v796_v60 = vcombine.high %v780_v41, %v780_v41  ;;  %v797_v45 = vcombine.high %v787_v36, %v787_v36  ;;  %v2332_v3 = vmul.f32 %v4021_v37, %v787_v36 }
 0x172   :  { %v3079_v49 = vadd.f32 %v2942_v29, %v4010_v23  ;;  %v2333_v21 = vmul.f32 %v4021_v37, %v795_v11  ;;  %v2335_v30 = vmul.f32 %v4021_v37, %v780_v41  ;;  %v2946_v7 = vcombine.low %v2330_v28, %v2331_v61  ;;  %v3165_v23 = vld [vmem:[%s4471_s5] sm:$0xff]  ;;  %v3171_v61 = vld [vmem:[%s4471_s5 + $0x30] sm:$0xff] }
 0x173   :  { %v798_v35 = vcombine.high %v794_v44, %v794_v44  ;;  %v2334_v52 = vmul.f32 %v4021_v37, %v797_v45  ;;  %v2336_v16 = vmul.f32 %v4021_v37, %v794_v44  ;;  %v2337_v22 = vmul.f32 %v4021_v37, %v796_v60  ;;  %v3174_v45 = vld [vmem:[%s4471_s5 + $0x48] sm:$0xff] }
 0x174   :  { %v3093_v33 = vmax.f32 %v3079_v49, 1e-06  ;;  %v2992_v1 = vcombine.low %v2332_v3, %v2333_v21  ;;  %v2339_v42 = vmul.f32 %v4021_v37, %v813_v25  ;;  %v2975_v15 = vcombine.low %v2953_v8, %v2960_v38 }
 0x175   :  { %v2993_v59 = vcombine.low %v2334_v52, %v2335_v30  ;;  %v2994_v43 = vcombine.low %v2336_v16, %v2337_v22  ;;  %v2338_v13 = vmul.f32 %v4021_v37, %v798_v35  ;;  %v2974_v12 = vrot.slane %v2946_v7, %v3739_v48  ;;  %v3175_v22 = vld [vmem:[%s4471_s5 + $0x50] sm:$0xff] }
 0x176   :  { %v3107_v40 = vmul.f32 %v3093_v33, %v3093_v33  ;;  %v2340_v54 = vmul.f32 %v4021_v37, %v820_v57  ;;  %v3002_v56 = vrot.slane %v2992_v1, %v3739_v48  ;;  %v3479_v26 = vpack.c.bf16 %v3166_v34, %v3165_v23 }
 0x177   :  { %v3009_v39 = vrot.slane %v2993_v59, %v3739_v48  ;;  %v2995_v55 = vcombine.low %v2338_v13, %v2339_v42  ;;  %v3134_v51 = vadd.f32 %v3133_v6, %v4264_v10  ;;  %v2976_v37 = vcombine.low %v2967_v53, %v2974_v12  ;;  %v3169_v10 = vld [vmem:[%s4471_s5 + $0x20] sm:$0xff]  ;;  %v3170_v6 = vld [vmem:[%s4471_s5 + $0x28] sm:$0xff]  ;;  %v3179_v12 = vld [vmem:[%s4471_s5 + $0x70] sm:$0xff] }
 0x178   :  { %v3121_v46 = vmul.f32 %v3107_v40, %v3093_v33  ;;  %v3047_v2 = vrot.slane %v2340_v54, %v3739_v48  ;;  %v3016_v50 = vrot.slane %v2994_v43, %v3739_v48  ;;  %3480 = vmatpush3.bf16.msra.mxu1 %v3479_v26  ;;  %v3482_v28 = vpack.c.bf16 %v3168_v31, %v3167_v9  ;;  %v3176_v33 = vld [vmem:[%s4471_s5 + $0x58] sm:$0xff]  ;;  %v3177_v59 = vld [vmem:[%s4471_s5 + $0x60] sm:$0xff]  ;;  %v3178_v43 = vld [vmem:[%s4471_s5 + $0x68] sm:$0xff] }
 0x179   :  { %v3024_v63 = vcombine.low %v3002_v56, %v3009_v39  ;;  %v3023_v8 = vrot.slane %v2995_v55, %v3739_v48  ;;  %v2983_v0 = vrot.slane %v2975_v15, %v3739_v48  ;;  %v2990_v14 = vrot.slane %v2976_v37, %v3739_v48  ;;  %v3180_v54 = vld [vmem:[%s4471_s5 + $0x78] sm:$0xff] }
 0x17a   :  { %v3141_v5 = vadd.f32 %v3140_v18, %v3121_v46  ;;  %v3054_v19 = vrot.slane %v3047_v2, %v3739_v48  ;;  %v4483_v20 = vmov 0.0|0.0   ;;  %v2231_v24 = vmul.f32 %v4302_v62, %v3965_v47 }
 0x17b   :  { %3481 = vmatprep.subr.bf16.mxu1 %v4483_v20  ;;  %v3025_v58 = vcombine.low %v3016_v50, %v3023_v8  ;;  %v2991_v38 = vcombine.low %v2983_v0, %v2990_v14  ;;  %v3032_v17 = vrot.slane %v3024_v63, %v3739_v48  ;;  %v3485_v41 = vpack.c.bf16 %v3170_v6, %v3169_v10 }
 0x17c   :  { %v3082_v53 = vadd.f32 %v3054_v19, %v4293_v4  ;;  %3483 = vmatpush3.bf16.msra.mxu1 %v3482_v28  ;;  %v3135_v36 = vrot.slane %v3134_v51, 2  ;;  %v3172_v4 = vld [vmem:[%s4471_s5 + $0x38] sm:$0xff]  ;;  %v3494_v57 = vpack.c.bf16 %v3176_v33, %v3175_v22  ;;  %v3497_v15 = vpack.c.bf16 %v3178_v43, %v3177_v59 }
 0x17d   :  { %v3039_v27 = vrot.slane %v3025_v58, %v3739_v48  ;;  %v3080_v29 = vadd.f32 %v2991_v38, %v4299_v32  ;;  %3484 = vmatprep.subr.bf16.mxu1 %v4483_v20  ;;  %v3488_v48 = vpack.c.bf16 %v3172_v4, %v3171_v61  ;;  %v3173_v32 = vld [vmem:[%s4471_s5 + $0x40] sm:$0xff]  ;;  %v3500_v56 = vpack.c.bf16 %v3180_v54, %v3179_v12 }
 0x17e   :  { %v3096_v11 = vmax.f32 %v3082_v53, 1e-06  ;;  %v3136_v18 = vadd.f32 %v3135_v36, %v3134_v51  ;;  %v3491_v30 = vpack.c.bf16 %v3174_v45, %v3173_v32 }
 0x17f   :  { %v3040_v25 = vcombine.low %v3032_v17, %v3039_v27  ;;  %v3094_v47 = vmax.f32 %v3080_v29, 1e-06 }
 0x180   :  { %3486 = vmatpush3.bf16.msra.mxu1 %v3485_v41  ;;  %v3110_v60 = vmul.f32 %v3096_v11, %v3096_v11  ;;  %v3137_v35 = vrot.slane %v3136_v18, 1 }
 0x181   :  { %v3081_v62 = vadd.f32 %v3040_v25, %v2231_v24  ;;  %v3108_v44 = vmul.f32 %v3094_v47, %v3094_v47  ;;  %3487 = vmatprep.subr.bf16.mxu1 %v4483_v20 }
 0x182   :  { %v3124_v16 = vmul.f32 %v3110_v60, %v3096_v11  ;;  %v3138_v23 = vadd.f32 %v3137_v35, %v3136_v18 }
 0x183   :  { %v3095_v49 = vmax.f32 %v3081_v62, 1e-06  ;;  %v3122_v3 = vmul.f32 %v3108_v44, %v3094_v47 }
 0x184   :  { %3489 = vmatpush3.bf16.msra.mxu1 %v3488_v48  ;;  %v3144_v34 = vsel %vm3130_vm1, %v3124_v16, 0.0  ;;  %v3153_v40 = vmul.f32 0.020408163, %v3138_v23 }
 0x185   :  { %v3109_v21 = vmul.f32 %v3095_v49, %v3095_v49  ;;  %v3142_v52 = vadd.f32 %v3141_v5, %v3122_v3  ;;  %3490 = vmatprep.subr.bf16.mxu1 %v4483_v20 }
 0x186   :  { %3521 = vlog2.f32 %v3153_v40 }
 0x187   :  { %v3123_v7 = vmul.f32 %v3109_v21, %v3095_v49 }
 0x188   :  { %3492 = vmatpush3.bf16.msra.mxu1 %v3491_v30 }
 0x189   :  { %v3143_v1 = vadd.f32 %v3142_v52, %v3123_v7  ;;  %3493 = vmatprep.subr.bf16.mxu1 %v4483_v20 }
 0x18b   :  { %v3145_v13 = vadd.f32 %v3144_v34, %v3143_v1 }
 0x18c   :  { %3495 = vmatpush3.bf16.msra.mxu1 %v3494_v57 }
 0x18d   :  { %v3146_v42 = vrot.slane %v3145_v13, 4  ;;  %3496 = vmatprep.subr.bf16.mxu1 %v4483_v20 }
 0x18f   :  { %v3147_v9 = vadd.f32 %v3146_v42, %v3145_v13 }
 0x190   :  { %3498 = vmatpush3.bf16.msra.mxu1 %v3497_v15  ;;  %v3522_v46 = vpop.eup %3521 }
 0x191   :  { %v3148_v31 = vrot.slane %v3147_v9, 2  ;;  %3499 = vmatprep.subr.bf16.mxu1 %v4483_v20  ;;  %v3156_v37 = vmul.f32 0.6931472, %v3522_v46  ;;  %v3301_v20 = vld [vmem:[%s4472_s6] ss:$0 sm:$0xff] }
 0x193   :  { %v3149_v39 = vadd.f32 %v3148_v31, %v3147_v9  ;;  %v3159_v2 = vmul.f32 0.33333334, %v3156_v37 }
 0x194   :  { %3501 = vmatpush3.bf16.msra.mxu1 %v3500_v56 }
 0x195   :  { %v3150_v55 = vrot.slane %v3149_v39, 1  ;;  %v3161_v8 = vmul.f32 1.442695, %v3159_v2 }
 0x197   :  { %v3151_v26 = vadd.f32 %v3150_v55, %v3149_v39 }
 0x199   :  { %v3154_v51 = vmul.f32 0.020408163, %v3151_v26 }
 0x19b   :  { %3523 = vlog2.f32 %v3154_v51 }
 0x19c   :  { %3525 = vpow2.f32 %v3161_v8 }
 0x1a5   :  { %v3524_v63 = vpop.eup %3523 }
 0x1a6   :  { %v3158_v50 = vmul.f32 0.6931472, %v3524_v63  ;;  %v3526_v5 = vpop.eup %3525 }
 0x1a8   :  { %v3160_v28 = vmul.f32 0.33333334, %v3158_v50 }
 0x1aa   :  { %v3163_v0 = vmul.f32 1.442695, %v3160_v28 }
 0x1ac   :  { %3527 = vpow2.f32 %v3163_v0 }
 0x1b6   :  { %v3528_v14 = vpop.eup %3527 }
 0x1b7   :  { %v3191_v19 = vsel %vm3190_vm2, %v3528_v14, %v3526_v5 }
 0x1b8   :  { %3452 = vmatmul.mubr.f32.vlgmr.msra.gmra.mrb[0].mxu1 %v3191_v19 }
 0x28b   :  { %v3259_v10 = vpop.f32.mrb[0].mxu1 }
 0x28c   :  { %v3260_v6 = vadd.f32 %v3301_v20, %v3259_v10  ;;  %v3453_v58 = vpop.f32.mrb[1].mxu1 }
 0x28e   :  { %v3263_v38 = vmul.f32 %v3260_v6, %v3260_v6 }
 0x290   :  { %v3265_v53 = vsel %vm3264_vm3, %v3263_v38, 0.0 }
 0x291   :  { %3266 = vadd.xlane.f32.xlu0 %v3265_v53 }
 0x31e   :  { %v3267_v17 = vpop.xlane.xlu0 %3266 }
 0x31f   :  { %3529 = vrsqrt.f32 %v3267_v17 }
 0x329   :  { %v3530_v24 = vpop.eup %3529 }
 0x32a   :  { %v3269_v27 = vmul.f32 %v3530_v24, %v3260_v6 }
 0x32c   :  { %3270 = vst.msk [vmem:[#allocation3] sm:$0x3] %vm3264_vm3, %v3269_v27 }
 0x32d   :  { %3542 = shalt.err (!%p3539_p4)
}
 0x32e   :  { %s3543_s26 = scalar_lea.hbm %s4474_s8, 32 }
 0x32f   :  { %p3544_p5 = scmp.ne.s32.totalorder %s4474_s8, %s3543_s26  ;;  %p3547_p6 = scmp.lt.u32.totalorder %s3543_s26, %s4474_s8 }
 0x331   :  { %p3549_p7 = pnand %p3547_p6, %p3544_p5 }
 0x333   :  { %3552 = shalt.err (!%p3549_p7)
}
 0x334   :  { %3280 = dma.vmem_to_hbm [thread:$0]  %s3278_s23, 32, %s4474_s8, [#allocation4]  }
 0x335   :  { %3553 = dma.done.wait [#allocation4], 32  }
 0x336   :  { %3554 = vsyncadd [#allocation4], 4294967264 }
 0x337   :  { %3284 = vsyncpa [#allocation4], 1 }

</bundles_post_ra>
